<compile_context>
chip_gen: v6e
topology: v6e:2x2x1
jax: 0.10.0
libtpu: 0.0.40
codegen_flags: <defaults>
</compile_context>

<pallas_src>
import math

import jax
import jax.numpy as jnp
from jax import lax
from jax.experimental import pallas as pl
from jax.experimental.pallas import tpu as pltpu

H_IN = 42                      # input spatial size implied by dim=196 (42/3=14, 14*14=196)
PAD = 2
H_PADDED = H_IN + 2 * PAD      # 46
K = 5
POOL = 3
H_OUT = H_IN // POOL           # 14
SEQ_C = H_OUT * H_OUT          # 196
NUM_TOKENS = 17                # 1 region token + 16 channel maps
NUM_HEADS = 4
HEAD_DIM = SEQ_C // NUM_HEADS  # 49
MLP_HIDDEN = 4 * SEQ_C         # 784
DEPTH = 12
LN_EPS = 1e-5
C_TOTAL = 3 + 5 + 8            # 16 conv output channels (concat order: c1, c2, c3)
WIDE = C_TOTAL * H_PADDED      # 736 lanes: all channels folded into the matmul N dim
SEL_W = C_TOTAL * H_OUT        # 224 lanes of pooled output


# ---------------------------------------------------------------------------
# Kernel 1: fused Conv(5x5,'same') + ReLU + MaxPool(3,3) for all three branches
# and all 16 output channels, one batch element per grid step.
# ---------------------------------------------------------------------------
def _conv_pool_kernel(x_ref, dsh_ref, mk_ref, bias_ref, rsel_ref, csel_ref, out_ref):
    xc = x_ref[0]                                                    # (46, 138)
    acc = jnp.zeros((H_PADDED, WIDE), jnp.float32)
    for dy in range(K):
        # Row shift: a[y, :] = xc[y+dy, :]  (all 3 planes at once)
        a = jnp.dot(dsh_ref[dy], xc, preferred_element_type=jnp.float32)       # (46,138)
        # Banded weight matmul folds kernel columns + input plane + out channel.
        acc = acc + jnp.dot(a, mk_ref[dy], preferred_element_type=jnp.float32)  # (46,736)
    # NOTE: bias + ReLU also touch the padded border rows/cols (>= 42) of each
    # 46-wide channel block; harmless because the pooling selections below never
    # read those rows/cols (max index used is 41).
    act = jnp.maximum(acc + bias_ref[...], 0.0)
    # 3-row window max at stride 3 (rows 3*yo + d), selects 14 rows.
    rp = jnp.dot(rsel_ref[0], act, preferred_element_type=jnp.float32)          # (14,736)
    rp = jnp.maximum(rp, jnp.dot(rsel_ref[1], act, preferred_element_type=jnp.float32))
    rp = jnp.maximum(rp, jnp.dot(rsel_ref[2], act, preferred_element_type=jnp.float32))
    # 3-col window max at stride 3 within each channel block -> (14, 16*14).
    out = jnp.dot(rp, csel_ref[0], preferred_element_type=jnp.float32)          # (14,224)
    out = jnp.maximum(out, jnp.dot(rp, csel_ref[1], preferred_element_type=jnp.float32))
    out = jnp.maximum(out, jnp.dot(rp, csel_ref[2], preferred_element_type=jnp.float32))
    out_ref[0] = out


def conv_stage(x1, x2, x3, conv_params):
    """x*: (B,1,42,42). Returns merged (B,16,14,14) == torch.cat((c1,c2,c3),1)."""
    B = x1.shape[0]

    def pad_plane(x):
        return jnp.pad(x.astype(jnp.float32)[:, 0], ((0, 0), (PAD, PAD), (PAD, PAD)))

    xcat = jnp.concatenate([pad_plane(x1), pad_plane(x2), pad_plane(x3)], axis=-1)

    # Row-shift matrices: (Dsh[dy] @ a)[y, :] = a[y+dy, :].
    Dsh = jnp.stack([jnp.eye(H_PADDED, k=dy, dtype=jnp.float32) for dy in range(K)])
    # Column-shift matrices: (a @ E[dx])[:, x] = a[:, x+dx].
    E = jnp.stack([jnp.eye(H_PADDED, k=-dx, dtype=jnp.float32) for dx in range(K)])

    # Banded weight matrices: input planes folded into K (138), channels into N (736).
    Mk = jnp.zeros((K, 3 * H_PADDED, WIDE), jnp.float32)
    bias_wide = jnp.zeros((1, WIDE), jnp.float32)
    off = 0
    for p_idx, cp in enumerate(conv_params):
        w = cp['w'].astype(jnp.float32)                     # (c_p, 1, 5, 5)
        band = jnp.einsum('cyx,xab->ycab', w[:, 0], E)      # (K, c_p, 46, 46)
        for cl in range(w.shape[0]):
            co = off + cl
            Mk = Mk.at[:, p_idx * H_PADDED:(p_idx + 1) * H_PADDED,
                       co * H_PADDED:(co + 1) * H_PADDED].set(band[:, cl])
            bias_wide = bias_wide.at[0, co * H_PADDED:(co + 1) * H_PADDED].set(
                cp['b'][cl].astype(jnp.float32))
        off += w.shape[0]

    # Pooling window/stride selection matrices.
    yo = jnp.arange(H_OUT)
    Rsel = jnp.zeros((POOL, H_OUT, H_PADDED), jnp.float32)
    for d in range(POOL):
        Rsel = Rsel.at[d, yo, POOL * yo + d].set(1.0)
    co_i = jnp.arange(C_TOTAL)
    rows = (co_i[:, None] * H_PADDED + POOL * yo[None, :]).reshape(-1)
    cols = (co_i[:, None] * H_OUT + yo[None, :]).reshape(-1)
    Csel = jnp.zeros((POOL, WIDE, SEL_W), jnp.float32)
    for d in range(POOL):
        Csel = Csel.at[d, rows + d, cols].set(1.0)

    pooled = pl.pallas_call(
        _conv_pool_kernel,
        out_shape=jax.ShapeDtypeStruct((B, H_OUT, SEL_W), jnp.float32),
        grid=(B,),
        in_specs=[
            pl.BlockSpec((1, H_PADDED, 3 * H_PADDED), lambda b: (b, 0, 0)),
            pl.BlockSpec((K, H_PADDED, H_PADDED), lambda b: (0, 0, 0)),
            pl.BlockSpec((K, 3 * H_PADDED, WIDE), lambda b: (0, 0, 0)),
            pl.BlockSpec((1, WIDE), lambda b: (0, 0)),
            pl.BlockSpec((POOL, H_OUT, H_PADDED), lambda b: (0, 0, 0)),
            pl.BlockSpec((POOL, WIDE, SEL_W), lambda b: (0, 0, 0)),
        ],
        out_specs=pl.BlockSpec((1, H_OUT, SEL_W), lambda b: (b, 0, 0)),
        compiler_params=pltpu.CompilerParams(
            dimension_semantics=("parallel",),
            vmem_limit_bytes=32 * 1024 * 1024),
    )(xcat, Dsh, Mk, bias_wide, Rsel, Csel)

    # (B, 14, 16*14) -> (B, 16, 14, 14), channel order c1|c2|c3.
    return pooled.reshape(B, H_OUT, C_TOTAL, H_OUT).transpose(0, 2, 1, 3)


# ---------------------------------------------------------------------------
# Kernel 2: all 12 transformer ("LG") blocks, grid over depth. Residual stream
# lives in a VMEM scratch; per-block weights stream (bf16) behind the compute.
# ---------------------------------------------------------------------------
def _lg_stack_kernel(x_ref, mask_ref,
                     g1_ref, b1_ref, wqkv_ref, bqkv_ref, wo_ref, bo_ref,
                     g2_ref, b2_ref, w1_ref, bm1_ref, w2_ref, bm2_ref,
                     out_ref, x_sc):
    d = pl.program_id(0)

    @pl.when(d == 0)
    def _():
        x_sc[...] = x_ref[...]

    x = x_sc[...]                                           # (B*17, 196) f32 residual

    # LayerNorm 1
    mu = jnp.mean(x, axis=-1, keepdims=True)
    xc = x - mu
    var = jnp.mean(xc * xc, axis=-1, keepdims=True)
    xn = xc * lax.rsqrt(var + LN_EPS) * g1_ref[0] + b1_ref[0]

    # Fused QKV projection: bf16 operands on the MXU, f32 accumulation.
    qkv = jnp.dot(xn.astype(jnp.bfloat16), wqkv_ref[0],
                  preferred_element_type=jnp.float32) + bqkv_ref[0]   # (B*17, 588)

    scale = 1.0 / math.sqrt(HEAD_DIM)
    mask = mask_ref[...]
    o_heads = []
    for h in range(NUM_HEADS):
        q = qkv[:, h * HEAD_DIM:(h + 1) * HEAD_DIM]
        k = qkv[:, SEQ_C + h * HEAD_DIM:SEQ_C + (h + 1) * HEAD_DIM]
        v = qkv[:, 2 * SEQ_C + h * HEAD_DIM:2 * SEQ_C + (h + 1) * HEAD_DIM]
        s = lax.dot_general(q, k, (((1,), (1,)), ((), ())),
                            preferred_element_type=jnp.float32) * scale
        s = s + mask                                        # block-diag: no cross-batch attn
        s = s - jnp.max(s, axis=-1, keepdims=True)
        p = jnp.exp(s)
        p = p / jnp.sum(p, axis=-1, keepdims=True)
        o_heads.append(jnp.dot(p, v, preferred_element_type=jnp.float32))
    o = jnp.concatenate(o_heads, axis=-1)                   # (B*17, 196)
    attn = jnp.dot(o.astype(jnp.bfloat16), wo_ref[0],
                   preferred_element_type=jnp.float32) + bo_ref[0]
    x = x + attn

    # LayerNorm 2 + MLP (tanh-approx GELU)
    mu2 = jnp.mean(x, axis=-1, keepdims=True)
    xc2 = x - mu2
    var2 = jnp.mean(xc2 * xc2, axis=-1, keepdims=True)
    xn2 = xc2 * lax.rsqrt(var2 + LN_EPS) * g2_ref[0] + b2_ref[0]
    h1 = jnp.dot(xn2.astype(jnp.bfloat16), w1_ref[0],
                 preferred_element_type=jnp.float32) + bm1_ref[0]
    c0 = 0.7978845608028654
    h1 = 0.5 * h1 * (1.0 + jnp.tanh(c0 * (h1 + 0.044715 * h1 * h1 * h1)))
    h2 = jnp.dot(h1.astype(jnp.bfloat16), w2_ref[0],
                 preferred_element_type=jnp.float32) + bm2_ref[0]
    x = x + h2

    x_sc[...] = x

    @pl.when(d == pl.num_programs(0) - 1)
    def _():
        out_ref[...] = x


def lg_stack(x_tokens, bp):
    """x_tokens: (B, 17, 196) f32; bp: dict of depth-stacked block parameters."""
    B, N, C = x_tokens.shape
    BT = B * N
    x2d = x_tokens.reshape(BT, C).astype(jnp.float32)
    batch_id = jnp.repeat(jnp.arange(B), N)
    mask = jnp.where(batch_id[:, None] == batch_id[None, :],
                     0.0, -1e30).astype(jnp.float32)

    stacked = [bp['g1'], bp['b1'], bp['wqkv'], bp['bqkv'], bp['wo'], bp['bo'],
               bp['g2'], bp['b2'], bp['w1'], bp['bm1'], bp['w2'], bp['bm2']]

    def depth_spec(arr):
        return pl.BlockSpec((1,) + arr.shape[1:], lambda d: (d, 0, 0))

    in_specs = [pl.BlockSpec((BT, C), lambda d: (0, 0)),
                pl.BlockSpec((BT, BT), lambda d: (0, 0))]
    in_specs += [depth_spec(a) for a in stacked]

    out = pl.pallas_call(
        _lg_stack_kernel,
        out_shape=jax.ShapeDtypeStruct((BT, C), jnp.float32),
        grid=(DEPTH,),
        in_specs=in_specs,
        out_specs=pl.BlockSpec((BT, C), lambda d: (0, 0)),
        scratch_shapes=[pltpu.VMEM((BT, C), jnp.float32)],
        compiler_params=pltpu.CompilerParams(
            dimension_semantics=("arbitrary",),
            vmem_limit_bytes=16 * 1024 * 1024),
    )(x2d, mask, *stacked)
    return out.reshape(B, N, C)


# ---------------------------------------------------------------------------
# Deterministic parameter init (shapes from the module __init__).
# ---------------------------------------------------------------------------
def init_params(key):
    cnt = [0]

    def nrm(shape, scale, dtype=jnp.float32):
        cnt[0] += 1
        k = jax.random.fold_in(key, cnt[0])
        return (scale * jax.random.normal(k, shape, jnp.float32)).astype(dtype)

    params = {'conv': []}
    for cout in (3, 5, 8):
        params['conv'].append({'w': nrm((cout, 1, K, K), 0.1),
                               'b': nrm((cout,), 0.01)})
    params['region_tokens'] = jnp.zeros((1, SEQ_C), jnp.float32)   # torch.zeros(1, 196)

    D = DEPTH
    params['blocks'] = {
        'g1': jnp.ones((D, 1, SEQ_C), jnp.float32),
        'b1': jnp.zeros((D, 1, SEQ_C), jnp.float32),
        'wqkv': nrm((D, SEQ_C, 3 * SEQ_C), 0.02, jnp.bfloat16),
        'bqkv': jnp.zeros((D, 1, 3 * SEQ_C), jnp.float32),
        'wo': nrm((D, SEQ_C, SEQ_C), 0.02, jnp.bfloat16),
        'bo': jnp.zeros((D, 1, SEQ_C), jnp.float32),
        'g2': jnp.ones((D, 1, SEQ_C), jnp.float32),
        'b2': jnp.zeros((D, 1, SEQ_C), jnp.float32),
        'w1': nrm((D, SEQ_C, MLP_HIDDEN), 0.02, jnp.bfloat16),
        'bm1': jnp.zeros((D, 1, MLP_HIDDEN), jnp.float32),
        'w2': nrm((D, MLP_HIDDEN, SEQ_C), 0.02, jnp.bfloat16),
        'bm2': jnp.zeros((D, 1, SEQ_C), jnp.float32),
    }
    return params


# ---------------------------------------------------------------------------
# Full forward == torch_p_AMEAN_Spot.forward: returns (x, clone)
# ---------------------------------------------------------------------------
def forward(params, x1, x2, x3):
    merged = conv_stage(x1, x2, x3, params['conv'])           # (B, 16, 14, 14)
    clone = merged                                            # merged.clone()
    B = merged.shape[0]
    x = merged.reshape(B, C_TOTAL, SEQ_C)                     # torch.flatten(merged, 2)
    region = jnp.broadcast_to(params['region_tokens'][None], (B, 1, SEQ_C))
    x = jnp.concatenate([region, x], axis=1)                  # (B, 17, 196)
    x = lg_stack(x, params['blocks'])                         # 12 LG blocks, fused
    return x, clone


if __name__ == "__main__":
    key = jax.random.PRNGKey(0)
    pkey, k1, k2, k3 = jax.random.split(key, 4)
    params = init_params(pkey)

    B = 2
    x1 = jax.random.normal(k1, (B, 1, H_IN, H_IN), jnp.float32)
    x2 = jax.random.normal(k2, (B, 1, H_IN, H_IN), jnp.float32)
    x3 = jax.random.normal(k3, (B, 1, H_IN, H_IN), jnp.float32)

    fwd = jax.jit(forward)
    x_out, clone = fwd(params, x1, x2, x3)
    jax.block_until_ready((x_out, clone))

    assert x_out.shape == (B, NUM_TOKENS, SEQ_C)
    assert clone.shape == (B, C_TOTAL, H_OUT, H_OUT)
    assert bool(jnp.isfinite(x_out).all()) and bool(jnp.isfinite(clone).all())
    print("KERNEL_OK")
</pallas_src>

<mosaic_0001>
module attributes {stable_mosaic.version = 11 : i64} {
  func.func @_conv_pool_kernel(%arg0: i32, %arg1: memref<1x46x138xf32, #tpu.memory_space<vmem>>, %arg2: memref<5x46x46xf32, #tpu.memory_space<vmem>>, %arg3: memref<5x138x736xf32, #tpu.memory_space<vmem>>, %arg4: memref<1x736xf32, #tpu.memory_space<vmem>>, %arg5: memref<3x14x46xf32, #tpu.memory_space<vmem>>, %arg6: memref<3x736x224xf32, #tpu.memory_space<vmem>>, %arg7: memref<1x14x224xf32, #tpu.memory_space<vmem>>) attributes {dimension_semantics = [#tpu.dimension_semantics<parallel>], iteration_bounds = array<i64: 2>, scalar_prefetch = 0 : i64, scratch_operands = 0 : i64, tpu.core_type = #tpu.core_type<tc>, window_params = [{transform_indices = @transform_0, window_bounds = array<i64: 1, 46, 138>}, {pipeline_mode = #tpu.pipeline_mode<synchronous>, transform_indices = @transform_1, window_bounds = array<i64: 5, 46, 46>}, {pipeline_mode = #tpu.pipeline_mode<synchronous>, transform_indices = @transform_2, window_bounds = array<i64: 5, 138, 736>}, {pipeline_mode = #tpu.pipeline_mode<synchronous>, transform_indices = @transform_3, window_bounds = array<i64: 1, 736>}, {pipeline_mode = #tpu.pipeline_mode<synchronous>, transform_indices = @transform_4, window_bounds = array<i64: 3, 14, 46>}, {pipeline_mode = #tpu.pipeline_mode<synchronous>, transform_indices = @transform_5, window_bounds = array<i64: 3, 736, 224>}, {transform_indices = @transform_6, window_bounds = array<i64: 1, 14, 224>}]} {
    %c0 = arith.constant 0 : index
    %c0_0 = arith.constant 0 : index
    %c0_1 = arith.constant 0 : index
    %0 = vector.load %arg1[%c0, %c0_0, %c0_1] : memref<1x46x138xf32, #tpu.memory_space<vmem>>, vector<1x46x138xf32>
    %1 = vector.shape_cast %0 : vector<1x46x138xf32> to vector<46x138xf32>
    %cst = arith.constant 0.000000e+00 : f32
    %2 = vector.broadcast %cst : f32 to vector<46x736xf32>
    %c0_2 = arith.constant 0 : index
    %c0_3 = arith.constant 0 : index
    %c0_4 = arith.constant 0 : index
    %3 = vector.load %arg2[%c0_2, %c0_3, %c0_4] : memref<5x46x46xf32, #tpu.memory_space<vmem>>, vector<1x46x46xf32>
    %4 = vector.shape_cast %3 : vector<1x46x46xf32> to vector<46x46xf32>
    %cst_5 = arith.constant dense<0.000000e+00> : vector<46x138xf32>
    %5 = tpu.matmul %4, %1, %cst_5 {dimension_numbers = #tpu.dot_dimension_numbers<[1], [0], [0], [1], [0, 0, 1, 1], [], []>} : vector<46x46xf32>, vector<46x138xf32>, vector<46x138xf32> -> vector<46x138xf32>
    %c0_6 = arith.constant 0 : index
    %c0_7 = arith.constant 0 : index
    %c0_8 = arith.constant 0 : index
    %6 = vector.load %arg3[%c0_6, %c0_7, %c0_8] : memref<5x138x736xf32, #tpu.memory_space<vmem>>, vector<1x138x736xf32>
    %7 = vector.shape_cast %6 : vector<1x138x736xf32> to vector<138x736xf32>
    %cst_9 = arith.constant dense<0.000000e+00> : vector<46x736xf32>
    %8 = tpu.matmul %5, %7, %cst_9 {dimension_numbers = #tpu.dot_dimension_numbers<[1], [0], [0], [1], [0, 0, 1, 1], [], []>} : vector<46x138xf32>, vector<138x736xf32>, vector<46x736xf32> -> vector<46x736xf32>
    %9 = arith.addf %2, %8 : vector<46x736xf32>
    %c1 = arith.constant 1 : index
    %c0_10 = arith.constant 0 : index
    %c0_11 = arith.constant 0 : index
    %10 = vector.load %arg2[%c1, %c0_10, %c0_11] : memref<5x46x46xf32, #tpu.memory_space<vmem>>, vector<1x46x46xf32>
    %11 = vector.shape_cast %10 : vector<1x46x46xf32> to vector<46x46xf32>
    %cst_12 = arith.constant dense<0.000000e+00> : vector<46x138xf32>
    %12 = tpu.matmul %11, %1, %cst_12 {dimension_numbers = #tpu.dot_dimension_numbers<[1], [0], [0], [1], [0, 0, 1, 1], [], []>} : vector<46x46xf32>, vector<46x138xf32>, vector<46x138xf32> -> vector<46x138xf32>
    %c1_13 = arith.constant 1 : index
    %c0_14 = arith.constant 0 : index
    %c0_15 = arith.constant 0 : index
    %13 = vector.load %arg3[%c1_13, %c0_14, %c0_15] : memref<5x138x736xf32, #tpu.memory_space<vmem>>, vector<1x138x736xf32>
    %14 = vector.shape_cast %13 : vector<1x138x736xf32> to vector<138x736xf32>
    %cst_16 = arith.constant dense<0.000000e+00> : vector<46x736xf32>
    %15 = tpu.matmul %12, %14, %cst_16 {dimension_numbers = #tpu.dot_dimension_numbers<[1], [0], [0], [1], [0, 0, 1, 1], [], []>} : vector<46x138xf32>, vector<138x736xf32>, vector<46x736xf32> -> vector<46x736xf32>
    %16 = arith.addf %9, %15 : vector<46x736xf32>
    %c2 = arith.constant 2 : index
    %c0_17 = arith.constant 0 : index
    %c0_18 = arith.constant 0 : index
    %17 = vector.load %arg2[%c2, %c0_17, %c0_18] : memref<5x46x46xf32, #tpu.memory_space<vmem>>, vector<1x46x46xf32>
    %18 = vector.shape_cast %17 : vector<1x46x46xf32> to vector<46x46xf32>
    %cst_19 = arith.constant dense<0.000000e+00> : vector<46x138xf32>
    %19 = tpu.matmul %18, %1, %cst_19 {dimension_numbers = #tpu.dot_dimension_numbers<[1], [0], [0], [1], [0, 0, 1, 1], [], []>} : vector<46x46xf32>, vector<46x138xf32>, vector<46x138xf32> -> vector<46x138xf32>
    %c2_20 = arith.constant 2 : index
    %c0_21 = arith.constant 0 : index
    %c0_22 = arith.constant 0 : index
    %20 = vector.load %arg3[%c2_20, %c0_21, %c0_22] : memref<5x138x736xf32, #tpu.memory_space<vmem>>, vector<1x138x736xf32>
    %21 = vector.shape_cast %20 : vector<1x138x736xf32> to vector<138x736xf32>
    %cst_23 = arith.constant dense<0.000000e+00> : vector<46x736xf32>
    %22 = tpu.matmul %19, %21, %cst_23 {dimension_numbers = #tpu.dot_dimension_numbers<[1], [0], [0], [1], [0, 0, 1, 1], [], []>} : vector<46x138xf32>, vector<138x736xf32>, vector<46x736xf32> -> vector<46x736xf32>
    %23 = arith.addf %16, %22 : vector<46x736xf32>
    %c3 = arith.constant 3 : index
    %c0_24 = arith.constant 0 : index
    %c0_25 = arith.constant 0 : index
    %24 = vector.load %arg2[%c3, %c0_24, %c0_25] : memref<5x46x46xf32, #tpu.memory_space<vmem>>, vector<1x46x46xf32>
    %25 = vector.shape_cast %24 : vector<1x46x46xf32> to vector<46x46xf32>
    %cst_26 = arith.constant dense<0.000000e+00> : vector<46x138xf32>
    %26 = tpu.matmul %25, %1, %cst_26 {dimension_numbers = #tpu.dot_dimension_numbers<[1], [0], [0], [1], [0, 0, 1, 1], [], []>} : vector<46x46xf32>, vector<46x138xf32>, vector<46x138xf32> -> vector<46x138xf32>
    %c3_27 = arith.constant 3 : index
    %c0_28 = arith.constant 0 : index
    %c0_29 = arith.constant 0 : index
    %27 = vector.load %arg3[%c3_27, %c0_28, %c0_29] : memref<5x138x736xf32, #tpu.memory_space<vmem>>, vector<1x138x736xf32>
    %28 = vector.shape_cast %27 : vector<1x138x736xf32> to vector<138x736xf32>
    %cst_30 = arith.constant dense<0.000000e+00> : vector<46x736xf32>
    %29 = tpu.matmul %26, %28, %cst_30 {dimension_numbers = #tpu.dot_dimension_numbers<[1], [0], [0], [1], [0, 0, 1, 1], [], []>} : vector<46x138xf32>, vector<138x736xf32>, vector<46x736xf32> -> vector<46x736xf32>
    %30 = arith.addf %23, %29 : vector<46x736xf32>
    %c4 = arith.constant 4 : index
    %c0_31 = arith.constant 0 : index
    %c0_32 = arith.constant 0 : index
    %31 = vector.load %arg2[%c4, %c0_31, %c0_32] : memref<5x46x46xf32, #tpu.memory_space<vmem>>, vector<1x46x46xf32>
    %32 = vector.shape_cast %31 : vector<1x46x46xf32> to vector<46x46xf32>
    %cst_33 = arith.constant dense<0.000000e+00> : vector<46x138xf32>
    %33 = tpu.matmul %32, %1, %cst_33 {dimension_numbers = #tpu.dot_dimension_numbers<[1], [0], [0], [1], [0, 0, 1, 1], [], []>} : vector<46x46xf32>, vector<46x138xf32>, vector<46x138xf32> -> vector<46x138xf32>
    %c4_34 = arith.constant 4 : index
    %c0_35 = arith.constant 0 : index
    %c0_36 = arith.constant 0 : index
    %34 = vector.load %arg3[%c4_34, %c0_35, %c0_36] : memref<5x138x736xf32, #tpu.memory_space<vmem>>, vector<1x138x736xf32>
    %35 = vector.shape_cast %34 : vector<1x138x736xf32> to vector<138x736xf32>
    %cst_37 = arith.constant dense<0.000000e+00> : vector<46x736xf32>
    %36 = tpu.matmul %33, %35, %cst_37 {dimension_numbers = #tpu.dot_dimension_numbers<[1], [0], [0], [1], [0, 0, 1, 1], [], []>} : vector<46x138xf32>, vector<138x736xf32>, vector<46x736xf32> -> vector<46x736xf32>
    %37 = arith.addf %30, %36 : vector<46x736xf32>
    %c0_38 = arith.constant 0 : index
    %c0_39 = arith.constant 0 : index
    %38 = vector.load %arg4[%c0_38, %c0_39] : memref<1x736xf32, #tpu.memory_space<vmem>>, vector<1x736xf32>
    %39 = vector.broadcast %38 : vector<1x736xf32> to vector<46x736xf32>
    %40 = arith.addf %37, %39 : vector<46x736xf32>
    %cst_40 = arith.constant 0.000000e+00 : f32
    %41 = vector.broadcast %cst_40 : f32 to vector<46x736xf32>
    %42 = arith.maximumf %40, %41 : vector<46x736xf32>
    %c0_41 = arith.constant 0 : index
    %c0_42 = arith.constant 0 : index
    %c0_43 = arith.constant 0 : index
    %43 = vector.load %arg5[%c0_41, %c0_42, %c0_43] : memref<3x14x46xf32, #tpu.memory_space<vmem>>, vector<1x14x46xf32>
    %44 = vector.shape_cast %43 : vector<1x14x46xf32> to vector<14x46xf32>
    %cst_44 = arith.constant dense<0.000000e+00> : vector<14x736xf32>
    %45 = tpu.matmul %44, %42, %cst_44 {dimension_numbers = #tpu.dot_dimension_numbers<[1], [0], [0], [1], [0, 0, 1, 1], [], []>} : vector<14x46xf32>, vector<46x736xf32>, vector<14x736xf32> -> vector<14x736xf32>
    %c1_45 = arith.constant 1 : index
    %c0_46 = arith.constant 0 : index
    %c0_47 = arith.constant 0 : index
    %46 = vector.load %arg5[%c1_45, %c0_46, %c0_47] : memref<3x14x46xf32, #tpu.memory_space<vmem>>, vector<1x14x46xf32>
    %47 = vector.shape_cast %46 : vector<1x14x46xf32> to vector<14x46xf32>
    %cst_48 = arith.constant dense<0.000000e+00> : vector<14x736xf32>
    %48 = tpu.matmul %47, %42, %cst_48 {dimension_numbers = #tpu.dot_dimension_numbers<[1], [0], [0], [1], [0, 0, 1, 1], [], []>} : vector<14x46xf32>, vector<46x736xf32>, vector<14x736xf32> -> vector<14x736xf32>
    %49 = arith.maximumf %45, %48 : vector<14x736xf32>
    %c2_49 = arith.constant 2 : index
    %c0_50 = arith.constant 0 : index
    %c0_51 = arith.constant 0 : index
    %50 = vector.load %arg5[%c2_49, %c0_50, %c0_51] : memref<3x14x46xf32, #tpu.memory_space<vmem>>, vector<1x14x46xf32>
    %51 = vector.shape_cast %50 : vector<1x14x46xf32> to vector<14x46xf32>
    %cst_52 = arith.constant dense<0.000000e+00> : vector<14x736xf32>
    %52 = tpu.matmul %51, %42, %cst_52 {dimension_numbers = #tpu.dot_dimension_numbers<[1], [0], [0], [1], [0, 0, 1, 1], [], []>} : vector<14x46xf32>, vector<46x736xf32>, vector<14x736xf32> -> vector<14x736xf32>
    %53 = arith.maximumf %49, %52 : vector<14x736xf32>
    %c0_53 = arith.constant 0 : index
    %c0_54 = arith.constant 0 : index
    %c0_55 = arith.constant 0 : index
    %54 = vector.load %arg6[%c0_53, %c0_54, %c0_55] : memref<3x736x224xf32, #tpu.memory_space<vmem>>, vector<1x736x224xf32>
    %55 = vector.shape_cast %54 : vector<1x736x224xf32> to vector<736x224xf32>
    %cst_56 = arith.constant dense<0.000000e+00> : vector<14x224xf32>
    %56 = tpu.matmul %53, %55, %cst_56 {dimension_numbers = #tpu.dot_dimension_numbers<[1], [0], [0], [1], [0, 0, 1, 1], [], []>} : vector<14x736xf32>, vector<736x224xf32>, vector<14x224xf32> -> vector<14x224xf32>
    %c1_57 = arith.constant 1 : index
    %c0_58 = arith.constant 0 : index
    %c0_59 = arith.constant 0 : index
    %57 = vector.load %arg6[%c1_57, %c0_58, %c0_59] : memref<3x736x224xf32, #tpu.memory_space<vmem>>, vector<1x736x224xf32>
    %58 = vector.shape_cast %57 : vector<1x736x224xf32> to vector<736x224xf32>
    %cst_60 = arith.constant dense<0.000000e+00> : vector<14x224xf32>
    %59 = tpu.matmul %53, %58, %cst_60 {dimension_numbers = #tpu.dot_dimension_numbers<[1], [0], [0], [1], [0, 0, 1, 1], [], []>} : vector<14x736xf32>, vector<736x224xf32>, vector<14x224xf32> -> vector<14x224xf32>
    %60 = arith.maximumf %56, %59 : vector<14x224xf32>
    %c2_61 = arith.constant 2 : index
    %c0_62 = arith.constant 0 : index
    %c0_63 = arith.constant 0 : index
    %61 = vector.load %arg6[%c2_61, %c0_62, %c0_63] : memref<3x736x224xf32, #tpu.memory_space<vmem>>, vector<1x736x224xf32>
    %62 = vector.shape_cast %61 : vector<1x736x224xf32> to vector<736x224xf32>
    %cst_64 = arith.constant dense<0.000000e+00> : vector<14x224xf32>
    %63 = tpu.matmul %53, %62, %cst_64 {dimension_numbers = #tpu.dot_dimension_numbers<[1], [0], [0], [1], [0, 0, 1, 1], [], []>} : vector<14x736xf32>, vector<736x224xf32>, vector<14x224xf32> -> vector<14x224xf32>
    %64 = arith.maximumf %60, %63 : vector<14x224xf32>
    %c0_65 = arith.constant 0 : index
    %c0_66 = arith.constant 0 : index
    %c0_67 = arith.constant 0 : index
    %65 = vector.load %arg7[%c0_65, %c0_66, %c0_67] : memref<1x14x224xf32, #tpu.memory_space<vmem>>, vector<1x14x224xf32>
    %66 = vector.shape_cast %65 : vector<1x14x224xf32> to vector<14x224xf32>
    %67 = vector.shape_cast %64 : vector<14x224xf32> to vector<1x14x224xf32>
    tpu.vector_store %arg7[%c0_65, %c0_66, %c0_67], %67 {strides = array<i32>} : memref<1x14x224xf32, #tpu.memory_space<vmem>>, vector<1x14x224xf32>,
    return
  }
  func.func @transform_0(%arg0: i32) -> (i32, i32, i32) {
    %c0_i32 = arith.constant 0 : i32
    %c0_i32_0 = arith.constant 0 : i32
    %c0_i32_1 = arith.constant 0 : i32
    return %arg0, %c0_i32, %c0_i32_0 : i32, i32, i32
  }
  func.func @transform_1(%arg0: i32) -> (i32, i32, i32) {
    %c0_i32 = arith.constant 0 : i32
    %c0_i32_0 = arith.constant 0 : i32
    %c0_i32_1 = arith.constant 0 : i32
    %c0_i32_2 = arith.constant 0 : i32
    return %c0_i32, %c0_i32_0, %c0_i32_1 : i32, i32, i32
  }
  func.func @transform_2(%arg0: i32) -> (i32, i32, i32) {
    %c0_i32 = arith.constant 0 : i32
    %c0_i32_0 = arith.constant 0 : i32
    %c0_i32_1 = arith.constant 0 : i32
    %c0_i32_2 = arith.constant 0 : i32
    return %c0_i32, %c0_i32_0, %c0_i32_1 : i32, i32, i32
  }
  func.func @transform_3(%arg0: i32) -> (i32, i32) {
    %c0_i32 = arith.constant 0 : i32
    %c0_i32_0 = arith.constant 0 : i32
    %c0_i32_1 = arith.constant 0 : i32
    return %c0_i32, %c0_i32_0 : i32, i32
  }
  func.func @transform_4(%arg0: i32) -> (i32, i32, i32) {
    %c0_i32 = arith.constant 0 : i32
    %c0_i32_0 = arith.constant 0 : i32
    %c0_i32_1 = arith.constant 0 : i32
    %c0_i32_2 = arith.constant 0 : i32
    return %c0_i32, %c0_i32_0, %c0_i32_1 : i32, i32, i32
  }
  func.func @transform_5(%arg0: i32) -> (i32, i32, i32) {
    %c0_i32 = arith.constant 0 : i32
    %c0_i32_0 = arith.constant 0 : i32
    %c0_i32_1 = arith.constant 0 : i32
    %c0_i32_2 = arith.constant 0 : i32
    return %c0_i32, %c0_i32_0, %c0_i32_1 : i32, i32, i32
  }
  func.func @transform_6(%arg0: i32) -> (i32, i32, i32) {
    %c0_i32 = arith.constant 0 : i32
    %c0_i32_0 = arith.constant 0 : i32
    %c0_i32_1 = arith.constant 0 : i32
    return %arg0, %c0_i32, %c0_i32_0 : i32, i32, i32
  }
}

module attributes {stable_mosaic.version = 11 : i64} {
  func.func @_lg_stack_kernel(%arg0: i32, %arg1: memref<34x196xf32, #tpu.memory_space<vmem>>, %arg2: memref<34x34xf32, #tpu.memory_space<vmem>>, %arg3: memref<1x1x196xf32, #tpu.memory_space<vmem>>, %arg4: memref<1x1x196xf32, #tpu.memory_space<vmem>>, %arg5: memref<1x196x588xbf16, #tpu.memory_space<vmem>>, %arg6: memref<1x1x588xf32, #tpu.memory_space<vmem>>, %arg7: memref<1x196x196xbf16, #tpu.memory_space<vmem>>, %arg8: memref<1x1x196xf32, #tpu.memory_space<vmem>>, %arg9: memref<1x1x196xf32, #tpu.memory_space<vmem>>, %arg10: memref<1x1x196xf32, #tpu.memory_space<vmem>>, %arg11: memref<1x196x784xbf16, #tpu.memory_space<vmem>>, %arg12: memref<1x1x784xf32, #tpu.memory_space<vmem>>, %arg13: memref<1x784x196xbf16, #tpu.memory_space<vmem>>, %arg14: memref<1x1x196xf32, #tpu.memory_space<vmem>>, %arg15: memref<34x196xf32, #tpu.memory_space<vmem>>, %arg16: memref<34x196xf32, #tpu.memory_space<vmem>>) attributes {dimension_semantics = [#tpu.dimension_semantics<arbitrary>], iteration_bounds = array<i64: 12>, scalar_prefetch = 0 : i64, scratch_operands = 1 : i64, tpu.core_type = #tpu.core_type<tc>, window_params = [{pipeline_mode = #tpu.pipeline_mode<synchronous>, transform_indices = @transform_0, window_bounds = array<i64: 34, 196>}, {pipeline_mode = #tpu.pipeline_mode<synchronous>, transform_indices = @transform_1, window_bounds = array<i64: 34, 34>}, {transform_indices = @transform_2, window_bounds = array<i64: 1, 1, 196>}, {transform_indices = @transform_3, window_bounds = array<i64: 1, 1, 196>}, {transform_indices = @transform_4, window_bounds = array<i64: 1, 196, 588>}, {transform_indices = @transform_5, window_bounds = array<i64: 1, 1, 588>}, {transform_indices = @transform_6, window_bounds = array<i64: 1, 196, 196>}, {transform_indices = @transform_7, window_bounds = array<i64: 1, 1, 196>}, {transform_indices = @transform_8, window_bounds = array<i64: 1, 1, 196>}, {transform_indices = @transform_9, window_bounds = array<i64: 1, 1, 196>}, {transform_indices = @transform_10, window_bounds = array<i64: 1, 196, 784>}, {transform_indices = @transform_11, window_bounds = array<i64: 1, 1, 784>}, {transform_indices = @transform_12, window_bounds = array<i64: 1, 784, 196>}, {transform_indices = @transform_13, window_bounds = array<i64: 1, 1, 196>}, {pipeline_mode = #tpu.pipeline_mode<synchronous>, transform_indices = @transform_14, window_bounds = array<i64: 34, 196>}]} {
    %c0_i32 = arith.constant 0 : i32
    %0 = arith.cmpi eq, %arg0, %c0_i32 : i32
    %1 = arith.extui %0 : i1 to i32
    %c0_i32_0 = arith.constant 0 : i32
    %2 = arith.cmpi ne, %1, %c0_i32_0 : i32
    scf.if %2 {
      %c0_80 = arith.constant 0 : index
      %c0_81 = arith.constant 0 : index
      %173 = vector.load %arg1[%c0_80, %c0_81] : memref<34x196xf32, #tpu.memory_space<vmem>>, vector<34x196xf32>
      %c0_82 = arith.constant 0 : index
      %c0_83 = arith.constant 0 : index
      %174 = vector.load %arg16[%c0_82, %c0_83] : memref<34x196xf32, #tpu.memory_space<vmem>>, vector<34x196xf32>
      tpu.vector_store %arg16[%c0_82, %c0_83], %173 {strides = array<i32>} : memref<34x196xf32, #tpu.memory_space<vmem>>, vector<34x196xf32>,
    } else {
    }
    %c0 = arith.constant 0 : index
    %c0_1 = arith.constant 0 : index
    %3 = vector.load %arg16[%c0, %c0_1] : memref<34x196xf32, #tpu.memory_space<vmem>>, vector<34x196xf32>
    %cst = arith.constant dense<0.000000e+00> : vector<34xf32>
    %4 = vector.multi_reduction <add>, %3, %cst [1] : vector<34x196xf32> to vector<34xf32>
    %5 = vector.shape_cast %4 : vector<34xf32> to vector<34x1xf32>
    %cst_2 = arith.constant 1.960000e+02 : f32
    %6 = vector.broadcast %cst_2 : f32 to vector<34x1xf32>
    %7 = arith.divf %5, %6 : vector<34x1xf32>
    %8 = vector.broadcast %7 : vector<34x1xf32> to vector<34x196xf32>
    %9 = arith.subf %3, %8 : vector<34x196xf32>
    %10 = arith.mulf %9, %9 : vector<34x196xf32>
    %cst_3 = arith.constant dense<0.000000e+00> : vector<34xf32>
    %11 = vector.multi_reduction <add>, %10, %cst_3 [1] : vector<34x196xf32> to vector<34xf32>
    %12 = vector.shape_cast %11 : vector<34xf32> to vector<34x1xf32>
    %cst_4 = arith.constant 1.960000e+02 : f32
    %13 = vector.broadcast %cst_4 : f32 to vector<34x1xf32>
    %14 = arith.divf %12, %13 : vector<34x1xf32>
    %cst_5 = arith.constant 9.99999974E-6 : f32
    %15 = vector.broadcast %cst_5 : f32 to vector<34x1xf32>
    %16 = arith.addf %14, %15 : vector<34x1xf32>
    %17 = math.rsqrt %16 : vector<34x1xf32>
    %18 = vector.broadcast %17 : vector<34x1xf32> to vector<34x196xf32>
    %19 = arith.mulf %9, %18 : vector<34x196xf32>
    %c0_6 = arith.constant 0 : index
    %c0_7 = arith.constant 0 : index
    %c0_8 = arith.constant 0 : index
    %20 = vector.load %arg3[%c0_6, %c0_7, %c0_8] : memref<1x1x196xf32, #tpu.memory_space<vmem>>, vector<1x1x196xf32>
    %21 = vector.shape_cast %20 : vector<1x1x196xf32> to vector<1x196xf32>
    %22 = vector.broadcast %21 : vector<1x196xf32> to vector<34x196xf32>
    %23 = arith.mulf %19, %22 : vector<34x196xf32>
    %c0_9 = arith.constant 0 : index
    %c0_10 = arith.constant 0 : index
    %c0_11 = arith.constant 0 : index
    %24 = vector.load %arg4[%c0_9, %c0_10, %c0_11] : memref<1x1x196xf32, #tpu.memory_space<vmem>>, vector<1x1x196xf32>
    %25 = vector.shape_cast %24 : vector<1x1x196xf32> to vector<1x196xf32>
    %26 = vector.broadcast %25 : vector<1x196xf32> to vector<34x196xf32>
    %27 = arith.addf %23, %26 : vector<34x196xf32>
    %28 = arith.truncf %27 : vector<34x196xf32> to vector<34x196xbf16>
    %c0_12 = arith.constant 0 : index
    %c0_13 = arith.constant 0 : index
    %c0_14 = arith.constant 0 : index
    %29 = vector.load %arg5[%c0_12, %c0_13, %c0_14] : memref<1x196x588xbf16, #tpu.memory_space<vmem>>, vector<1x196x588xbf16>
    %30 = vector.shape_cast %29 : vector<1x196x588xbf16> to vector<196x588xbf16>
    %cst_15 = arith.constant dense<0.000000e+00> : vector<34x588xf32>
    %31 = tpu.matmul %28, %30, %cst_15 {dimension_numbers = #tpu.dot_dimension_numbers<[1], [0], [0], [1], [0, 0, 1, 1], [], []>} : vector<34x196xbf16>, vector<196x588xbf16>, vector<34x588xf32> -> vector<34x588xf32>
    %c0_16 = arith.constant 0 : index
    %c0_17 = arith.constant 0 : index
    %c0_18 = arith.constant 0 : index
    %32 = vector.load %arg6[%c0_16, %c0_17, %c0_18] : memref<1x1x588xf32, #tpu.memory_space<vmem>>, vector<1x1x588xf32>
    %33 = vector.shape_cast %32 : vector<1x1x588xf32> to vector<1x588xf32>
    %34 = vector.broadcast %33 : vector<1x588xf32> to vector<34x588xf32>
    %35 = arith.addf %31, %34 : vector<34x588xf32>
    %c0_19 = arith.constant 0 : index
    %c0_20 = arith.constant 0 : index
    %36 = vector.load %arg2[%c0_19, %c0_20] : memref<34x34xf32, #tpu.memory_space<vmem>>, vector<34x34xf32>
    %37 = vector.extract_strided_slice %35 {offsets = [0, 0], sizes = [34, 49], strides = [1, 1]} : vector<34x588xf32> to vector<34x49xf32>
    %38 = vector.extract_strided_slice %35 {offsets = [0, 196], sizes = [34, 49], strides = [1, 1]} : vector<34x588xf32> to vector<34x49xf32>
    %39 = vector.extract_strided_slice %35 {offsets = [0, 392], sizes = [34, 49], strides = [1, 1]} : vector<34x588xf32> to vector<34x49xf32>
    %cst_21 = arith.constant dense<0.000000e+00> : vector<34x34xf32>
    %40 = tpu.matmul %37, %38, %cst_21 {dimension_numbers = #tpu.dot_dimension_numbers<[1], [1], [0], [0], [0, 0, 1, 0], [], []>} : vector<34x49xf32>, vector<34x49xf32>, vector<34x34xf32> -> vector<34x34xf32>
    %cst_22 = arith.constant 0.142857149 : f32
    %41 = vector.broadcast %cst_22 : f32 to vector<34x34xf32>
    %42 = arith.mulf %40, %41 : vector<34x34xf32>
    %43 = arith.addf %42, %36 : vector<34x34xf32>
    %cst_23 = arith.constant dense<0xFF800000> : vector<34xf32>
    %44 = vector.multi_reduction <maximumf>, %43, %cst_23 [1] : vector<34x34xf32> to vector<34xf32>
    %45 = vector.shape_cast %44 : vector<34xf32> to vector<34x1xf32>
    %46 = vector.broadcast %45 : vector<34x1xf32> to vector<34x34xf32>
    %47 = arith.subf %43, %46 : vector<34x34xf32>
    %48 = math.exp %47 : vector<34x34xf32>
    %cst_24 = arith.constant dense<0.000000e+00> : vector<34xf32>
    %49 = vector.multi_reduction <add>, %48, %cst_24 [1] : vector<34x34xf32> to vector<34xf32>
    %50 = vector.shape_cast %49 : vector<34xf32> to vector<34x1xf32>
    %51 = vector.broadcast %50 : vector<34x1xf32> to vector<34x34xf32>
    %52 = arith.divf %48, %51 : vector<34x34xf32>
    %cst_25 = arith.constant dense<0.000000e+00> : vector<34x49xf32>
    %53 = tpu.matmul %52, %39, %cst_25 {dimension_numbers = #tpu.dot_dimension_numbers<[1], [0], [0], [1], [0, 0, 1, 1], [], []>} : vector<34x34xf32>, vector<34x49xf32>, vector<34x49xf32> -> vector<34x49xf32>
    %54 = vector.extract_strided_slice %35 {offsets = [0, 49], sizes = [34, 49], strides = [1, 1]} : vector<34x588xf32> to vector<34x49xf32>
    %55 = vector.extract_strided_slice %35 {offsets = [0, 245], sizes = [34, 49], strides = [1, 1]} : vector<34x588xf32> to vector<34x49xf32>
    %56 = vector.extract_strided_slice %35 {offsets = [0, 441], sizes = [34, 49], strides = [1, 1]} : vector<34x588xf32> to vector<34x49xf32>
    %cst_26 = arith.constant dense<0.000000e+00> : vector<34x34xf32>
    %57 = tpu.matmul %54, %55, %cst_26 {dimension_numbers = #tpu.dot_dimension_numbers<[1], [1], [0], [0], [0, 0, 1, 0], [], []>} : vector<34x49xf32>, vector<34x49xf32>, vector<34x34xf32> -> vector<34x34xf32>
    %cst_27 = arith.constant 0.142857149 : f32
    %58 = vector.broadcast %cst_27 : f32 to vector<34x34xf32>
    %59 = arith.mulf %57, %58 : vector<34x34xf32>
    %60 = arith.addf %59, %36 : vector<34x34xf32>
    %cst_28 = arith.constant dense<0xFF800000> : vector<34xf32>
    %61 = vector.multi_reduction <maximumf>, %60, %cst_28 [1] : vector<34x34xf32> to vector<34xf32>
    %62 = vector.shape_cast %61 : vector<34xf32> to vector<34x1xf32>
    %63 = vector.broadcast %62 : vector<34x1xf32> to vector<34x34xf32>
    %64 = arith.subf %60, %63 : vector<34x34xf32>
    %65 = math.exp %64 : vector<34x34xf32>
    %cst_29 = arith.constant dense<0.000000e+00> : vector<34xf32>
    %66 = vector.multi_reduction <add>, %65, %cst_29 [1] : vector<34x34xf32> to vector<34xf32>
    %67 = vector.shape_cast %66 : vector<34xf32> to vector<34x1xf32>
    %68 = vector.broadcast %67 : vector<34x1xf32> to vector<34x34xf32>
    %69 = arith.divf %65, %68 : vector<34x34xf32>
    %cst_30 = arith.constant dense<0.000000e+00> : vector<34x49xf32>
    %70 = tpu.matmul %69, %56, %cst_30 {dimension_numbers = #tpu.dot_dimension_numbers<[1], [0], [0], [1], [0, 0, 1, 1], [], []>} : vector<34x34xf32>, vector<34x49xf32>, vector<34x49xf32> -> vector<34x49xf32>
    %71 = vector.extract_strided_slice %35 {offsets = [0, 98], sizes = [34, 49], strides = [1, 1]} : vector<34x588xf32> to vector<34x49xf32>
    %72 = vector.extract_strided_slice %35 {offsets = [0, 294], sizes = [34, 49], strides = [1, 1]} : vector<34x588xf32> to vector<34x49xf32>
    %73 = vector.extract_strided_slice %35 {offsets = [0, 490], sizes = [34, 49], strides = [1, 1]} : vector<34x588xf32> to vector<34x49xf32>
    %cst_31 = arith.constant dense<0.000000e+00> : vector<34x34xf32>
    %74 = tpu.matmul %71, %72, %cst_31 {dimension_numbers = #tpu.dot_dimension_numbers<[1], [1], [0], [0], [0, 0, 1, 0], [], []>} : vector<34x49xf32>, vector<34x49xf32>, vector<34x34xf32> -> vector<34x34xf32>
    %cst_32 = arith.constant 0.142857149 : f32
    %75 = vector.broadcast %cst_32 : f32 to vector<34x34xf32>
    %76 = arith.mulf %74, %75 : vector<34x34xf32>
    %77 = arith.addf %76, %36 : vector<34x34xf32>
    %cst_33 = arith.constant dense<0xFF800000> : vector<34xf32>
    %78 = vector.multi_reduction <maximumf>, %77, %cst_33 [1] : vector<34x34xf32> to vector<34xf32>
    %79 = vector.shape_cast %78 : vector<34xf32> to vector<34x1xf32>
    %80 = vector.broadcast %79 : vector<34x1xf32> to vector<34x34xf32>
    %81 = arith.subf %77, %80 : vector<34x34xf32>
    %82 = math.exp %81 : vector<34x34xf32>
    %cst_34 = arith.constant dense<0.000000e+00> : vector<34xf32>
    %83 = vector.multi_reduction <add>, %82, %cst_34 [1] : vector<34x34xf32> to vector<34xf32>
    %84 = vector.shape_cast %83 : vector<34xf32> to vector<34x1xf32>
    %85 = vector.broadcast %84 : vector<34x1xf32> to vector<34x34xf32>
    %86 = arith.divf %82, %85 : vector<34x34xf32>
    %cst_35 = arith.constant dense<0.000000e+00> : vector<34x49xf32>
    %87 = tpu.matmul %86, %73, %cst_35 {dimension_numbers = #tpu.dot_dimension_numbers<[1], [0], [0], [1], [0, 0, 1, 1], [], []>} : vector<34x34xf32>, vector<34x49xf32>, vector<34x49xf32> -> vector<34x49xf32>
    %88 = vector.extract_strided_slice %35 {offsets = [0, 147], sizes = [34, 49], strides = [1, 1]} : vector<34x588xf32> to vector<34x49xf32>
    %89 = vector.extract_strided_slice %35 {offsets = [0, 343], sizes = [34, 49], strides = [1, 1]} : vector<34x588xf32> to vector<34x49xf32>
    %90 = vector.extract_strided_slice %35 {offsets = [0, 539], sizes = [34, 49], strides = [1, 1]} : vector<34x588xf32> to vector<34x49xf32>
    %cst_36 = arith.constant dense<0.000000e+00> : vector<34x34xf32>
    %91 = tpu.matmul %88, %89, %cst_36 {dimension_numbers = #tpu.dot_dimension_numbers<[1], [1], [0], [0], [0, 0, 1, 0], [], []>} : vector<34x49xf32>, vector<34x49xf32>, vector<34x34xf32> -> vector<34x34xf32>
    %cst_37 = arith.constant 0.142857149 : f32
    %92 = vector.broadcast %cst_37 : f32 to vector<34x34xf32>
    %93 = arith.mulf %91, %92 : vector<34x34xf32>
    %94 = arith.addf %93, %36 : vector<34x34xf32>
    %cst_38 = arith.constant dense<0xFF800000> : vector<34xf32>
    %95 = vector.multi_reduction <maximumf>, %94, %cst_38 [1] : vector<34x34xf32> to vector<34xf32>
    %96 = vector.shape_cast %95 : vector<34xf32> to vector<34x1xf32>
    %97 = vector.broadcast %96 : vector<34x1xf32> to vector<34x34xf32>
    %98 = arith.subf %94, %97 : vector<34x34xf32>
    %99 = math.exp %98 : vector<34x34xf32>
    %cst_39 = arith.constant dense<0.000000e+00> : vector<34xf32>
    %100 = vector.multi_reduction <add>, %99, %cst_39 [1] : vector<34x34xf32> to vector<34xf32>
    %101 = vector.shape_cast %100 : vector<34xf32> to vector<34x1xf32>
    %102 = vector.broadcast %101 : vector<34x1xf32> to vector<34x34xf32>
    %103 = arith.divf %99, %102 : vector<34x34xf32>
    %cst_40 = arith.constant dense<0.000000e+00> : vector<34x49xf32>
    %104 = tpu.matmul %103, %90, %cst_40 {dimension_numbers = #tpu.dot_dimension_numbers<[1], [0], [0], [1], [0, 0, 1, 1], [], []>} : vector<34x34xf32>, vector<34x49xf32>, vector<34x49xf32> -> vector<34x49xf32>
    %105 = tpu.concatenate %53, %70, %87, %104 in 1 : vector<34x49xf32>, vector<34x49xf32>, vector<34x49xf32>, vector<34x49xf32> -> vector<34x196xf32>
    %106 = arith.truncf %105 : vector<34x196xf32> to vector<34x196xbf16>
    %c0_41 = arith.constant 0 : index
    %c0_42 = arith.constant 0 : index
    %c0_43 = arith.constant 0 : index
    %107 = vector.load %arg7[%c0_41, %c0_42, %c0_43] : memref<1x196x196xbf16, #tpu.memory_space<vmem>>, vector<1x196x196xbf16>
    %108 = vector.shape_cast %107 : vector<1x196x196xbf16> to vector<196x196xbf16>
    %cst_44 = arith.constant dense<0.000000e+00> : vector<34x196xf32>
    %109 = tpu.matmul %106, %108, %cst_44 {dimension_numbers = #tpu.dot_dimension_numbers<[1], [0], [0], [1], [0, 0, 1, 1], [], []>} : vector<34x196xbf16>, vector<196x196xbf16>, vector<34x196xf32> -> vector<34x196xf32>
    %c0_45 = arith.constant 0 : index
    %c0_46 = arith.constant 0 : index
    %c0_47 = arith.constant 0 : index
    %110 = vector.load %arg8[%c0_45, %c0_46, %c0_47] : memref<1x1x196xf32, #tpu.memory_space<vmem>>, vector<1x1x196xf32>
    %111 = vector.shape_cast %110 : vector<1x1x196xf32> to vector<1x196xf32>
    %112 = vector.broadcast %111 : vector<1x196xf32> to vector<34x196xf32>
    %113 = arith.addf %109, %112 : vector<34x196xf32>
    %114 = arith.addf %3, %113 : vector<34x196xf32>
    %cst_48 = arith.constant dense<0.000000e+00> : vector<34xf32>
    %115 = vector.multi_reduction <add>, %114, %cst_48 [1] : vector<34x196xf32> to vector<34xf32>
    %116 = vector.shape_cast %115 : vector<34xf32> to vector<34x1xf32>
    %cst_49 = arith.constant 1.960000e+02 : f32
    %117 = vector.broadcast %cst_49 : f32 to vector<34x1xf32>
    %118 = arith.divf %116, %117 : vector<34x1xf32>
    %119 = vector.broadcast %118 : vector<34x1xf32> to vector<34x196xf32>
    %120 = arith.subf %114, %119 : vector<34x196xf32>
    %121 = arith.mulf %120, %120 : vector<34x196xf32>
    %cst_50 = arith.constant dense<0.000000e+00> : vector<34xf32>
    %122 = vector.multi_reduction <add>, %121, %cst_50 [1] : vector<34x196xf32> to vector<34xf32>
    %123 = vector.shape_cast %122 : vector<34xf32> to vector<34x1xf32>
    %cst_51 = arith.constant 1.960000e+02 : f32
    %124 = vector.broadcast %cst_51 : f32 to vector<34x1xf32>
    %125 = arith.divf %123, %124 : vector<34x1xf32>
    %cst_52 = arith.constant 9.99999974E-6 : f32
    %126 = vector.broadcast %cst_52 : f32 to vector<34x1xf32>
    %127 = arith.addf %125, %126 : vector<34x1xf32>
    %128 = math.rsqrt %127 : vector<34x1xf32>
    %129 = vector.broadcast %128 : vector<34x1xf32> to vector<34x196xf32>
    %130 = arith.mulf %120, %129 : vector<34x196xf32>
    %c0_53 = arith.constant 0 : index
    %c0_54 = arith.constant 0 : index
    %c0_55 = arith.constant 0 : index
    %131 = vector.load %arg9[%c0_53, %c0_54, %c0_55] : memref<1x1x196xf32, #tpu.memory_space<vmem>>, vector<1x1x196xf32>
    %132 = vector.shape_cast %131 : vector<1x1x196xf32> to vector<1x196xf32>
    %133 = vector.broadcast %132 : vector<1x196xf32> to vector<34x196xf32>
    %134 = arith.mulf %130, %133 : vector<34x196xf32>
    %c0_56 = arith.constant 0 : index
    %c0_57 = arith.constant 0 : index
    %c0_58 = arith.constant 0 : index
    %135 = vector.load %arg10[%c0_56, %c0_57, %c0_58] : memref<1x1x196xf32, #tpu.memory_space<vmem>>, vector<1x1x196xf32>
    %136 = vector.shape_cast %135 : vector<1x1x196xf32> to vector<1x196xf32>
    %137 = vector.broadcast %136 : vector<1x196xf32> to vector<34x196xf32>
    %138 = arith.addf %134, %137 : vector<34x196xf32>
    %139 = arith.truncf %138 : vector<34x196xf32> to vector<34x196xbf16>
    %c0_59 = arith.constant 0 : index
    %c0_60 = arith.constant 0 : index
    %c0_61 = arith.constant 0 : index
    %140 = vector.load %arg11[%c0_59, %c0_60, %c0_61] : memref<1x196x784xbf16, #tpu.memory_space<vmem>>, vector<1x196x784xbf16>
    %141 = vector.shape_cast %140 : vector<1x196x784xbf16> to vector<196x784xbf16>
    %cst_62 = arith.constant dense<0.000000e+00> : vector<34x784xf32>
    %142 = tpu.matmul %139, %141, %cst_62 {dimension_numbers = #tpu.dot_dimension_numbers<[1], [0], [0], [1], [0, 0, 1, 1], [], []>} : vector<34x196xbf16>, vector<196x784xbf16>, vector<34x784xf32> -> vector<34x784xf32>
    %c0_63 = arith.constant 0 : index
    %c0_64 = arith.constant 0 : index
    %c0_65 = arith.constant 0 : index
    %143 = vector.load %arg12[%c0_63, %c0_64, %c0_65] : memref<1x1x784xf32, #tpu.memory_space<vmem>>, vector<1x1x784xf32>
    %144 = vector.shape_cast %143 : vector<1x1x784xf32> to vector<1x784xf32>
    %145 = vector.broadcast %144 : vector<1x784xf32> to vector<34x784xf32>
    %146 = arith.addf %142, %145 : vector<34x784xf32>
    %cst_66 = arith.constant 5.000000e-01 : f32
    %147 = vector.broadcast %cst_66 : f32 to vector<34x784xf32>
    %148 = arith.mulf %147, %146 : vector<34x784xf32>
    %cst_67 = arith.constant 4.471500e-02 : f32
    %149 = vector.broadcast %cst_67 : f32 to vector<34x784xf32>
    %150 = arith.mulf %149, %146 : vector<34x784xf32>
    %151 = arith.mulf %150, %146 : vector<34x784xf32>
    %152 = arith.mulf %151, %146 : vector<34x784xf32>
    %153 = arith.addf %146, %152 : vector<34x784xf32>
    %cst_68 = arith.constant 0.797884583 : f32
    %154 = vector.broadcast %cst_68 : f32 to vector<34x784xf32>
    %155 = arith.mulf %154, %153 : vector<34x784xf32>
    %156 = math.tanh %155 : vector<34x784xf32>
    %cst_69 = arith.constant 1.000000e+00 : f32
    %157 = vector.broadcast %cst_69 : f32 to vector<34x784xf32>
    %158 = arith.addf %157, %156 : vector<34x784xf32>
    %159 = arith.mulf %148, %158 : vector<34x784xf32>
    %160 = arith.truncf %159 : vector<34x784xf32> to vector<34x784xbf16>
    %c0_70 = arith.constant 0 : index
    %c0_71 = arith.constant 0 : index
    %c0_72 = arith.constant 0 : index
    %161 = vector.load %arg13[%c0_70, %c0_71, %c0_72] : memref<1x784x196xbf16, #tpu.memory_space<vmem>>, vector<1x784x196xbf16>
    %162 = vector.shape_cast %161 : vector<1x784x196xbf16> to vector<784x196xbf16>
    %cst_73 = arith.constant dense<0.000000e+00> : vector<34x196xf32>
    %163 = tpu.matmul %160, %162, %cst_73 {dimension_numbers = #tpu.dot_dimension_numbers<[1], [0], [0], [1], [0, 0, 1, 1], [], []>} : vector<34x784xbf16>, vector<784x196xbf16>, vector<34x196xf32> -> vector<34x196xf32>
    %c0_74 = arith.constant 0 : index
    %c0_75 = arith.constant 0 : index
    %c0_76 = arith.constant 0 : index
    %164 = vector.load %arg14[%c0_74, %c0_75, %c0_76] : memref<1x1x196xf32, #tpu.memory_space<vmem>>, vector<1x1x196xf32>
    %165 = vector.shape_cast %164 : vector<1x1x196xf32> to vector<1x196xf32>
    %166 = vector.broadcast %165 : vector<1x196xf32> to vector<34x196xf32>
    %167 = arith.addf %163, %166 : vector<34x196xf32>
    %168 = arith.addf %114, %167 : vector<34x196xf32>
    %c0_77 = arith.constant 0 : index
    %c0_78 = arith.constant 0 : index
    %169 = vector.load %arg16[%c0_77, %c0_78] : memref<34x196xf32, #tpu.memory_space<vmem>>, vector<34x196xf32>
    tpu.vector_store %arg16[%c0_77, %c0_78], %168 {strides = array<i32>} : memref<34x196xf32, #tpu.memory_space<vmem>>, vector<34x196xf32>,
    %c11_i32 = arith.constant 11 : i32
    %170 = arith.cmpi eq, %arg0, %c11_i32 : i32
    %171 = arith.extui %170 : i1 to i32
    %c0_i32_79 = arith.constant 0 : i32
    %172 = arith.cmpi ne, %171, %c0_i32_79 : i32
    scf.if %172 {
      %c0_80 = arith.constant 0 : index
      %c0_81 = arith.constant 0 : index
      %173 = vector.load %arg15[%c0_80, %c0_81] : memref<34x196xf32, #tpu.memory_space<vmem>>, vector<34x196xf32>
      tpu.vector_store %arg15[%c0_80, %c0_81], %168 {strides = array<i32>} : memref<34x196xf32, #tpu.memory_space<vmem>>, vector<34x196xf32>,
    } else {
    }
    return
  }
  func.func @transform_0(%arg0: i32) -> (i32, i32) {
    %c0_i32 = arith.constant 0 : i32
    %c0_i32_0 = arith.constant 0 : i32
    %c0_i32_1 = arith.constant 0 : i32
    return %c0_i32, %c0_i32_0 : i32, i32
  }
  func.func @transform_1(%arg0: i32) -> (i32, i32) {
    %c0_i32 = arith.constant 0 : i32
    %c0_i32_0 = arith.constant 0 : i32
    %c0_i32_1 = arith.constant 0 : i32
    return %c0_i32, %c0_i32_0 : i32, i32
  }
  func.func @transform_2(%arg0: i32) -> (i32, i32, i32) {
    %c0_i32 = arith.constant 0 : i32
    %c0_i32_0 = arith.constant 0 : i32
    %c0_i32_1 = arith.constant 0 : i32
    return %arg0, %c0_i32, %c0_i32_0 : i32, i32, i32
  }
  func.func @transform_3(%arg0: i32) -> (i32, i32, i32) {
    %c0_i32 = arith.constant 0 : i32
    %c0_i32_0 = arith.constant 0 : i32
    %c0_i32_1 = arith.constant 0 : i32
    return %arg0, %c0_i32, %c0_i32_0 : i32, i32, i32
  }
  func.func @transform_4(%arg0: i32) -> (i32, i32, i32) {
    %c0_i32 = arith.constant 0 : i32
    %c0_i32_0 = arith.constant 0 : i32
    %c0_i32_1 = arith.constant 0 : i32
    return %arg0, %c0_i32, %c0_i32_0 : i32, i32, i32
  }
  func.func @transform_5(%arg0: i32) -> (i32, i32, i32) {
    %c0_i32 = arith.constant 0 : i32
    %c0_i32_0 = arith.constant 0 : i32
    %c0_i32_1 = arith.constant 0 : i32
    return %arg0, %c0_i32, %c0_i32_0 : i32, i32, i32
  }
  func.func @transform_6(%arg0: i32) -> (i32, i32, i32) {
    %c0_i32 = arith.constant 0 : i32
    %c0_i32_0 = arith.constant 0 : i32
    %c0_i32_1 = arith.constant 0 : i32
    return %arg0, %c0_i32, %c0_i32_0 : i32, i32, i32
  }
  func.func @transform_7(%arg0: i32) -> (i32, i32, i32) {
    %c0_i32 = arith.constant 0 : i32
    %c0_i32_0 = arith.constant 0 : i32
    %c0_i32_1 = arith.constant 0 : i32
    return %arg0, %c0_i32, %c0_i32_0 : i32, i32, i32
  }
  func.func @transform_8(%arg0: i32) -> (i32, i32, i32) {
    %c0_i32 = arith.constant 0 : i32
    %c0_i32_0 = arith.constant 0 : i32
    %c0_i32_1 = arith.constant 0 : i32
    return %arg0, %c0_i32, %c0_i32_0 : i32, i32, i32
  }
  func.func @transform_9(%arg0: i32) -> (i32, i32, i32) {
    %c0_i32 = arith.constant 0 : i32
    %c0_i32_0 = arith.constant 0 : i32
    %c0_i32_1 = arith.constant 0 : i32
    return %arg0, %c0_i32, %c0_i32_0 : i32, i32, i32
  }
  func.func @transform_10(%arg0: i32) -> (i32, i32, i32) {
    %c0_i32 = arith.constant 0 : i32
    %c0_i32_0 = arith.constant 0 : i32
    %c0_i32_1 = arith.constant 0 : i32
    return %arg0, %c0_i32, %c0_i32_0 : i32, i32, i32
  }
  func.func @transform_11(%arg0: i32) -> (i32, i32, i32) {
    %c0_i32 = arith.constant 0 : i32
    %c0_i32_0 = arith.constant 0 : i32
    %c0_i32_1 = arith.constant 0 : i32
    return %arg0, %c0_i32, %c0_i32_0 : i32, i32, i32
  }
  func.func @transform_12(%arg0: i32) -> (i32, i32, i32) {
    %c0_i32 = arith.constant 0 : i32
    %c0_i32_0 = arith.constant 0 : i32
    %c0_i32_1 = arith.constant 0 : i32
    return %arg0, %c0_i32, %c0_i32_0 : i32, i32, i32
  }
  func.func @transform_13(%arg0: i32) -> (i32, i32, i32) {
    %c0_i32 = arith.constant 0 : i32
    %c0_i32_0 = arith.constant 0 : i32
    %c0_i32_1 = arith.constant 0 : i32
    return %arg0, %c0_i32, %c0_i32_0 : i32, i32, i32
  }
  func.func @transform_14(%arg0: i32) -> (i32, i32) {
    %c0_i32 = arith.constant 0 : i32
    %c0_i32_0 = arith.constant 0 : i32
    %c0_i32_1 = arith.constant 0 : i32
    return %c0_i32, %c0_i32_0 : i32, i32
  }
}

</mosaic_0001>

<bundles_post_ra>
// kernel: eq.28
= control target key start
LH: loop header
LB: loop body
LE: loop exit
PB: predicated region body
PF: predicated region fallthrough
CT: control target
= control target key end

     0   :  { %vm8_vm0 = vcmask 138240   ;;  %vm14_vm1 = vcmask 277640   ;;  %s42_s0 = inlined_call_operand.vmem [shape: s32[2,17], index: 0, kind: input, shape index: {}]   ;;  %s43_s1 = inlined_call_operand.vmem [shape: s32[34], index: 1, kind: output, shape index: {}]  }
   0x1   :  { %v5_v0 = vld [vmem:[%s42_s0] sm:$0x3]  ;;  %s25_s0 = smov 17  }
   0x2   :  { %6 = vst [vmem:[#allocation1] sm:$0x3] %v5_v0 }
   0x9   :  { %v11_v1 = vld [vmem:[#allocation1 + $0x1] sm:$0x1]   ;;  %v7_v2 = vld [vmem:[#allocation1] sm:$0x1]  }
   0xa   :  { %12 = vrot.lane.b32.xlu0 %v11_v1, %s25_s0  ;;  %9 = vst.msk [vmem:[#allocation0] sm:$0x1] %vm8_vm0, %v7_v2  }
  0x7c   :  { %v13_v3 = vpop.permute.xlu0 %12  }
  0x7d   :  { %15 = vst.msk [vmem:[#allocation0] sm:$0x1] %vm14_vm1, %v13_v3  }
  0x84   :  { %v20_v4 = vld [vmem:[#allocation0] sm:$0x1] }
  0x85   :  { %23 = vst [vmem:[%s43_s1] sm:$0x1] %v20_v4 }

// kernel: forward.3
= control target key start
LH: loop header
LB: loop body
LE: loop exit
PB: predicated region body
PF: predicated region fallthrough
CT: control target
= control target key end

     0   :  { %s6942_s29 = smov 0   ;;  %s8867_s0 = inlined_call_operand.vmem [shape: f32[34,196], index: 0, kind: input, shape index: {}]   ;;  %s8868_s1 = inlined_call_operand.vmem [shape: f32[34,34], index: 1, kind: input, shape index: {}]   ;;  %s8869_s2 = inlined_call_operand.vmem [shape: f32[12,1,196], index: 2, kind: input, shape index: {}]   ;;  %s8870_s3 = inlined_call_operand.vmem [shape: f32[12,1,196], index: 3, kind: input, shape index: {}]   ;;  %s8871_s4 = inlined_call_operand.vmem [shape: bf16[12,196,588], index: 4, kind: input, shape index: {}]   ;;  %s8872_s5 = inlined_call_operand.vmem [shape: f32[12,1,588], index: 5, kind: input, shape index: {}]   ;;  %s8873_s6 = inlined_call_operand.vmem [shape: bf16[12,196,196], index: 6, kind: input, shape index: {}]   ;;  %s8874_s7 = inlined_call_operand.vmem [shape: f32[12,1,196], index: 7, kind: input, shape index: {}]   ;;  %s8875_s8 = inlined_call_operand.vmem [shape: f32[12,1,196], index: 8, kind: input, shape index: {}]   ;;  %s8876_s9 = inlined_call_operand.vmem [shape: f32[12,1,196], index: 9, kind: input, shape index: {}]   ;;  %s8877_s10 = inlined_call_operand.vmem [shape: bf16[12,196,784], index: 10, kind: input, shape index: {}]   ;;  %s8878_s11 = inlined_call_operand.vmem [shape: f32[12,1,784], index: 11, kind: input, shape index: {}]   ;;  %s8879_s12 = inlined_call_operand.vmem [shape: bf16[12,784,196], index: 12, kind: input, shape index: {}]   ;;  %s8880_s13 = inlined_call_operand.vmem [shape: f32[12,1,196], index: 13, kind: input, shape index: {}]   ;;  %s8881_s14 = inlined_call_operand.vmem [shape: f32[34,196], index: 14, kind: output, shape index: {}]  }
   0x1   :  { %8909 = sst [smem:[#allocation18_spill]] %s8867_s0 }
   0x2   :  { %8910 = sst [smem:[#allocation19_spill]] %s8868_s1 }
   0x3   :  { %8911 = sst [smem:[#allocation20_spill]] %s8871_s4 }
   0x4   :  { %8912 = sst [smem:[#allocation21_spill]] %s8872_s5 }
   0x5   :  { %8913 = sst [smem:[#allocation22_spill]] %s8881_s14 }
   0x6 LB: > { %8914 = sst [smem:[#allocation3_spill]] %s6848_s29  ;;  %s6948_s30 = sadd.s32 4294967295, %s6848_s29   ;;  %s6848_s29 = sphi %s6942_s29, %s24_s29  }
   0x7   : > { %8915 = sst [smem:[#allocation4_spill]] %s6948_s30  ;;  %p5528_p0 = scmp.ge.s32.totalorder %s6848_s29, 1 }
   0x8   : > { %p509_p1 = scmp.lt.s32.totalorder %s6848_s29, 13 }
   0xa   : > { %p510_p2 = pnand %p5528_p0, %p509_p1 }
   0xc   : > { %513 = sbr.rel (%p510_p2) target bundleno = 3266 (0xcc2), region = 76 }
  0x11   : > { %p597_p3 = scmp.lt.s32.totalorder %s6948_s30, 11  ;;  %s8916_s4 = sld [smem:[#allocation20_spill]] }
  0x12   : > { %s8917_s5 = sld [smem:[#allocation21_spill]] }
  0x13   : > { %s598_s15 = scalar_select %p597_p3, %s6948_s30, 11 }
  0x15   : > { %s6954_s16 = sshll.u32 %s598_s15, 1  ;;  %s6200_s17 = smul.u32 500, %s598_s15 }
  0x16   : > { %s6201_s27 = smul.u32 5, %s598_s15 }
  0x17   : > { %s6967_s26 = scalar_lea.vmem %s8916_s4, %s6200_s17  ;;  %s6202_s28 = smul.u32 200, %s598_s15 }
  0x18   : > { %s6976_s18 = scalar_lea.vmem %s8917_s5, %s6201_s27  ;;  %s6203_s14 = smul.u32 700, %s598_s15 }
  0x19   : > { %s6985_s17 = scalar_lea.vmem %s8873_s6, %s6202_s28  ;;  %s6204_s30 = smul.u32 7, %s598_s15 }
  0x1a   : > { %s6998_s20 = scalar_lea.vmem %s8877_s10, %s6203_s14  ;;  %s6205_s19 = smul.u32 784, %s598_s15 }
  0x1b   : > { %s7003_s28 = scalar_lea.vmem %s8878_s11, %s6204_s30  ;;  %s8918_s4 = sld [smem:[#allocation4_spill]] }
  0x1c   : > { %s7008_s25 = scalar_lea.vmem %s8879_s12, %s6205_s19 }
  0x21   : > { %p5539_p4 = scmp.ne.s32.totalorder %s8918_s4, 0 }
  0x22   : > { %s8919_s0 = sld [smem:[#allocation18_spill]] (!%p5539_p4) }
  0x23   : > { %653 = sbr.rel (%p5539_p4) target bundleno = 46 (0x2e), region = 80 }
  0x28   : > { %v654_v0 = vld [vmem:[%s8919_s0] sm:$0xff]  ;;  %v655_v1 = vld [vmem:[%s8919_s0 + $0x8] sm:$0xff]  ;;  %vm665_vm0 = vcmask 556032   ;;  %v656_v2 = vld [vmem:[%s8919_s0 + $0x10] sm:$0xff]  ;;  %vm674_vm1 = vcmask 549888  }
  0x29   : > { %664 = vst [vmem:[#allocation2] sm:$0xff] %v654_v0  ;;  %666 = vst.msk [vmem:[#allocation2 + $0x8] sm:$0xff] %vm665_vm0, %v655_v1  ;;  %v657_v3 = vld [vmem:[%s8919_s0 + $0x18] sm:$0xff]  ;;  %v658_v4 = vld [vmem:[%s8919_s0 + $0x20] sm:$0xff] }
  0x2a   : > { %667 = vst [vmem:[#allocation2 + $0x10] sm:$0xff] %v656_v2  ;;  %v659_v5 = vld [vmem:[%s8919_s0 + $0x28] sm:$0xff]  ;;  %668 = vst.msk [vmem:[#allocation2 + $0x18] sm:$0xff] %vm665_vm0, %v657_v3  ;;  %v660_v6 = vld [vmem:[%s8919_s0 + $0x30] sm:$0xff] }
  0x2b   : > { %669 = vst [vmem:[#allocation2 + $0x20] sm:$0xff] %v658_v4  ;;  %670 = vst.msk [vmem:[#allocation2 + $0x28] sm:$0xff] %vm665_vm0, %v659_v5  ;;  %v661_v7 = vld [vmem:[%s8919_s0 + $0x38] sm:$0xff]  ;;  %v662_v8 = vld [vmem:[%s8919_s0 + $0x40] sm:$0x3] }
  0x2c   : > { %671 = vst [vmem:[#allocation2 + $0x30] sm:$0xff] %v660_v6  ;;  %672 = vst.msk [vmem:[#allocation2 + $0x38] sm:$0xff] %vm665_vm0, %v661_v7  ;;  %v663_v9 = vld [vmem:[%s8919_s0 + $0x48] sm:$0x3] }
  0x2d   : > { %673 = vst [vmem:[#allocation2 + $0x40] sm:$0x3] %v662_v8  ;;  %675 = vst.msk [vmem:[#allocation2 + $0x48] sm:$0x3] %vm674_vm1, %v663_v9 }
  0x2e PF: > { %vm686_vm2 = vcmask 556032   ;;  %vm703_vm3 = vcmask 1041408   ;;  %vm705_vm4 = vcmask 549888   ;;  %v6261_v31 = vld [vmem:[%s6967_s26 + $0x11c] ss:$20 sps:$4 sm:$0xff]   ;;  %s8923_s19 = scalar_lea.vmem %s8869_s2, %s6954_s16  ;;  %s8924_s24 = scalar_lea.vmem %s8870_s3, %s6954_s16  ;;  %vm6853_vm5 = vmmov 0  }
  0x2f   : > { %v6263_v32 = vld [vmem:[%s6967_s26 + $0x118] ss:$20 sps:$4 sm:$0xff]   ;;  %v6266_v34 = vld [vmem:[%s6967_s26 + $0x120] ss:$20 sps:$4 sm:$0xff]   ;;  %1283 = vmatprep.subr.bf16.mxu0 %v6261_v31  ;;  %v6270_v36 = vld [vmem:[%s6967_s26 + $0xfc] ss:$20 sps:$4 sm:$0xff]   ;;  %s8927_s23 = scalar_lea.vmem %s8874_s7, %s6954_s16 }
  0x30   : > { %v7045_v10 = vld [vmem:[#allocation2] sm:$0xff]  ;;  %v7047_v11 = vld [vmem:[#allocation2 + $0x8] sm:$0xff]  ;;  %1284 = vmatpush1.bf16.msra.mxu0 %v6263_v32  ;;  %v6285_v47 = vld [vmem:[%s6967_s26 + $0x7c] ss:$20 sps:$4 sm:$0xff]   ;;  %s6855_s1 = smov 11   ;;  %s6856_s29 = smov 79  }
  0x31   : > { %v687_v13 = vsel %vm686_vm2, %v7047_v11, 0.0  ;;  %v7055_v15 = vld [vmem:[#allocation2 + $0x10] sm:$0xff]  ;;  %v7057_v16 = vld [vmem:[#allocation2 + $0x18] sm:$0xff]  ;;  %v6273_v39 = vld [vmem:[%s6967_s26 + $0xcc] ss:$20 sps:$4 sm:$0xff]   ;;  %s6857_s5 = smov 90  }
  0x32   : > { %v7049_v12 = vld [vmem:[#allocation2 + $0x20] sm:$0xff]  ;;  %v7053_v14 = vld [vmem:[#allocation2 + $0x28] sm:$0xff]  ;;  %v688_v17 = vadd.f32 %v687_v13, %v7045_v10  ;;  %v691_v19 = vsel %vm686_vm2, %v7057_v16, 0.0  ;;  %v6294_v52 = vld [vmem:[%s6967_s26 + $0x5c] ss:$20 sps:$4 sm:$0xff]   ;;  %vm1481_vm6 = vcmask 400384  }
  0x33   : > { %v695_v18 = vsel %vm686_vm2, %v7053_v14, 0.0  ;;  %v7064_v20 = vld [vmem:[#allocation2 + $0x30] sm:$0xff]  ;;  %v7066_v21 = vld [vmem:[#allocation2 + $0x38] sm:$0xff]  ;;  %v692_v26 = vadd.f32 %v691_v19, %v7055_v15  ;;  %v6282_v44 = vld [vmem:[%s6967_s26 + $0xac] ss:$20 sps:$4 sm:$0xff]   ;;  %s8925_s21 = sld [smem:[#allocation19_spill]] }
  0x34   : > { %v7068_v22 = vld [vmem:[#allocation2 + $0x40] sm:$0x3]  ;;  %v696_v23 = vadd.f32 %v695_v18, %v7049_v12  ;;  %v699_v24 = vsel %vm686_vm2, %v7066_v21, 0.0  ;;  %v7073_v25 = vld [vmem:[#allocation2 + $0x48] sm:$0x3]  ;;  %689 = vadd.xlane.f32.xlu0 %v688_v17  ;;  %vm1607_vm7 = vcmask 277504  }
  0x35   : > { %v700_v27 = vadd.f32 %v699_v24, %v7064_v20  ;;  %v704_v28 = vsel %vm703_vm3, %v7068_v22, 0.0  ;;  %v706_v29 = vsel %vm705_vm4, %v7073_v25, 0.0  ;;  %v6264_v33 = vld [vmem:[%s6967_s26 + $0x124] ss:$20 sps:$4 sm:$0xff]   ;;  %v6267_v35 = vld [vmem:[%s6967_s26 + $0xf4] ss:$20 sps:$4 sm:$0xff]  }
  0x36   : > { %697 = vadd.xlane.f32.xlu1 %v696_v23  ;;  %v707_v30 = vadd.f32 %v706_v29, %v704_v28  ;;  %1344 = vmatprep.subr.bf16.mxu1 %v6264_v33  ;;  %v6269_v37 = vld [vmem:[%s6967_s26 + $0xf0] ss:$20 sps:$4 sm:$0xff]   ;;  %v6272_v38 = vld [vmem:[%s6967_s26 + $0xf8] ss:$20 sps:$4 sm:$0xff]   ;;  %v6276_v40 = vld [vmem:[%s6967_s26 + $0xd4] ss:$20 sps:$4 sm:$0xff]  }
  0x37   : > { %1345 = vmatpush1.bf16.msra.mxu1 %v6266_v34  ;;  %1285 = vmatprep.subr.bf16.mxu0 %v6267_v35  ;;  %v6275_v41 = vld [vmem:[%s6967_s26 + $0xc8] ss:$20 sps:$4 sm:$0xff]   ;;  %v6278_v42 = vld [vmem:[%s6967_s26 + $0xd0] ss:$20 sps:$4 sm:$0xff]   ;;  %v6281_v45 = vld [vmem:[%s6967_s26 + $0xa0] ss:$20 sps:$4 sm:$0xff]  }
  0x38   : > { %693 = vadd.xlane.f32.xlu0 %v692_v26  ;;  %1346 = vmatprep.subr.bf16.mxu1 %v6270_v36  ;;  %v6279_v43 = vld [vmem:[%s6967_s26 + $0xa4] ss:$20 sps:$4 sm:$0xff]   ;;  %v6284_v46 = vld [vmem:[%s6967_s26 + $0xa8] ss:$20 sps:$4 sm:$0xff]   ;;  %v6290_v50 = vld [vmem:[%s6967_s26 + $0x80] ss:$20 sps:$4 sm:$0xff]  }
  0x39   : > { %1286 = vmatpush1.bf16.msra.mxu0 %v6269_v37  ;;  %v6288_v48 = vld [vmem:[%s6967_s26 + $0x84] ss:$20 sps:$4 sm:$0xff]   ;;  %v6291_v51 = vld [vmem:[%s6967_s26 + $0x54] ss:$20 sps:$4 sm:$0xff]   ;;  %v6297_v32 = vld [vmem:[%s6967_s26 + $0x2c] ss:$20 sps:$4 sm:$0xff]  }
  0x3a   : > { %701 = vadd.xlane.f32.xlu1 %v700_v27  ;;  %1287 = vmatprep.subr.bf16.mxu0 %v6273_v39  ;;  %v6287_v49 = vld [vmem:[%s6967_s26 + $0x78] ss:$20 sps:$4 sm:$0xff]   ;;  %v6293_v53 = vld [vmem:[%s6967_s26 + $0x50] ss:$20 sps:$4 sm:$0xff]   ;;  %v6299_v33 = vld [vmem:[%s6967_s26 + $0x28] ss:$20 sps:$4 sm:$0xff]  }
  0x3b   : > { %1347 = vmatpush1.bf16.msra.mxu1 %v6272_v38  ;;  %v6296_v31 = vld [vmem:[%s6967_s26 + $0x58] ss:$20 sps:$4 sm:$0xff]   ;;  %v6300_v34 = vld [vmem:[%s6967_s26 + $0x34] ss:$20 sps:$4 sm:$0xff]   ;;  %v6302_v35 = vld [vmem:[%s6967_s26 + $0x30] ss:$20 sps:$4 sm:$0xff]  }
  0x3c   : > { %708 = vadd.xlane.f32.xlu0 %v707_v30  ;;  %1348 = vmatprep.subr.bf16.mxu1 %v6276_v40  ;;  %v6303_v36 = vld [vmem:[%s6967_s26 + $0x4] ss:$20 sps:$4 sm:$0xff]   ;;  %v6305_v37 = vld [vmem:[%s6967_s26] ss:$20 sps:$4 sm:$0xff]   ;;  %v6308_v39 = vld [vmem:[%s6967_s26 + $0x8] ss:$20 sps:$4 sm:$0xff]  }
  0x3d   : > { %1288 = vmatpush1.bf16.msra.mxu0 %v6275_v41  ;;  %v6306_v38 = vld [vmem:[%s6967_s26 + $0xc] ss:$20 sps:$4 sm:$0xff]   ;;  %vm1620_vm8 = vcmask 271360   ;;  %s6862_s14 = smov 22   ;;  %vm1825_vm9 = vcmask 89088   ;;  %vm2147_vm10 = vcmask 244736  }
  0x3e   : > { %1289 = vmatprep.subr.bf16.mxu0 %v6279_v43  ;;  %v904_v40 = vld [vmem:[%s6967_s26 + $0x1e0] sm:$0x33]  ;;  %v905_v43 = vld [vmem:[%s6967_s26 + $0x1e8] sm:$0x33]  ;;  %vm2510_vm11 = vcmask 334848   ;;  %vm2363_vm12 = vcmask 179200  }
  0x3f   : > { %1349 = vmatpush1.bf16.msra.mxu1 %v6278_v42  ;;  %v5601_v41 = vcombine.high %v904_v40, %v904_v40  ;;  %v5600_v42 = vcombine.low %v904_v40, %v904_v40  ;;  %s6863_s15 = smov 101   ;;  %s6864_s30 = smov 49   ;;  %vm2877_vm13 = vcmask 801792   ;;  %vm2883_vm14 = vcmask 154624  }
  0x40   : > { %1350 = vmatprep.subr.bf16.mxu1 %v6282_v44  ;;  %v5603_v44 = vcombine.high %v905_v43, %v905_v43  ;;  %s6865_s4 = smov 98   ;;  %s6866_s27 = smov 19   ;;  %vm5077_vm15 = vcmask 130048  }
  0x41   : > { %1290 = vmatpush1.bf16.msra.mxu0 %v6281_v45  ;;  %v5602_v45 = vcombine.low %v905_v43, %v905_v43 }
  0x42   : > { %1291 = vmatprep.subr.bf16.mxu0 %v6285_v47 }
  0x43   : > { %1351 = vmatpush1.bf16.msra.mxu1 %v6284_v46  ;;  %v1269_v46 = vsel %vm703_vm3, %v5600_v42, 0  ;;  %v1275_v47 = vsel %vm703_vm3, %v5602_v45, 0 }
  0x44   : > { %1352 = vmatprep.subr.bf16.mxu1 %v6288_v48  ;;  %v6313_v48 = vld [vmem:[%s6967_s26 + $0x1bc] ss:$20 sps:$4 sm:$0xff]  }
  0x45   : > { %1292 = vmatpush1.bf16.msra.mxu0 %v6287_v49  ;;  %v6315_v49 = vld [vmem:[%s6967_s26 + $0x1b8] ss:$20 sps:$4 sm:$0xff]  }
  0x46   : > { %1293 = vmatprep.subr.bf16.mxu0 %v6291_v51  ;;  %v6318_v51 = vld [vmem:[%s6967_s26 + $0x1c0] ss:$20 sps:$4 sm:$0xff]  }
  0x47   : > { %1353 = vmatpush1.bf16.msra.mxu1 %v6290_v50  ;;  %v6316_v50 = vld [vmem:[%s6967_s26 + $0x1c4] ss:$20 sps:$4 sm:$0xff]  }
  0x48   : > { %1354 = vmatprep.subr.bf16.mxu1 %v6294_v52  ;;  %v6319_v52 = vld [vmem:[%s6967_s26 + $0x194] ss:$20 sps:$4 sm:$0xff]  }
  0x49   : > { %1294 = vmatpush1.bf16.msra.mxu0 %v6293_v53  ;;  %v6322_v53 = vld [vmem:[%s6967_s26 + $0x19c] ss:$20 sps:$4 sm:$0xff]  }
  0x4a   : > { %1295 = vmatprep.subr.bf16.mxu0 %v6297_v32 }
  0x4b   : > { %1355 = vmatpush1.bf16.msra.mxu1 %v6296_v31 }
  0x4c   : > { %1356 = vmatprep.subr.bf16.mxu1 %v6300_v34  ;;  %v804_v34 = vld [vmem:[%s8924_s24] sm:$0x3] }
  0x4d   : > { %1296 = vmatpush1.bf16.msra.mxu0 %v6299_v33 }
  0x4e   : > { %1297 = vmatprep.subr.bf16.mxu0 %v6303_v36 }
  0x4f   : > { %1357 = vmatpush1.bf16.msra.mxu1 %v6302_v35 }
  0x50   : > { %1358 = vmatprep.subr.bf16.mxu1 %v6306_v38 }
  0x51   : > { %1298 = vmatpush1.bf16.msra.mxu0 %v6305_v37 }
  0x52   : > { %5605 = vmatprep.subr.msk.bf16.mxu0 %vm703_vm3, %v5601_v41 }
  0x53   : > { %1359 = vmatpush1.bf16.msra.mxu1 %v6308_v39 }
  0x54   : > { %5609 = vmatprep.subr.msk.bf16.mxu1 %vm703_vm3, %v5603_v44 }
  0x55   : > { %1306 = vmatpush2.bf16.msra.mxu0 %v1269_v46 }
  0x56   : > { %1307 = vmatprep.subr.bf16.mxu0 %v6313_v48 }
  0x57   : > { %1367 = vmatpush2.bf16.msra.mxu1 %v1275_v47 }
  0x58   : > { %1368 = vmatprep.subr.bf16.mxu1 %v6316_v50 }
  0x59   : > { %1308 = vmatpush2.bf16.msra.mxu0 %v6315_v49 }
  0x5a   : > { %1309 = vmatprep.subr.bf16.mxu0 %v6319_v52 }
  0x5b   : > { %1369 = vmatpush2.bf16.msra.mxu1 %v6318_v51 }
  0x5c   : > { %1370 = vmatprep.subr.bf16.mxu1 %v6322_v53 }
  0xbd   : > { %v690_v54 = vpop.xlane.xlu0 %689 }
  0xbe   : > { %v711_v55 = vmul.f32 0.0051020407, %v690_v54  ;;  %v6321_v54 = vld [vmem:[%s6967_s26 + $0x190] ss:$20 sps:$4 sm:$0xff]  }
  0xbf   : > { %v698_v56 = vpop.xlane.xlu1 %697  ;;  %1310 = vmatpush2.bf16.msra.mxu0 %v6321_v54 }
  0xc0   : > { %v713_v57 = vmul.f32 0.0051020407, %v698_v56  ;;  %v7105_v58 = vsub.f32 %v7045_v10, %v711_v55  ;;  %v7108_v59 = vsub.f32 %v7047_v11, %v711_v55  ;;  %v6324_v55 = vld [vmem:[%s6967_s26 + $0x198] ss:$20 sps:$4 sm:$0xff]  }
  0xc1   : > { %v694_v62 = vpop.xlane.xlu0 %693  ;;  %v6325_v56 = vld [vmem:[%s6967_s26 + $0x16c] ss:$20 sps:$4 sm:$0xff]   ;;  %1371 = vmatpush2.bf16.msra.mxu1 %v6324_v55 }
  0xc2   : > { %v7111_v60 = vsub.f32 %v7049_v12, %v713_v57  ;;  %v7114_v61 = vsub.f32 %v7053_v14, %v713_v57  ;;  %v712_v63 = vmul.f32 0.0051020407, %v694_v62  ;;  %v726_v1 = vmul.f32 %v7105_v58, %v7105_v58  ;;  %v6328_v57 = vld [vmem:[%s6967_s26 + $0x174] ss:$20 sps:$4 sm:$0xff]   ;;  %1311 = vmatprep.subr.bf16.mxu0 %v6325_v56 }
  0xc3   : > { %v702_v0 = vpop.xlane.xlu1 %701  ;;  %v727_v2 = vmul.f32 %v7108_v59, %v7108_v59  ;;  %v6327_v62 = vld [vmem:[%s6967_s26 + $0x168] ss:$20 sps:$4 sm:$0xff]   ;;  %1372 = vmatprep.subr.bf16.mxu1 %v6328_v57 }
  0xc4   : > { %v714_v3 = vmul.f32 0.0051020407, %v702_v0  ;;  %v730_v4 = vmul.f32 %v7111_v60, %v7111_v60  ;;  %v731_v5 = vmul.f32 %v7114_v61, %v7114_v61  ;;  %v7125_v6 = vsub.f32 %v7055_v15, %v712_v63  ;;  %v6331_v0 = vld [vmem:[%s6967_s26 + $0x144] ss:$20 sps:$4 sm:$0xff]   ;;  %1312 = vmatpush2.bf16.msra.mxu0 %v6327_v62  ;;  %v6337_v56 = vld [vmem:[%s6967_s26 + $0x128] ss:$20 sps:$4 sm:$0xff]  }
  0xc5   : > { %v7128_v7 = vsub.f32 %v7057_v16, %v712_v63  ;;  %v736_v8 = vsel %vm686_vm2, %v727_v2, 0.0  ;;  %v709_v11 = vpop.xlane.xlu0 %708  ;;  %v6330_v63 = vld [vmem:[%s6967_s26 + $0x170] ss:$20 sps:$4 sm:$0xff]   ;;  %v6333_v2 = vld [vmem:[%s6967_s26 + $0x140] ss:$20 sps:$4 sm:$0xff]   ;;  %1313 = vmatprep.subr.bf16.mxu0 %v6331_v0 }
  0xc6   : > { %v7132_v9 = vsub.f32 %v7064_v20, %v714_v3  ;;  %v7135_v10 = vsub.f32 %v7066_v21, %v714_v3  ;;  %v737_v12 = vadd.f32 %v736_v8, %v726_v1  ;;  %v744_v13 = vsel %vm686_vm2, %v731_v5, 0.0  ;;  %v6334_v1 = vld [vmem:[%s6967_s26 + $0x14c] ss:$20 sps:$4 sm:$0xff]   ;;  %1373 = vmatpush2.bf16.msra.mxu1 %v6330_v63  ;;  %v6336_v3 = vld [vmem:[%s6967_s26 + $0x148] ss:$20 sps:$4 sm:$0xff]  }
  0xc7   : > { %v715_v14 = vmul.f32 0.0051020407, %v709_v11  ;;  %v728_v15 = vmul.f32 %v7125_v6, %v7125_v6  ;;  %v729_v16 = vmul.f32 %v7128_v7, %v7128_v7  ;;  %v745_v17 = vadd.f32 %v744_v13, %v730_v4  ;;  %1374 = vmatprep.subr.bf16.mxu1 %v6334_v1 }
  0xc8   : > { %738 = vadd.xlane.f32.xlu1 %v737_v12  ;;  %v732_v18 = vmul.f32 %v7132_v9, %v7132_v9  ;;  %v733_v19 = vmul.f32 %v7135_v10, %v7135_v10  ;;  %1314 = vmatpush2.bf16.msra.mxu0 %v6333_v2  ;;  %v8890_v4 = vmov 0  }
  0xc9   : > { %v7147_v20 = vsub.f32 %v7068_v22, %v715_v14  ;;  %v7150_v21 = vsub.f32 %v7073_v25, %v715_v14  ;;  %v740_v23 = vsel %vm686_vm2, %v729_v16, 0.0  ;;  %1405 = vmatprep.subr.bf16.mxu0 %v8890_v4 }
  0xca   : > { %v741_v24 = vadd.f32 %v740_v23, %v728_v15  ;;  %v748_v26 = vsel %vm686_vm2, %v733_v19, 0.0  ;;  %1375 = vmatpush2.bf16.msra.mxu1 %v6336_v3 }
  0xcb   : > { %v734_v27 = vmul.f32 %v7147_v20, %v7147_v20  ;;  %v735_v28 = vmul.f32 %v7150_v21, %v7150_v21  ;;  %v749_v22 = vadd.f32 %v748_v26, %v732_v18  ;;  %v784_v18 = vlaneseq }
  0xcc   : > { %746 = vadd.xlane.f32.xlu1 %v745_v17  ;;  %742 = vadd.xlane.f32.xlu0 %v741_v24 }
  0xcd   : > { %v752_v25 = vsel %vm703_vm3, %v734_v27, 0.0  ;;  %v753_v29 = vsel %vm705_vm4, %v735_v28, 0.0 }
  0xce   : > { %v754_v30 = vadd.f32 %v753_v29, %v752_v25 }
  0xd0   : > { %750 = vadd.xlane.f32.xlu0 %v749_v22  ;;  %755 = vadd.xlane.f32.xlu1 %v754_v30  ;;  %v7192_v22 = vshrl.u32 %v784_v18, 7  ;;  %v782_v30 = vld [vmem:[%s8923_s19] sm:$0x3]  ;;  %v6343_v18 = vld [vmem:[%s6967_s26 + $0x38] ss:$20 sps:$4 sm:$0xff]  }
  0xd2   : > { %8920 = vst [vmem:[#allocation5_spill] sm:$0xff] %v7192_v22  ;;  %v7195_v25 = vsub.s32 1, %v7192_v22  ;;  %v7198_v29 = vsub.s32 0, %v7192_v22 }
  0xd4   : > { %8921 = vst [vmem:[#allocation6_spill] sm:$0xff] %v7195_v25  ;;  %8922 = vst [vmem:[#allocation7_spill] sm:$0xff] %v7198_v29  ;;  %v791_v33 = vrot.slane %v782_v30, %v7195_v25  ;;  %v787_v36 = vrot.slane %v782_v30, %v7198_v29  ;;  %v813_v38 = vrot.slane %v804_v34, %v7195_v25  ;;  %v6349_v30 = vld [vmem:[%s6967_s26 + $0x150] ss:$20 sps:$4 sm:$0xff]  }
  0xd5   : > { %v809_v42 = vrot.slane %v804_v34, %v7198_v29 }
 0x151   : > { %v739_v5 = vpop.xlane.xlu1 %738 }
 0x152   : > { %v757_v8 = vmul.f32 0.0051020407, %v739_v5 }
 0x154   : > { %v762_v11 = vadd.f32 1e-05, %v757_v8  ;;  %v6339_v8 = vld [vmem:[%s6967_s26 + $0xd8] ss:$20 sps:$4 sm:$0xff]  }
 0x155   : > { %v747_v12 = vpop.xlane.xlu1 %746  ;;  %v743_v13 = vpop.xlane.xlu0 %742 }
 0x156   : > { %6662 = vrsqrt.f32 %v762_v11  ;;  %v759_v14 = vmul.f32 0.0051020407, %v747_v12  ;;  %v758_v15 = vmul.f32 0.0051020407, %v743_v13 }
 0x158   : > { %v764_v16 = vadd.f32 1e-05, %v759_v14  ;;  %v763_v17 = vadd.f32 1e-05, %v758_v15  ;;  %v6341_v15 = vld [vmem:[%s6967_s26 + $0x88] ss:$20 sps:$4 sm:$0xff]  }
 0x159   : > { %v756_v19 = vpop.xlane.xlu1 %755  ;;  %v751_v23 = vpop.xlane.xlu0 %750 }
 0x15a   : > { %6664 = vrsqrt.f32 %v764_v16  ;;  %v761_v24 = vmul.f32 0.0051020407, %v756_v19  ;;  %v760_v26 = vmul.f32 0.0051020407, %v751_v23  ;;  %v6344_v19 = vld [vmem:[%s6967_s26 + $0x10] ss:$20 sps:$4 sm:$0xff]  }
 0x15b   : > { %6666 = vrsqrt.f32 %v763_v17  ;;  %v6342_v17 = vld [vmem:[%s6967_s26 + $0x60] ss:$20 sps:$4 sm:$0xff]   ;;  %v6345_v23 = vld [vmem:[%s6967_s26 + $0x1f0] ss:$0 sps:$4 sm:$0x33]  }
 0x15c   : > { %v766_v27 = vadd.f32 1e-05, %v761_v24  ;;  %v765_v28 = vadd.f32 1e-05, %v760_v26  ;;  %v1281_v24 = vsel %vm703_vm3, %v6345_v23, 0 }
 0x15d   : > { %v6346_v26 = vld [vmem:[%s6967_s26 + $0x1c8] ss:$20 sps:$4 sm:$0xff]  }
 0x15e   : > { %6668 = vrsqrt.f32 %v766_v27  ;;  %v6347_v27 = vld [vmem:[%s6967_s26 + $0x1a0] ss:$20 sps:$4 sm:$0xff]  }
 0x15f   : > { %6670 = vrsqrt.f32 %v765_v28  ;;  %v6348_v28 = vld [vmem:[%s6967_s26 + $0x178] ss:$20 sps:$4 sm:$0xff]  }
 0x163   : > { %v6663_v31 = vpop.eup %6662 }
 0x164   : > { %v773_v32 = vmul.f32 %v6663_v31, %v7108_v59  ;;  %v772_v35 = vmul.f32 %v6663_v31, %v7105_v58 }
 0x166   : > { %v795_v40 = vmul.f32 %v791_v33, %v773_v32  ;;  %v794_v41 = vmul.f32 %v787_v36, %v772_v35  ;;  %v7269_v35 = vld [vmem:[%s6976_s18] sm:$0x1f]  ;;  %s6854_s18 = smov 120  }
 0x167   : > { %v6665_v37 = vpop.eup %6664 }
 0x168   : > { %v6667_v39 = vpop.eup %6666  ;;  %v777_v59 = vmul.f32 %v6665_v37, %v7114_v61  ;;  %v817_v48 = vadd.f32 %v813_v38, %v795_v40  ;;  %v816_v49 = vadd.f32 %v809_v42, %v794_v41  ;;  %v7279_v41 = vrot.slane %v7269_v35, %v7198_v29 }
 0x169   : > { %v775_v43 = vmul.f32 %v6667_v39, %v7128_v7  ;;  %v774_v44 = vmul.f32 %v6667_v39, %v7125_v6  ;;  %v776_v7 = vmul.f32 %v6665_v37, %v7111_v60 }
 0x16a   : > { %v799_v50 = vmul.f32 %v791_v33, %v777_v59 }
 0x16b   : > { %v6669_v45 = vpop.eup %6668  ;;  %v797_v46 = vmul.f32 %v791_v33, %v775_v43  ;;  %v796_v58 = vmul.f32 %v787_v36, %v774_v44  ;;  %v798_v60 = vmul.f32 %v787_v36, %v776_v7 }
 0x16c   : > { %v6671_v47 = vpop.eup %6670  ;;  %v781_v51 = vmul.f32 %v6669_v45, %v7150_v21  ;;  %v821_v21 = vadd.f32 %v813_v38, %v799_v50  ;;  %v780_v2 = vmul.f32 %v6669_v45, %v7147_v20  ;;  %v6340_v20 = vld [vmem:[%s6967_s26 + $0xb0] ss:$20 sps:$4 sm:$0xff]  }
 0x16d   : > { %v819_v52 = vadd.f32 %v813_v38, %v797_v46  ;;  %v818_v53 = vadd.f32 %v809_v42, %v796_v58  ;;  %v779_v54 = vmul.f32 %v6671_v47, %v7135_v10  ;;  %v778_v61 = vmul.f32 %v6671_v47, %v7132_v9  ;;  %v6338_v10 = vld [vmem:[%s6967_s26 + $0x100] ss:$20 sps:$4 sm:$0xff]   ;;  %s6852_s26 = smov 60  }
 0x16e   : > { %v803_v0 = vmul.f32 %v791_v33, %v781_v51  ;;  %v820_v5 = vadd.f32 %v809_v42, %v798_v60  ;;  %v802_v12 = vmul.f32 %v787_v36, %v780_v2  ;;  %v916_v47 = vrot.slane %v7269_v35, %v7195_v25 }
 0x16f   : > { %v827_v6 = vpack.c.bf16 %v819_v52, %v817_v48  ;;  %v7223_v55 = vpack.c.bf16 %v818_v53, %v816_v49  ;;  %v801_v57 = vmul.f32 %v791_v33, %v779_v54  ;;  %v800_v62 = vmul.f32 %v787_v36, %v778_v61 }
 0x170   : > { %v825_v3 = vadd.f32 %v813_v38, %v803_v0  ;;  %v824_v14 = vadd.f32 %v809_v42, %v802_v12 }
 0x171   : > { %5606 = vmatprep.mubr.msk.bf16.mxu0 %vm686_vm2, %v827_v6  ;;  %5610 = vmatprep.mubr.msk.bf16.mxu1 %vm686_vm2, %v827_v6  ;;  %v823_v63 = vadd.f32 %v813_v38, %v801_v57  ;;  %v822_v1 = vadd.f32 %v809_v42, %v800_v62  ;;  %v8892_v38 = vmov 0.0   ;;  %v8888_v62 = vsub.s32 3, %v7192_v22 }
 0x172   : > { %1316 = vmatmul.mubr.bf16.vlgmr.msra.gmra.mxu0 %v7223_v55  ;;  %1377 = vmatmul.mubr.bf16.vlgmr.msra.gmra.mxu1 %v7223_v55  ;;  %v831_v13 = vpack.c.bf16 %v825_v3, %v825_v3  ;;  %v830_v16 = vpack.c.bf16 %v824_v14, %v824_v14  ;;  %v8889_v3 = vsub.s32 2, %v7192_v22 }
 0x173   : > { %1406 = vmatpush1.bf16.msra.mxu0 %v6337_v56  ;;  %v829_v9 = vpack.c.bf16 %v823_v63, %v821_v21  ;;  %v828_v11 = vpack.c.bf16 %v822_v1, %v820_v5  ;;  %6000 = vmatprep.subr.mxu1 %v8892_v38 }
 0x174   : > { %1407 = vmatprep.subr.bf16.mxu0 %v8890_v4 }
 0x175   : > { %5607 = vmatprep.mubr.msk.bf16.mxu0 %vm686_vm2, %v829_v9  ;;  %5611 = vmatprep.mubr.msk.bf16.mxu1 %vm686_vm2, %v829_v9 }
 0x177   : > { %1408 = vmatpush1.bf16.msra.mxu0 %v6338_v10 }
 0x178   : > { %1409 = vmatprep.subr.bf16.mxu0 %v8890_v4 }
 0x17a   : > { %1326 = vmatmul.mubr.bf16.gmra.mxu0 %v828_v11  ;;  %1387 = vmatmul.mubr.bf16.gmra.mxu1 %v828_v11 }
 0x17b   : > { %1410 = vmatpush1.bf16.msra.mxu0 %v6339_v8  ;;  %5608 = vmatprep.mubr.msk.bf16.mxu0 %vm686_vm2, %v831_v13  ;;  %v920_v8 = vrot.slane %v7269_v35, %v8889_v3 }
 0x17c   : > { %5612 = vmatprep.mubr.msk.bf16.mxu1 %vm686_vm2, %v831_v13  ;;  %1411 = vmatprep.subr.bf16.mxu0 %v8890_v4 }
 0x17f   : > { %1412 = vmatpush1.bf16.msra.mxu0 %v6340_v20 }
 0x180   : > { %1413 = vmatprep.subr.bf16.mxu0 %v8890_v4 }
 0x182   : > { %1336 = vmatmul.mubr.bf16.gmra.mxu0 %v830_v16  ;;  %1397 = vmatmul.mubr.bf16.gmra.mxu1 %v830_v16 }
 0x183   : > { %1414 = vmatpush1.bf16.msra.mxu0 %v6341_v15  ;;  %5613 = vmatprep.mubr.msk.bf16.mxu0 %vm686_vm2, %v827_v6 }
 0x184   : > { %1415 = vmatprep.subr.bf16.mxu0 %v8890_v4  ;;  %6010 = vmatprep.mubr.msk.f32.mxu1 %vm6853_vm5, %v8892_v38 }
 0x187   : > { %1416 = vmatpush1.bf16.msra.mxu0 %v6342_v17 }
 0x188   : > { %1417 = vmatprep.subr.bf16.mxu0 %v8890_v4 }
 0x18b   : > { %1418 = vmatpush1.bf16.msra.mxu0 %v6343_v18 }
 0x18c   : > { %1419 = vmatprep.subr.bf16.mxu0 %v8890_v4 }
 0x18f   : > { %1420 = vmatpush1.bf16.msra.mxu0 %v6344_v19 }
 0x190   : > { %1427 = vmatprep.subr.bf16.mxu0 %v8890_v4 }
 0x193   : > { %1428 = vmatpush2.bf16.msra.mxu0 %v1281_v24 }
 0x194   : > { %1429 = vmatprep.subr.bf16.mxu0 %v8890_v4 }
 0x197   : > { %1430 = vmatpush2.bf16.msra.mxu0 %v6346_v26 }
 0x198   : > { %1431 = vmatprep.subr.bf16.mxu0 %v8890_v4 }
 0x19b   : > { %1432 = vmatpush2.bf16.msra.mxu0 %v6347_v27 }
 0x19c   : > { %1433 = vmatprep.subr.bf16.mxu0 %v8890_v4 }
 0x19f   : > { %1434 = vmatpush2.bf16.msra.mxu0 %v6348_v28 }
 0x1a0   : > { %1435 = vmatprep.subr.bf16.mxu0 %v8890_v4 }
 0x1a3   : > { %1436 = vmatpush2.bf16.msra.mxu0 %v6349_v30 }
 0x1a4   : > { %6075 = vmatprep.subr.mxu0 %v8892_v38 }
 0x1a6   : > { %1438 = vmatmul.mubr.bf16.vlgmr.msra.gmra.mxu0 %v7223_v55 }
 0x1a7   : > { %5614 = vmatprep.mubr.msk.bf16.mxu0 %vm686_vm2, %v829_v9  ;;  %v924_v9 = vrot.slane %v7269_v35, %v8888_v62 }
 0x1ae   : > { %1446 = vmatmul.mubr.bf16.gmra.mxu0 %v828_v11 }
 0x1af   : > { %5615 = vmatprep.mubr.msk.bf16.mxu0 %vm686_vm2, %v831_v13  ;;  %v8887_v13 = vsub.s32 4, %v7192_v22 }
 0x1b1   : > { %v7367_v15 = vrot.slane %v7269_v35, %v8887_v13 }
 0x1b6   : > { %1454 = vmatmul.mubr.bf16.gmra.mxu0 %v830_v16 }
 0x1b7   : > { %6085 = vmatprep.mubr.msk.f32.mxu0 %vm6853_vm5, %v8892_v38 }
 0x232   : > { %v7264_v31 = vpop.f32.mrf.mxu0  ;;  %v7266_v32 = vpop.f32.mrf.mxu1 }
 0x233   : > { %v7356_v20 = vadd.f32 %v7264_v31, %v7279_v41  ;;  %v7384_v24 = vadd.f32 %v7266_v32, %v920_v8 }
 0x234   : > { %v1319_v33 = vpop.f32.mrf.mxu0  ;;  %v1380_v34 = vpop.f32.mrf.mxu1 }
 0x235   : > { %v7304_v0 = vadd.f32 %v1319_v33, %v916_v47  ;;  %v7332_v5 = vadd.f32 %v1380_v34, %v924_v9 }
 0x236   : > { %v7271_v36 = vpop.f32.mrf.mxu0  ;;  %v7273_v37 = vpop.f32.mrf.mxu1 }
 0x237   : > { %v7371_v16 = vadd.f32 %v7271_v36, %v7279_v41  ;;  %v7374_v17 = vadd.f32 %v7273_v37, %v920_v8 }
 0x238   : > { %v1323_v39 = vpop.f32.mrf.mxu0  ;;  %v1384_v40 = vpop.f32.mrf.mxu1 }
 0x239   : > { %v7306_v60 = vadd.f32 %v1323_v39, %v916_v47  ;;  %v7325_v2 = vadd.f32 %v1384_v40, %v924_v9 }
 0x23a   : > { %v1327_v42 = vpop.f32.mrf.mxu0  ;;  %v1388_v59 = vpop.f32.mrf.mxu1 }
 0x23b   : > { %v7282_v43 = vadd.f32 %v1327_v42, %v7279_v41  ;;  %v7358_v14 = vadd.f32 %v1388_v59, %v920_v8 }
 0x23c   : > { %v1329_v44 = vpop.f32.mrf.mxu0  ;;  %v1390_v45 = vpop.f32.mrf.mxu1 }
 0x23d   : > { %v7297_v6 = vadd.f32 %v1329_v44, %v916_v47  ;;  %v7317_v10 = vadd.f32 %v1390_v45, %v924_v9 }
 0x23e   : > { %v1331_v46 = vpop.f32.mrf.mxu0  ;;  %v1392_v58 = vpop.f32.mrf.mxu1 }
 0x23f   : > { %v7287_v48 = vadd.f32 %v1331_v46, %v7279_v41  ;;  %v7347_v12 = vadd.f32 %v1392_v58, %v920_v8 }
 0x240   : > { %v1333_v49 = vpop.f32.mrf.mxu0  ;;  %v1394_v50 = vpop.f32.mrf.mxu1 }
 0x241   : > { %v7289_v51 = vadd.f32 %v1333_v49, %v916_v47  ;;  %v7319_v1 = vadd.f32 %v1394_v50, %v924_v9 }
 0x242   : > { %v1337_v52 = vpop.f32.mrf.mxu0  ;;  %v1398_v53 = vpop.f32.mrf.mxu1 }
 0x243   : > { %v7292_v54 = vadd.f32 %v1337_v52, %v7279_v41  ;;  %1477 = vrot.lane.b32.xlu1 %v7289_v51, %s6852_s26  ;;  %v7341_v11 = vadd.f32 %v1398_v53, %v920_v8 }
 0x244   : > { %v1339_v61 = vpop.f32.mrf.mxu0  ;;  %v7295_v7 = vpop.f32.mrf.mxu1 }
 0x245   : > { %v7299_v55 = vadd.f32 %v1339_v61, %v916_v47  ;;  %v7403_v35 = vadd.f32 %v7295_v7, %v924_v9  ;;  %v7462_v9 = vld [vmem:[%s8925_s21] sm:$0xff] }
 0x246   : > { %v1341_v56 = vpop.f32.mrf.mxu0  ;;  %v1402_v57 = vpop.f32.mrf.mxu1 }
 0x247   : > { %1479 = vrot.lane.b32.xlu0 %v7299_v55, %s6852_s26  ;;  %1475 = vrot.lane.b32.xlu1 %v7297_v6, %s6852_s26 }
 0x248   : > { %v1342_v21 = vpop.f32.mrf.mxu0  ;;  %v1403_v63 = vpop.f32.mrf.mxu1 }
 0x24b   : > { %1471 = vrot.lane.b32.xlu0 %v7304_v0, %s6852_s26  ;;  %1473 = vrot.lane.b32.xlu1 %v7306_v60, %s6852_s26  ;;  %s8939_s26 = scalar_lea.vmem %s8875_s8, %s6954_s16 }
 0x24f   : > { %1675 = vrot.lane.b32.xlu0 %v7319_v1, %s6854_s18  ;;  %1673 = vrot.lane.b32.xlu1 %v7317_v10, %s6854_s18 }
 0x253   : > { %1817 = vrot.lane.b32.xlu0 %v7289_v51, %s6855_s1  ;;  %1671 = vrot.lane.b32.xlu1 %v7325_v2, %s6854_s18 }
 0x257   : > { %1813 = vrot.lane.b32.xlu0 %v7297_v6, %s6855_s1  ;;  %1669 = vrot.lane.b32.xlu1 %v7332_v5, %s6854_s18 }
 0x25b   : > { %1809 = vrot.lane.b32.xlu0 %v7306_v60, %s6855_s1  ;;  %1823 = vrot.lane.b32.xlu1 %v7341_v11, %s6855_s1 }
 0x25f   : > { %1805 = vrot.lane.b32.xlu0 %v7304_v0, %s6855_s1  ;;  %1819 = vrot.lane.b32.xlu1 %v7347_v12, %s6855_s1 }
 0x263   : > { %1790 = vrot.lane.b32.xlu0 %v7356_v20, %s6856_s29  ;;  %1815 = vrot.lane.b32.xlu1 %v7358_v14, %s6855_s1 }
 0x266   : > { %v1439_v18 = vpop.f32.mrf.mxu0 }
 0x267   : > { %v7377_v19 = vadd.f32 %v1439_v18, %v7367_v15  ;;  %1792 = vrot.lane.b32.xlu0 %v7371_v16, %s6856_s29  ;;  %1811 = vrot.lane.b32.xlu1 %v7374_v17, %s6855_s1 }
 0x268   : > { %v1441_v23 = vpop.f32.mrf.mxu0 }
 0x26a   : > { %v1442_v26 = vpop.f32.mrf.mxu0 }
 0x26b   : > { %v7387_v27 = vadd.f32 %v1442_v26, %v7367_v15  ;;  %1821 = vrot.lane.b32.xlu0 %v7299_v55, %s6855_s1  ;;  %1807 = vrot.lane.b32.xlu1 %v7384_v24, %s6855_s1  ;;  %s6859_s1 = smov 41  }
 0x26c   : > { %v1444_v28 = vpop.f32.mrf.mxu0 }
 0x26d   : > { %v7468_v28 = vld [vmem:[%s8925_s21 + $0x8] sm:$0xff] }
 0x26e   : > { %v7393_v30 = vpop.f32.mrf.mxu0 }
 0x26f   : > { %2161 = vrot.lane.b32.xlu1 %v7341_v11, %s6857_s5 }
 0x270   : > { %v1449_v31 = vpop.f32.mrf.mxu0 }
 0x272   : > { %v1450_v32 = vpop.f32.mrf.mxu0 }
 0x273   : > { %v7398_v33 = vadd.f32 %v1450_v32, %v7367_v15  ;;  %2159 = vrot.lane.b32.xlu1 %v7347_v12, %s6857_s5 }
 0x274   : > { %v1452_v34 = vpop.f32.mrf.mxu0 }
 0x276   : > { %v7405_v36 = vpop.f32.mrf.mxu0 }
 0x277   : > { %1677 = vrot.lane.b32.xlu1 %v7403_v35, %s6854_s18  ;;  %s6858_s18 = smov 30  }
 0x278   : > { %v1457_v37 = vpop.f32.mrf.mxu0 }
 0x27a   : > { %v1458_v39 = vpop.f32.mrf.mxu0 }
 0x27c   : > { %v1459_v40 = vpop.f32.mrf.mxu0 }
 0x27d   : > { %v7475_v40 = vld [vmem:[%s8925_s21 + $0x10] sm:$0xff] }
 0x2b5   : > { %v1478_v41 = vpop.permute.xlu1 %1477 }
 0x2b9   : > { %v1480_v42 = vpop.permute.xlu0 %1479  ;;  %v1476_v59 = vpop.permute.xlu1 %1475 }
 0x2ba   : > { %6001 = vmatpush3.xpose.msk.msra.mxu1 %vm1481_vm6, %v1480_v42 }
 0x2bb   : > { %6002 = vmatprep.subr.mxu1 %v8892_v38 }
 0x2bd   : > { %v1474_v44 = vpop.permute.xlu1 %1473  ;;  %v1472_v58 = vpop.permute.xlu0 %1471 }
 0x2be   : > { %6003 = vmatpush3.xpose.msk.msra.mxu1 %vm1481_vm6, %v1478_v41 }
 0x2bf   : > { %6004 = vmatprep.subr.mxu1 %v8892_v38 }
 0x2c1   : > { %v1674_v45 = vpop.permute.xlu1 %1673  ;;  %v1676_v21 = vpop.permute.xlu0 %1675 }
 0x2c2   : > { %6005 = vmatpush3.xpose.msk.msra.mxu1 %vm1481_vm6, %v1476_v59 }
 0x2c3   : > { %6006 = vmatprep.subr.mxu1 %v8892_v38 }
 0x2c5   : > { %v1672_v46 = vpop.permute.xlu1 %1671 }
 0x2c6   : > { %6007 = vmatpush3.xpose.msk.msra.mxu1 %vm1481_vm6, %v1474_v44 }
 0x2c7   : > { %6008 = vmatprep.subr.mxu1 %v8892_v38 }
 0x2c9   : > { %v1670_v47 = vpop.permute.xlu1 %1669 }
 0x2ca   : > { %6009 = vmatpush3.xpose.msk.msra.mxu1 %vm1481_vm6, %v1472_v58 }
 0x2cb   : > { %6025 = vmatprep.subr.mxu1 %v8892_v38 }
 0x2cd   : > { %6011 = vmatmul.mubr.msk.f32.vlgmr.msra.gmra.mxu1 %vm1481_vm6, %v7356_v20  ;;  %v7421_v49 = vpop.permute.xlu1 %1823 }
 0x2ce   : > { %6013 = vmatprep.mubr.msk.f32.mxu1 %vm6853_vm5, %v8892_v38 }
 0x2d1   : > { %6014 = vmatmul.mubr.msk.f32.gmra.mxu1 %vm1481_vm6, %v7371_v16  ;;  %v7427_v50 = vpop.permute.xlu1 %1819 }
 0x2d2   : > { %6016 = vmatprep.mubr.msk.f32.mxu1 %vm6853_vm5, %v8892_v38 }
 0x2d5   : > { %v7431_v52 = vpop.permute.xlu1 %1815  ;;  %6017 = vmatmul.mubr.msk.f32.gmra.mxu1 %vm1481_vm6, %v7282_v43 }
 0x2d6   : > { %6019 = vmatprep.mubr.msk.f32.mxu1 %vm6853_vm5, %v8892_v38 }
 0x2d9   : > { %v7437_v53 = vpop.permute.xlu1 %1811  ;;  %6020 = vmatmul.mubr.msk.f32.gmra.mxu1 %vm1481_vm6, %v7287_v48 }
 0x2da   : > { %6022 = vmatprep.mubr.msk.f32.mxu1 %vm6853_vm5, %v8892_v38 }
 0x2dd   : > { %v7443_v61 = vpop.permute.xlu1 %1807  ;;  %6023 = vmatmul.mubr.msk.f32.gmra.mxu1 %vm1481_vm6, %v7292_v54 }
 0x2de   : > { %6035 = vmatprep.mubr.msk.f32.mxu1 %vm6853_vm5, %v8892_v38 }
 0x2e1   : > { %v7449_v7 = vpop.permute.xlu1 %2161 }
 0x2e5   : > { %v7451_v56 = vpop.permute.xlu1 %2159 }
 0x2e9   : > { %v1678_v57 = vpop.permute.xlu1 %1677 }
 0x2ea   : > { %6026 = vmatpush3.msk.msra.mxu1 %vm703_vm3, %v1678_v57 }
 0x2eb   : > { %6027 = vmatprep.subr.mxu1 %v8892_v38 }
 0x2ec   : > { %6028 = vmatpush3.msra.mxu1 %v1676_v21 }
 0x2ed   : > { %6029 = vmatprep.subr.mxu1 %v8892_v38 }
 0x2ee   : > { %6030 = vmatpush3.msra.mxu1 %v1674_v45 }
 0x2ef   : > { %6031 = vmatprep.subr.mxu1 %v8892_v38 }
 0x2f0   : > { %6032 = vmatpush3.msra.mxu1 %v1672_v46  ;;  %v7482_v46 = vld [vmem:[%s8925_s21 + $0x18] sm:$0xff] }
 0x2f1   : > { %6033 = vmatprep.subr.mxu1 %v8892_v38 }
 0x2f2   : > { %6034 = vmatpush3.msra.mxu1 %v1670_v47 }
 0x2f3   : > { %6050 = vmatprep.subr.mxu1 %v8892_v38 }
 0x38d   : > { %v1573_v63 = vpop.f32.mrf.mxu1 }
 0x38e   : > { %v1597_v8 = vmul.f32 0.14285715, %v1573_v63 }
 0x38f   : > { %v6012_v18 = vpop.f32.mrf.mxu1 }
 0x390   : > { %v1602_v23 = vadd.f32 %v1597_v8, %v7462_v9  ;;  %v7489_v8 = vld [vmem:[%s8925_s21 + $0x20] sm:$0x3] }
 0x391   : > { %v1578_v26 = vpop.f32.mrf.mxu1 }
 0x392   : > { %v1598_v31 = vmul.f32 0.14285715, %v1578_v26  ;;  %v1608_v32 = vsel %vm1607_vm7, %v1602_v23, -inf }
 0x393   : > { %1609 = vmax.xlane.f32.xlu1 %v1608_v32  ;;  %v6015_v34 = vpop.f32.mrf.mxu1 }
 0x394   : > { %v1603_v37 = vadd.f32 %v1598_v31, %v7468_v28 }
 0x395   : > { %v1583_v39 = vpop.f32.mrf.mxu1 }
 0x396   : > { %v1599_v41 = vmul.f32 0.14285715, %v1583_v39  ;;  %v1611_v42 = vsel %vm1607_vm7, %v1603_v37, -inf  ;;  %v7498_v39 = vpop.permute.xlu0 %1817 }
 0x397   : > { %1612 = vmax.xlane.f32.xlu0 %v1611_v42  ;;  %v6018_v59 = vpop.f32.mrf.mxu1 }
 0x398   : > { %v1604_v44 = vadd.f32 %v1599_v41, %v7475_v40 }
 0x399   : > { %v1588_v45 = vpop.f32.mrf.mxu1 }
 0x39a   : > { %v1600_v58 = vmul.f32 0.14285715, %v1588_v45  ;;  %v1614_v47 = vsel %vm1607_vm7, %v1604_v44, -inf  ;;  %v7500_v41 = vpop.permute.xlu0 %1813 }
 0x39b   : > { %1615 = vmax.xlane.f32.xlu0 %v1614_v47  ;;  %v6021_v57 = vpop.f32.mrf.mxu1 }
 0x39c   : > { %v1605_v21 = vadd.f32 %v1600_v58, %v7482_v46 }
 0x39d   : > { %v1593_v63 = vpop.f32.mrf.mxu1 }
 0x39e   : > { %v1601_v18 = vmul.f32 0.14285715, %v1593_v63  ;;  %v1617_v26 = vsel %vm1607_vm7, %v1605_v21, -inf  ;;  %v7502_v42 = vpop.permute.xlu0 %1809 }
 0x39f   : > { %1618 = vmax.xlane.f32.xlu0 %v1617_v26  ;;  %v6024_v31 = vpop.f32.mrf.mxu1 }
 0x3a0   : > { %v1606_v32 = vadd.f32 %v1601_v18, %v7489_v8 }
 0x3a2   : > { %v1621_v34 = vsel %vm1620_vm8, %v1606_v32, -inf  ;;  %v7504_v59 = vpop.permute.xlu0 %1805 }
 0x3a3   : > { %1622 = vmax.xlane.f32.xlu1 %v1621_v34 }
 0x3a6   : > { %v7506_v45 = vpop.permute.xlu0 %1790 }
 0x3aa   : > { %v7508_v58 = vpop.permute.xlu0 %1792 }
 0x3ae   : > { %v7510_v47 = vpop.permute.xlu0 %1821 }
 0x3b4   : > { %2157 = vrot.lane.b32.xlu1 %v7358_v14, %s6857_s5 }
 0x3b5   : > { %1794 = vrot.lane.b32.xlu0 %v7282_v43, %s6856_s29 }
 0x41c   : > { %v1610_v57 = vpop.xlane.xlu1 %1609 }
 0x41d   : > { %v1624_v63 = vsub.f32 %v1602_v23, %v1610_v57 }
 0x41f   : > { %v1629_v18 = vmul.f32 1.442695, %v1624_v63 }
 0x420   : > { %v1613_v26 = vpop.xlane.xlu0 %1612 }
 0x421   : > { %6672 = vpow2.f32 %v1629_v18  ;;  %v1625_v31 = vsub.f32 %v1603_v37, %v1613_v26 }
 0x423   : > { %v1631_v34 = vmul.f32 1.442695, %v1625_v31 }
 0x424   : > { %v1616_v13 = vpop.xlane.xlu0 %1615 }
 0x425   : > { %6674 = vpow2.f32 %v1631_v34  ;;  %v1626_v62 = vsub.f32 %v1604_v44, %v1616_v13 }
 0x427   : > { %v1633_v3 = vmul.f32 1.442695, %v1626_v62 }
 0x428   : > { %v1619_v62 = vpop.xlane.xlu0 %1618 }
 0x429   : > { %6676 = vpow2.f32 %v1633_v3 }
 0x42c   : > { %v1623_v3 = vpop.xlane.xlu1 %1622 }
 0x42d   : > { %v1628_v44 = vsub.f32 %v1606_v32, %v1623_v3 }
 0x42e   : > { %v7512_v4 = vpop.eup %6672 }
 0x42f   : > { %v1639_v38 = vsel %vm1607_vm7, %v7512_v4, 0.0  ;;  %v1637_v63 = vmul.f32 1.442695, %v1628_v44 }
 0x430   : > { %1640 = vadd.xlane.f32.xlu0 %v1639_v38  ;;  %v1627_v38 = vsub.f32 %v1605_v21, %v1619_v62 }
 0x432   : > { %v7516_v22 = vpop.eup %6674  ;;  %v1635_v13 = vmul.f32 1.442695, %v1627_v38 }
 0x433   : > { %v1642_v23 = vsel %vm1607_vm7, %v7516_v22, 0.0 }
 0x434   : > { %1643 = vadd.xlane.f32.xlu1 %v1642_v23  ;;  %6678 = vpow2.f32 %v1635_v13 }
 0x435   : > { %6680 = vpow2.f32 %v1637_v63 }
 0x436   : > { %v7520_v57 = vpop.eup %6676 }
 0x437   : > { %v1645_v37 = vsel %vm1607_vm7, %v7520_v57, 0.0 }
 0x438   : > { %1646 = vadd.xlane.f32.xlu0 %v1645_v37 }
 0x441   : > { %v7528_v18 = vpop.eup %6678 }
 0x442   : > { %v1648_v26 = vsel %vm1607_vm7, %v7528_v18, 0.0  ;;  %v7532_v31 = vpop.eup %6680 }
 0x443   : > { %v1651_v34 = vsel %vm1620_vm8, %v7532_v31, 0.0 }
 0x445   : > { %2155 = vrot.lane.b32.xlu1 %v7374_v17, %s6857_s5 }
 0x44e   : > { %1796 = vrot.lane.b32.xlu0 %v7287_v48, %s6856_s29 }
 0x469   : > { %1649 = vadd.xlane.f32.xlu1 %v1648_v26 }
 0x46d   : > { %1652 = vadd.xlane.f32.xlu0 %v1651_v34 }
 0x47a   : > { %2153 = vrot.lane.b32.xlu1 %v7384_v24, %s6857_s5  ;;  %s6861_s5 = smov 71  }
 0x47e   : > { %2129 = vrot.lane.b32.xlu1 %v7304_v0, %s6858_s18 }
 0x482   : > { %2508 = vrot.lane.b32.xlu1 %v7403_v35, %s6859_s1 }
 0x483   : > { %1798 = vrot.lane.b32.xlu0 %v7292_v54, %s6856_s29  ;;  %s6860_s29 = smov 109  }
 0x486   : > { %2133 = vrot.lane.b32.xlu1 %v7306_v60, %s6858_s18 }
 0x487   : > { %2127 = vrot.lane.b32.xlu0 %v7356_v20, %s6858_s18  ;;  %v7598_v20 = vadd.f32 %v7393_v30, %v7367_v15 }
 0x48a   : > { %2504 = vrot.lane.b32.xlu1 %v7319_v1, %s6859_s1 }
 0x48b   : > { %2506 = vrot.lane.b32.xlu0 %v7341_v11, %s6859_s1 }
 0x48e   : > { %2137 = vrot.lane.b32.xlu1 %v7297_v6, %s6858_s18 }
 0x48f   : > { %2131 = vrot.lane.b32.xlu0 %v7371_v16, %s6858_s18 }
 0x492   : > { %2500 = vrot.lane.b32.xlu1 %v7317_v10, %s6859_s1 }
 0x493   : > { %2502 = vrot.lane.b32.xlu0 %v7347_v12, %s6859_s1  ;;  %v8926_v12 = vmov 0.0  }
 0x496   : > { %2141 = vrot.lane.b32.xlu1 %v7289_v51, %s6858_s18 }
 0x497   : > { %2135 = vrot.lane.b32.xlu0 %v7282_v43, %s6858_s18  ;;  %v7566_v43 = vpop.permute.xlu0 %1794 }
 0x49a   : > { %2496 = vrot.lane.b32.xlu1 %v7325_v2, %s6859_s1 }
 0x49b   : > { %2498 = vrot.lane.b32.xlu0 %v7358_v14, %s6859_s1  ;;  %v1829_v14 = vsel %vm1825_vm9, %v7498_v39, %v7427_v50 }
 0x49e   : > { %2145 = vrot.lane.b32.xlu1 %v7299_v55, %s6858_s18 }
 0x49f   : > { %2139 = vrot.lane.b32.xlu0 %v7287_v48, %s6858_s18  ;;  %v7571_v48 = vpop.permute.xlu1 %2157 }
 0x4a2   : > { %2492 = vrot.lane.b32.xlu1 %v7332_v5, %s6859_s1 }
 0x4a3   : > { %2494 = vrot.lane.b32.xlu0 %v7374_v17, %s6859_s1  ;;  %v1826_v17 = vsel %vm1825_vm9, %v7504_v59, %v7443_v61 }
 0x4a6   : > { %2482 = vrot.lane.b32.xlu1 %v7306_v60, %s6860_s29 }
 0x4a7   : > { %2143 = vrot.lane.b32.xlu0 %v7292_v54, %s6858_s18 }
 0x4aa   : > { %2486 = vrot.lane.b32.xlu1 %v7289_v51, %s6860_s29 }
 0x4ab   : > { %2490 = vrot.lane.b32.xlu0 %v7384_v24, %s6859_s1 }
 0x4ae   : > { %2014 = vrot.lane.b32.xlu1 %v7403_v35, %s6861_s5 }
 0x4af   : > { %2480 = vrot.lane.b32.xlu0 %v7304_v0, %s6860_s29 }
 0x4b2   : > { %2010 = vrot.lane.b32.xlu1 %v7317_v10, %s6861_s5 }
 0x4b3   : > { %2484 = vrot.lane.b32.xlu0 %v7297_v6, %s6860_s29 }
 0x4b6   : > { %2359 = vrot.lane.b32.xlu1 %v7403_v35, %s6862_s14 }
 0x4b7   : > { %2488 = vrot.lane.b32.xlu0 %v7299_v55, %s6860_s29  ;;  %v7580_v55 = vadd.f32 %v7405_v36, %v7367_v15  ;;  %v1827_v15 = vsel %vm1825_vm9, %v7502_v42, %v7437_v53  ;;  %s8940_s29 = scalar_lea.vmem %s8876_s9, %s6954_s16 }
 0x4b9   : > { %v1641_v51 = vpop.xlane.xlu0 %1640 }
 0x4ba   : > { %6682 = vrcp.f32 %v1641_v51  ;;  %2355 = vrot.lane.b32.xlu1 %v7319_v1, %s6862_s14 }
 0x4bb   : > { %2012 = vrot.lane.b32.xlu0 %v7319_v1, %s6861_s5  ;;  %v1830_v1 = vsel %vm1825_vm9, %v7510_v47, %v7421_v49 }
 0x4bd   : > { %v1644_v54 = vpop.xlane.xlu1 %1643 }
 0x4be   : > { %6684 = vrcp.f32 %v1644_v54 }
 0x4bf   : > { %2008 = vrot.lane.b32.xlu0 %v7325_v2, %s6861_s5 }
 0x4c1   : > { %v1647_v6 = vpop.xlane.xlu0 %1646 }
 0x4c2   : > { %6686 = vrcp.f32 %v1647_v6 }
 0x4c3   : > { %2006 = vrot.lane.b32.xlu0 %v7332_v5, %s6861_s5 }
 0x4c5   : > { %v1797_v24 = vpop.permute.xlu0 %1796 }
 0x4c7   : > { %v6683_v0 = vpop.eup %6682  ;;  %2361 = vrot.lane.b32.xlu0 %v7580_v55, %s6862_s14 }
 0x4c8   : > { %v1655_v60 = vmul.f32 %v6683_v0, %v7512_v4 }
 0x4ca   : > { %6036 = vmatmul.mubr.msk.f32.vlgmr.msra.gmra.mxu1 %vm1607_vm7, %v1655_v60 }
 0x4cb   : > { %v6685_v11 = vpop.eup %6684  ;;  %6051 = vmatpush3.xpose.msk.msra.mxu1 %vm1481_vm6, %v1830_v1  ;;  %2351 = vrot.lane.b32.xlu0 %v7317_v10, %s6862_s14  ;;  %v1828_v10 = vsel %vm1825_vm9, %v7500_v41, %v7431_v52 }
 0x4cc   : > { %6038 = vmatprep.mubr.msk.f32.mxu1 %vm6853_vm5, %v8926_v12  ;;  %6052 = vmatprep.subr.mxu1 %v8926_v12  ;;  %v1657_v4 = vmul.f32 %v6685_v11, %v7516_v22 }
 0x4ce   : > { %6039 = vmatmul.mubr.msk.f32.gmra.mxu1 %vm1607_vm7, %v1657_v4 }
 0x4cf   : > { %v6687_v16 = vpop.eup %6686  ;;  %6053 = vmatpush3.xpose.msk.msra.mxu1 %vm1481_vm6, %v1829_v14  ;;  %2353 = vrot.lane.b32.xlu0 %v7598_v20, %s6862_s14 }
 0x4d0   : > { %6041 = vmatprep.mubr.msk.f32.mxu1 %vm6853_vm5, %v8926_v12  ;;  %6054 = vmatprep.subr.mxu1 %v8926_v12  ;;  %v1659_v22 = vmul.f32 %v6687_v16, %v7520_v57 }
 0x4d2   : > { %6042 = vmatmul.mubr.msk.f32.gmra.mxu1 %vm1607_vm7, %v1659_v22 }
 0x4d3   : > { %6055 = vmatpush3.xpose.msk.msra.mxu1 %vm1481_vm6, %v1828_v10  ;;  %2347 = vrot.lane.b32.xlu0 %v7325_v2, %s6862_s14  ;;  %v2156_v2 = vpop.permute.xlu1 %2155 }
 0x4d4   : > { %6056 = vmatprep.subr.mxu1 %v8926_v12  ;;  %6044 = vmatprep.mubr.msk.f32.mxu1 %vm6853_vm5, %v8926_v12 }
 0x4d7   : > { %6057 = vmatpush3.xpose.msk.msra.mxu1 %vm1481_vm6, %v1827_v15 }
 0x4d8   : > { %6058 = vmatprep.subr.mxu1 %v8926_v12 }
 0x4db   : > { %6059 = vmatpush3.xpose.msk.msra.mxu1 %vm1481_vm6, %v1826_v17 }
 0x4dc   : > { %6100 = vmatprep.subr.mxu1 %v8926_v12 }
 0x4f2   : > { %v1650_v30 = vpop.xlane.xlu1 %1649 }
 0x4f3   : > { %6688 = vrcp.f32 %v1650_v30 }
 0x4f6   : > { %v1653_v35 = vpop.xlane.xlu0 %1652  ;;  %v2154_v36 = vpop.permute.xlu1 %2153 }
 0x4f7   : > { %6690 = vrcp.f32 %v1653_v35 }
 0x4fa   : > { %v1799_v49 = vpop.permute.xlu0 %1798  ;;  %v2130_v50 = vpop.permute.xlu1 %2129 }
 0x4fe   : > { %v2128_v52 = vpop.permute.xlu0 %2127  ;;  %v2509_v53 = vpop.permute.xlu1 %2508 }
 0x4ff   : > { %v2148_v13 = vsel %vm2147_vm10, %v2128_v52, %v2130_v50 }
 0x500   : > { %v6689_v21 = vpop.eup %6688 }
 0x501   : > { %v1661_v32 = vmul.f32 %v6689_v21, %v7528_v18 }
 0x502   : > { %v2507_v39 = vpop.permute.xlu0 %2506  ;;  %v2134_v61 = vpop.permute.xlu1 %2133 }
 0x503   : > { %6045 = vmatmul.mubr.msk.f32.gmra.mxu1 %vm1607_vm7, %v1661_v32  ;;  %v2515_v18 = vsel %vm2510_vm11, %v2507_v39, %v2509_v53 }
 0x504   : > { %v6691_v41 = vpop.eup %6690  ;;  %6047 = vmatprep.mubr.msk.f32.mxu1 %vm6853_vm5, %v8926_v12 }
 0x505   : > { %v1663_v42 = vmul.f32 %v6691_v41, %v7532_v31 }
 0x506   : > { %v2132_v59 = vpop.permute.xlu0 %2131  ;;  %v2505_v47 = vpop.permute.xlu1 %2504 }
 0x507   : > { %6048 = vmatmul.mubr.msk.f32.gmra.mxu1 %vm1607_vm7, %v1663_v42  ;;  %v2149_v26 = vsel %vm2147_vm10, %v2132_v59, %v2134_v61 }
 0x508   : > { %6060 = vmatprep.mubr.msk.f32.mxu1 %vm6853_vm5, %v8926_v12 }
 0x50a   : > { %v2503_v23 = vpop.permute.xlu0 %2502  ;;  %v2138_v57 = vpop.permute.xlu1 %2137 }
 0x50b   : > { %6061 = vmatmul.mubr.msk.f32.vlgmr.msra.gmra.mxu1 %vm1481_vm6, %v7506_v45 }
 0x50c   : > { %6101 = vmatpush3.xpose.msk.msra.mxu1 %vm1481_vm6, %v7449_v7  ;;  %6063 = vmatprep.mubr.msk.f32.mxu1 %vm6853_vm5, %v8926_v12 }
 0x50d   : > { %6102 = vmatprep.subr.mxu1 %v8926_v12 }
 0x50e   : > { %v2136_v37 = vpop.permute.xlu0 %2135  ;;  %v2501_v62 = vpop.permute.xlu1 %2500 }
 0x50f   : > { %6064 = vmatmul.mubr.msk.f32.gmra.mxu1 %vm1481_vm6, %v7508_v58 }
 0x510   : > { %6103 = vmatpush3.xpose.msk.msra.mxu1 %vm1481_vm6, %v7451_v56  ;;  %6066 = vmatprep.mubr.msk.f32.mxu1 %vm6853_vm5, %v8926_v12 }
 0x511   : > { %6104 = vmatprep.subr.mxu1 %v8926_v12 }
 0x512   : > { %v2499_v45 = vpop.permute.xlu0 %2498  ;;  %v2142_v7 = vpop.permute.xlu1 %2141 }
 0x513   : > { %6067 = vmatmul.mubr.msk.f32.gmra.mxu1 %vm1481_vm6, %v7566_v43  ;;  %v2514_v43 = vsel %vm2510_vm11, %v2503_v23, %v2505_v47  ;;  %v2513_v6 = vsel %vm2510_vm11, %v2499_v45, %v2501_v62 }
 0x514   : > { %6105 = vmatpush3.xpose.msk.msra.mxu1 %vm1481_vm6, %v7571_v48  ;;  %6069 = vmatprep.mubr.msk.f32.mxu1 %vm6853_vm5, %v8926_v12  ;;  %v2150_v48 = vsel %vm2147_vm10, %v2136_v37, %v2138_v57 }
 0x515   : > { %6106 = vmatprep.subr.mxu1 %v8926_v12 }
 0x516   : > { %v2140_v58 = vpop.permute.xlu0 %2139  ;;  %v2497_v56 = vpop.permute.xlu1 %2496 }
 0x517   : > { %6070 = vmatmul.mubr.msk.f32.gmra.mxu1 %vm1481_vm6, %v1797_v24  ;;  %v2151_v0 = vsel %vm2147_vm10, %v2140_v58, %v2142_v7 }
 0x518   : > { %6107 = vmatpush3.xpose.msk.msra.mxu1 %vm1481_vm6, %v2156_v2  ;;  %6072 = vmatprep.mubr.msk.f32.mxu1 %vm6853_vm5, %v8926_v12 }
 0x519   : > { %6108 = vmatprep.subr.mxu1 %v8926_v12 }
 0x51a   : > { %v2495_v38 = vpop.permute.xlu0 %2494  ;;  %v2146_v3 = vpop.permute.xlu1 %2145 }
 0x51b   : > { %6073 = vmatmul.mubr.msk.f32.gmra.mxu1 %vm1481_vm6, %v1799_v49  ;;  %v2512_v11 = vsel %vm2510_vm11, %v2495_v38, %v2497_v56 }
 0x51c   : > { %6109 = vmatpush3.xpose.msk.msra.mxu1 %vm1481_vm6, %v2154_v36  ;;  %6110 = vmatprep.mubr.msk.f32.mxu1 %vm6853_vm5, %v8926_v12 }
 0x51d   : > { %6150 = vmatprep.subr.mxu1 %v8926_v12 }
 0x51e   : > { %v2144_v44 = vpop.permute.xlu0 %2143  ;;  %v2493_v63 = vpop.permute.xlu1 %2492 }
 0x51f   : > { %6111 = vmatmul.mubr.msk.f32.vlgmr.msra.gmra.mxu1 %vm1481_vm6, %v2148_v13  ;;  %v2152_v4 = vsel %vm2147_vm10, %v2144_v44, %v2146_v3 }
 0x520   : > { %6151 = vmatpush3.xpose.msk.msra.mxu1 %vm1481_vm6, %v2515_v18  ;;  %6113 = vmatprep.mubr.msk.f32.mxu1 %vm6853_vm5, %v8926_v12 }
 0x521   : > { %6152 = vmatprep.subr.mxu1 %v8926_v12 }
 0x522   : > { %v2491_v31 = vpop.permute.xlu0 %2490  ;;  %v2483_v34 = vpop.permute.xlu1 %2482 }
 0x523   : > { %6114 = vmatmul.mubr.msk.f32.gmra.mxu1 %vm1481_vm6, %v2149_v26  ;;  %v2511_v16 = vsel %vm2510_vm11, %v2491_v31, %v2493_v63 }
 0x524   : > { %6153 = vmatpush3.xpose.msk.msra.mxu1 %vm1481_vm6, %v2514_v43  ;;  %6116 = vmatprep.mubr.msk.f32.mxu1 %vm6853_vm5, %v8926_v12 }
 0x525   : > { %6154 = vmatprep.subr.mxu1 %v8926_v12 }
 0x526   : > { %v2481_v51 = vpop.permute.xlu0 %2480  ;;  %v2487_v54 = vpop.permute.xlu1 %2486 }
 0x527   : > { %6117 = vmatmul.mubr.msk.f32.gmra.mxu1 %vm1481_vm6, %v2150_v48 }
 0x528   : > { %6155 = vmatpush3.xpose.msk.msra.mxu1 %vm1481_vm6, %v2513_v6  ;;  %6119 = vmatprep.mubr.msk.f32.mxu1 %vm6853_vm5, %v8926_v12 }
 0x529   : > { %6156 = vmatprep.subr.mxu1 %v8926_v12 }
 0x52a   : > { %v2485_v60 = vpop.permute.xlu0 %2484  ;;  %v2015_v1 = vpop.permute.xlu1 %2014 }
 0x52b   : > { %6076 = vmatpush3.msk.msra.mxu0 %vm703_vm3, %v2015_v1  ;;  %6120 = vmatmul.mubr.msk.f32.gmra.mxu1 %vm1481_vm6, %v2151_v0 }
 0x52c   : > { %6157 = vmatpush3.xpose.msk.msra.mxu1 %vm1481_vm6, %v2512_v11  ;;  %6122 = vmatprep.mubr.msk.f32.mxu1 %vm6853_vm5, %v8926_v12 }
 0x52d   : > { %6158 = vmatprep.subr.mxu1 %v8926_v12  ;;  %6077 = vmatprep.subr.mxu0 %v8926_v12 }
 0x52e   : > { %v2489_v14 = vpop.permute.xlu0 %2488  ;;  %v2011_v10 = vpop.permute.xlu1 %2010 }
 0x52f   : > { %6123 = vmatmul.mubr.msk.f32.gmra.mxu1 %vm1481_vm6, %v2152_v4 }
 0x530   : > { %6159 = vmatpush3.xpose.msk.msra.mxu1 %vm1481_vm6, %v2511_v16  ;;  %6160 = vmatprep.mubr.msk.f32.mxu1 %vm6853_vm5, %v8926_v12 }
 0x532   : > { %v2013_v22 = vpop.permute.xlu0 %2012  ;;  %v2360_v2 = vpop.permute.xlu1 %2359 }
 0x533   : > { %6078 = vmatpush3.msra.mxu0 %v2013_v22  ;;  %6161 = vmatmul.mubr.msk.f32.vlgmr.msra.gmra.mxu1 %vm1481_vm6, %v2481_v51 }
 0x534   : > { %6079 = vmatprep.subr.mxu0 %v8926_v12  ;;  %6163 = vmatprep.mubr.msk.f32.mxu1 %vm6853_vm5, %v8926_v12 }
 0x535   : > { %6080 = vmatpush3.msra.mxu0 %v2011_v10 }
 0x536   : > { %v2009_v15 = vpop.permute.xlu0 %2008  ;;  %6081 = vmatprep.subr.mxu0 %v8926_v12 }
 0x537   : > { %6082 = vmatpush3.msra.mxu0 %v2009_v15  ;;  %6164 = vmatmul.mubr.msk.f32.gmra.mxu1 %vm1481_vm6, %v2483_v34 }
 0x538   : > { %6083 = vmatprep.subr.mxu0 %v8926_v12  ;;  %6166 = vmatprep.mubr.msk.f32.mxu1 %vm6853_vm5, %v8926_v12 }
 0x53a   : > { %v2007_v17 = vpop.permute.xlu0 %2006 }
 0x53b   : > { %6084 = vmatpush3.msra.mxu0 %v2007_v17  ;;  %6167 = vmatmul.mubr.msk.f32.gmra.mxu1 %vm1481_vm6, %v2485_v60 }
 0x53c   : > { %6169 = vmatprep.mubr.msk.f32.mxu1 %vm6853_vm5, %v8926_v12  ;;  %6125 = vmatprep.subr.mxu0 %v8926_v12 }
 0x53e   : > { %v2362_v24 = vpop.permute.xlu0 %2361 }
 0x53f   : > { %v7720_v30 = vsel %vm2363_vm12, %v2360_v2, %v2362_v24  ;;  %6170 = vmatmul.mubr.msk.f32.gmra.mxu1 %vm1481_vm6, %v2487_v54 }
 0x540   : > { %6172 = vmatprep.mubr.msk.f32.mxu1 %vm6853_vm5, %v8926_v12 }
 0x542   : > { %v2352_v35 = vpop.permute.xlu0 %2351 }
 0x543   : > { %6173 = vmatmul.mubr.msk.f32.gmra.mxu1 %vm1481_vm6, %v2489_v14 }
 0x546   : > { %v2354_v36 = vpop.permute.xlu0 %2353 }
 0x547   : > { %v7727_v49 = vsel %vm2363_vm12, %v2352_v35, %v2354_v36 }
 0x58a   : > { %v7729_v50 = vpop.f32.mrf.mxu1 }
 0x58c   : > { %v6037_v52 = vpop.f32.mrf.mxu1 }
 0x58e   : > { %v7731_v53 = vpop.f32.mrf.mxu1 }
 0x590   : > { %v6040_v21 = vpop.f32.mrf.mxu1 }
 0x592   : > { %v7733_v32 = vpop.f32.mrf.mxu1 }
 0x594   : > { %v6043_v39 = vpop.f32.mrf.mxu1 }
 0x5c3   : > { %v7735_v61 = vpop.f32.mrf.mxu1 }
 0x5c5   : > { %v6046_v41 = vpop.f32.mrf.mxu1 }
 0x5c7   : > { %v7737_v42 = vpop.f32.mrf.mxu1 }
 0x5c9   : > { %v6049_v59 = vpop.f32.mrf.mxu1 }
 0x5cb   : > { %v1917_v47 = vpop.f32.mrf.mxu1 }
 0x5cc   : > { %v1941_v23 = vmul.f32 0.14285715, %v1917_v47 }
 0x5cd   : > { %v6062_v57 = vpop.f32.mrf.mxu1 }
 0x5ce   : > { %v7740_v37 = vadd.f32 %v1941_v23, %v7462_v9 }
 0x5cf   : > { %v1922_v62 = vpop.f32.mrf.mxu1 }
 0x5d0   : > { %v1942_v45 = vmul.f32 0.14285715, %v1922_v62  ;;  %v1951_v7 = vsel %vm1607_vm7, %v7740_v37, -inf }
 0x5d1   : > { %1952 = vmax.xlane.f32.xlu1 %v1951_v7  ;;  %v6065_v58 = vpop.f32.mrf.mxu1 }
 0x5d2   : > { %v7745_v56 = vadd.f32 %v1942_v45, %v7468_v28 }
 0x5d3   : > { %v1927_v38 = vpop.f32.mrf.mxu1 }
 0x5d4   : > { %v1943_v3 = vmul.f32 0.14285715, %v1927_v38  ;;  %v1954_v13 = vsel %vm1607_vm7, %v7745_v56, -inf }
 0x5d5   : > { %1955 = vmax.xlane.f32.xlu0 %v1954_v13  ;;  %v6068_v44 = vpop.f32.mrf.mxu1 }
 0x5d6   : > { %v7750_v63 = vadd.f32 %v1943_v3, %v7475_v40 }
 0x5d7   : > { %v1932_v18 = vpop.f32.mrf.mxu1 }
 0x5d8   : > { %v1944_v26 = vmul.f32 0.14285715, %v1932_v18  ;;  %v1957_v31 = vsel %vm1607_vm7, %v7750_v63, -inf }
 0x5d9   : > { %1958 = vmax.xlane.f32.xlu0 %v1957_v31  ;;  %v6071_v34 = vpop.f32.mrf.mxu1 }
 0x5da   : > { %v7755_v43 = vadd.f32 %v1944_v26, %v7482_v46 }
 0x5db   : > { %v1937_v48 = vpop.f32.mrf.mxu1 }
 0x5dc   : > { %v1960_v51 = vsel %vm1607_vm7, %v7755_v43, -inf  ;;  %v1945_v58 = vmul.f32 0.14285715, %v1937_v48 }
 0x5dd   : > { %1961 = vmax.xlane.f32.xlu0 %v1960_v51  ;;  %v6074_v54 = vpop.f32.mrf.mxu1 }
 0x5de   : > { %v7782_v18 = vadd.f32 %v1945_v58, %v7489_v8 }
 0x5df   : > { %v2249_v6 = vpop.f32.mrf.mxu1 }
 0x5e0   : > { %v2273_v0 = vmul.f32 0.14285715, %v2249_v6  ;;  %v1963_v51 = vsel %vm1620_vm8, %v7782_v18, -inf }
 0x5e1   : > { %v6112_v60 = vpop.f32.mrf.mxu1 }
 0x5e2   : > { %2357 = vrot.lane.b32.xlu1 %v7398_v33, %s6862_s14  ;;  %v7762_v1 = vadd.f32 %v2273_v0, %v7462_v9 }
 0x5e3   : > { %v2254_v11 = vpop.f32.mrf.mxu1 }
 0x5e4   : > { %v2283_v4 = vsel %vm1607_vm7, %v7762_v1, -inf  ;;  %v2274_v13 = vmul.f32 0.14285715, %v2254_v11 }
 0x5e5   : > { %2284 = vmax.xlane.f32.xlu0 %v2283_v4  ;;  %v6115_v14 = vpop.f32.mrf.mxu1 }
 0x5e6   : > { %v7787_v54 = vadd.f32 %v2274_v13, %v7468_v28 }
 0x5e7   : > { %v2259_v16 = vpop.f32.mrf.mxu1 }
 0x5e8   : > { %v2275_v22 = vmul.f32 0.14285715, %v2259_v16  ;;  %v2286_v48 = vsel %vm1607_vm7, %v7787_v54, -inf }
 0x5e9   : > { %v6118_v10 = vpop.f32.mrf.mxu1 }
 0x5ea   : > { %v7767_v15 = vadd.f32 %v2275_v22, %v7475_v40 }
 0x5eb   : > { %v2264_v17 = vpop.f32.mrf.mxu1 }
 0x5ec   : > { %v2289_v2 = vsel %vm1607_vm7, %v7767_v15, -inf  ;;  %v2276_v31 = vmul.f32 0.14285715, %v2264_v17 }
 0x5ed   : > { %2290 = vmax.xlane.f32.xlu0 %v2289_v2  ;;  %v6121_v24 = vpop.f32.mrf.mxu1 }
 0x5ee   : > { %v7792_v0 = vadd.f32 %v2276_v31, %v7482_v46  ;;  %v7820_v24 = vpop.permute.xlu0 %2347 }
 0x5ef   : > { %v2269_v35 = vpop.f32.mrf.mxu1 }
 0x5f0   : > { %v2277_v36 = vmul.f32 0.14285715, %v2269_v35  ;;  %v2292_v60 = vsel %vm1607_vm7, %v7792_v0, -inf }
 0x5f1   : > { %v6124_v52 = vpop.f32.mrf.mxu1 }
 0x5f2   : > { %v7772_v21 = vadd.f32 %v2277_v36, %v7489_v8 }
 0x5f3   : > { %v2602_v39 = vpop.f32.mrf.mxu1 }
 0x5f4   : > { %v2295_v41 = vsel %vm1620_vm8, %v7772_v21, -inf  ;;  %v2626_v6 = vmul.f32 0.14285715, %v2602_v39 }
 0x5f5   : > { %2296 = vmax.xlane.f32.xlu0 %v2295_v41  ;;  %v6162_v59 = vpop.f32.mrf.mxu1 }
 0x5f6   : > { %v7797_v11 = vadd.f32 %v2626_v6, %v7462_v9 }
 0x5f7   : > { %v2607_v47 = vpop.f32.mrf.mxu1 }
 0x5f8   : > { %v2627_v23 = vmul.f32 0.14285715, %v2607_v47 }
 0x5f9   : > { %v6165_v57 = vpop.f32.mrf.mxu1 }
 0x5fa   : > { %v7777_v62 = vadd.f32 %v2627_v23, %v7468_v28  ;;  %v2636_v28 = vsel %vm1607_vm7, %v7797_v11, -inf }
 0x5fb   : > { %v2612_v45 = vpop.f32.mrf.mxu1 }
 0x5fc   : > { %v2639_v7 = vsel %vm1607_vm7, %v7777_v62, -inf  ;;  %v2628_v4 = vmul.f32 0.14285715, %v2612_v45 }
 0x5fd   : > { %2640 = vmax.xlane.f32.xlu0 %v2639_v7  ;;  %v6168_v38 = vpop.f32.mrf.mxu1 }
 0x5fe   : > { %v7806_v14 = vadd.f32 %v2628_v4, %v7475_v40  ;;  %v2356_v40 = vpop.permute.xlu1 %2355 }
 0x5ff   : > { %v2617_v3 = vpop.f32.mrf.mxu1 }
 0x600   : > { %v2629_v16 = vmul.f32 0.14285715, %v2617_v3  ;;  %v2642_v10 = vsel %vm1607_vm7, %v7806_v14, -inf }
 0x601   : > { %v6171_v44 = vpop.f32.mrf.mxu1 }
 0x602   : > { %v7809_v22 = vadd.f32 %v2629_v16, %v7482_v46 }
 0x603   : > { %v2622_v26 = vpop.f32.mrf.mxu1 }
 0x604   : > { %v2630_v9 = vmul.f32 0.14285715, %v2622_v26  ;;  %v2645_v2 = vsel %vm1607_vm7, %v7809_v22, -inf }
 0x605   : > { %v6174_v34 = vpop.f32.mrf.mxu1 }
 0x606   : > { %1964 = vmax.xlane.f32.xlu1 %v1963_v51  ;;  %v7814_v17 = vadd.f32 %v2630_v9, %v7489_v8 }
 0x60a   : > { %2287 = vmax.xlane.f32.xlu1 %v2286_v48 }
 0x60e   : > { %2293 = vmax.xlane.f32.xlu1 %v2292_v60 }
 0x612   : > { %2637 = vmax.xlane.f32.xlu1 %v2636_v28 }
 0x613   : > { %2349 = vrot.lane.b32.xlu0 %v7387_v27, %s6862_s14 }
 0x623   : > { %2343 = vrot.lane.b32.xlu1 %v7332_v5, %s6862_s14  ;;  %v2648_v5 = vsel %vm1620_vm8, %v7814_v17, -inf }
 0x647   : > { %2643 = vmax.xlane.f32.xlu1 %v2642_v10 }
 0x64b   : > { %2646 = vmax.xlane.f32.xlu1 %v2645_v2 }
 0x64f   : > { %2649 = vmax.xlane.f32.xlu1 %v2648_v5 }
 0x65a   : > { %v1953_v46 = vpop.xlane.xlu1 %1952 }
 0x65b   : > { %v1966_v35 = vsub.f32 %v7740_v37, %v1953_v46 }
 0x65d   : > { %v1971_v36 = vmul.f32 1.442695, %v1966_v35 }
 0x65e   : > { %v2358_v52 = vpop.permute.xlu1 %2357  ;;  %v1956_v39 = vpop.xlane.xlu0 %1955 }
 0x65f   : > { %6692 = vpow2.f32 %v1971_v36  ;;  %v7824_v8 = vsel %vm2363_vm12, %v2356_v40, %v2358_v52  ;;  %v1967_v41 = vsub.f32 %v7745_v56, %v1956_v39 }
 0x661   : > { %v1973_v59 = vmul.f32 1.442695, %v1967_v41 }
 0x662   : > { %v1959_v47 = vpop.xlane.xlu0 %1958 }
 0x663   : > { %6694 = vpow2.f32 %v1973_v59  ;;  %v1968_v23 = vsub.f32 %v7750_v63, %v1959_v47 }
 0x665   : > { %v1975_v57 = vmul.f32 1.442695, %v1968_v23 }
 0x666   : > { %v1962_v45 = vpop.xlane.xlu0 %1961 }
 0x667   : > { %6696 = vpow2.f32 %v1975_v57  ;;  %v1969_v7 = vsub.f32 %v7755_v43, %v1962_v45 }
 0x669   : > { %v1977_v37 = vmul.f32 1.442695, %v1969_v7 }
 0x66b   : > { %6698 = vpow2.f32 %v1977_v37 }
 0x66c   : > { %v7829_v58 = vpop.eup %6692 }
 0x66d   : > { %v1981_v38 = vsel %vm1607_vm7, %v7829_v58, 0.0 }
 0x66e   : > { %1982 = vadd.xlane.f32.xlu0 %v1981_v38  ;;  %v2285_v26 = vpop.xlane.xlu0 %2284 }
 0x66f   : > { %v2298_v34 = vsub.f32 %v7762_v1, %v2285_v26 }
 0x670   : > { %v7833_v3 = vpop.eup %6694 }
 0x671   : > { %v1984_v56 = vsel %vm1607_vm7, %v7833_v3, 0.0  ;;  %v2303_v60 = vmul.f32 1.442695, %v2298_v34 }
 0x672   : > { %1985 = vadd.xlane.f32.xlu0 %v1984_v56 }
 0x674   : > { %v7837_v63 = vpop.eup %6696 }
 0x675   : > { %v1987_v13 = vsel %vm1607_vm7, %v7837_v63, 0.0 }
 0x676   : > { %1988 = vadd.xlane.f32.xlu1 %v1987_v13  ;;  %v2291_v31 = vpop.xlane.xlu0 %2290 }
 0x677   : > { %v2300_v28 = vsub.f32 %v7767_v15, %v2291_v31 }
 0x678   : > { %v7841_v43 = vpop.eup %6698 }
 0x679   : > { %v1990_v44 = vsel %vm1607_vm7, %v7841_v43, 0.0  ;;  %v2307_v5 = vmul.f32 1.442695, %v2300_v28 }
 0x67a   : > { %1991 = vadd.xlane.f32.xlu0 %v1990_v44 }
 0x67e   : > { %v2297_v51 = vpop.xlane.xlu0 %2296 }
 0x67f   : > { %v2302_v2 = vsub.f32 %v7772_v21, %v2297_v51 }
 0x681   : > { %v2311_v35 = vmul.f32 1.442695, %v2302_v2 }
 0x686   : > { %v2641_v16 = vpop.xlane.xlu0 %2640 }
 0x687   : > { %v2652_v40 = vsub.f32 %v7777_v62, %v2641_v16 }
 0x689   : > { %v2658_v15 = vmul.f32 1.442695, %v2652_v40 }
 0x68f   : > { %v1965_v6 = vpop.xlane.xlu1 %1964 }
 0x690   : > { %v1970_v48 = vsub.f32 %v7782_v18, %v1965_v6 }
 0x692   : > { %v1979_v4 = vmul.f32 1.442695, %v1970_v48 }
 0x693   : > { %v2288_v9 = vpop.xlane.xlu1 %2287 }
 0x694   : > { %6700 = vpow2.f32 %v1979_v4  ;;  %v2299_v10 = vsub.f32 %v7787_v54, %v2288_v9  ;;  %v2350_v4 = vpop.permute.xlu0 %2349 }
 0x695   : > { %6702 = vpow2.f32 %v2303_v60 }
 0x696   : > { %v2305_v1 = vmul.f32 1.442695, %v2299_v10 }
 0x697   : > { %v2294_v46 = vpop.xlane.xlu1 %2293 }
 0x698   : > { %6704 = vpow2.f32 %v2305_v1  ;;  %v2301_v18 = vsub.f32 %v7792_v0, %v2294_v46 }
 0x699   : > { %6706 = vpow2.f32 %v2307_v5 }
 0x69a   : > { %v2309_v36 = vmul.f32 1.442695, %v2301_v18 }
 0x69b   : > { %v2638_v52 = vpop.xlane.xlu1 %2637 }
 0x69c   : > { %6708 = vpow2.f32 %v2309_v36  ;;  %v2651_v39 = vsub.f32 %v7797_v11, %v2638_v52 }
 0x69d   : > { %6710 = vpow2.f32 %v2311_v35 }
 0x69e   : > { %6712 = vpow2.f32 %v2658_v15  ;;  %v2656_v21 = vmul.f32 1.442695, %v2651_v39 }
 0x69f   : > { %v7889_v26 = vpop.permute.xlu1 %2343 }
 0x6a0   : > { %6714 = vpow2.f32 %v2656_v21 }
 0x6a1   : > { %v7853_v54 = vpop.eup %6700 }
 0x6a2   : > { %v1993_v62 = vsel %vm1620_vm8, %v7853_v54, 0.0  ;;  %v7857_v41 = vpop.eup %6702 }
 0x6a3   : > { %1994 = vadd.xlane.f32.xlu0 %v1993_v62  ;;  %v2313_v59 = vsel %vm1607_vm7, %v7857_v41, 0.0 }
 0x6a5   : > { %v7859_v0 = vpop.eup %6704 }
 0x6a6   : > { %v2316_v11 = vsel %vm1607_vm7, %v7859_v0, 0.0  ;;  %v7865_v47 = vpop.eup %6706 }
 0x6a7   : > { %2314 = vadd.xlane.f32.xlu0 %v2313_v59  ;;  %2317 = vadd.xlane.f32.xlu1 %v2316_v11  ;;  %v2319_v45 = vsel %vm1607_vm7, %v7865_v47, 0.0 }
 0x6a9   : > { %v7867_v23 = vpop.eup %6708 }
 0x6aa   : > { %v7869_v57 = vpop.eup %6710  ;;  %v2322_v7 = vsel %vm1607_vm7, %v7867_v23, 0.0 }
 0x6ab   : > { %v7875_v37 = vpop.eup %6712  ;;  %2320 = vadd.xlane.f32.xlu0 %v2319_v45  ;;  %2323 = vadd.xlane.f32.xlu1 %v2322_v7  ;;  %v2325_v56 = vsel %vm1620_vm8, %v7869_v57, 0.0 }
 0x6ac   : > { %v2669_v38 = vsel %vm1607_vm7, %v7875_v37, 0.0 }
 0x6ad   : > { %v7881_v13 = vpop.eup %6714 }
 0x6ae   : > { %v2666_v44 = vsel %vm1607_vm7, %v7881_v13, 0.0 }
 0x6af   : > { %2670 = vadd.xlane.f32.xlu0 %v2669_v38  ;;  %2326 = vadd.xlane.f32.xlu1 %v2325_v56 }
 0x6b3   : > { %2667 = vadd.xlane.f32.xlu1 %v2666_v44 }
 0x6c4   : > { %2699 = vrot.lane.b32.xlu1 %v7580_v55, %s6863_s15 }
 0x6c5   : > { %2345 = vrot.lane.b32.xlu0 %v7377_v19, %s6862_s14 }
 0x6c8   : > { %2697 = vrot.lane.b32.xlu1 %v7398_v33, %s6863_s15 }
 0x6cc   : > { %2695 = vrot.lane.b32.xlu1 %v7598_v20, %s6863_s15 }
 0x6d0   : > { %v2644_v31 = vpop.xlane.xlu1 %2643  ;;  %2693 = vrot.lane.b32.xlu1 %v7387_v27, %s6863_s15 }
 0x6d1   : > { %v2653_v34 = vsub.f32 %v7806_v14, %v2644_v31 }
 0x6d3   : > { %v2660_v51 = vmul.f32 1.442695, %v2653_v34 }
 0x6d4   : > { %v2647_v6 = vpop.xlane.xlu1 %2646  ;;  %2691 = vrot.lane.b32.xlu1 %v7377_v19, %s6863_s15 }
 0x6d5   : > { %6716 = vpow2.f32 %v2660_v51  ;;  %v2654_v33 = vsub.f32 %v7809_v22, %v2647_v6 }
 0x6d7   : > { %v2662_v20 = vmul.f32 1.442695, %v2654_v33 }
 0x6d8   : > { %v2650_v55 = vpop.xlane.xlu1 %2649 }
 0x6d9   : > { %v2655_v48 = vsub.f32 %v7814_v17, %v2650_v55 }
 0x6db   : > { %v2664_v60 = vmul.f32 1.442695, %v2655_v48 }
 0x6dd   : > { %6718 = vpow2.f32 %v2664_v60 }
 0x6de   : > { %6720 = vpow2.f32 %v2662_v20 }
 0x6e2   : > { %v7897_v28 = vpop.eup %6716 }
 0x6e3   : > { %v2672_v27 = vsel %vm1607_vm7, %v7897_v28, 0.0 }
 0x6e4   : > { %2673 = vadd.xlane.f32.xlu0 %v2672_v27 }
 0x6ea   : > { %v7901_v14 = vpop.eup %6718 }
 0x6eb   : > { %v2678_v19 = vsel %vm1620_vm8, %v7901_v14, 0.0  ;;  %v7905_v17 = vpop.eup %6720 }
 0x6ec   : > { %2679 = vadd.xlane.f32.xlu0 %v2678_v19  ;;  %v2675_v22 = vsel %vm1607_vm7, %v7905_v17, 0.0 }
 0x6f7   : > { %v1983_v16 = vpop.xlane.xlu0 %1982 }
 0x6f8   : > { %6722 = vrcp.f32 %v1983_v16  ;;  %2676 = vadd.xlane.f32.xlu1 %v2675_v22 }
 0x6fb   : > { %v1986_v9 = vpop.xlane.xlu0 %1985 }
 0x6fc   : > { %6724 = vrcp.f32 %v1986_v9 }
 0x6ff   : > { %v1989_v10 = vpop.xlane.xlu1 %1988 }
 0x700   : > { %6726 = vrcp.f32 %v1989_v10 }
 0x703   : > { %v1992_v2 = vpop.xlane.xlu0 %1991 }
 0x704   : > { %6728 = vrcp.f32 %v1992_v2 }
 0x705   : > { %v6723_v5 = vpop.eup %6722 }
 0x706   : > { %v1997_v40 = vmul.f32 %v6723_v5, %v7829_v58 }
 0x708   : > { %6086 = vmatmul.mubr.msk.f32.vlgmr.msra.gmra.mxu0 %vm1607_vm7, %v1997_v40 }
 0x709   : > { %v6725_v1 = vpop.eup %6724  ;;  %6126 = vmatpush3.msk.msra.mxu0 %vm703_vm3, %v7720_v30  ;;  %6088 = vmatprep.mubr.msk.f32.mxu0 %vm6853_vm5, %v8926_v12  ;;  %v2365_v30 = vsel %vm2363_vm12, %v7820_v24, %v2350_v4 }
 0x70a   : > { %6127 = vmatprep.subr.mxu0 %v8926_v12  ;;  %v1999_v46 = vmul.f32 %v6725_v1, %v7833_v3  ;;  %v6350_v1 = vld [vmem:[%s6985_s17 + $0x70] ss:$8 sps:$4 sm:$0xff]  }
 0x70b   : > { %6128 = vmatpush3.msra.mxu0 %v7824_v8 }
 0x70c   : > { %6129 = vmatprep.subr.mxu0 %v8926_v12  ;;  %6089 = vmatmul.mubr.msk.f32.gmra.mxu0 %vm1607_vm7, %v1999_v46  ;;  %v6352_v46 = vld [vmem:[%s6985_s17 + $0x74] ss:$8 sps:$4 sm:$0xff]  }
 0x70d   : > { %v6727_v58 = vpop.eup %6726  ;;  %6130 = vmatpush3.msra.mxu0 %v7727_v49  ;;  %6091 = vmatprep.mubr.msk.f32.mxu0 %vm6853_vm5, %v8926_v12 }
 0x70e   : > { %6131 = vmatprep.subr.mxu0 %v8926_v12  ;;  %v2001_v18 = vmul.f32 %v6727_v58, %v7837_v63  ;;  %v6355_v58 = vld [vmem:[%s6985_s17 + $0x64] ss:$8 sps:$4 sm:$0xff]   ;;  %3072 = vmatprep.subr.bf16.mxu1 %v6352_v46 }
 0x70f   : > { %6132 = vmatpush3.msra.mxu0 %v2365_v30  ;;  %3073 = vmatpush1.bf16.msra.mxu1 %v6350_v1  ;;  %v6353_v30 = vld [vmem:[%s6985_s17 + $0x60] ss:$8 sps:$4 sm:$0xff]  }
 0x710   : > { %6092 = vmatmul.mubr.msk.f32.gmra.mxu0 %vm1607_vm7, %v2001_v18  ;;  %6133 = vmatprep.subr.mxu0 %v8926_v12  ;;  %v6358_v18 = vld [vmem:[%s6985_s17 + $0x54] ss:$8 sps:$4 sm:$0xff]  }
 0x711   : > { %v6729_v8 = vpop.eup %6728  ;;  %6094 = vmatprep.mubr.msk.f32.mxu0 %vm6853_vm5, %v8926_v12  ;;  %3074 = vmatprep.subr.bf16.mxu1 %v6355_v58 }
 0x712   : > { %v2003_v49 = vmul.f32 %v6729_v8, %v7841_v43  ;;  %v6356_v8 = vld [vmem:[%s6985_s17 + $0x50] ss:$8 sps:$4 sm:$0xff]  }
 0x713   : > { %3075 = vmatpush1.bf16.msra.mxu1 %v6353_v30 }
 0x714   : > { %6095 = vmatmul.mubr.msk.f32.gmra.mxu0 %vm1607_vm7, %v2003_v49  ;;  %3076 = vmatprep.subr.bf16.mxu1 %v6358_v18  ;;  %v6361_v49 = vld [vmem:[%s6985_s17 + $0x44] ss:$8 sps:$4 sm:$0xff]  }
 0x715   : > { %6097 = vmatprep.mubr.msk.f32.mxu0 %vm6853_vm5, %v8926_v12 }
 0x717   : > { %3077 = vmatpush1.bf16.msra.mxu1 %v6356_v8 }
 0x718   : > { %3078 = vmatprep.subr.bf16.mxu1 %v6361_v49 }
 0x72c   : > { %v1995_v24 = vpop.xlane.xlu0 %1994 }
 0x72d   : > { %6730 = vrcp.f32 %v1995_v24  ;;  %v6359_v24 = vld [vmem:[%s6985_s17 + $0x40] ss:$8 sps:$4 sm:$0xff]  }
 0x72e   : > { %3079 = vmatpush1.bf16.msra.mxu1 %v6359_v24 }
 0x730   : > { %v2315_v3 = vpop.xlane.xlu0 %2314  ;;  %v2318_v63 = vpop.xlane.xlu1 %2317 }
 0x731   : > { %6732 = vrcp.f32 %v2315_v3  ;;  %v6364_v3 = vld [vmem:[%s6985_s17 + $0x34] ss:$8 sps:$4 sm:$0xff]  }
 0x732   : > { %6734 = vrcp.f32 %v2318_v63  ;;  %v6362_v63 = vld [vmem:[%s6985_s17 + $0x30] ss:$8 sps:$4 sm:$0xff]   ;;  %3080 = vmatprep.subr.bf16.mxu1 %v6364_v3 }
 0x733   : > { %3081 = vmatpush1.bf16.msra.mxu1 %v6362_v63 }
 0x734   : > { %v2321_v35 = vpop.xlane.xlu0 %2320  ;;  %v2324_v15 = vpop.xlane.xlu1 %2323 }
 0x735   : > { %6736 = vrcp.f32 %v2321_v35  ;;  %v6367_v35 = vld [vmem:[%s6985_s17 + $0x24] ss:$8 sps:$4 sm:$0xff]  }
 0x736   : > { %6738 = vrcp.f32 %v2324_v15  ;;  %v6365_v15 = vld [vmem:[%s6985_s17 + $0x20] ss:$8 sps:$4 sm:$0xff]   ;;  %3082 = vmatprep.subr.bf16.mxu1 %v6367_v35 }
 0x737   : > { %3083 = vmatpush1.bf16.msra.mxu1 %v6365_v15 }
 0x738   : > { %v2671_v36 = vpop.xlane.xlu0 %2670  ;;  %v2327_v52 = vpop.xlane.xlu1 %2326 }
 0x739   : > { %6740 = vrcp.f32 %v2327_v52  ;;  %v6368_v52 = vld [vmem:[%s6985_s17 + $0x10] ss:$8 sps:$4 sm:$0xff]  }
 0x73a   : > { %v6731_v39 = vpop.eup %6730 }
 0x73b   : > { %v2005_v43 = vmul.f32 %v6731_v39, %v7853_v54  ;;  %v6373_v39 = vld [vmem:[%s6985_s17 + $0x4] ss:$8 sps:$4 sm:$0xff]  }
 0x73c   : > { %v2346_v21 = vpop.permute.xlu0 %2345  ;;  %v2668_v62 = vpop.xlane.xlu1 %2667 }
 0x73d   : > { %v2364_v59 = vsel %vm2363_vm12, %v7889_v26, %v2346_v21  ;;  %6098 = vmatmul.mubr.msk.f32.gmra.mxu0 %vm1607_vm7, %v2005_v43  ;;  %6742 = vrcp.f32 %v2668_v62  ;;  %v6371_v21 = vld [vmem:[%s6985_s17] ss:$8 sps:$4 sm:$0xff]  }
 0x73e   : > { %v6733_v11 = vpop.eup %6732  ;;  %6134 = vmatpush3.msra.mxu0 %v2364_v59  ;;  %6135 = vmatprep.mubr.msk.f32.mxu0 %vm6853_vm5, %v8926_v12  ;;  %6744 = vrcp.f32 %v2671_v36  ;;  %v6370_v36 = vld [vmem:[%s6985_s17 + $0x14] ss:$8 sps:$4 sm:$0xff]   ;;  %v2919_v62 = vld [vmem:[%s6985_s17 + $0xc0] sm:$0x33] }
 0x73f   : > { %v2329_v45 = vmul.f32 %v6733_v11, %v7857_v41  ;;  %6175 = vmatprep.subr.mxu0 %v8926_v12  ;;  %v6735_v7 = vpop.eup %6734  ;;  %3084 = vmatprep.subr.bf16.mxu1 %v6370_v36  ;;  %v5705_v11 = vcombine.high %v2919_v62, %v2919_v62 }
 0x740   : > { %v2700_v38 = vpop.permute.xlu1 %2699  ;;  %v2331_v54 = vmul.f32 %v6735_v7, %v7859_v0  ;;  %3085 = vmatpush1.bf16.msra.mxu1 %v6368_v52  ;;  %v6378_v7 = vld [vmem:[%s6985_s17 + $0xb4] ss:$8 sps:$4 sm:$0xff]  }
 0x741   : > { %6136 = vmatmul.mubr.msk.f32.vlgmr.msra.gmra.mxu0 %vm1607_vm7, %v2329_v45  ;;  %3086 = vmatprep.subr.bf16.mxu1 %v6373_v39  ;;  %v5704_v45 = vcombine.low %v2919_v62, %v2919_v62 }
 0x742   : > { %6176 = vmatpush3.msk.msra.mxu0 %vm703_vm3, %v2700_v38  ;;  %6138 = vmatprep.mubr.msk.f32.mxu0 %vm6853_vm5, %v8926_v12  ;;  %v6737_v56 = vpop.eup %6736 }
 0x743   : > { %6177 = vmatprep.subr.mxu0 %v8926_v12  ;;  %v2333_v41 = vmul.f32 %v6737_v56, %v7865_v47  ;;  %v6739_v26 = vpop.eup %6738 }
 0x744   : > { %v2698_v44 = vpop.permute.xlu1 %2697  ;;  %v2335_v0 = vmul.f32 %v6739_v26, %v7867_v23  ;;  %3087 = vmatpush1.bf16.msra.mxu1 %v6371_v21 }
 0x745   : > { %6139 = vmatmul.mubr.msk.f32.gmra.mxu0 %vm1607_vm7, %v2331_v54  ;;  %5706 = vmatprep.subr.msk.bf16.mxu1 %vm703_vm3, %v5705_v11  ;;  %v3067_v54 = vsel %vm703_vm3, %v5704_v45, 0 }
 0x746   : > { %6178 = vmatpush3.msra.mxu0 %v2698_v44  ;;  %6141 = vmatprep.mubr.msk.f32.mxu0 %vm6853_vm5, %v8926_v12  ;;  %v6741_v34 = vpop.eup %6740  ;;  %v6376_v44 = vld [vmem:[%s6985_s17 + $0xb0] ss:$8 sps:$4 sm:$0xff]  }
 0x747   : > { %6179 = vmatprep.subr.mxu0 %v8926_v12  ;;  %v2337_v47 = vmul.f32 %v6741_v34, %v7869_v57  ;;  %v6379_v34 = vld [vmem:[%s6985_s17 + $0xa0] ss:$8 sps:$4 sm:$0xff]  }
 0x748   : > { %v2696_v31 = vpop.permute.xlu1 %2695  ;;  %3095 = vmatpush2.bf16.msra.mxu1 %v3067_v54 }
 0x749   : > { %6142 = vmatmul.mubr.msk.f32.gmra.mxu0 %vm1607_vm7, %v2333_v41  ;;  %3096 = vmatprep.subr.bf16.mxu1 %v6378_v7  ;;  %v6381_v41 = vld [vmem:[%s6985_s17 + $0xa4] ss:$8 sps:$4 sm:$0xff]  }
 0x74a   : > { %6180 = vmatpush3.msra.mxu0 %v2696_v31  ;;  %6144 = vmatprep.mubr.msk.f32.mxu0 %vm6853_vm5, %v8926_v12  ;;  %v6743_v6 = vpop.eup %6742 }
 0x74b   : > { %6181 = vmatprep.subr.mxu0 %v8926_v12  ;;  %v2682_v23 = vmul.f32 %v6743_v6, %v7881_v13  ;;  %v6745_v48 = vpop.eup %6744 }
 0x74c   : > { %v2694_v51 = vpop.permute.xlu1 %2693  ;;  %v2684_v60 = vmul.f32 %v6745_v48, %v7875_v37  ;;  %3097 = vmatpush2.bf16.msra.mxu1 %v6376_v44 }
 0x74d   : > { %6145 = vmatmul.mubr.msk.f32.gmra.mxu0 %vm1607_vm7, %v2335_v0  ;;  %3098 = vmatprep.subr.bf16.mxu1 %v6381_v41 }
 0x74e   : > { %6182 = vmatpush3.msra.mxu0 %v2694_v51  ;;  %6147 = vmatprep.mubr.msk.f32.mxu0 %vm6853_vm5, %v8926_v12  ;;  %v6384_v51 = vld [vmem:[%s6985_s17 + $0x94] ss:$8 sps:$4 sm:$0xff]  }
 0x74f   : > { %6183 = vmatprep.subr.mxu0 %v8926_v12 }
 0x750   : > { %v2692_v55 = vpop.permute.xlu1 %2691  ;;  %3099 = vmatpush2.bf16.msra.mxu1 %v6379_v34 }
 0x751   : > { %6148 = vmatmul.mubr.msk.f32.gmra.mxu0 %vm1607_vm7, %v2337_v47  ;;  %3100 = vmatprep.subr.bf16.mxu1 %v6384_v51 }
 0x752   : > { %6184 = vmatpush3.msra.mxu0 %v2692_v55  ;;  %6185 = vmatprep.mubr.msk.f32.mxu0 %vm6853_vm5, %v8926_v12  ;;  %v6382_v55 = vld [vmem:[%s6985_s17 + $0x90] ss:$8 sps:$4 sm:$0xff]  }
 0x754   : > { %3101 = vmatpush2.bf16.msra.mxu1 %v6382_v55 }
 0x755   : > { %6186 = vmatmul.mubr.msk.f32.vlgmr.msra.gmra.mxu0 %vm1607_vm7, %v2682_v23 }
 0x756   : > { %6188 = vmatprep.mubr.msk.f32.mxu0 %vm6853_vm5, %v8926_v12 }
 0x759   : > { %6189 = vmatmul.mubr.msk.f32.gmra.mxu0 %vm1607_vm7, %v2684_v60  ;;  %v6387_v60 = vld [vmem:[%s6985_s17 + $0x84] ss:$8 sps:$4 sm:$0xff]  }
 0x75a   : > { %6191 = vmatprep.mubr.msk.f32.mxu0 %vm6853_vm5, %v8926_v12  ;;  %3102 = vmatprep.subr.bf16.mxu1 %v6387_v60 }
 0x76d   : > { %v2674_v57 = vpop.xlane.xlu0 %2673 }
 0x76e   : > { %6746 = vrcp.f32 %v2674_v57 }
 0x775   : > { %v2680_v13 = vpop.xlane.xlu0 %2679 }
 0x77b   : > { %v6747_v33 = vpop.eup %6746 }
 0x77c   : > { %v2686_v20 = vmul.f32 %v6747_v33, %v7897_v28  ;;  %v6385_v33 = vld [vmem:[%s6985_s17 + $0x80] ss:$8 sps:$4 sm:$0xff]  }
 0x77d   : > { %3103 = vmatpush2.bf16.msra.mxu1 %v6385_v33 }
 0x77e   : > { %6192 = vmatmul.mubr.msk.f32.gmra.mxu0 %vm1607_vm7, %v2686_v20 }
 0x77f   : > { %6194 = vmatprep.mubr.msk.f32.mxu0 %vm6853_vm5, %v8926_v12 }
 0x781   : > { %v2677_v27 = vpop.xlane.xlu1 %2676 }
 0x782   : > { %6748 = vrcp.f32 %v2677_v27 }
 0x783   : > { %6750 = vrcp.f32 %v2680_v13 }
 0x78f   : > { %v6749_v37 = vpop.eup %6748 }
 0x790   : > { %v2688_v19 = vmul.f32 %v6749_v37, %v7905_v17  ;;  %v6751_v4 = vpop.eup %6750 }
 0x791   : > { %v2690_v28 = vmul.f32 %v6751_v4, %v7901_v14 }
 0x792   : > { %6195 = vmatmul.mubr.msk.f32.gmra.mxu0 %vm1607_vm7, %v2688_v19 }
 0x793   : > { %6197 = vmatprep.mubr.msk.f32.mxu0 %vm6853_vm5, %v8926_v12 }
 0x796   : > { %6198 = vmatmul.mubr.msk.f32.gmra.mxu0 %vm1607_vm7, %v2690_v28 }
 0x7c8   : > { %v2103_v16 = vpop.f32.mrf.mxu0 }
 0x7ca   : > { %v6087_v22 = vpop.f32.mrf.mxu0 }
 0x7cc   : > { %v2108_v9 = vpop.f32.mrf.mxu0 }
 0x7cd   : > { %v6231_v10 = vpack.i.bf16 %v2108_v9, %v2103_v16 }
 0x7ce   : > { %v6090_v2 = vpop.f32.mrf.mxu0 }
 0x7cf   : > { %6232 = vrot.lane.b32.xlu0 %v6231_v10, %s6864_s30 }
 0x7d0   : > { %v2113_v17 = vpop.f32.mrf.mxu0 }
 0x7d2   : > { %v6093_v12 = vpop.f32.mrf.mxu0 }
 0x7d4   : > { %v2118_v5 = vpop.f32.mrf.mxu0 }
 0x7d5   : > { %v6246_v14 = vpack.i.bf16 %v2118_v5, %v2113_v17 }
 0x7d6   : > { %v6096_v40 = vpop.f32.mrf.mxu0 }
 0x7d7   : > { %6247 = vrot.lane.b32.xlu0 %v6246_v14, %s6864_s30 }
 0x7fd   : > { %v2123_v43 = vpop.f32.mrf.mxu0 }
 0x7ff   : > { %v6099_v59 = vpop.f32.mrf.mxu0 }
 0x801   : > { %v2456_v38 = vpop.f32.mrf.mxu0 }
 0x803   : > { %v6137_v56 = vpop.f32.mrf.mxu0 }
 0x805   : > { %v2461_v26 = vpop.f32.mrf.mxu0 }
 0x806   : > { %v6236_v31 = vpack.i.bf16 %v2461_v26, %v2456_v38 }
 0x807   : > { %v6140_v0 = vpop.f32.mrf.mxu0 }
 0x808   : > { %6237 = vrot.lane.b32.xlu1 %v6236_v31, %s6865_s4 }
 0x809   : > { %v2466_v47 = vpop.f32.mrf.mxu0 }
 0x80b   : > { %v6143_v6 = vpop.f32.mrf.mxu0 }
 0x80d   : > { %v2471_v23 = vpop.f32.mrf.mxu0 }
 0x80e   : > { %v6251_v28 = vpack.i.bf16 %v2471_v23, %v2466_v47  ;;  %v2920_v23 = vld [vmem:[%s8927_s23] sm:$0x3] }
 0x80f   : > { %v6146_v48 = vpop.f32.mrf.mxu0  ;;  %v2929_v60 = vrot.slane %v2920_v23, %v7195_v25 }
 0x810   : > { %v2925_v48 = vrot.slane %v2920_v23, %v7198_v29  ;;  %v6394_v23 = vld [vmem:[%s6998_s20 + $0x150] ss:$28 sps:$4 sm:$0xff]  }
 0x811   : > { %v2476_v57 = vpop.f32.mrf.mxu0 }
 0x813   : > { %v6149_v20 = vpop.f32.mrf.mxu0 }
 0x815   : > { %v2788_v13 = vpop.f32.mrf.mxu0 }
 0x817   : > { %v6187_v27 = vpop.f32.mrf.mxu0 }
 0x819   : > { %v2793_v37 = vpop.f32.mrf.mxu0 }
 0x81a   : > { %v6241_v19 = vpack.i.bf16 %v2793_v37, %v2788_v13  ;;  %v6832_v37 = vld [vmem:[#allocation2 + $0x8] sm:$0xff] }
 0x81b   : > { %v6190_v4 = vpop.f32.mrf.mxu0 }
 0x81c   : > { %6242 = vrot.lane.b32.xlu1 %v6241_v19, %s6866_s27  ;;  %v6833_v19 = vld [vmem:[#allocation2] sm:$0xff] }
 0x820   : > { %6252 = vrot.lane.b32.xlu1 %v6251_v28, %s6865_s4 }
 0x824   : > { %2825 = vrot.lane.b32.xlu1 %v2123_v43, %s6864_s30 }
 0x83e   : > { %v2798_v16 = vpop.f32.mrf.mxu0 }
 0x840   : > { %v6193_v22 = vpop.f32.mrf.mxu0 }
 0x841   : > { %v6233_v5 = vpop.permute.xlu0 %6232 }
 0x842   : > { %v6235_v40 = vunpack.i.h.bf16 %v6233_v5  ;;  %v6234_v1 = vunpack.i.l.bf16 %v6233_v5 }
 0x844   : > { %v2873_v18 = vsel %vm1481_vm6, %v7731_v53, %v6235_v40  ;;  %v2872_v8 = vsel %vm1481_vm6, %v7729_v50, %v6234_v1 }
 0x849   : > { %v6248_v39 = vpop.permute.xlu0 %6247 }
 0x84a   : > { %v6250_v43 = vunpack.i.h.bf16 %v6248_v39  ;;  %v6249_v21 = vunpack.i.l.bf16 %v6248_v39 }
 0x84c   : > { %v2875_v45 = vsel %vm1481_vm6, %v7735_v61, %v6250_v43  ;;  %v2874_v7 = vsel %vm1481_vm6, %v7733_v32, %v6249_v21 }
 0x852   : > { %v2803_v9 = vpop.f32.mrf.mxu0 }
 0x853   : > { %v6256_v10 = vpack.i.bf16 %v2803_v9, %v2798_v16 }
 0x854   : > { %v6196_v2 = vpop.f32.mrf.mxu0 }
 0x855   : > { %6257 = vrot.lane.b32.xlu0 %v6256_v10, %s6866_s27  ;;  %v6834_v2 = vld [vmem:[#allocation2 + $0x18] sm:$0xff] }
 0x856   : > { %v2808_v17 = vpop.f32.mrf.mxu0 }
 0x857   : > { %2865 = vrot.lane.b32.xlu1 %v2808_v17, %s6866_s27 }
 0x858   : > { %v6199_v12 = vpop.f32.mrf.mxu0 }
 0x859   : > { %2845 = vrot.lane.b32.xlu0 %v2476_v57, %s6865_s4  ;;  %v6835_v12 = vld [vmem:[#allocation2 + $0x10] sm:$0xff] }
 0x87a   : > { %v6238_v14 = vpop.permute.xlu1 %6237 }
 0x87b   : > { %v6240_v46 = vunpack.i.h.bf16 %v6238_v14  ;;  %v6239_v58 = vunpack.i.l.bf16 %v6238_v14 }
 0x87d   : > { %v2879_v3 = vsel %vm2877_vm13, %v2873_v18, %v6240_v46  ;;  %v2878_v63 = vsel %vm2877_vm13, %v2872_v8, %v6239_v58  ;;  %v6836_v8 = vld [vmem:[#allocation2 + $0x28] sm:$0xff] }
 0x87e   : > { %v2889_v52 = vpack.c.bf16 %v2879_v3, %v2878_v63 }
 0x88e   : > { %v6243_v30 = vpop.permute.xlu1 %6242 }
 0x88f   : > { %v6245_v49 = vunpack.i.h.bf16 %v6243_v30  ;;  %v6244_v24 = vunpack.i.l.bf16 %v6243_v30 }
 0x891   : > { %v2884_v35 = vsel %vm2883_vm14, %v6239_v58, %v6244_v24  ;;  %v2885_v15 = vsel %vm2883_vm14, %v6240_v46, %v6245_v49  ;;  %v6837_v24 = vld [vmem:[#allocation2 + $0x20] sm:$0xff] }
 0x892   : > { %v2890_v36 = vpack.c.bf16 %v2885_v15, %v2884_v35  ;;  %v6253_v53 = vpop.permute.xlu1 %6252 }
 0x893   : > { %v6255_v50 = vunpack.i.h.bf16 %v6253_v53  ;;  %v6254_v62 = vunpack.i.l.bf16 %v6253_v53  ;;  %v6838_v53 = vld [vmem:[#allocation2 + $0x38] sm:$0xff] }
 0x894   : > { %5707 = vmatprep.mubr.msk.bf16.mxu1 %vm686_vm2, %v2890_v36 }
 0x895   : > { %3105 = vmatmul.mubr.bf16.vlgmr.msra.gmra.mxu1 %v2889_v52  ;;  %v2880_v56 = vsel %vm2877_vm13, %v2874_v7, %v6254_v62  ;;  %v2881_v44 = vsel %vm2877_vm13, %v2875_v45, %v6255_v50 }
 0x896   : > { %v2826_v59 = vpop.permute.xlu1 %2825  ;;  %v2891_v61 = vpack.c.bf16 %v2881_v44, %v2880_v56  ;;  %v6841_v44 = vld [vmem:[#allocation2 + $0x48] sm:$0x3] }
 0x897   : > { %v2876_v32 = vsel %vm1481_vm6, %v7737_v42, %v2826_v59 }
 0x8c7   : > { %v6258_v11 = vpop.permute.xlu0 %6257 }
 0x8c8   : > { %v6260_v38 = vunpack.i.h.bf16 %v6258_v11  ;;  %v6259_v54 = vunpack.i.l.bf16 %v6258_v11  ;;  %v6840_v11 = vld [vmem:[#allocation2 + $0x40] sm:$0x3] }
 0x8c9   : > { %v2866_v0 = vpop.permute.xlu1 %2865 }
 0x8ca   : > { %v2886_v41 = vsel %vm2883_vm14, %v6254_v62, %v6259_v54  ;;  %v2887_v26 = vsel %vm2883_vm14, %v6255_v50, %v6260_v38  ;;  %v6839_v50 = vld [vmem:[#allocation2 + $0x30] sm:$0xff] }
 0x8cb   : > { %v2892_v31 = vpack.c.bf16 %v2887_v26, %v2886_v41  ;;  %v2846_v34 = vpop.permute.xlu0 %2845 }
 0x8cc   : > { %v2888_v51 = vsel %vm2883_vm14, %v2846_v34, %v2866_v0  ;;  %v2882_v6 = vsel %vm2877_vm13, %v2876_v32, %v2846_v34  ;;  %v6393_v32 = vld [vmem:[%s6998_s20 + $0x194] ss:$28 sps:$4 sm:$0xff]  }
 0x8cd   : > { %v2894_v47 = vpack.c.bf16 %v2888_v51, %v2888_v51  ;;  %5708 = vmatprep.mubr.msk.bf16.mxu1 %vm686_vm2, %v2892_v31  ;;  %v2893_v55 = vpack.c.bf16 %v2882_v6, %v2882_v6  ;;  %v6388_v51 = vld [vmem:[%s6998_s20 + $0x188] ss:$28 sps:$4 sm:$0xff]   ;;  %v6396_v6 = vld [vmem:[%s6998_s20 + $0x154] ss:$28 sps:$4 sm:$0xff]   ;;  %3963 = vmatprep.subr.bf16.mxu1 %v6393_v32 }
 0x8ce   : > { %3115 = vmatmul.mubr.bf16.gmra.mxu1 %v2891_v61  ;;  %v6390_v61 = vld [vmem:[%s6998_s20 + $0x18c] ss:$28 sps:$4 sm:$0xff]  }
 0x8cf   : > { %5709 = vmatprep.mubr.msk.bf16.mxu1 %vm686_vm2, %v2894_v47  ;;  %v6391_v47 = vld [vmem:[%s6998_s20 + $0x190] ss:$28 sps:$4 sm:$0xff]   ;;  %3902 = vmatprep.subr.bf16.mxu0 %v6390_v61 }
 0x8d0   : > { %3903 = vmatpush1.bf16.msra.mxu0 %v6388_v51  ;;  %3964 = vmatpush1.bf16.msra.mxu1 %v6391_v47 }
 0x8d1   : > { %3904 = vmatprep.subr.bf16.mxu0 %v6396_v6  ;;  %v6442_v6 = vld [vmem:[%s6998_s20 + $0x26c] ss:$28 sps:$4 sm:$0xff]  }
 0x8d4   : > { %3905 = vmatpush1.bf16.msra.mxu0 %v6394_v23  ;;  %v6440_v23 = vld [vmem:[%s6998_s20 + $0x268] ss:$28 sps:$4 sm:$0xff]  }
 0x8d6   : > { %3125 = vmatmul.mubr.bf16.gmra.mxu1 %v2893_v55  ;;  %v6399_v55 = vld [vmem:[%s6998_s20 + $0x15c] ss:$28 sps:$4 sm:$0xff]  }
 0x8d7   : > { %3965 = vmatprep.subr.bf16.mxu1 %v6399_v55  ;;  %v6445_v55 = vld [vmem:[%s6998_s20 + $0x274] ss:$28 sps:$4 sm:$0xff]  }
 0x955   : > { %v3106_v57 = vpop.f32.mrf.mxu1 }
 0x956   : > { %v3107_v33 = vadd.f32 %v3106_v57, %v2925_v48  ;;  %v6405_v57 = vld [vmem:[%s6998_s20 + $0x124] ss:$28 sps:$4 sm:$0xff]  }
 0x957   : > { %v3108_v20 = vpop.f32.mrf.mxu1 }
 0x958   : > { %v3109_v13 = vadd.f32 %v3108_v20, %v2929_v60  ;;  %v8050_v4 = vadd.f32 %v6833_v19, %v3107_v33  ;;  %v6400_v33 = vld [vmem:[%s6998_s20 + $0x118] ss:$28 sps:$4 sm:$0xff]   ;;  %v6403_v20 = vld [vmem:[%s6998_s20 + $0x120] ss:$28 sps:$4 sm:$0xff]   ;;  %v6409_v19 = vld [vmem:[%s6998_s20 + $0xe8] ss:$28 sps:$4 sm:$0xff]  }
 0x959   : > { %v3110_v27 = vpop.f32.mrf.mxu1 }
 0x95a   : > { %v8048_v42 = vadd.f32 %v6832_v37, %v3109_v13  ;;  %8929 = vst [vmem:[#allocation9_spill] sm:$0xff] %v8050_v4  ;;  %v3111_v28 = vadd.f32 %v3110_v27, %v2925_v48  ;;  %v6408_v13 = vld [vmem:[%s6998_s20 + $0xe4] ss:$28 sps:$4 sm:$0xff]   ;;  %v6411_v27 = vld [vmem:[%s6998_s20 + $0xec] ss:$28 sps:$4 sm:$0xff]  }
 0x95b   : > { %v3112_v16 = vpop.f32.mrf.mxu1  ;;  %v6406_v37 = vld [vmem:[%s6998_s20 + $0xe0] ss:$28 sps:$4 sm:$0xff]  }
 0x95c   : > { %8928 = vst [vmem:[#allocation8_spill] sm:$0xff] %v8048_v42  ;;  %v3113_v22 = vadd.f32 %v3112_v16, %v2929_v60  ;;  %v3143_v9 = vsel %vm686_vm2, %v8048_v42, 0.0  ;;  %v8057_v5 = vadd.f32 %v6835_v12, %v3111_v28  ;;  %v6414_v28 = vld [vmem:[%s6998_s20 + $0xac] ss:$28 sps:$4 sm:$0xff]   ;;  %v6417_v16 = vld [vmem:[%s6998_s20 + $0xb4] ss:$28 sps:$4 sm:$0xff]  }
 0x95d   : > { %v3144_v10 = vadd.f32 %v3143_v9, %v8050_v4  ;;  %v6415_v9 = vld [vmem:[%s6998_s20 + $0xb0] ss:$28 sps:$4 sm:$0xff]  }
 0x95e   : > { %v8055_v17 = vadd.f32 %v6834_v2, %v3113_v22  ;;  %8931 = vst [vmem:[#allocation11_spill] sm:$0xff] %v8057_v5  ;;  %v6412_v22 = vld [vmem:[%s6998_s20 + $0xa8] ss:$28 sps:$4 sm:$0xff]   ;;  %v6423_v2 = vld [vmem:[%s6998_s20 + $0x7c] ss:$28 sps:$4 sm:$0xff]  }
 0x95f   : > { %3145 = vadd.xlane.f32.xlu0 %v3144_v10  ;;  %v6420_v10 = vld [vmem:[%s6998_s20 + $0x74] ss:$28 sps:$4 sm:$0xff]  }
 0x960   : > { %8930 = vst [vmem:[#allocation10_spill] sm:$0xff] %v8055_v17  ;;  %v3147_v14 = vsel %vm686_vm2, %v8055_v17, 0.0  ;;  %v6418_v12 = vld [vmem:[%s6998_s20 + $0x70] ss:$28 sps:$4 sm:$0xff]  }
 0x961   : > { %v3148_v40 = vadd.f32 %v3147_v14, %v8057_v5  ;;  %v6421_v14 = vld [vmem:[%s6998_s20 + $0x78] ss:$28 sps:$4 sm:$0xff]  }
 0x963   : > { %3149 = vadd.xlane.f32.xlu1 %v3148_v40 }
 0x98e   : > { %v3116_v1 = vpop.f32.mrf.mxu1 }
 0x98f   : > { %v3117_v46 = vadd.f32 %v3116_v1, %v2925_v48 }
 0x990   : > { %v3118_v58 = vpop.f32.mrf.mxu1 }
 0x991   : > { %v3119_v30 = vadd.f32 %v3118_v58, %v2929_v60  ;;  %v8064_v3 = vadd.f32 %v6837_v24, %v3117_v46 }
 0x992   : > { %v3120_v18 = vpop.f32.mrf.mxu1 }
 0x993   : > { %v8062_v49 = vadd.f32 %v6836_v8, %v3119_v30  ;;  %8933 = vst [vmem:[#allocation13_spill] sm:$0xff] %v8064_v3  ;;  %v3121_v63 = vadd.f32 %v3120_v18, %v2925_v48 }
 0x994   : > { %v3122_v35 = vpop.f32.mrf.mxu1 }
 0x995   : > { %8932 = vst [vmem:[#allocation12_spill] sm:$0xff] %v8062_v49  ;;  %v3123_v15 = vadd.f32 %v3122_v35, %v2929_v60  ;;  %v3151_v36 = vsel %vm686_vm2, %v8062_v49, 0.0  ;;  %v8071_v62 = vadd.f32 %v6839_v50, %v3121_v63  ;;  %v6426_v50 = vld [vmem:[%s6998_s20 + $0x3c] ss:$28 sps:$4 sm:$0xff]  }
 0x996   : > { %v3126_v52 = vpop.f32.mrf.mxu1  ;;  %v3152_v39 = vadd.f32 %v3151_v36, %v8064_v3 }
 0x997   : > { %v8069_v43 = vadd.f32 %v6838_v53, %v3123_v15  ;;  %v3127_v21 = vadd.f32 %v3126_v52, %v2925_v48  ;;  %8935 = vst [vmem:[#allocation15_spill] sm:$0xff] %v8071_v62  ;;  %v6397_v48 = vld [vmem:[%s6998_s20 + $0x158] ss:$28 sps:$4 sm:$0xff]  }
 0x998   : > { %v3128_v59 = vpop.f32.mrf.mxu1  ;;  %3153 = vadd.xlane.f32.xlu0 %v3152_v39  ;;  %3966 = vmatpush1.bf16.msra.mxu1 %v6397_v48  ;;  %v6443_v48 = vld [vmem:[%s6998_s20 + $0x270] ss:$28 sps:$4 sm:$0xff]  }
 0x999   : > { %8934 = vst [vmem:[#allocation14_spill] sm:$0xff] %v8069_v43  ;;  %v8073_v45 = vadd.f32 %v6840_v11, %v3127_v21  ;;  %v3129_v7 = vadd.f32 %v3128_v59, %v2929_v60  ;;  %v3155_v38 = vsel %vm686_vm2, %v8069_v43, 0.0  ;;  %v6402_v60 = vld [vmem:[%s6998_s20 + $0x11c] ss:$28 sps:$4 sm:$0xff]   ;;  %3967 = vmatprep.subr.bf16.mxu1 %v6405_v57  ;;  %v6429_v59 = vld [vmem:[%s6998_s20 + $0x44] ss:$28 sps:$4 sm:$0xff]  }
 0x99a   : > { %v3130_v54 = vpop.f32.mrf.mxu1  ;;  %v3156_v56 = vadd.f32 %v3155_v38, %v8071_v62  ;;  %3906 = vmatprep.subr.bf16.mxu0 %v6402_v60  ;;  %v6424_v11 = vld [vmem:[%s6998_s20 + $0x38] ss:$28 sps:$4 sm:$0xff]   ;;  %v6432_v38 = vld [vmem:[%s6998_s20 + $0x4] ss:$28 sps:$4 sm:$0xff]  }
 0x99b   : > { %8936 = vst [vmem:[#allocation16_spill] sm:$0xff] %v8073_v45  ;;  %v8078_v41 = vadd.f32 %v6841_v44, %v3129_v7  ;;  %v3159_v31 = vsel %vm703_vm3, %v8073_v45, 0.0  ;;  %3907 = vmatpush1.bf16.msra.mxu0 %v6400_v33  ;;  %v6427_v7 = vld [vmem:[%s6998_s20 + $0x40] ss:$28 sps:$4 sm:$0xff]   ;;  %v6435_v54 = vld [vmem:[%s6998_s20 + $0xc] ss:$28 sps:$4 sm:$0xff]  }
 0x99c   : > { %v3131_v26 = vpop.f32.mrf.mxu1  ;;  %3157 = vadd.xlane.f32.xlu0 %v3156_v56  ;;  %3968 = vmatpush1.bf16.msra.mxu1 %v6403_v20  ;;  %v6430_v56 = vld [vmem:[%s6998_s20] ss:$28 sps:$4 sm:$0xff]   ;;  %v6433_v44 = vld [vmem:[%s6998_s20 + $0x8] ss:$28 sps:$4 sm:$0xff]   ;;  %v6448_v60 = vld [vmem:[%s6998_s20 + $0x234] ss:$28 sps:$4 sm:$0xff]  }
 0x99d   : > { %8937 = vst [vmem:[#allocation17_spill] sm:$0xff] %v8078_v41  ;;  %v3160_v0 = vsel %vm705_vm4, %v8078_v41, 0.0  ;;  %3908 = vmatprep.subr.bf16.mxu0 %v6408_v13  ;;  %3969 = vmatprep.subr.bf16.mxu1 %v6411_v27  ;;  %v3381_v26 = vld [vmem:[%s6998_s20 + $0x2a0] sm:$0x33]  ;;  %v6451_v57 = vld [vmem:[%s6998_s20 + $0x23c] ss:$28 sps:$4 sm:$0xff]  }
 0x99e   : > { %v3161_v34 = vadd.f32 %v3160_v0, %v3159_v31  ;;  %v3382_v31 = vld [vmem:[%s6998_s20 + $0x2a8] sm:$0x33]  ;;  %v5795_v0 = vcombine.high %v3381_v26, %v3381_v26  ;;  %v5794_v51 = vcombine.low %v3381_v26, %v3381_v26  ;;  %v6449_v20 = vld [vmem:[%s6998_s20 + $0x238] ss:$28 sps:$4 sm:$0xff]  }
 0x99f   : > { %3909 = vmatpush1.bf16.msra.mxu0 %v6406_v37  ;;  %v5796_v61 = vcombine.low %v3382_v31, %v3382_v31  ;;  %v6446_v33 = vld [vmem:[%s6998_s20 + $0x230] ss:$28 sps:$4 sm:$0xff]   ;;  %v6452_v13 = vld [vmem:[%s6998_s20 + $0x1f8] ss:$28 sps:$4 sm:$0xff]   ;;  %v6455_v37 = vld [vmem:[%s6998_s20 + $0x200] ss:$28 sps:$4 sm:$0xff]  }
 0x9a0   : > { %3162 = vadd.xlane.f32.xlu0 %v3161_v34  ;;  %3970 = vmatpush1.bf16.msra.mxu1 %v6409_v19  ;;  %v5797_v34 = vcombine.high %v3382_v31, %v3382_v31  ;;  %v3882_v47 = vsel %vm703_vm3, %v5794_v51, 0  ;;  %v6454_v27 = vld [vmem:[%s6998_s20 + $0x1fc] ss:$28 sps:$4 sm:$0xff]   ;;  %v6457_v19 = vld [vmem:[%s6998_s20 + $0x204] ss:$28 sps:$4 sm:$0xff]  }
 0x9a1   : > { %3910 = vmatprep.subr.bf16.mxu0 %v6414_v28  ;;  %3971 = vmatprep.subr.bf16.mxu1 %v6417_v16  ;;  %v3888_v32 = vsel %vm703_vm3, %v5796_v61, 0  ;;  %v6460_v28 = vld [vmem:[%s6998_s20 + $0x1c4] ss:$28 sps:$4 sm:$0xff]   ;;  %v6463_v16 = vld [vmem:[%s6998_s20 + $0x1cc] ss:$28 sps:$4 sm:$0xff]  }
 0x9a3   : > { %3911 = vmatpush1.bf16.msra.mxu0 %v6412_v22  ;;  %v6458_v22 = vld [vmem:[%s6998_s20 + $0x1c0] ss:$28 sps:$4 sm:$0xff]  }
 0x9a4   : > { %3972 = vmatpush1.bf16.msra.mxu1 %v6415_v9  ;;  %3912 = vmatprep.subr.bf16.mxu0 %v6420_v10  ;;  %v6461_v9 = vld [vmem:[%s6998_s20 + $0x1c8] ss:$28 sps:$4 sm:$0xff]   ;;  %v6466_v10 = vld [vmem:[%s6998_s20 + $0x19c] ss:$28 sps:$4 sm:$0xff]  }
 0x9a5   : > { %3973 = vmatprep.subr.bf16.mxu1 %v6423_v2  ;;  %v8938_v2 = vmov 0  }
 0x9a7   : > { %3913 = vmatpush1.bf16.msra.mxu0 %v6418_v12 }
 0x9a8   : > { %3974 = vmatpush1.bf16.msra.mxu1 %v6421_v14  ;;  %3914 = vmatprep.subr.bf16.mxu0 %v6426_v50 }
 0x9a9   : > { %3975 = vmatprep.subr.bf16.mxu1 %v6429_v59 }
 0x9ab   : > { %3915 = vmatpush1.bf16.msra.mxu0 %v6424_v11 }
 0x9ac   : > { %3976 = vmatpush1.bf16.msra.mxu1 %v6427_v7  ;;  %3916 = vmatprep.subr.bf16.mxu0 %v6432_v38 }
 0x9ad   : > { %3977 = vmatprep.subr.bf16.mxu1 %v6435_v54 }
 0x9af   : > { %3917 = vmatpush1.bf16.msra.mxu0 %v6430_v56 }
 0x9b0   : > { %3978 = vmatpush1.bf16.msra.mxu1 %v6433_v44  ;;  %5801 = vmatprep.subr.msk.bf16.mxu0 %vm703_vm3, %v5795_v0 }
 0x9b1   : > { %5805 = vmatprep.subr.msk.bf16.mxu1 %vm703_vm3, %v5797_v34 }
 0x9b3   : > { %3925 = vmatpush2.bf16.msra.mxu0 %v3882_v47 }
 0x9b4   : > { %3986 = vmatpush2.bf16.msra.mxu1 %v3888_v32  ;;  %3926 = vmatprep.subr.bf16.mxu0 %v6442_v6 }
 0x9b5   : > { %3987 = vmatprep.subr.bf16.mxu1 %v6445_v55  ;;  %v3235_v55 = vld [vmem:[%s8939_s26] sm:$0x3] }
 0x9b7   : > { %3927 = vmatpush2.bf16.msra.mxu0 %v6440_v23 }
 0x9b8   : > { %3988 = vmatpush2.bf16.msra.mxu1 %v6443_v48  ;;  %3928 = vmatprep.subr.bf16.mxu0 %v6448_v60 }
 0x9b9   : > { %3989 = vmatprep.subr.bf16.mxu1 %v6451_v57  ;;  %v8204_v57 = vrot.slane %v3235_v55, %v7198_v29 }
 0x9bb   : > { %3929 = vmatpush2.bf16.msra.mxu0 %v6446_v33  ;;  %v8207_v33 = vrot.slane %v3235_v55, %v7195_v25  ;;  %v6492_v55 = vld [vmem:[%s6998_s20 + $0x10] ss:$28 sps:$4 sm:$0xff]  }
 0x9bc   : > { %3990 = vmatpush2.bf16.msra.mxu1 %v6449_v20  ;;  %3930 = vmatprep.subr.bf16.mxu0 %v6454_v27  ;;  %v3257_v20 = vld [vmem:[%s8940_s29] sm:$0x3] }
 0x9bd   : > { %3991 = vmatprep.subr.bf16.mxu1 %v6457_v19  ;;  %v8215_v27 = vrot.slane %v3257_v20, %v7198_v29 }
 0x9bf   : > { %3931 = vmatpush2.bf16.msra.mxu0 %v6452_v13 }
 0x9c0   : > { %3992 = vmatpush2.bf16.msra.mxu1 %v6455_v37  ;;  %3932 = vmatprep.subr.bf16.mxu0 %v6460_v28 }
 0x9c1   : > { %3993 = vmatprep.subr.bf16.mxu1 %v6463_v16 }
 0x9c3   : > { %3933 = vmatpush2.bf16.msra.mxu0 %v6458_v22 }
 0x9c4   : > { %3994 = vmatpush2.bf16.msra.mxu1 %v6461_v9  ;;  %4024 = vmatprep.subr.bf16.mxu0 %v6466_v10 }
 0x9c5   : > { %4085 = vmatprep.subr.bf16.mxu1 %v8938_v2 }
 0x9e8   : > { %v3146_v40 = vpop.xlane.xlu0 %3145 }
 0x9e9   : > { %v3164_v1 = vmul.f32 0.0051020407, %v3146_v40 }
 0x9eb   : > { %v8109_v46 = vsub.f32 %v8050_v4, %v3164_v1  ;;  %v8112_v58 = vsub.f32 %v8048_v42, %v3164_v1 }
 0x9ec   : > { %v3150_v30 = vpop.xlane.xlu1 %3149 }
 0x9ed   : > { %v3179_v18 = vmul.f32 %v8109_v46, %v8109_v46  ;;  %v3180_v8 = vmul.f32 %v8112_v58, %v8112_v58  ;;  %v3165_v24 = vmul.f32 0.0051020407, %v3150_v30 }
 0x9ef   : > { %v8119_v63 = vsub.f32 %v8057_v5, %v3165_v24  ;;  %v8122_v35 = vsub.f32 %v8055_v17, %v3165_v24  ;;  %v3189_v15 = vsel %vm686_vm2, %v3180_v8, 0.0 }
 0x9f0   : > { %v3190_v36 = vadd.f32 %v3189_v15, %v3179_v18 }
 0x9f1   : > { %v3181_v52 = vmul.f32 %v8119_v63, %v8119_v63  ;;  %v3182_v39 = vmul.f32 %v8122_v35, %v8122_v35 }
 0x9f2   : > { %3191 = vadd.xlane.f32.xlu1 %v3190_v36 }
 0x9f3   : > { %v3193_v53 = vsel %vm686_vm2, %v3182_v39, 0.0 }
 0x9f4   : > { %v3194_v21 = vadd.f32 %v3193_v53, %v3181_v52 }
 0x9f6   : > { %3195 = vadd.xlane.f32.xlu0 %v3194_v21 }
 0xa21   : > { %v3154_v12 = vpop.xlane.xlu0 %3153 }
 0xa22   : > { %v3166_v14 = vmul.f32 0.0051020407, %v3154_v12 }
 0xa24   : > { %v8163_v40 = vsub.f32 %v8064_v3, %v3166_v14  ;;  %v8166_v1 = vsub.f32 %v8062_v49, %v3166_v14 }
 0xa25   : > { %v3158_v30 = vpop.xlane.xlu0 %3157 }
 0xa26   : > { %v3183_v18 = vmul.f32 %v8163_v40, %v8163_v40  ;;  %v3184_v8 = vmul.f32 %v8166_v1, %v8166_v1  ;;  %v3167_v24 = vmul.f32 0.0051020407, %v3158_v30  ;;  %v6464_v30 = vld [vmem:[%s6998_s20 + $0x198] ss:$28 sps:$4 sm:$0xff]  }
 0xa28   : > { %v8173_v15 = vsub.f32 %v8071_v62, %v3167_v24  ;;  %v8176_v36 = vsub.f32 %v8069_v43, %v3167_v24  ;;  %v3197_v52 = vsel %vm686_vm2, %v3184_v8, 0.0  ;;  %v6470_v8 = vld [vmem:[%s6998_s20 + $0x164] ss:$28 sps:$4 sm:$0xff]  }
 0xa29   : > { %v3163_v39 = vpop.xlane.xlu0 %3162  ;;  %v3198_v53 = vadd.f32 %v3197_v52, %v3183_v18  ;;  %v6467_v18 = vld [vmem:[%s6998_s20 + $0x1a0] ss:$28 sps:$4 sm:$0xff]   ;;  %v6471_v52 = vld [vmem:[%s6998_s20 + $0x168] ss:$28 sps:$4 sm:$0xff]  }
 0xa2a   : > { %v3185_v21 = vmul.f32 %v8173_v15, %v8173_v15  ;;  %v3186_v50 = vmul.f32 %v8176_v36, %v8176_v36  ;;  %v3168_v59 = vmul.f32 0.0051020407, %v3163_v39  ;;  %v6468_v24 = vld [vmem:[%s6998_s20 + $0x160] ss:$28 sps:$4 sm:$0xff]   ;;  %v6474_v39 = vld [vmem:[%s6998_s20 + $0x12c] ss:$28 sps:$4 sm:$0xff]  }
 0xa2b   : > { %3199 = vadd.xlane.f32.xlu1 %v3198_v53  ;;  %v6472_v53 = vld [vmem:[%s6998_s20 + $0x128] ss:$28 sps:$4 sm:$0xff]  }
 0xa2c   : > { %v8184_v11 = vsub.f32 %v8073_v45, %v3168_v59  ;;  %v8187_v7 = vsub.f32 %v8078_v41, %v3168_v59  ;;  %v3201_v38 = vsel %vm686_vm2, %v3186_v50, 0.0  ;;  %v6478_v50 = vld [vmem:[%s6998_s20 + $0xf4] ss:$28 sps:$4 sm:$0xff]  }
 0xa2d   : > { %v3202_v54 = vadd.f32 %v3201_v38, %v3185_v21  ;;  %v6475_v21 = vld [vmem:[%s6998_s20 + $0x130] ss:$28 sps:$4 sm:$0xff]   ;;  %v6479_v38 = vld [vmem:[%s6998_s20 + $0xf8] ss:$28 sps:$4 sm:$0xff]  }
 0xa2e   : > { %v3187_v56 = vmul.f32 %v8184_v11, %v8184_v11  ;;  %v3188_v44 = vmul.f32 %v8187_v7, %v8187_v7  ;;  %v6476_v59 = vld [vmem:[%s6998_s20 + $0xf0] ss:$28 sps:$4 sm:$0xff]  }
 0xa2f   : > { %3203 = vadd.xlane.f32.xlu0 %v3202_v54  ;;  %v6482_v54 = vld [vmem:[%s6998_s20 + $0xbc] ss:$28 sps:$4 sm:$0xff]  }
 0xa30   : > { %v3205_v26 = vsel %vm703_vm3, %v3187_v56, 0.0  ;;  %v3206_v31 = vsel %vm705_vm4, %v3188_v44, 0.0  ;;  %v6480_v56 = vld [vmem:[%s6998_s20 + $0xb8] ss:$28 sps:$4 sm:$0xff]   ;;  %v6483_v44 = vld [vmem:[%s6998_s20 + $0xc0] ss:$28 sps:$4 sm:$0xff]  }
 0xa31   : > { %v3207_v0 = vadd.f32 %v3206_v31, %v3205_v26  ;;  %v6486_v26 = vld [vmem:[%s6998_s20 + $0x84] ss:$28 sps:$4 sm:$0xff]  }
 0xa32   : > { %v6484_v31 = vld [vmem:[%s6998_s20 + $0x80] ss:$28 sps:$4 sm:$0xff]  }
 0xa33   : > { %3208 = vadd.xlane.f32.xlu1 %v3207_v0  ;;  %v6487_v0 = vld [vmem:[%s6998_s20 + $0x88] ss:$28 sps:$4 sm:$0xff]  }
 0xa7b   : > { %v3192_v34 = vpop.xlane.xlu1 %3191 }
 0xa7c   : > { %v3210_v51 = vmul.f32 0.0051020407, %v3192_v34  ;;  %v6490_v34 = vld [vmem:[%s6998_s20 + $0x4c] ss:$28 sps:$4 sm:$0xff]  }
 0xa7e   : > { %v3215_v61 = vadd.f32 1e-05, %v3210_v51  ;;  %v6488_v51 = vld [vmem:[%s6998_s20 + $0x48] ss:$28 sps:$4 sm:$0xff]  }
 0xa7f   : > { %v3196_v47 = vpop.xlane.xlu0 %3195 }
 0xa80   : > { %6752 = vrsqrt.f32 %v3215_v61  ;;  %v3211_v32 = vmul.f32 0.0051020407, %v3196_v47  ;;  %v6491_v61 = vld [vmem:[%s6998_s20 + $0x50] ss:$28 sps:$4 sm:$0xff]  }
 0xa81   : > { %v6494_v47 = vld [vmem:[%s6998_s20 + $0x14] ss:$28 sps:$4 sm:$0xff]  }
 0xa82   : > { %v3216_v6 = vadd.f32 1e-05, %v3211_v32  ;;  %v3383_v32 = vld [vmem:[%s6998_s20 + $0x2b0] sm:$0x33] }
 0xa84   : > { %6754 = vrsqrt.f32 %v3216_v6 }
 0xa8d   : > { %v6753_v23 = vpop.eup %6752 }
 0xa8e   : > { %v3225_v48 = vmul.f32 %v6753_v23, %v8109_v46  ;;  %v3226_v60 = vmul.f32 %v6753_v23, %v8112_v58  ;;  %v8218_v46 = vrot.slane %v3257_v20, %v7195_v25  ;;  %v6495_v23 = vld [vmem:[%s6998_s20 + $0x18] ss:$28 sps:$4 sm:$0xff]   ;;  %v5798_v20 = vcombine.low %v3383_v32, %v3383_v32 }
 0xa90   : > { %v3248_v19 = vmul.f32 %v8207_v33, %v3226_v60  ;;  %v3247_v28 = vmul.f32 %v8204_v57, %v3225_v48  ;;  %v5799_v60 = vcombine.high %v3383_v32, %v3383_v32 }
 0xa91   : > { %v6755_v13 = vpop.eup %6754 }
 0xa92   : > { %v3227_v58 = vmul.f32 %v6755_v13, %v8119_v63  ;;  %v3228_v37 = vmul.f32 %v6755_v13, %v8122_v35  ;;  %v3270_v9 = vadd.f32 %v8218_v46, %v3248_v19  ;;  %v3269_v12 = vadd.f32 %v8215_v27, %v3247_v28  ;;  %v6498_v13 = vld [vmem:[%s6998_s20 + $0x2b8] ss:$0 sps:$4 sm:$0x33]  }
 0xa93   : > { %v3894_v28 = vsel %vm703_vm3, %v5798_v20, 0 }
 0xa94   : > { %v3250_v16 = vmul.f32 %v8207_v33, %v3228_v37  ;;  %v3249_v22 = vmul.f32 %v8204_v57, %v3227_v58 }
 0xa96   : > { %v3272_v10 = vadd.f32 %v8218_v46, %v3250_v16  ;;  %v3271_v63 = vadd.f32 %v8215_v27, %v3249_v22  ;;  %v3900_v16 = vsel %vm703_vm3, %v6498_v13, 0  ;;  %v6501_v22 = vld [vmem:[%s6998_s20 + $0x27c] ss:$28 sps:$4 sm:$0xff]  }
 0xa98   : > { %v8230_v35 = vpack.c.bf16 %v3272_v10, %v3270_v9  ;;  %v8232_v14 = vpack.c.bf16 %v3271_v63, %v3269_v12  ;;  %v6499_v12 = vld [vmem:[%s6998_s20 + $0x278] ss:$28 sps:$4 sm:$0xff]   ;;  %v6502_v63 = vld [vmem:[%s6998_s20 + $0x280] ss:$28 sps:$4 sm:$0xff]  }
 0xa9a   : > { %5802 = vmatprep.mubr.msk.bf16.mxu0 %vm686_vm2, %v8230_v35  ;;  %5806 = vmatprep.mubr.msk.bf16.mxu1 %vm686_vm2, %v8230_v35 }
 0xa9b   : > { %3935 = vmatmul.mubr.bf16.vlgmr.msra.gmra.mxu0 %v8232_v14  ;;  %3996 = vmatmul.mubr.bf16.vlgmr.msra.gmra.mxu1 %v8232_v14 }
 0xa9c   : > { %4025 = vmatpush1.bf16.msra.mxu0 %v6464_v30  ;;  %4086 = vmatpush1.bf16.msra.mxu1 %v6467_v18  ;;  %v6505_v18 = vld [vmem:[%s6998_s20 + $0x244] ss:$28 sps:$4 sm:$0xff]  }
 0xa9d   : > { %4026 = vmatprep.subr.bf16.mxu0 %v6470_v8  ;;  %4087 = vmatprep.subr.bf16.mxu1 %v8938_v2 }
 0xaa0   : > { %4027 = vmatpush1.bf16.msra.mxu0 %v6468_v24  ;;  %4088 = vmatpush1.bf16.msra.mxu1 %v6471_v52  ;;  %v6503_v24 = vld [vmem:[%s6998_s20 + $0x240] ss:$28 sps:$4 sm:$0xff]   ;;  %v6506_v52 = vld [vmem:[%s6998_s20 + $0x248] ss:$28 sps:$4 sm:$0xff]  }
 0xaa1   : > { %4028 = vmatprep.subr.bf16.mxu0 %v6474_v39  ;;  %4089 = vmatprep.subr.bf16.mxu1 %v8938_v2  ;;  %v6509_v39 = vld [vmem:[%s6998_s20 + $0x20c] ss:$28 sps:$4 sm:$0xff]  }
 0xaa4   : > { %4029 = vmatpush1.bf16.msra.mxu0 %v6472_v53  ;;  %4090 = vmatpush1.bf16.msra.mxu1 %v6475_v21  ;;  %v6507_v53 = vld [vmem:[%s6998_s20 + $0x208] ss:$28 sps:$4 sm:$0xff]   ;;  %v6510_v21 = vld [vmem:[%s6998_s20 + $0x210] ss:$28 sps:$4 sm:$0xff]  }
 0xaa5   : > { %4030 = vmatprep.subr.bf16.mxu0 %v6478_v50  ;;  %4091 = vmatprep.subr.bf16.mxu1 %v8938_v2  ;;  %v6513_v50 = vld [vmem:[%s6998_s20 + $0x1d4] ss:$28 sps:$4 sm:$0xff]  }
 0xaa8   : > { %4031 = vmatpush1.bf16.msra.mxu0 %v6476_v59  ;;  %4092 = vmatpush1.bf16.msra.mxu1 %v6479_v38 }
 0xaa9   : > { %4032 = vmatprep.subr.bf16.mxu0 %v6482_v54  ;;  %4093 = vmatprep.subr.bf16.mxu1 %v8938_v2 }
 0xaac   : > { %4033 = vmatpush1.bf16.msra.mxu0 %v6480_v56  ;;  %4094 = vmatpush1.bf16.msra.mxu1 %v6483_v44  ;;  %v6511_v56 = vld [vmem:[%s6998_s20 + $0x1d0] ss:$28 sps:$4 sm:$0xff]   ;;  %v6514_v44 = vld [vmem:[%s6998_s20 + $0x1d8] ss:$28 sps:$4 sm:$0xff]  }
 0xaad   : > { %4034 = vmatprep.subr.bf16.mxu0 %v6486_v26  ;;  %4095 = vmatprep.subr.bf16.mxu1 %v8938_v2  ;;  %v6517_v26 = vld [vmem:[%s7008_s25 + $0x74] ss:$8 sps:$4 sm:$0xff]  }
 0xab0   : > { %4035 = vmatpush1.bf16.msra.mxu0 %v6484_v31  ;;  %4096 = vmatpush1.bf16.msra.mxu1 %v6487_v0  ;;  %v6520_v31 = vld [vmem:[%s7008_s25 + $0x174] ss:$8 sps:$4 sm:$0xff]  }
 0xab1   : > { %4036 = vmatprep.subr.bf16.mxu0 %v6490_v34  ;;  %4097 = vmatprep.subr.bf16.mxu1 %v8938_v2 }
 0xab4   : > { %v3200_v6 = vpop.xlane.xlu1 %3199  ;;  %4037 = vmatpush1.bf16.msra.mxu0 %v6488_v51  ;;  %4098 = vmatpush1.bf16.msra.mxu1 %v6491_v61 }
 0xab5   : > { %v3212_v48 = vmul.f32 0.0051020407, %v3200_v6  ;;  %4038 = vmatprep.subr.bf16.mxu0 %v6494_v47  ;;  %4099 = vmatprep.subr.bf16.mxu1 %v8938_v2 }
 0xab7   : > { %v3217_v58 = vadd.f32 1e-05, %v3212_v48 }
 0xab8   : > { %v3204_v37 = vpop.xlane.xlu0 %3203  ;;  %4039 = vmatpush1.bf16.msra.mxu0 %v6492_v55  ;;  %4100 = vmatpush1.bf16.msra.mxu1 %v6495_v23 }
 0xab9   : > { %6756 = vrsqrt.f32 %v3217_v58  ;;  %v3213_v19 = vmul.f32 0.0051020407, %v3204_v37  ;;  %5809 = vmatprep.subr.msk.bf16.mxu0 %vm703_vm3, %v5799_v60  ;;  %4107 = vmatprep.subr.bf16.mxu1 %v8938_v2 }
 0xabb   : > { %v3218_v9 = vadd.f32 1e-05, %v3213_v19  ;;  %v6526_v19 = vld [vmem:[%s7008_s25 + $0x164] ss:$8 sps:$4 sm:$0xff]  }
 0xabc   : > { %v3209_v10 = vpop.xlane.xlu1 %3208  ;;  %4047 = vmatpush2.bf16.msra.mxu0 %v3894_v28  ;;  %4108 = vmatpush2.bf16.msra.mxu1 %v3900_v16  ;;  %v6524_v28 = vld [vmem:[%s7008_s25 + $0x160] ss:$8 sps:$4 sm:$0xff]   ;;  %v6529_v16 = vld [vmem:[%s7008_s25 + $0x54] ss:$8 sps:$4 sm:$0xff]  }
 0xabd   : > { %6758 = vrsqrt.f32 %v3218_v9  ;;  %v3214_v30 = vmul.f32 0.0051020407, %v3209_v10  ;;  %4048 = vmatprep.subr.bf16.mxu0 %v6501_v22  ;;  %4109 = vmatprep.subr.bf16.mxu1 %v8938_v2  ;;  %v6532_v22 = vld [vmem:[%s7008_s25 + $0x154] ss:$8 sps:$4 sm:$0xff]   ;;  %v6527_v9 = vld [vmem:[%s7008_s25 + $0x50] ss:$8 sps:$4 sm:$0xff]  }
 0xabe   : > { %v6535_v10 = vld [vmem:[%s7008_s25 + $0x44] ss:$8 sps:$4 sm:$0xff]  }
 0xabf   : > { %v3219_v8 = vadd.f32 1e-05, %v3214_v30  ;;  %v6536_v30 = vld [vmem:[%s7008_s25 + $0x140] ss:$8 sps:$4 sm:$0xff]  }
 0xac0   : > { %4049 = vmatpush2.bf16.msra.mxu0 %v6499_v12  ;;  %4110 = vmatpush2.bf16.msra.mxu1 %v6502_v63  ;;  %v6538_v12 = vld [vmem:[%s7008_s25 + $0x144] ss:$8 sps:$4 sm:$0xff]   ;;  %v6533_v63 = vld [vmem:[%s7008_s25 + $0x40] ss:$8 sps:$4 sm:$0xff]  }
 0xac1   : > { %6760 = vrsqrt.f32 %v3219_v8  ;;  %4050 = vmatprep.subr.bf16.mxu0 %v6505_v18  ;;  %4111 = vmatprep.subr.bf16.mxu1 %v8938_v2  ;;  %v6541_v18 = vld [vmem:[%s7008_s25 + $0x34] ss:$8 sps:$4 sm:$0xff]  }
 0xac2   : > { %v6544_v8 = vld [vmem:[%s7008_s25 + $0x134] ss:$8 sps:$4 sm:$0xff]  }
 0xac4   : > { %4051 = vmatpush2.bf16.msra.mxu0 %v6503_v24  ;;  %4112 = vmatpush2.bf16.msra.mxu1 %v6506_v52  ;;  %v6539_v24 = vld [vmem:[%s7008_s25 + $0x30] ss:$8 sps:$4 sm:$0xff]  }
 0xac5   : > { %4052 = vmatprep.subr.bf16.mxu0 %v6509_v39  ;;  %4113 = vmatprep.subr.bf16.mxu1 %v8938_v2  ;;  %v6542_v52 = vld [vmem:[%s7008_s25 + $0x130] ss:$8 sps:$4 sm:$0xff]   ;;  %v6547_v39 = vld [vmem:[%s7008_s25 + $0x24] ss:$8 sps:$4 sm:$0xff]  }
 0xac6   : > { %v6757_v59 = vpop.eup %6756 }
 0xac7   : > { %v3230_v38 = vmul.f32 %v6757_v59, %v8166_v1  ;;  %v3229_v54 = vmul.f32 %v6757_v59, %v8163_v40  ;;  %v6553_v59 = vld [vmem:[%s7008_s25 + $0x14] ss:$8 sps:$4 sm:$0xff]  }
 0xac8   : > { %4053 = vmatpush2.bf16.msra.mxu0 %v6507_v53  ;;  %4114 = vmatpush2.bf16.msra.mxu1 %v6510_v21  ;;  %v6550_v53 = vld [vmem:[%s7008_s25 + $0x124] ss:$8 sps:$4 sm:$0xff]   ;;  %v6545_v21 = vld [vmem:[%s7008_s25 + $0x20] ss:$8 sps:$4 sm:$0xff]  }
 0xac9   : > { %4054 = vmatprep.subr.bf16.mxu0 %v6513_v50  ;;  %4115 = vmatprep.subr.bf16.mxu1 %v8938_v2  ;;  %v3252_v34 = vmul.f32 %v8207_v33, %v3230_v38  ;;  %v3251_v51 = vmul.f32 %v8204_v57, %v3229_v54  ;;  %v6548_v50 = vld [vmem:[%s7008_s25 + $0x120] ss:$8 sps:$4 sm:$0xff]   ;;  %v6556_v38 = vld [vmem:[%s7008_s25 + $0x114] ss:$8 sps:$4 sm:$0xff]   ;;  %v6551_v54 = vld [vmem:[%s7008_s25 + $0x10] ss:$8 sps:$4 sm:$0xff]  }
 0xaca   : > { %v6759_v0 = vpop.eup %6758 }
 0xacb   : > { %v3232_v61 = vmul.f32 %v6759_v0, %v8176_v36  ;;  %v3231_v1 = vmul.f32 %v6759_v0, %v8173_v15  ;;  %v3274_v6 = vadd.f32 %v8218_v46, %v3252_v34  ;;  %v3273_v55 = vadd.f32 %v8215_v27, %v3251_v51  ;;  %v6560_v0 = vld [vmem:[%s7008_s25 + $0x100] ss:$8 sps:$4 sm:$0xff]   ;;  %v6565_v34 = vld [vmem:[%s7008_s25 + $0xf4] ss:$8 sps:$4 sm:$0xff]  }
 0xacc   : > { %4055 = vmatpush2.bf16.msra.mxu0 %v6511_v56  ;;  %4116 = vmatpush2.bf16.msra.mxu1 %v6514_v44  ;;  %v6554_v56 = vld [vmem:[%s7008_s25 + $0x110] ss:$8 sps:$4 sm:$0xff]   ;;  %v6559_v44 = vld [vmem:[%s7008_s25 + $0x4] ss:$8 sps:$4 sm:$0xff]   ;;  %v6568_v51 = vld [vmem:[%s7008_s25 + $0x1f4] ss:$8 sps:$4 sm:$0xff]  }
 0xacd   : > { %v3254_v40 = vmul.f32 %v8207_v33, %v3232_v61  ;;  %v3253_v47 = vmul.f32 %v8204_v57, %v3231_v1  ;;  %5087 = vmatprep.subr.bf16.mxu0 %v6517_v26  ;;  %5148 = vmatprep.subr.bf16.mxu1 %v6520_v31  ;;  %v6562_v26 = vld [vmem:[%s7008_s25 + $0x104] ss:$8 sps:$4 sm:$0xff]   ;;  %v6557_v31 = vld [vmem:[%s7008_s25] ss:$8 sps:$4 sm:$0xff]   ;;  %v6563_v61 = vld [vmem:[%s7008_s25 + $0xf0] ss:$8 sps:$4 sm:$0xff]  }
 0xace   : > { %v6761_v32 = vpop.eup %6760  ;;  %v6566_v1 = vld [vmem:[%s7008_s25 + $0x1f0] ss:$8 sps:$4 sm:$0xff]  }
 0xacf   : > { %v3276_v23 = vadd.f32 %v8218_v46, %v3254_v40  ;;  %v3275_v48 = vadd.f32 %v8215_v27, %v3253_v47  ;;  %v3234_v36 = vmul.f32 %v6761_v32, %v8187_v7  ;;  %v3233_v15 = vmul.f32 %v6761_v32, %v8184_v11  ;;  %v6571_v40 = vld [vmem:[%s7008_s25 + $0xe4] ss:$8 sps:$4 sm:$0xff]   ;;  %v6569_v32 = vld [vmem:[%s7008_s25 + $0xe0] ss:$8 sps:$4 sm:$0xff]  }
 0xad0   : > { %v6574_v47 = vld [vmem:[%s7008_s25 + $0x1e4] ss:$8 sps:$4 sm:$0xff]  }
 0xad1   : > { %v3282_v60 = vpack.c.bf16 %v3276_v23, %v3274_v6  ;;  %v3281_v20 = vpack.c.bf16 %v3275_v48, %v3273_v55  ;;  %v3256_v13 = vmul.f32 %v8207_v33, %v3234_v36  ;;  %v3255_v58 = vmul.f32 %v8204_v57, %v3233_v15  ;;  %v6515_v33 = vld [vmem:[%s7008_s25 + $0x70] ss:$8 sps:$4 sm:$0xff]   ;;  %v6572_v6 = vld [vmem:[%s7008_s25 + $0x1e0] ss:$8 sps:$4 sm:$0xff]   ;;  %v6577_v55 = vld [vmem:[%s7008_s25 + $0xd4] ss:$8 sps:$4 sm:$0xff]  }
 0xad2   : > { %v6580_v23 = vld [vmem:[%s7008_s25 + $0x1d4] ss:$8 sps:$4 sm:$0xff]   ;;  %v6575_v48 = vld [vmem:[%s7008_s25 + $0xd0] ss:$8 sps:$4 sm:$0xff]   ;;  %v6583_v15 = vld [vmem:[%s7008_s25 + $0xc4] ss:$8 sps:$4 sm:$0xff]  }
 0xad3   : > { %5803 = vmatprep.mubr.msk.bf16.mxu0 %vm686_vm2, %v3282_v60  ;;  %5807 = vmatprep.mubr.msk.bf16.mxu1 %vm686_vm2, %v3282_v60  ;;  %v3278_v37 = vadd.f32 %v8218_v46, %v3256_v13  ;;  %v3277_v11 = vadd.f32 %v8215_v27, %v3255_v58  ;;  %v6518_v46 = vld [vmem:[%s7008_s25 + $0x170] ss:$8 sps:$4 sm:$0xff]   ;;  %v6523_v27 = vld [vmem:[%s7008_s25 + $0x64] ss:$8 sps:$4 sm:$0xff]   ;;  %v6584_v13 = vld [vmem:[%s7008_s25 + $0x1c0] ss:$8 sps:$4 sm:$0xff]  }
 0xad4   : > { %3945 = vmatmul.mubr.bf16.gmra.mxu0 %v3281_v20  ;;  %4006 = vmatmul.mubr.bf16.gmra.mxu1 %v3281_v20  ;;  %v6578_v36 = vld [vmem:[%s7008_s25 + $0x1d0] ss:$8 sps:$4 sm:$0xff]   ;;  %v6589_v58 = vld [vmem:[%s7008_s25 + $0xb4] ss:$8 sps:$4 sm:$0xff]  }
 0xad5   : > { %v3284_v7 = vpack.c.bf16 %v3278_v37, %v3278_v37  ;;  %v3283_v57 = vpack.c.bf16 %v3277_v11, %v3277_v11  ;;  %v6592_v37 = vld [vmem:[%s7008_s25 + $0x1b4] ss:$8 sps:$4 sm:$0xff]   ;;  %v6590_v11 = vld [vmem:[%s7008_s25 + $0x1b0] ss:$8 sps:$4 sm:$0xff]  }
 0xad7   : > { %5804 = vmatprep.mubr.msk.bf16.mxu0 %vm686_vm2, %v3284_v7  ;;  %5808 = vmatprep.mubr.msk.bf16.mxu1 %vm686_vm2, %v3284_v7 }
 0xadc   : > { %3955 = vmatmul.mubr.bf16.gmra.mxu0 %v3283_v57  ;;  %4016 = vmatmul.mubr.bf16.gmra.mxu1 %v3283_v57 }
 0xadd   : > { %5810 = vmatprep.mubr.msk.bf16.mxu0 %vm686_vm2, %v8230_v35  ;;  %5813 = vmatprep.mubr.msk.bf16.mxu1 %vm686_vm2, %v8230_v35  ;;  %v6521_v35 = vld [vmem:[%s7008_s25 + $0x60] ss:$8 sps:$4 sm:$0xff]  }
 0xae4   : > { %4057 = vmatmul.mubr.bf16.vlgmr.msra.gmra.mxu0 %v8232_v14  ;;  %4118 = vmatmul.mubr.bf16.vlgmr.msra.gmra.mxu1 %v8232_v14  ;;  %v6530_v14 = vld [vmem:[%s7008_s25 + $0x150] ss:$8 sps:$4 sm:$0xff]  }
 0xae5   : > { %5811 = vmatprep.mubr.msk.bf16.mxu0 %vm686_vm2, %v3282_v60  ;;  %5814 = vmatprep.mubr.msk.bf16.mxu1 %vm686_vm2, %v3282_v60  ;;  %v6586_v60 = vld [vmem:[%s7008_s25 + $0x1c4] ss:$8 sps:$4 sm:$0xff]  }
 0xae6   : > { %5088 = vmatpush1.bf16.msra.mxu0 %v6515_v33  ;;  %5149 = vmatpush1.bf16.msra.mxu1 %v6518_v46  ;;  %v6598_v33 = vld [vmem:[%s7008_s25 + $0x1a4] ss:$8 sps:$4 sm:$0xff]   ;;  %v6593_v46 = vld [vmem:[%s7008_s25 + $0xa0] ss:$8 sps:$4 sm:$0xff]  }
 0xae7   : > { %5089 = vmatprep.subr.bf16.mxu0 %v6523_v27  ;;  %5150 = vmatprep.subr.bf16.mxu1 %v6526_v19  ;;  %v6596_v27 = vld [vmem:[%s7008_s25 + $0x1a0] ss:$8 sps:$4 sm:$0xff]   ;;  %v6601_v19 = vld [vmem:[%s7008_s25 + $0x94] ss:$8 sps:$4 sm:$0xff]  }
 0xaea   : > { %5090 = vmatpush1.bf16.msra.mxu0 %v6521_v35  ;;  %5151 = vmatpush1.bf16.msra.mxu1 %v6524_v28  ;;  %v6604_v35 = vld [vmem:[%s7008_s25 + $0x194] ss:$8 sps:$4 sm:$0xff]   ;;  %v6599_v28 = vld [vmem:[%s7008_s25 + $0x90] ss:$8 sps:$4 sm:$0xff]  }
 0xaeb   : > { %5091 = vmatprep.subr.bf16.mxu0 %v6529_v16  ;;  %5152 = vmatprep.subr.bf16.mxu1 %v6532_v22  ;;  %v6602_v16 = vld [vmem:[%s7008_s25 + $0x190] ss:$8 sps:$4 sm:$0xff]   ;;  %v6607_v22 = vld [vmem:[%s7008_s25 + $0x84] ss:$8 sps:$4 sm:$0xff]  }
 0xaec   : > { %4067 = vmatmul.mubr.bf16.gmra.mxu0 %v3281_v20  ;;  %4126 = vmatmul.mubr.bf16.gmra.mxu1 %v3281_v20  ;;  %v6581_v20 = vld [vmem:[%s7008_s25 + $0xc0] ss:$8 sps:$4 sm:$0xff]  }
 0xaed   : > { %5812 = vmatprep.mubr.msk.bf16.mxu0 %vm686_vm2, %v3284_v7  ;;  %5815 = vmatprep.mubr.msk.bf16.mxu1 %vm686_vm2, %v3284_v7  ;;  %v6587_v7 = vld [vmem:[%s7008_s25 + $0xb0] ss:$8 sps:$4 sm:$0xff]  }
 0xaee   : > { %5092 = vmatpush1.bf16.msra.mxu0 %v6527_v9  ;;  %5153 = vmatpush1.bf16.msra.mxu1 %v6530_v14  ;;  %v6610_v9 = vld [vmem:[%s7008_s25 + $0x184] ss:$8 sps:$4 sm:$0xff]   ;;  %v6605_v14 = vld [vmem:[%s7008_s25 + $0x80] ss:$8 sps:$4 sm:$0xff]  }
 0xaef   : > { %5093 = vmatprep.subr.bf16.mxu0 %v6535_v10  ;;  %5154 = vmatprep.subr.bf16.mxu1 %v6538_v12  ;;  %v6608_v10 = vld [vmem:[%s7008_s25 + $0x180] ss:$8 sps:$4 sm:$0xff]   ;;  %v6613_v12 = vld [vmem:[%s7008_s25 + $0x274] ss:$8 sps:$4 sm:$0xff]  }
 0xaf2   : > { %5094 = vmatpush1.bf16.msra.mxu0 %v6533_v63  ;;  %5155 = vmatpush1.bf16.msra.mxu1 %v6536_v30  ;;  %v6649_v63 = vld [vmem:[%s7008_s25 + $0x304] ss:$8 sps:$4 sm:$0xff]  }
 0xaf3   : > { %5095 = vmatprep.subr.bf16.mxu0 %v6541_v18  ;;  %5156 = vmatprep.subr.bf16.mxu1 %v6544_v8  ;;  %v8391_v30 = vld [vmem:[%s7003_s28] sm:$0x7f]  ;;  %v8941_v8 = vld [vmem:[#allocation5_spill] sm:$0xff] }
 0xaf4   : > { %4077 = vmatmul.mubr.bf16.gmra.mxu0 %v3283_v57  ;;  %4134 = vmatmul.mubr.bf16.gmra.mxu1 %v3283_v57  ;;  %v6595_v57 = vld [vmem:[%s7008_s25 + $0xa4] ss:$8 sps:$4 sm:$0xff]   ;;  %v8395_v18 = vrot.slane %v8391_v30, %v7198_v29 }
 0xaf6   : > { %5096 = vmatpush1.bf16.msra.mxu0 %v6539_v24  ;;  %5157 = vmatpush1.bf16.msra.mxu1 %v6542_v52  ;;  %v8942_v24 = vsub.s32 2, %v8941_v8 }
 0xaf7   : > { %5097 = vmatprep.subr.bf16.mxu0 %v6547_v39  ;;  %5158 = vmatprep.subr.bf16.mxu1 %v6550_v53 }
 0xaf8   : > { %v8400_v52 = vrot.slane %v8391_v30, %v8942_v24 }
 0xafa   : > { %5098 = vmatpush1.bf16.msra.mxu0 %v6545_v21  ;;  %5159 = vmatpush1.bf16.msra.mxu1 %v6548_v50  ;;  %v8404_v21 = vrot.slane %v8391_v30, %v7195_v25  ;;  %v8943_v50 = vsub.s32 3, %v8941_v8 }
 0xafb   : > { %5099 = vmatprep.subr.bf16.mxu0 %v6553_v59  ;;  %5160 = vmatprep.subr.bf16.mxu1 %v6556_v38 }
 0xafc   : > { %v8409_v59 = vrot.slane %v8391_v30, %v8943_v50 }
 0xafe   : > { %5100 = vmatpush1.bf16.msra.mxu0 %v6551_v54  ;;  %5161 = vmatpush1.bf16.msra.mxu1 %v6554_v56 }
 0xaff   : > { %5101 = vmatprep.subr.bf16.mxu0 %v6559_v44  ;;  %5162 = vmatprep.subr.bf16.mxu1 %v6562_v26 }
 0xb02   : > { %5102 = vmatpush1.bf16.msra.mxu0 %v6557_v31  ;;  %5163 = vmatpush1.bf16.msra.mxu1 %v6560_v0 }
 0xb03   : > { %5103 = vmatprep.subr.bf16.mxu0 %v6565_v34  ;;  %5164 = vmatprep.subr.bf16.mxu1 %v6568_v51 }
 0xb06   : > { %5104 = vmatpush2.bf16.msra.mxu0 %v6563_v61  ;;  %5165 = vmatpush2.bf16.msra.mxu1 %v6566_v1 }
 0xb07   : > { %5105 = vmatprep.subr.bf16.mxu0 %v6571_v40  ;;  %5166 = vmatprep.subr.bf16.mxu1 %v6574_v47 }
 0xb0a   : > { %5106 = vmatpush2.bf16.msra.mxu0 %v6569_v32  ;;  %5167 = vmatpush2.bf16.msra.mxu1 %v6572_v6 }
 0xb0b   : > { %5107 = vmatprep.subr.bf16.mxu0 %v6577_v55  ;;  %5168 = vmatprep.subr.bf16.mxu1 %v6580_v23 }
 0xb0e   : > { %5108 = vmatpush2.bf16.msra.mxu0 %v6575_v48  ;;  %5169 = vmatpush2.bf16.msra.mxu1 %v6578_v36 }
 0xb0f   : > { %5109 = vmatprep.subr.bf16.mxu0 %v6583_v15  ;;  %5170 = vmatprep.subr.bf16.mxu1 %v6586_v60 }
 0xb12   : > { %5110 = vmatpush2.bf16.msra.mxu0 %v6581_v20  ;;  %5171 = vmatpush2.bf16.msra.mxu1 %v6584_v13 }
 0xb13   : > { %5111 = vmatprep.subr.bf16.mxu0 %v6589_v58  ;;  %5172 = vmatprep.subr.bf16.mxu1 %v6592_v37 }
 0xb16   : > { %5112 = vmatpush2.bf16.msra.mxu0 %v6587_v7  ;;  %5173 = vmatpush2.bf16.msra.mxu1 %v6590_v11 }
 0xb17   : > { %5113 = vmatprep.subr.bf16.mxu0 %v6595_v57  ;;  %5174 = vmatprep.subr.bf16.mxu1 %v6598_v33 }
 0xb1a   : > { %5114 = vmatpush2.bf16.msra.mxu0 %v6593_v46  ;;  %5175 = vmatpush2.bf16.msra.mxu1 %v6596_v27 }
 0xb1b   : > { %5115 = vmatprep.subr.bf16.mxu0 %v6601_v19  ;;  %5176 = vmatprep.subr.bf16.mxu1 %v6604_v35 }
 0xb1e   : > { %5116 = vmatpush2.bf16.msra.mxu0 %v6599_v28  ;;  %5177 = vmatpush2.bf16.msra.mxu1 %v6602_v16 }
 0xb1f   : > { %5117 = vmatprep.subr.bf16.mxu0 %v6607_v22  ;;  %5178 = vmatprep.subr.bf16.mxu1 %v6610_v9 }
 0xb22   : > { %5118 = vmatpush2.bf16.msra.mxu0 %v6605_v14  ;;  %5179 = vmatpush2.bf16.msra.mxu1 %v6608_v10 }
 0xb23   : > { %5209 = vmatprep.subr.bf16.mxu0 %v6613_v12  ;;  %5284 = vmatprep.subr.bf16.mxu1 %v6649_v63 }
 0xb5b   : > { %v3936_v39 = vpop.f32.mrf.mxu0  ;;  %v3997_v53 = vpop.f32.mrf.mxu1 }
 0xb5c   : > { %v8412_v38 = vadd.f32 %v3936_v39, %v8395_v18  ;;  %v8415_v54 = vadd.f32 %v3997_v53, %v8400_v52 }
 0xb5d   : > { %v3938_v56 = vpop.f32.mrf.mxu0  ;;  %v3999_v44 = vpop.f32.mrf.mxu1 }
 0xb5e   : > { %v4176_v26 = vmul.f32 0.044715, %v8412_v38  ;;  %v4178_v31 = vmul.f32 0.044715, %v8415_v54  ;;  %v8420_v0 = vadd.f32 %v3938_v56, %v8404_v21  ;;  %v8423_v34 = vadd.f32 %v3999_v44, %v8409_v59 }
 0xb5f   : > { %v3940_v51 = vpop.f32.mrf.mxu0  ;;  %v4001_v61 = vpop.f32.mrf.mxu1 }
 0xb60   : > { %v4211_v1 = vmul.f32 %v4176_v26, %v8412_v38  ;;  %v4213_v40 = vmul.f32 %v4178_v31, %v8415_v54  ;;  %v3941_v47 = vadd.f32 %v3940_v51, %v8395_v18  ;;  %v8429_v32 = vadd.f32 %v4001_v61, %v8400_v52 }
 0xb61   : > { %v4177_v6 = vmul.f32 0.044715, %v8420_v0  ;;  %v4179_v55 = vmul.f32 0.044715, %v8423_v34  ;;  %v3942_v23 = vpop.f32.mrf.mxu0  ;;  %v4003_v60 = vpop.f32.mrf.mxu1 }
 0xb62   : > { %v4246_v48 = vmul.f32 %v4211_v1, %v8412_v38  ;;  %v4248_v36 = vmul.f32 %v4213_v40, %v8415_v54  ;;  %v4183_v15 = vmul.f32 0.044715, %v3941_v47  ;;  %v4185_v58 = vmul.f32 0.044715, %v8429_v32 }
 0xb63   : > { %v4212_v20 = vmul.f32 %v4177_v6, %v8420_v0  ;;  %v4214_v13 = vmul.f32 %v4179_v55, %v8423_v34  ;;  %v3943_v57 = vadd.f32 %v3942_v23, %v8404_v21  ;;  %v4004_v19 = vadd.f32 %v4003_v60, %v8409_v59 }
 0xb64   : > { %v4281_v37 = vadd.f32 %v4246_v48, %v8412_v38  ;;  %v4283_v7 = vadd.f32 %v4248_v36, %v8415_v54  ;;  %v4218_v11 = vmul.f32 %v4183_v15, %v3941_v47  ;;  %v4220_v27 = vmul.f32 %v4185_v58, %v8429_v32 }
 0xb65   : > { %v4247_v33 = vmul.f32 %v4212_v20, %v8420_v0  ;;  %v4249_v46 = vmul.f32 %v4214_v13, %v8423_v34  ;;  %v4184_v22 = vmul.f32 0.044715, %v3943_v57  ;;  %v4186_v14 = vmul.f32 0.044715, %v4004_v19 }
 0xb66   : > { %v4316_v35 = vmul.f32 0.7978846, %v4281_v37  ;;  %v4318_v28 = vmul.f32 0.7978846, %v4283_v7  ;;  %v4253_v16 = vmul.f32 %v4218_v11, %v3941_v47  ;;  %v4255_v9 = vmul.f32 %v4220_v27, %v8429_v32 }
 0xb67   : > { %v4282_v10 = vadd.f32 %v4247_v33, %v8420_v0  ;;  %v4219_v63 = vmul.f32 %v4184_v22, %v3943_v57  ;;  %v4221_v39 = vmul.f32 %v4186_v14, %v4004_v19  ;;  %v4284_v44 = vadd.f32 %v4249_v46, %v8423_v34 }
 0xb68   : > { %v4288_v12 = vadd.f32 %v4253_v16, %v3941_v47  ;;  %6762 = vtanh.f32 %v4316_v35  ;;  %v4290_v24 = vadd.f32 %v4255_v9, %v8429_v32  ;;  %v4141_v13 = vmul.f32 0.5, %v8412_v38 }
 0xb69   : > { %v4317_v53 = vmul.f32 0.7978846, %v4282_v10  ;;  %6764 = vtanh.f32 %v4318_v28  ;;  %v4254_v56 = vmul.f32 %v4219_v63, %v3943_v57  ;;  %v4256_v31 = vmul.f32 %v4221_v39, %v4004_v19 }
 0xb6a   : > { %v4323_v50 = vmul.f32 0.7978846, %v4288_v12  ;;  %v4325_v26 = vmul.f32 0.7978846, %v4290_v24  ;;  %v4319_v61 = vmul.f32 0.7978846, %v4284_v44 }
 0xb6b   : > { %6766 = vtanh.f32 %v4317_v53  ;;  %v4289_v51 = vadd.f32 %v4254_v56, %v3943_v57  ;;  %v4291_v1 = vadd.f32 %v4256_v31, %v4004_v19  ;;  %v4148_v11 = vmul.f32 0.5, %v3941_v47  ;;  %v6611_v56 = vld [vmem:[%s7008_s25 + $0x270] ss:$8 sps:$4 sm:$0xff]   ;;  %v6614_v31 = vld [vmem:[%s7008_s25 + $0x260] ss:$8 sps:$4 sm:$0xff]  }
 0xb6c   : > { %6768 = vtanh.f32 %v4323_v50  ;;  %v4142_v33 = vmul.f32 0.5, %v8420_v0  ;;  %v4150_v28 = vmul.f32 0.5, %v8429_v32  ;;  %v4149_v16 = vmul.f32 0.5, %v3943_v57 }
 0xb6d   : > { %6770 = vtanh.f32 %v4325_v26  ;;  %v4324_v40 = vmul.f32 0.7978846, %v4289_v51  ;;  %v4326_v6 = vmul.f32 0.7978846, %v4291_v1  ;;  %v4144_v14 = vmul.f32 0.5, %v8423_v34 }
 0xb6e   : > { %6772 = vtanh.f32 %v4319_v61  ;;  %v4151_v10 = vmul.f32 0.5, %v4004_v19  ;;  %v4143_v47 = vmul.f32 0.5, %v8415_v54  ;;  %v6616_v19 = vld [vmem:[%s7008_s25 + $0x264] ss:$8 sps:$4 sm:$0xff]   ;;  %v6647_v26 = vld [vmem:[%s7008_s25 + $0x300] ss:$8 sps:$4 sm:$0xff]  }
 0xb6f   : > { %6774 = vtanh.f32 %v4324_v40  ;;  %v6619_v51 = vld [vmem:[%s7008_s25 + $0x254] ss:$8 sps:$4 sm:$0xff]   ;;  %v6617_v61 = vld [vmem:[%s7008_s25 + $0x250] ss:$8 sps:$4 sm:$0xff]   ;;  %v6622_v1 = vld [vmem:[%s7008_s25 + $0x244] ss:$8 sps:$4 sm:$0xff]  }
 0xb70   : > { %6776 = vtanh.f32 %v4326_v6  ;;  %v6620_v40 = vld [vmem:[%s7008_s25 + $0x240] ss:$8 sps:$4 sm:$0xff]   ;;  %v6625_v6 = vld [vmem:[%s7008_s25 + $0x234] ss:$8 sps:$4 sm:$0xff]  }
 0xb75   : > { %v6763_v55 = vpop.eup %6762 }
 0xb76   : > { %v6765_v23 = vpop.eup %6764  ;;  %v4386_v27 = vadd.f32 1.0, %v6763_v55  ;;  %v6623_v55 = vld [vmem:[%s7008_s25 + $0x230] ss:$8 sps:$4 sm:$0xff]  }
 0xb77   : > { %v4388_v9 = vadd.f32 1.0, %v6765_v23  ;;  %v6628_v23 = vld [vmem:[%s7008_s25 + $0x224] ss:$8 sps:$4 sm:$0xff]  }
 0xb78   : > { %v6767_v48 = vpop.eup %6766  ;;  %v4421_v32 = vmul.f32 %v4386_v27, %v4141_v13  ;;  %v6629_v27 = vld [vmem:[%s7008_s25 + $0x210] ss:$8 sps:$4 sm:$0xff]  }
 0xb79   : > { %v6769_v36 = vpop.eup %6768  ;;  %v4387_v58 = vadd.f32 1.0, %v6767_v48  ;;  %v4423_v50 = vmul.f32 %v4388_v9, %v4143_v47 }
 0xb7a   : > { %v6771_v15 = vpop.eup %6770  ;;  %v4393_v20 = vadd.f32 1.0, %v6769_v36 }
 0xb7b   : > { %v6773_v60 = vpop.eup %6772  ;;  %v4395_v37 = vadd.f32 1.0, %v6771_v15  ;;  %v4422_v63 = vmul.f32 %v4387_v58, %v4142_v33  ;;  %v6631_v58 = vld [vmem:[%s7008_s25 + $0x214] ss:$8 sps:$4 sm:$0xff]  }
 0xb7c   : > { %v6775_v7 = vpop.eup %6774  ;;  %v4389_v46 = vadd.f32 1.0, %v6773_v60  ;;  %v4428_v12 = vmul.f32 %v4393_v20, %v4148_v11  ;;  %v6626_v20 = vld [vmem:[%s7008_s25 + $0x220] ss:$8 sps:$4 sm:$0xff]  }
 0xb7d   : > { %v6777_v35 = vpop.eup %6776  ;;  %v4394_v22 = vadd.f32 1.0, %v6775_v7  ;;  %v4430_v24 = vmul.f32 %v4395_v37, %v4150_v28  ;;  %v6634_v28 = vld [vmem:[%s7008_s25 + $0x204] ss:$8 sps:$4 sm:$0xff]  }
 0xb7e   : > { %v4396_v38 = vadd.f32 1.0, %v6777_v35  ;;  %v4424_v39 = vmul.f32 %v4389_v46, %v4144_v14  ;;  %v4456_v44 = vpack.c.bf16 %v4428_v12, %v4421_v32  ;;  %v3413_v14 = vsub.s32 6, %v8941_v8 }
 0xb7f   : > { %v4429_v0 = vmul.f32 %v4394_v22, %v4149_v16  ;;  %v4458_v54 = vpack.c.bf16 %v4430_v24, %v4423_v50  ;;  %v3409_v24 = vsub.s32 5, %v8941_v8 }
 0xb80   : > { %v4431_v53 = vmul.f32 %v4396_v38, %v4151_v10 }
 0xb81   : > { %v4457_v57 = vpack.c.bf16 %v4429_v0, %v4422_v63  ;;  %v6632_v63 = vld [vmem:[%s7008_s25 + $0x200] ss:$8 sps:$4 sm:$0xff]  }
 0xb82   : > { %v4459_v34 = vpack.c.bf16 %v4431_v53, %v4424_v39  ;;  %v6637_v39 = vld [vmem:[%s7008_s25 + $0x2f4] ss:$8 sps:$4 sm:$0xff]  }
 0xb83   : > { %5119 = vmatprep.mubr.bf16.mxu0 %v4457_v57 }
 0xb84   : > { %5180 = vmatprep.mubr.bf16.mxu1 %v4459_v34  ;;  %5120 = vmatmul.mubr.bf16.vlgmr.msra.gmra.mxu0 %v4456_v44  ;;  %v8944_v44 = vsub.s32 4, %v8941_v8  ;;  %v6635_v8 = vld [vmem:[%s7008_s25 + $0x2f0] ss:$8 sps:$4 sm:$0xff]  }
 0xb85   : > { %5181 = vmatmul.mubr.bf16.vlgmr.msra.gmra.mxu1 %v4458_v54  ;;  %5210 = vmatpush1.bf16.msra.mxu0 %v6611_v56 }
 0xb86   : > { %5211 = vmatprep.subr.bf16.mxu0 %v6616_v19  ;;  %5285 = vmatpush1.bf16.msra.mxu1 %v6647_v26  ;;  %v8503_v19 = vrot.slane %v8391_v30, %v8944_v44  ;;  %v8506_v26 = vrot.slane %v8391_v30, %v3413_v14 }
 0xb89   : > { %5212 = vmatpush1.bf16.msra.mxu0 %v6614_v31 }
 0xb8a   : > { %5213 = vmatprep.subr.bf16.mxu0 %v6619_v51 }
 0xb8d   : > { %5214 = vmatpush1.bf16.msra.mxu0 %v6617_v61 }
 0xb8e   : > { %5215 = vmatprep.subr.bf16.mxu0 %v6622_v1 }
 0xb91   : > { %5216 = vmatpush1.bf16.msra.mxu0 %v6620_v40 }
 0xb92   : > { %5217 = vmatprep.subr.bf16.mxu0 %v6625_v6 }
 0xb94   : > { %v3946_v48 = vpop.f32.mrf.mxu0  ;;  %v4007_v36 = vpop.f32.mrf.mxu1 }
 0xb95   : > { %5218 = vmatpush1.bf16.msra.mxu0 %v6623_v55  ;;  %v8486_v0 = vadd.f32 %v3946_v48, %v8395_v18  ;;  %v8491_v53 = vadd.f32 %v4007_v36, %v8400_v52  ;;  %v8519_v55 = vrot.slane %v8391_v30, %v3409_v24  ;;  %v6643_v30 = vld [vmem:[%s7008_s25 + $0x2d4] ss:$8 sps:$4 sm:$0xff]  }
 0xb96   : > { %v3948_v15 = vpop.f32.mrf.mxu0  ;;  %v4009_v60 = vpop.f32.mrf.mxu1  ;;  %5219 = vmatprep.subr.bf16.mxu0 %v6628_v23  ;;  %v6640_v23 = vld [vmem:[%s7008_s25 + $0x2e4] ss:$8 sps:$4 sm:$0xff]  }
 0xb97   : > { %v8467_v13 = vadd.f32 %v3948_v15, %v8404_v21  ;;  %v8494_v32 = vadd.f32 %v4009_v60, %v8409_v59  ;;  %v4190_v6 = vmul.f32 0.044715, %v8486_v0  ;;  %v4192_v48 = vmul.f32 0.044715, %v8491_v53 }
 0xb98   : > { %v3950_v37 = vpop.f32.mrf.mxu0  ;;  %v4011_v7 = vpop.f32.mrf.mxu1 }
 0xb99   : > { %v4191_v11 = vmul.f32 0.044715, %v8467_v13  ;;  %5220 = vmatpush1.bf16.msra.mxu0 %v6626_v20  ;;  %v8509_v54 = vadd.f32 %v3950_v37, %v8395_v18  ;;  %v8512_v31 = vadd.f32 %v4011_v7, %v8400_v52  ;;  %v4193_v36 = vmul.f32 0.044715, %v8494_v32 }
 0xb9a   : > { %v3952_v33 = vpop.f32.mrf.mxu0  ;;  %v4013_v46 = vpop.f32.mrf.mxu1  ;;  %5221 = vmatprep.subr.bf16.mxu0 %v6631_v58  ;;  %v6638_v58 = vld [vmem:[%s7008_s25 + $0x2e0] ss:$8 sps:$4 sm:$0xff]  }
 0xb9b   : > { %v4226_v35 = vmul.f32 %v4191_v11, %v8467_v13  ;;  %v8475_v16 = vadd.f32 %v3952_v33, %v8404_v21  ;;  %v8498_v50 = vadd.f32 %v4013_v46, %v8409_v59  ;;  %v8535_v46 = vmul.f32 0.5, %v8486_v0 }
 0xb9c   : > { %v3956_v22 = vpop.f32.mrf.mxu0  ;;  %v4017_v9 = vpop.f32.mrf.mxu1 }
 0xb9d   : > { %v4261_v10 = vmul.f32 %v4226_v35, %v8467_v13  ;;  %v4198_v38 = vmul.f32 0.044715, %v8475_v16  ;;  %5222 = vmatpush1.bf16.msra.mxu0 %v6629_v27  ;;  %v4200_v15 = vmul.f32 0.044715, %v8498_v50  ;;  %v4197_v27 = vmul.f32 0.044715, %v8509_v54 }
 0xb9e   : > { %v8480_v12 = vpop.f32.mrf.mxu0  ;;  %v8482_v47 = vpop.f32.mrf.mxu1  ;;  %5223 = vmatprep.subr.bf16.mxu0 %v6634_v28  ;;  %v4199_v35 = vmul.f32 0.044715, %v8512_v31  ;;  %v8540_v28 = vadd.f32 %v3956_v22, %v8395_v18  ;;  %v4227_v18 = vmul.f32 %v4192_v48, %v8491_v53  ;;  %v4228_v22 = vmul.f32 %v4193_v36, %v8494_v32  ;;  %v6641_v48 = vld [vmem:[%s7008_s25 + $0x2d0] ss:$8 sps:$4 sm:$0xff]   ;;  %v6646_v36 = vld [vmem:[%s7008_s25 + $0x2c4] ss:$8 sps:$4 sm:$0xff]  }
 0xb9f   : > { %v4233_v57 = vmul.f32 %v4198_v38, %v8475_v16  ;;  %v4296_v40 = vadd.f32 %v4261_v10, %v8467_v13  ;;  %v8545_v38 = vmul.f32 0.5, %v8491_v53 }
 0xba0   : > { %v3960_v56 = vpop.f32.mrf.mxu0  ;;  %v4021_v34 = vpop.f32.mrf.mxu1 }
 0xba1   : > { %v4268_v51 = vmul.f32 %v4233_v57, %v8475_v16  ;;  %5224 = vmatpush1.bf16.msra.mxu0 %v6632_v63  ;;  %v4331_v33 = vmul.f32 0.7978846, %v4296_v40  ;;  %v8548_v63 = vadd.f32 %v4017_v9, %v8400_v52  ;;  %v4225_v56 = vmul.f32 %v4190_v6, %v8486_v0 }
 0xba2   : > { %v3961_v61 = vpop.f32.mrf.mxu0  ;;  %v4022_v1 = vpop.f32.mrf.mxu1  ;;  %5225 = vmatprep.subr.bf16.mxu0 %v6637_v39  ;;  %v4235_v34 = vmul.f32 %v4200_v15, %v8498_v50  ;;  %v8569_v15 = vmul.f32 0.5, %v8467_v13 }
 0xba3   : > { %v4303_v37 = vadd.f32 %v4268_v51, %v8475_v16  ;;  %6778 = vtanh.f32 %v4331_v33  ;;  %v4232_v1 = vmul.f32 %v4197_v27, %v8509_v54  ;;  %v4263_v33 = vmul.f32 %v4228_v22, %v8494_v32 }
 0xba4   : > { %v4058_v60 = vpop.f32.mrf.mxu0  ;;  %v4119_v20 = vpop.f32.mrf.mxu1  ;;  %v4270_v27 = vmul.f32 %v4235_v34, %v8498_v50  ;;  %v4260_v22 = vmul.f32 %v4225_v56, %v8486_v0 }
 0xba5   : > { %v8528_v7 = vadd.f32 %v4058_v60, %v8503_v19  ;;  %v8531_v11 = vadd.f32 %v4119_v20, %v8506_v26  ;;  %5226 = vmatpush2.bf16.msra.mxu0 %v6635_v8  ;;  %v4338_v57 = vmul.f32 0.7978846, %v4303_v37  ;;  %v4234_v8 = vmul.f32 %v4199_v35, %v8512_v31 }
 0xba6   : > { %v8542_v14 = vpop.f32.mrf.mxu0  ;;  %v4121_v10 = vpop.f32.mrf.mxu1  ;;  %5227 = vmatprep.subr.bf16.mxu0 %v6640_v23  ;;  %v4204_v60 = vmul.f32 0.044715, %v8540_v28  ;;  %v4206_v20 = vmul.f32 0.044715, %v8548_v63 }
 0xba7   : > { %8945 = vst [vmem:[#allocation5_spill] sm:$0xff] %v8531_v11  ;;  %v4180_v24 = vmul.f32 0.044715, %v8528_v7  ;;  %v4182_v39 = vmul.f32 0.044715, %v8531_v11  ;;  %6780 = vtanh.f32 %v4338_v57  ;;  %v8588_v57 = vmul.f32 0.5, %v8494_v32 }
 0xba8   : > { %v4062_v44 = vpop.f32.mrf.mxu0  ;;  %v4122_v51 = vpop.f32.mrf.mxu1 }
 0xba9   : > { %v4215_v52 = vmul.f32 %v4180_v24, %v8528_v7  ;;  %v8558_v9 = vadd.f32 %v4062_v44, %v8503_v19  ;;  %v8561_v61 = vadd.f32 %v4122_v51, %v8506_v26  ;;  %v4217_v40 = vmul.f32 %v4182_v39, %v8531_v11  ;;  %5228 = vmatpush2.bf16.msra.mxu0 %v6638_v58 }
 0xbaa   : > { %v4064_v6 = vpop.f32.mrf.mxu0  ;;  %v4124_v23 = vpop.f32.mrf.mxu1  ;;  %5229 = vmatprep.subr.bf16.mxu0 %v6643_v30  ;;  %v8578_v58 = vadd.f32 %v8480_v12, %v8404_v21  ;;  %v8583_v24 = vadd.f32 %v8482_v47, %v8409_v59  ;;  %v8592_v21 = vmul.f32 %v4227_v18, %v8491_v53  ;;  %v4267_v12 = vmul.f32 %v4232_v1, %v8509_v54  ;;  %v6644_v47 = vld [vmem:[%s7008_s25 + $0x2c0] ss:$8 sps:$4 sm:$0xff]   ;;  %v6652_v18 = vld [vmem:[%s7008_s25 + $0x2b4] ss:$8 sps:$4 sm:$0xff]  }
 0xbab   : > { %v4187_v37 = vmul.f32 0.044715, %v8558_v9  ;;  %v4189_v13 = vmul.f32 0.044715, %v8561_v61  ;;  %v4250_v30 = vmul.f32 %v4215_v52, %v8528_v7  ;;  %v4252_v34 = vmul.f32 %v4217_v40, %v8531_v11 }
 0xbac   : > { %v4068_v35 = vpop.f32.mrf.mxu0  ;;  %v4127_v10 = vpop.f32.mrf.mxu1  ;;  %v8598_v51 = vmul.f32 %v4234_v8, %v8512_v31  ;;  %v8601_v52 = vmul.f32 %v4204_v60, %v8540_v28  ;;  %v8604_v23 = vmul.f32 %v4206_v20, %v8548_v63  ;;  %v4205_v1 = vmul.f32 0.044715, %v8578_v58 }
 0xbad   : > { %v4222_v39 = vmul.f32 %v4187_v37, %v8558_v9  ;;  %5230 = vmatpush2.bf16.msra.mxu0 %v6641_v48  ;;  %v4224_v40 = vmul.f32 %v4189_v13, %v8561_v61  ;;  %v4298_v8 = vadd.f32 %v4263_v33, %v8494_v32  ;;  %v4305_v60 = vadd.f32 %v4270_v27, %v8498_v50 }
 0xbae   : > { %v4070_v44 = vpop.f32.mrf.mxu0  ;;  %v4129_v59 = vpop.f32.mrf.mxu1  ;;  %5231 = vmatprep.subr.bf16.mxu0 %v6646_v36  ;;  %v4285_v20 = vadd.f32 %v4250_v30, %v8528_v7  ;;  %v8618_v36 = vadd.f32 %v8542_v14, %v8519_v55  ;;  %v4287_v13 = vadd.f32 %v4252_v34, %v8531_v11  ;;  %v8625_v41 = vadd.f32 %v4068_v35, %v8503_v19  ;;  %v6650_v14 = vld [vmem:[%s7008_s25 + $0x2b0] ss:$8 sps:$4 sm:$0xff]  }
 0xbaf   : > { %v4257_v56 = vmul.f32 %v4222_v39, %v8558_v9  ;;  %v4207_v59 = vmul.f32 0.044715, %v8583_v24  ;;  %v8621_v39 = vadd.f32 %v4064_v6, %v8519_v55  ;;  %v8628_v32 = vadd.f32 %v4127_v10, %v8506_v26  ;;  %v6655_v10 = vld [vmem:[%s7008_s25 + $0x2a4] ss:$8 sps:$4 sm:$0xff]  }
 0xbb0   : > { %v8610_v48 = vpop.f32.mrf.mxu0  ;;  %v4130_v37 = vpop.f32.mrf.mxu1  ;;  %v8631_v30 = vmul.f32 0.5, %v8475_v16  ;;  %v8636_v6 = vmul.f32 0.5, %v8498_v50  ;;  %v4295_v35 = vadd.f32 %v4260_v22, %v8486_v0  ;;  %v4302_v34 = vadd.f32 %v4267_v12, %v8509_v54  ;;  %v6653_v50 = vld [vmem:[%s7008_s25 + $0x2a0] ss:$8 sps:$4 sm:$0xff]  }
 0xbb1   : > { %5232 = vmatpush2.bf16.msra.mxu0 %v6644_v47  ;;  %v4292_v45 = vadd.f32 %v4257_v56, %v8558_v9  ;;  %v4333_v16 = vmul.f32 0.7978846, %v4298_v8  ;;  %v4340_v62 = vmul.f32 0.7978846, %v4305_v60  ;;  %v8647_v56 = vmul.f32 0.5, %v8509_v54 }
 0xbb2   : > { %v4074_v33 = vpop.f32.mrf.mxu0  ;;  %v4132_v27 = vpop.f32.mrf.mxu1  ;;  %5233 = vmatprep.subr.bf16.mxu0 %v6652_v18  ;;  %v8651_v49 = vmul.f32 %v4205_v1, %v8578_v58  ;;  %v4320_v0 = vmul.f32 0.7978846, %v4285_v20  ;;  %v4181_v22 = vmul.f32 0.044715, %v8618_v36  ;;  %v4188_v12 = vmul.f32 0.044715, %v8621_v39 }
 0xbb3   : > { %v4259_v27 = vmul.f32 %v4224_v40, %v8561_v61  ;;  %v6658_v18 = vld [vmem:[%s7008_s25 + $0x294] ss:$8 sps:$4 sm:$0xff]   ;;  %v6779_v40 = vpop.eup %6778  ;;  %v8657_v3 = vmul.f32 %v4207_v59, %v8583_v24  ;;  %v4322_v17 = vmul.f32 0.7978846, %v4287_v13  ;;  %v4194_v8 = vmul.f32 0.044715, %v8625_v41 }
 0xbb4   : > { %v8642_v43 = vpop.f32.mrf.mxu0  ;;  %v8644_v47 = vpop.f32.mrf.mxu1  ;;  %v4196_v54 = vmul.f32 0.044715, %v8628_v32  ;;  %v4327_v1 = vmul.f32 0.7978846, %v4292_v45  ;;  %v8664_v20 = vadd.f32 %v4070_v44, %v8519_v55  ;;  %v4330_v42 = vmul.f32 0.7978846, %v4295_v35 }
 0xbb5   : > { %5234 = vmatpush2.bf16.msra.mxu0 %v6650_v14  ;;  %v4337_v4 = vmul.f32 0.7978846, %v4302_v34  ;;  %v6781_v25 = vpop.eup %6780  ;;  %v4294_v59 = vadd.f32 %v4259_v27, %v8561_v61  ;;  %v8668_v13 = vadd.f32 %v4130_v37, %v8506_v26  ;;  %6782 = vtanh.f32 %v4333_v16 }
 0xbb6   : > { %v8661_v60 = vpop.f32.mrf.mxu0  ;;  %v4137_v5 = vpop.f32.mrf.mxu1  ;;  %5235 = vmatprep.subr.bf16.mxu0 %v6655_v10  ;;  %6784 = vtanh.f32 %v4320_v0  ;;  %v4216_v45 = vmul.f32 %v4181_v22, %v8618_v36  ;;  %v4401_v44 = vadd.f32 1.0, %v6779_v40  ;;  %v4297_v14 = vadd.f32 %v8592_v21, %v8491_v53  ;;  %v6656_v10 = vld [vmem:[%s7008_s25 + $0x290] ss:$8 sps:$4 sm:$0xff]  }
 0xbb7   : > { %v8671_v5 = vmul.f32 0.5, %v8512_v31  ;;  %6786 = vtanh.f32 %v4322_v17  ;;  %v4223_v35 = vmul.f32 %v4188_v12, %v8621_v39  ;;  %v4229_v37 = vmul.f32 %v4194_v8, %v8625_v41  ;;  %v6661_v17 = vld [vmem:[%s7008_s25 + $0x284] ss:$8 sps:$4 sm:$0xff]  }
 0xbb8   : > { %v4082_v29 = vpop.f32.mrf.mxu0  ;;  %v4138_v11 = vpop.f32.mrf.mxu1  ;;  %6788 = vtanh.f32 %v4327_v1  ;;  %v4195_v27 = vmul.f32 0.044715, %v8664_v20  ;;  %v8682_v16 = vadd.f32 %v4074_v33, %v8519_v55  ;;  %v4408_v0 = vadd.f32 1.0, %v6781_v25 }
 0xbb9   : > { %v4231_v29 = vmul.f32 %v4196_v54, %v8628_v32  ;;  %5236 = vmatpush2.bf16.msra.mxu0 %v6653_v50  ;;  %v4329_v53 = vmul.f32 0.7978846, %v4294_v59  ;;  %v8687_v21 = vadd.f32 %v8610_v48, %v8503_v19  ;;  %v4203_v22 = vmul.f32 0.044715, %v8668_v13  ;;  %v6659_v48 = vld [vmem:[%s7008_s25 + $0x280] ss:$8 sps:$4 sm:$0xff]   ;;  %s8947_s25 = scalar_lea.vmem %s8880_s13, %s6954_s16 }
 0xbba   : > { %v4083_v11 = vpop.f32.mrf.mxu0  ;;  %v4139_v34 = vpop.f32.mrf.mxu1  ;;  %5237 = vmatprep.subr.bf16.mxu0 %v6658_v18  ;;  %6790 = vtanh.f32 %v4340_v62  ;;  %v4436_v50 = vmul.f32 %v4401_v44, %v8569_v15  ;;  %v4443_v12 = vmul.f32 %v4408_v0, %v8631_v30  ;;  %v4304_v33 = vadd.f32 %v8598_v51, %v8512_v31  ;;  %s8960_s16 = sld [smem:[#allocation4_spill]] }
 0xbbb   : > { %6792 = vtanh.f32 %v4330_v42  ;;  %v4251_v25 = vmul.f32 %v4216_v45, %v8618_v36  ;;  %v4258_v18 = vmul.f32 %v4223_v35, %v8621_v39  ;;  %v8697_v40 = vmul.f32 %v4229_v37, %v8625_v41 }
 0xbbc   : > { %6794 = vtanh.f32 %v4337_v4  ;;  %v4202_v62 = vmul.f32 0.044715, %v8682_v16  ;;  %v4464_v8 = vpack.c.bf16 %v4443_v12, %v4436_v50  ;;  %v4332_v15 = vmul.f32 0.7978846, %v4297_v14 }
 0xbbd   : > { %5238 = vmatpush2.bf16.msra.mxu0 %v6656_v10  ;;  %v4339_v54 = vmul.f32 0.7978846, %v4304_v33  ;;  %6796 = vtanh.f32 %v4329_v53  ;;  %v4230_v42 = vmul.f32 %v4195_v27, %v8664_v20  ;;  %v4201_v31 = vmul.f32 0.044715, %v8687_v21 }
 0xbbe   : > { %5239 = vmatprep.subr.bf16.mxu0 %v6661_v17  ;;  %v4275_v51 = vmul.f32 %v8651_v49, %v8578_v58  ;;  %v4266_v30 = vmul.f32 %v4231_v29, %v8628_v32  ;;  %v4238_v4 = vmul.f32 %v4203_v22, %v8668_v13  ;;  %5129 = vmatprep.mubr.bf16.mxu0 %v4464_v8  ;;  %6798 = vtanh.f32 %v4332_v15 }
 0xbbf   : > { %v4277_v1 = vmul.f32 %v8657_v3, %v8583_v24  ;;  %v8711_v59 = vadd.f32 %v8642_v43, %v8503_v19  ;;  %v8715_v45 = vadd.f32 %v8644_v47, %v8506_v26  ;;  %6800 = vtanh.f32 %v4339_v54 }
 0xbc0   : > { %v4310_v49 = vadd.f32 %v4275_v51, %v8578_v58  ;;  %v4237_v44 = vmul.f32 %v4202_v62, %v8682_v16  ;;  %v4274_v35 = vmul.f32 %v8601_v52, %v8540_v28  ;;  %v4276_v3 = vmul.f32 %v8604_v23, %v8548_v63  ;;  %p5917_p5 = scmp.ne.s32.totalorder %s8960_s16, 11 }
 0xbc1   : > { %5240 = vmatpush2.bf16.msra.mxu0 %v6659_v48  ;;  %v4312_v14 = vadd.f32 %v4277_v1, %v8583_v24  ;;  %v4265_v43 = vmul.f32 %v4230_v42, %v8664_v20  ;;  %v4236_v19 = vmul.f32 %v4201_v31, %v8687_v21  ;;  %v8728_v26 = vadd.f32 %v8661_v60, %v8519_v55  ;;  %s8961_s15 = sld [smem:[#allocation22_spill]] (!%p5917_p5) }
 0xbc2   : > { %v4345_v47 = vmul.f32 0.7978846, %v4310_v49  ;;  %v6783_v37 = vpop.eup %6782  ;;  %v4273_v29 = vmul.f32 %v4238_v4, %v8668_v13  ;;  %v4309_v34 = vadd.f32 %v4274_v35, %v8540_v28  ;;  %v4311_v52 = vadd.f32 %v4276_v3, %v8548_v63 }
 0xbc3   : > { %v4347_v11 = vmul.f32 0.7978846, %v4312_v14  ;;  %v8733_v10 = vpop.eup %6784  ;;  %v4210_v23 = vmul.f32 0.044715, %v8715_v45  ;;  %v4286_v27 = vadd.f32 %v4251_v25, %v8618_v36  ;;  %v4293_v0 = vadd.f32 %v4258_v18, %v8621_v39 }
 0xbc4   : > { %6802 = vtanh.f32 %v4345_v47  ;;  %v8738_v55 = vpop.eup %6786  ;;  %v4272_v60 = vmul.f32 %v4237_v44, %v8682_v16  ;;  %v4344_v17 = vmul.f32 0.7978846, %v4309_v34  ;;  %v4346_v53 = vmul.f32 0.7978846, %v4311_v52 }
 0xbc5   : > { %6804 = vtanh.f32 %v4347_v11  ;;  %v8741_v22 = vpop.eup %6788  ;;  %v4301_v50 = vadd.f32 %v4266_v30, %v8628_v32  ;;  %v4403_v12 = vadd.f32 1.0, %v6783_v37  ;;  %v4321_v33 = vmul.f32 0.7978846, %v4286_v27 }
 0xbc6   : > { %v4328_v48 = vmul.f32 0.7978846, %v4293_v0  ;;  %v4271_v8 = vmul.f32 %v4236_v19, %v8687_v21  ;;  %v4208_v25 = vmul.f32 0.044715, %v8711_v59  ;;  %v4209_v18 = vmul.f32 0.044715, %v8728_v26 }
 0xbc7   : > { %v6791_v62 = vpop.eup %6790  ;;  %6806 = vtanh.f32 %v4344_v17  ;;  %v4308_v54 = vadd.f32 %v4273_v29, %v8668_v13  ;;  %v4300_v31 = vadd.f32 %v4265_v43, %v8664_v20  ;;  %v4245_v30 = vmul.f32 %v4210_v23, %v8715_v45 }
 0xbc8   : > { %v6793_v15 = vpop.eup %6792  ;;  %v4410_v42 = vadd.f32 1.0, %v6791_v62  ;;  %6808 = vtanh.f32 %v4346_v53  ;;  %v4307_v1 = vadd.f32 %v4272_v60, %v8682_v16  ;;  %v4438_v49 = vmul.f32 %v4403_v12, %v8588_v57 }
 0xbc9   : > { %v6795_v51 = vpop.eup %6794  ;;  %v4400_v4 = vadd.f32 1.0, %v6793_v15  ;;  %6810 = vtanh.f32 %v4321_v33  ;;  %v4244_v3 = vmul.f32 %v4209_v18, %v8728_v26  ;;  %v4335_v43 = vmul.f32 0.7978846, %v4300_v31 }
 0xbca   : > { %v4445_v44 = vmul.f32 %v4410_v42, %v8636_v6  ;;  %v4407_v14 = vadd.f32 1.0, %v6795_v51  ;;  %6812 = vtanh.f32 %v4328_v48  ;;  %v8753_v35 = vpop.eup %6796  ;;  %v4342_v47 = vmul.f32 0.7978846, %v4307_v1 }
 0xbcb   : > { %v4435_v19 = vmul.f32 %v4400_v4, %v8535_v46  ;;  %v6799_v37 = vpop.eup %6798  ;;  %v4299_v34 = vadd.f32 %v8697_v40, %v8625_v41  ;;  %v4306_v57 = vadd.f32 %v4271_v8, %v8687_v21  ;;  %v4243_v52 = vmul.f32 %v4208_v25, %v8711_v59 }
 0xbcc   : > { %v4466_v29 = vpack.c.bf16 %v4445_v44, %v4438_v49  ;;  %v4442_v11 = vmul.f32 %v4407_v14, %v8647_v56  ;;  %v6801_v6 = vpop.eup %6800  ;;  %v4280_v23 = vmul.f32 %v4245_v30, %v8715_v45  ;;  %v4402_v27 = vadd.f32 1.0, %v6799_v37 }
 0xbcd   : > { %6814 = vtanh.f32 %v4335_v43  ;;  %v4343_v0 = vmul.f32 0.7978846, %v4308_v54  ;;  %v4409_v60 = vadd.f32 1.0, %v6801_v6  ;;  %v4334_v17 = vmul.f32 0.7978846, %v4299_v34 }
 0xbce   : > { %5190 = vmatprep.mubr.bf16.mxu1 %v4466_v29  ;;  %v4463_v46 = vpack.c.bf16 %v4442_v11, %v4435_v19  ;;  %6816 = vtanh.f32 %v4342_v47  ;;  %v4341_v53 = vmul.f32 0.7978846, %v4306_v57  ;;  %v4336_v56 = vmul.f32 0.7978846, %v4301_v50 }
 0xbcf   : > { %v4437_v40 = vmul.f32 %v4402_v27, %v8545_v38  ;;  %v4444_v12 = vmul.f32 %v4409_v60, %v8671_v5  ;;  %v4279_v33 = vmul.f32 %v4244_v3, %v8728_v26  ;;  %v4315_v62 = vadd.f32 %v4280_v23, %v8715_v45 }
 0xbd0   : > { %5130 = vmatmul.mubr.bf16.gmra.mxu0 %v4463_v46  ;;  %v4170_v8 = vmul.f32 0.5, %v8578_v58  ;;  %6818 = vtanh.f32 %v4341_v53  ;;  %v4278_v25 = vmul.f32 %v4243_v52, %v8711_v59  ;;  %v4172_v38 = vmul.f32 0.5, %v8583_v24 }
 0xbd1   : > { %v6803_v48 = vpop.eup %6802  ;;  %6820 = vtanh.f32 %v4343_v0  ;;  %v4465_v15 = vpack.c.bf16 %v4444_v12, %v4437_v40  ;;  %v4314_v50 = vadd.f32 %v4279_v33, %v8728_v26  ;;  %v4169_v58 = vmul.f32 0.5, %v8540_v28 }
 0xbd2   : > { %v6805_v18 = vpop.eup %6804  ;;  %v4415_v54 = vadd.f32 1.0, %v6803_v48  ;;  %6822 = vtanh.f32 %v4334_v17  ;;  %v4313_v5 = vadd.f32 %v4278_v25, %v8711_v59  ;;  %v4350_v1 = vmul.f32 0.7978846, %v4315_v62 }
 0xbd3   : > { %v4417_v42 = vadd.f32 1.0, %v6805_v18  ;;  %6824 = vtanh.f32 %v4336_v56  ;;  %5191 = vmatmul.mubr.bf16.gmra.mxu1 %v4465_v15  ;;  %v4349_v30 = vmul.f32 0.7978846, %v4314_v50  ;;  %v4171_v24 = vmul.f32 0.5, %v8548_v63 }
 0xbd4   : > { %v6807_v31 = vpop.eup %6806  ;;  %v4450_v51 = vmul.f32 %v4415_v54, %v4170_v8  ;;  %v4348_v14 = vmul.f32 0.7978846, %v4313_v5  ;;  %v4152_v37 = vmul.f32 0.5, %v8558_v9  ;;  %v4146_v57 = vmul.f32 0.5, %v8618_v36 }
 0xbd5   : > { %v6809_v4 = vpop.eup %6808  ;;  %v4452_v49 = vmul.f32 %v4417_v42, %v4172_v38  ;;  %v4414_v44 = vadd.f32 1.0, %v6807_v31  ;;  %6826 = vtanh.f32 %v4349_v30  ;;  %v4153_v6 = vmul.f32 0.5, %v8621_v39 }
 0xbd6   : > { %v6811_v3 = vpop.eup %6810  ;;  %v4471_v19 = vpack.c.bf16 %v4450_v51, %v4450_v51  ;;  %v4416_v43 = vadd.f32 1.0, %v6809_v4  ;;  %v4399_v23 = vadd.f32 1.0, %v8753_v35  ;;  %v4397_v63 = vadd.f32 1.0, %v8741_v22 }
 0xbd7   : > { %v6813_v47 = vpop.eup %6812  ;;  %v4473_v29 = vpack.c.bf16 %v4452_v49, %v4452_v49  ;;  %v4449_v11 = vmul.f32 %v4414_v44, %v4169_v58  ;;  %v4391_v34 = vadd.f32 1.0, %v6811_v3  ;;  %6828 = vtanh.f32 %v4348_v14 }
 0xbd8   : > { %5139 = vmatprep.mubr.bf16.mxu0 %v4471_v19  ;;  %v4451_v28 = vmul.f32 %v4416_v43, %v4171_v24  ;;  %v4398_v52 = vadd.f32 1.0, %v6813_v47  ;;  %6830 = vtanh.f32 %v4350_v1  ;;  %v4392_v53 = vadd.f32 1.0, %v8738_v55  ;;  %v8946_v55 = vld [vmem:[#allocation5_spill] sm:$0xff] }
 0xbd9   : > { %5200 = vmatprep.mubr.bf16.mxu1 %v4473_v29  ;;  %v4470_v27 = vpack.c.bf16 %v4449_v11, %v4449_v11  ;;  %v4426_v46 = vmul.f32 %v4391_v34, %v4146_v57  ;;  %v4154_v36 = vmul.f32 0.5, %v8561_v61  ;;  %v4390_v39 = vadd.f32 1.0, %v8733_v10 }
 0xbda   : > { %v6815_v0 = vpop.eup %6814  ;;  %v4472_v9 = vpack.c.bf16 %v4451_v28, %v4451_v28  ;;  %v4433_v60 = vmul.f32 %v4398_v52, %v4153_v6  ;;  %v4160_v40 = vmul.f32 0.5, %v8664_v20  ;;  %v4167_v22 = vmul.f32 0.5, %v8682_v16 }
 0xbdb   : > { %v6817_v17 = vpop.eup %6816  ;;  %5140 = vmatmul.mubr.bf16.gmra.mxu0 %v4470_v27  ;;  %v4405_v56 = vadd.f32 1.0, %v6815_v0  ;;  %v4145_v33 = vmul.f32 0.5, %v8528_v7  ;;  %v4432_v48 = vmul.f32 %v4397_v63, %v4152_v37  ;;  %v4147_v8 = vmul.f32 0.5, %v8946_v55 }
 0xbdc   : > { %5201 = vmatmul.mubr.bf16.gmra.mxu1 %v4472_v9  ;;  %v4461_v35 = vpack.c.bf16 %v4433_v60, %v4426_v46  ;;  %v4412_v12 = vadd.f32 1.0, %v6817_v17  ;;  %v4434_v61 = vmul.f32 %v4399_v23, %v4154_v36  ;;  %v4166_v51 = vmul.f32 0.5, %v8687_v21 }
 0xbdd   : > { %5302 = vmatprep.mubr.bf16.mxu1 %v8938_v2  ;;  %v6819_v62 = vpop.eup %6818  ;;  %v4440_v25 = vmul.f32 %v4405_v56, %v4160_v40  ;;  %v4425_v15 = vmul.f32 %v4390_v39, %v4145_v33  ;;  %v4427_v50 = vmul.f32 %v4392_v53, %v4147_v8  ;;  %v4168_v30 = vmul.f32 0.5, %v8668_v13  ;;  %v4575_v39 = vld [vmem:[%s8947_s25] sm:$0x3] }
 0xbde   : > { %5241 = vmatprep.mubr.bf16.mxu0 %v4461_v35  ;;  %v4447_v10 = vmul.f32 %v4412_v12, %v4167_v22  ;;  %v6821_v18 = vpop.eup %6820  ;;  %v4411_v42 = vadd.f32 1.0, %v6819_v62  ;;  %v4174_v1 = vmul.f32 0.5, %v8728_v26  ;;  %v4159_v44 = vmul.f32 0.5, %v8625_v41  ;;  %v8948_v40 = vld [vmem:[#allocation7_spill] sm:$0xff] }
 0xbdf   : > { %v6823_v54 = vpop.eup %6822  ;;  %v4460_v16 = vpack.c.bf16 %v4432_v48, %v4425_v15  ;;  %v4462_v7 = vpack.c.bf16 %v4434_v61, %v4427_v50  ;;  %v4413_v5 = vadd.f32 1.0, %v6821_v18  ;;  %v4161_v19 = vmul.f32 0.5, %v8628_v32  ;;  %v8949_v48 = vld [vmem:[#allocation6_spill] sm:$0xff] }
 0xbe0   : > { %v4468_v20 = vpack.c.bf16 %v4447_v10, %v4440_v25  ;;  %v6825_v38 = vpop.eup %6824  ;;  %v4404_v58 = vadd.f32 1.0, %v6823_v54  ;;  %v4446_v14 = vmul.f32 %v4411_v42, %v4166_v51  ;;  %v4173_v26 = vmul.f32 0.5, %v8711_v59 }
 0xbe1   : > { %v4406_v4 = vadd.f32 1.0, %v6825_v38  ;;  %v4448_v24 = vmul.f32 %v4413_v5, %v4168_v30  ;;  %v4175_v57 = vmul.f32 0.5, %v8715_v45  ;;  %v4580_v22 = vrot.slane %v4575_v39, %v8948_v40 }
 0xbe2   : > { %v6827_v31 = vpop.eup %6826  ;;  %v4439_v47 = vmul.f32 %v4404_v58, %v4159_v44  ;;  %v4584_v62 = vrot.slane %v4575_v39, %v8949_v48 }
 0xbe3   : > { %5242 = vmatmul.mubr.bf16.vlgmr.msra.gmra.mxu0 %v4460_v16  ;;  %v4419_v49 = vadd.f32 1.0, %v6827_v31  ;;  %v4441_v13 = vmul.f32 %v4406_v4, %v4161_v19  ;;  %v8950_v19 = vld [vmem:[#allocation9_spill] sm:$0xff] }
 0xbe4   : > { %5914 = vmatmul.mubr.msk.bf16.vlgmr.msra.gmra.mxu1 %vm5077_vm15, %v4462_v7  ;;  %5251 = vmatprep.mubr.bf16.mxu0 %v4468_v20  ;;  %v6829_v3 = vpop.eup %6828  ;;  %v4467_v29 = vpack.c.bf16 %v4446_v14, %v4439_v47 }
 0xbe5   : > { %5312 = vmatprep.mubr.bf16.mxu1 %v8938_v2  ;;  %v4454_v21 = vmul.f32 %v4419_v49, %v4174_v1  ;;  %v6831_v43 = vpop.eup %6830  ;;  %v4418_v11 = vadd.f32 1.0, %v6829_v3  ;;  %v4469_v34 = vpack.c.bf16 %v4448_v24, %v4441_v13 }
 0xbe6   : > { %v4420_v28 = vadd.f32 1.0, %v6831_v43 }
 0xbe7   : > { %v4475_v37 = vpack.c.bf16 %v4454_v21, %v4454_v21  ;;  %v4453_v41 = vmul.f32 %v4418_v11, %v4173_v26  ;;  %v8951_v11 = vld [vmem:[#allocation8_spill] sm:$0xff] }
 0xbe8   : > { %v4455_v32 = vmul.f32 %v4420_v28, %v4175_v57 }
 0xbe9   : > { %v4474_v6 = vpack.c.bf16 %v4453_v41, %v4453_v41 }
 0xbea   : > { %v4476_v52 = vpack.c.bf16 %v4455_v32, %v4455_v32 }
 0xbeb   : > { %5252 = vmatmul.mubr.bf16.gmra.mxu0 %v4467_v29 }
 0xbec   : > { %5915 = vmatmul.mubr.msk.bf16.gmra.mxu1 %vm5077_vm15, %v4469_v34  ;;  %5261 = vmatprep.mubr.bf16.mxu0 %v4475_v37 }
 0xbed   : > { %5322 = vmatprep.mubr.bf16.mxu1 %v8938_v2 }
 0xbf3   : > { %5262 = vmatmul.mubr.bf16.gmra.mxu0 %v4474_v6 }
 0xbf4   : > { %5916 = vmatmul.mubr.msk.bf16.gmra.mxu1 %vm5077_vm15, %v4476_v52  ;;  %v8952_v52 = vld [vmem:[#allocation11_spill] sm:$0xff] }
 0xc44   : > { %v5121_v23 = vpop.f32.mrf.mxu0 }
 0xc45   : > { %v5182_v27 = vpop.f32.mrf.mxu1  ;;  %v5122_v61 = vadd.f32 %v5121_v23, %v4580_v22 }
 0xc46   : > { %v5123_v63 = vpop.f32.mrf.mxu0 }
 0xc47   : > { %v5184_v0 = vpop.f32.mrf.mxu1  ;;  %v5124_v18 = vadd.f32 %v5123_v63, %v4584_v62  ;;  %v5183_v50 = vadd.f32 %v5182_v27, %v5122_v61 }
 0xc48   : > { %v5125_v59 = vpop.f32.mrf.mxu0 }
 0xc49   : > { %v5186_v9 = vpop.f32.mrf.mxu1  ;;  %v5126_v20 = vadd.f32 %v5125_v59, %v4580_v22  ;;  %v5185_v7 = vadd.f32 %v5184_v0, %v5124_v18 }
 0xc4a   : > { %v5127_v45 = vpop.f32.mrf.mxu0 }
 0xc4b   : > { %v5188_v60 = vpop.f32.mrf.mxu1  ;;  %v5128_v16 = vadd.f32 %v5127_v45, %v4584_v62  ;;  %v5187_v58 = vadd.f32 %v5186_v9, %v5126_v20 }
 0xc4d   : > { %v5189_v44 = vadd.f32 %v5188_v60, %v5128_v16 }
 0xc90   : > { %v5131_v46 = vpop.f32.mrf.mxu0 }
 0xc91   : > { %v5132_v30 = vadd.f32 %v5131_v46, %v4580_v22  ;;  %v8953_v46 = vld [vmem:[#allocation10_spill] sm:$0xff] }
 0xc92   : > { %v5133_v17 = vpop.f32.mrf.mxu0 }
 0xc93   : > { %v5192_v53 = vpop.f32.mrf.mxu1  ;;  %v5134_v3 = vadd.f32 %v5133_v17, %v4584_v62 }
 0xc94   : > { %v5135_v2 = vpop.f32.mrf.mxu0  ;;  %v5193_v29 = vadd.f32 %v5192_v53, %v5132_v30 }
 0xc95   : > { %v5194_v36 = vpop.f32.mrf.mxu1  ;;  %v5136_v13 = vadd.f32 %v5135_v2, %v4580_v22 }
 0xc96   : > { %v5137_v56 = vpop.f32.mrf.mxu0  ;;  %v5195_v6 = vadd.f32 %v5194_v36, %v5134_v3  ;;  %v8954_v36 = vld [vmem:[#allocation13_spill] sm:$0xff] }
 0xc97   : > { %v5196_v35 = vpop.f32.mrf.mxu1  ;;  %v5138_v41 = vadd.f32 %v5137_v56, %v4584_v62  ;;  %v8959_v3 = vld [vmem:[#allocation17_spill] sm:$0xff] }
 0xc98   : > { %v5197_v59 = vadd.f32 %v5196_v35, %v5136_v13 }
 0xc99   : > { %v5198_v12 = vpop.f32.mrf.mxu1 }
 0xc9a   : > { %v5199_v39 = vadd.f32 %v5198_v12, %v5138_v41 }
 0xc9b   : > { %v5141_v33 = vpop.f32.mrf.mxu0 }
 0xc9c   : > { %v5202_v55 = vpop.f32.mrf.mxu1  ;;  %v5142_v45 = vadd.f32 %v5141_v33, %v4580_v22  ;;  %v8955_v22 = vld [vmem:[#allocation12_spill] sm:$0xff] }
 0xc9d   : > { %v5143_v8 = vpop.f32.mrf.mxu0 }
 0xc9e   : > { %v8806_v25 = vpop.f32.mrf.mxu1  ;;  %v5144_v40 = vadd.f32 %v5143_v8, %v4584_v62  ;;  %v5203_v35 = vadd.f32 %v5202_v55, %v5142_v45  ;;  %v8956_v62 = vld [vmem:[#allocation15_spill] sm:$0xff] }
 0xc9f   : > { %v5145_v10 = vpop.f32.mrf.mxu0 }
 0xca0   : > { %v5206_v15 = vpop.f32.mrf.mxu1  ;;  %v5205_v12 = vadd.f32 %v8806_v25, %v5144_v40 }
 0xca1   : > { %v5146_v54 = vpop.f32.mrf.mxu0 }
 0xca2   : > { %v5207_v38 = vpop.f32.mrf.mxu1 }
 0xca3   : > { %v5243_v42 = vpop.f32.mrf.mxu0 }
 0xca4   : > { %v5244_v5 = vadd.f32 %v5243_v42, %v5183_v50  ;;  %v5304_v31 = vpop.f32.mrf.mxu1 }
 0xca5   : > { %v5245_v51 = vpop.f32.mrf.mxu0 }
 0xca6   : > { %v5305_v4 = vadd.f32 %v5304_v31, %v5244_v5  ;;  %v5246_v1 = vadd.f32 %v5245_v51, %v5185_v7  ;;  %v5306_v49 = vpop.f32.mrf.mxu1  ;;  %v8957_v31 = vld [vmem:[#allocation14_spill] sm:$0xff] }
 0xca7   : > { %v5247_v14 = vpop.f32.mrf.mxu0 }
 0xca8   : > { %v8809_v24 = vadd.f32 %v5305_v4, %v8950_v19  ;;  %v5307_v21 = vadd.f32 %v5306_v49, %v5246_v1  ;;  %v5248_v43 = vadd.f32 %v5247_v14, %v5187_v58  ;;  %v5308_v47 = vpop.f32.mrf.mxu1  ;;  %v8958_v1 = vld [vmem:[#allocation16_spill] sm:$0xff] }
 0xca9   : > { %v5249_v37 = vpop.f32.mrf.mxu0 }
 0xcaa   : > { %5341 = vst [vmem:[#allocation2] sm:$0xff] %v8809_v24  ;;  %v5332_v34 = vadd.f32 %v5307_v21, %v8951_v11  ;;  %v5309_v28 = vadd.f32 %v5308_v47, %v5248_v43  ;;  %v5250_v26 = vadd.f32 %v5249_v37, %v5189_v44  ;;  %v5310_v57 = vpop.f32.mrf.mxu1 }
 0xcab   : > { %v5253_v32 = vpop.f32.mrf.mxu0 }
 0xcac   : > { %5342 = vst.msk [vmem:[#allocation2 + $0x8] sm:$0xff] %vm686_vm2, %v5332_v34  ;;  %v5333_v23 = vadd.f32 %v5309_v28, %v8952_v52  ;;  %v5311_v27 = vadd.f32 %v5310_v57, %v5250_v26  ;;  %v5254_v63 = vadd.f32 %v5253_v32, %v5193_v29  ;;  %v5314_v0 = vpop.f32.mrf.mxu1 }
 0xcad   : > { %v5255_v9 = vpop.f32.mrf.mxu0 }
 0xcae   : > { %5343 = vst [vmem:[#allocation2 + $0x10] sm:$0xff] %v5333_v23  ;;  %v5334_v60 = vadd.f32 %v5311_v27, %v8953_v46  ;;  %v5315_v17 = vadd.f32 %v5314_v0, %v5254_v63  ;;  %v5256_v53 = vadd.f32 %v5255_v9, %v5195_v6  ;;  %v5316_v2 = vpop.f32.mrf.mxu1 }
 0xcaf   : > { %v5257_v56 = vpop.f32.mrf.mxu0 }
 0xcb0   : > { %5344 = vst.msk [vmem:[#allocation2 + $0x18] sm:$0xff] %vm686_vm2, %v5334_v60  ;;  %v5335_v48 = vadd.f32 %v5315_v17, %v8954_v36  ;;  %v5317_v61 = vadd.f32 %v5316_v2, %v5256_v53  ;;  %v5258_v10 = vadd.f32 %v5257_v56, %v5197_v59  ;;  %v5318_v18 = vpop.f32.mrf.mxu1 }
 0xcb1   : > { %v5259_v15 = vpop.f32.mrf.mxu0 }
 0xcb2   : > { %5345 = vst [vmem:[#allocation2 + $0x20] sm:$0xff] %v5335_v48  ;;  %v5336_v33 = vadd.f32 %v5317_v61, %v8955_v22  ;;  %v5319_v54 = vadd.f32 %v5318_v18, %v5258_v10  ;;  %v5260_v50 = vadd.f32 %v5259_v15, %v5199_v39  ;;  %v5320_v20 = vpop.f32.mrf.mxu1 }
 0xcb3   : > { %v5263_v38 = vpop.f32.mrf.mxu0 }
 0xcb4   : > { %5346 = vst.msk [vmem:[#allocation2 + $0x28] sm:$0xff] %vm686_vm2, %v5336_v33  ;;  %v5337_v8 = vadd.f32 %v5319_v54, %v8956_v62  ;;  %v5321_v16 = vadd.f32 %v5320_v20, %v5260_v50  ;;  %v5264_v42 = vadd.f32 %v5263_v38, %v5203_v35  ;;  %v5324_v7 = vpop.f32.mrf.mxu1 }
 0xcb5   : > { %v5265_v5 = vpop.f32.mrf.mxu0 }
 0xcb6   : > { %5347 = vst [vmem:[#allocation2 + $0x30] sm:$0xff] %v5337_v8  ;;  %v5338_v55 = vadd.f32 %v5321_v16, %v8957_v31  ;;  %v5325_v51 = vadd.f32 %v5324_v7, %v5264_v42  ;;  %v5266_v58 = vadd.f32 %v5265_v5, %v5205_v12  ;;  %v5326_v30 = vpop.f32.mrf.mxu1 }
 0xcb7   : > { %v5267_v4 = vpop.f32.mrf.mxu0 }
 0xcb8   : > { %5348 = vst.msk [vmem:[#allocation2 + $0x38] sm:$0xff] %vm686_vm2, %v5338_v55  ;;  %v5339_v49 = vadd.f32 %v5325_v51, %v8958_v1  ;;  %v5327_v25 = vadd.f32 %v5326_v30, %v5266_v58  ;;  %v5328_v44 = vpop.f32.mrf.mxu1  ;;  %5354 = sbr.rel (%p5917_p5) target bundleno = 3266 (0xcc2), region = 84 }
 0xcb9   : > { %v5268_v14 = vpop.f32.mrf.mxu0 }
 0xcba   : > { %5349 = vst [vmem:[#allocation2 + $0x40] sm:$0x3] %v5339_v49  ;;  %v5340_v19 = vadd.f32 %v5327_v25, %v8959_v3  ;;  %v5329_v21 = vpop.f32.mrf.mxu1 }
 0xcbc   : > { %5350 = vst.msk [vmem:[#allocation2 + $0x48] sm:$0x3] %vm705_vm4, %v5340_v19 }
 0xcbd   : > { %5355 = vst [vmem:[%s8961_s15] sm:$0xff] %v8809_v24  ;;  %5356 = vst.msk [vmem:[%s8961_s15 + $0x8] sm:$0xff] %vm686_vm2, %v5332_v34 }
 0xcbe   : > { %5357 = vst [vmem:[%s8961_s15 + $0x10] sm:$0xff] %v5333_v23  ;;  %5358 = vst.msk [vmem:[%s8961_s15 + $0x18] sm:$0xff] %vm686_vm2, %v5334_v60 }
 0xcbf   : > { %5359 = vst [vmem:[%s8961_s15 + $0x20] sm:$0xff] %v5335_v48  ;;  %5360 = vst.msk [vmem:[%s8961_s15 + $0x28] sm:$0xff] %vm686_vm2, %v5336_v33 }
 0xcc0   : > { %5361 = vst [vmem:[%s8961_s15 + $0x30] sm:$0xff] %v5337_v8  ;;  %5362 = vst.msk [vmem:[%s8961_s15 + $0x38] sm:$0xff] %vm686_vm2, %v5338_v55 }
 0xcc1   : > { %5363 = vst [vmem:[%s8961_s15 + $0x40] sm:$0x3] %v5339_v49  ;;  %5364 = vst.msk [vmem:[%s8961_s15 + $0x48] sm:$0x3] %vm705_vm4, %v5340_v19 }
 0xcc2 PF: > { %s8962_s30 = sld [smem:[#allocation3_spill]] }
 0xcc8   : > { %s24_s29 = sadd.s32 1, %s8962_s30  }
 0xcc9   : > { %p21_p6 = scmp.ge.s32.totalorder %s24_s29, 14  }
 0xccb   :  { %23 = sbr.rel (!%p21_p6) target bundleno = 6 (0x6), region = 143 }

// kernel: forward.2
= control target key start
LH: loop header
LB: loop body
LE: loop exit
PB: predicated region body
PF: predicated region fallthrough
CT: control target
= control target key end

     0   :  { %s6556_s21 = smov 0   ;;  %s11361_s0 = inlined_call_operand.vmem [shape: f32[2,46,138], index: 0, kind: input, shape index: {}]   ;;  %s11362_s1 = inlined_call_operand.vmem [shape: f32[5,46,46], index: 1, kind: input, shape index: {}]   ;;  %s11363_s2 = inlined_call_operand.vmem [shape: f32[5,138,736], index: 2, kind: input, shape index: {}]   ;;  %s11364_s3 = inlined_call_operand.vmem [shape: f32[1,736], index: 3, kind: input, shape index: {}]   ;;  %s11365_s4 = inlined_call_operand.vmem [shape: f32[3,14,46], index: 4, kind: input, shape index: {}]   ;;  %s11366_s5 = inlined_call_operand.vmem [shape: f32[3,736,224], index: 5, kind: input, shape index: {}]   ;;  %s11367_s6 = inlined_call_operand.vmem [shape: f32[2,14,224], index: 6, kind: output, shape index: {}]  }
   0x1 LB: > { %s5437_s22 = sadd.s32 4294967295, %s6518_s21   ;;  %p5441_p0 = scmp.ge.s32.totalorder %s6518_s21, 1  ;;  %s6518_s21 = sphi %s6556_s21, %s16_s21  }
   0x2   : > { %p212_p1 = scmp.lt.s32.totalorder %s6518_s21, 3 }
   0x4   : > { %p213_p2 = pnand %p5441_p0, %p212_p1 }
   0x6   : > { %216 = sbr.rel (%p213_p2) target bundleno = 1941 (0x795), region = 44 }
   0xb   : > { %p242_p3 = scmp.lt.s32.totalorder %s5437_s22, 1  ;;  %v11368_v0 = vmov 0.0   ;;  %vm289_vm0 = vcmask 1045504   ;;  %vm270_vm1 = vcmask 375808   ;;  %v5453_v13 = vld [vmem:[%s11362_s1 + $0x30] sm:$0xff]  ;;  %v264_v14 = vld [vmem:[%s11362_s1] sm:$0xff] }
   0xc   : > { %594 = vmatprep.mubr.f32.mxu1 %v11368_v0  ;;  %360 = vmatprep.mubr.f32.mxu0 %v11368_v0  ;;  %v5558_v15 = vld [vmem:[%s11363_s2 + $0x638] sm:$0xff]  ;;  %v5560_v16 = vld [vmem:[%s11363_s2 + $0x648] sm:$0xff]  ;;  %v5557_v17 = vld [vmem:[%s11363_s2 + $0x630] sm:$0xff]  ;;  %vm759_vm2 = vcmask 1041408   ;;  %vm740_vm3 = vcmask 80896   ;;  %vm4299_vm4 = vcmask 785408  }
   0xd   : > { %s11460_s22 = smov (!%p242_p3, %s5437_s22), 1  ;;  %v5559_v18 = vld [vmem:[%s11363_s2 + $0x640] sm:$0xff]  ;;  %v5454_v19 = vld [vmem:[%s11362_s1 + $0x38] sm:$0xff]  ;;  %v265_v20 = vld [vmem:[%s11362_s1 + $0x8] sm:$0xff]  ;;  %vm5380_vm5 = vcmask 783360  }
   0xe   : > { %s6478_s23 = smul.u32 96, %s11460_s22  ;;  %v5552_v21 = vld [vmem:[%s11363_s2 + $0x608] sm:$0xff]  ;;  %v5554_v22 = vld [vmem:[%s11363_s2 + $0x618] sm:$0xff]  ;;  %v5551_v23 = vld [vmem:[%s11363_s2 + $0x600] sm:$0xff]  ;;  %s6477_s15 = sshll.u32 %s11460_s22, 5 }
   0xf   : > { %v5553_v24 = vld [vmem:[%s11363_s2 + $0x610] sm:$0xff]  ;;  %v5455_v25 = vld [vmem:[%s11362_s1 + $0x40] sm:$0xff]  ;;  %v5546_v27 = vld [vmem:[%s11363_s2 + $0x5d8] sm:$0xff]  ;;  %s251_s18 = scalar_lea.vmem %s11367_s6, %s6477_s15 }
  0x10   : > { %s6572_s26 = scalar_lea.vmem %s11361_s0, %s6478_s23  ;;  %v266_v26 = vld [vmem:[%s11362_s1 + $0x10] sm:$0xff]  ;;  %v5548_v28 = vld [vmem:[%s11363_s2 + $0x5e8] sm:$0xff]  ;;  %v5547_v30 = vld [vmem:[%s11363_s2 + $0x5e0] sm:$0xff] }
  0x11   : > { %v263_v1 = vld [vmem:[%s6572_s26 + $0x58] sm:$0x3f]  ;;  %v262_v2 = vld [vmem:[%s6572_s26 + $0x50] sm:$0x3f]  ;;  %v261_v3 = vld [vmem:[%s6572_s26 + $0x48] sm:$0xff] }
  0x12   : > { %5459 = vmatprep.subr.msk.mxu1 %vm289_vm0, %v263_v1  ;;  %v260_v4 = vld [vmem:[%s6572_s26 + $0x40] sm:$0xff]  ;;  %5445 = vmatprep.subr.msk.mxu0 %vm289_vm0, %v263_v1  ;;  %v259_v5 = vld [vmem:[%s6572_s26 + $0x38] sm:$0xff]  ;;  %v258_v6 = vld [vmem:[%s6572_s26 + $0x30] sm:$0xff] }
  0x13   : > { %5460 = vmatpush1.msk.msra.mxu1 %vm289_vm0, %v262_v2  ;;  %5446 = vmatpush1.msk.msra.mxu0 %vm289_vm0, %v262_v2  ;;  %v257_v7 = vld [vmem:[%s6572_s26 + $0x28] sm:$0xff]  ;;  %v256_v8 = vld [vmem:[%s6572_s26 + $0x20] sm:$0xff]  ;;  %v255_v9 = vld [vmem:[%s6572_s26 + $0x18] sm:$0xff] }
  0x14   : > { %552 = vmatprep.subr.mxu1 %v261_v3  ;;  %318 = vmatprep.subr.mxu0 %v261_v3  ;;  %v254_v10 = vld [vmem:[%s6572_s26 + $0x10] sm:$0xff]  ;;  %v253_v11 = vld [vmem:[%s6572_s26 + $0x8] sm:$0xff]  ;;  %v252_v12 = vld [vmem:[%s6572_s26] sm:$0xff] }
  0x15   : > { %553 = vmatpush1.msra.mxu1 %v260_v4  ;;  %319 = vmatpush1.msra.mxu0 %v260_v4  ;;  %v5545_v29 = vld [vmem:[%s11363_s2 + $0x5d0] sm:$0xff]  ;;  %v5456_v31 = vld [vmem:[%s11362_s1 + $0x48] sm:$0xff]  ;;  %v267_v32 = vld [vmem:[%s11362_s1 + $0x18] sm:$0xff] }
  0x16   : > { %554 = vmatprep.subr.mxu1 %v259_v5  ;;  %320 = vmatprep.subr.mxu0 %v259_v5  ;;  %v5540_v33 = vld [vmem:[%s11363_s2 + $0x5a8] sm:$0xff]  ;;  %v5542_v34 = vld [vmem:[%s11363_s2 + $0x5b8] sm:$0xff]  ;;  %v5539_v35 = vld [vmem:[%s11363_s2 + $0x5a0] sm:$0xff] }
  0x17   : > { %555 = vmatpush1.msra.mxu1 %v258_v6  ;;  %321 = vmatpush1.msra.mxu0 %v258_v6  ;;  %v5541_v36 = vld [vmem:[%s11363_s2 + $0x5b0] sm:$0xff]  ;;  %v268_v38 = vld [vmem:[%s11362_s1 + $0x20] sm:$0xff]  ;;  %v5534_v39 = vld [vmem:[%s11363_s2 + $0x578] sm:$0xff] }
  0x18   : > { %556 = vmatprep.subr.mxu1 %v257_v7  ;;  %322 = vmatprep.subr.mxu0 %v257_v7  ;;  %v5457_v37 = vld [vmem:[%s11362_s1 + $0x50] sm:$0xff]  ;;  %v5536_v40 = vld [vmem:[%s11363_s2 + $0x588] sm:$0xff]  ;;  %v5535_v42 = vld [vmem:[%s11363_s2 + $0x580] sm:$0xff] }
  0x19   : > { %557 = vmatpush1.msra.mxu1 %v256_v8  ;;  %323 = vmatpush1.msra.mxu0 %v256_v8  ;;  %v5533_v41 = vld [vmem:[%s11363_s2 + $0x570] sm:$0xff]  ;;  %v5458_v43 = vld [vmem:[%s11362_s1 + $0x58] sm:$0x3f]  ;;  %v269_v44 = vld [vmem:[%s11362_s1 + $0x28] sm:$0x3f] }
  0x1a   : > { %558 = vmatprep.subr.mxu1 %v255_v9  ;;  %324 = vmatprep.subr.mxu0 %v255_v9  ;;  %v5528_v45 = vld [vmem:[%s11363_s2 + $0x548] sm:$0xff]  ;;  %v5530_v46 = vld [vmem:[%s11363_s2 + $0x558] sm:$0xff]  ;;  %v5527_v47 = vld [vmem:[%s11363_s2 + $0x540] sm:$0xff] }
  0x1b   : > { %559 = vmatpush1.msra.mxu1 %v254_v10  ;;  %325 = vmatpush1.msra.mxu0 %v254_v10  ;;  %v5529_v48 = vld [vmem:[%s11363_s2 + $0x550] sm:$0xff]  ;;  %v5522_v49 = vld [vmem:[%s11363_s2 + $0x518] sm:$0xff]  ;;  %v5524_v50 = vld [vmem:[%s11363_s2 + $0x528] sm:$0xff] }
  0x1c   : > { %560 = vmatprep.subr.mxu1 %v253_v11  ;;  %326 = vmatprep.subr.mxu0 %v253_v11  ;;  %v5521_v51 = vld [vmem:[%s11363_s2 + $0x510] sm:$0xff]  ;;  %v5523_v52 = vld [vmem:[%s11363_s2 + $0x520] sm:$0xff]  ;;  %v5516_v53 = vld [vmem:[%s11363_s2 + $0x4e8] sm:$0xff] }
  0x1d   : > { %561 = vmatpush1.msra.mxu1 %v252_v12  ;;  %327 = vmatpush1.msra.mxu0 %v252_v12  ;;  %v5518_v54 = vld [vmem:[%s11363_s2 + $0x4f8] sm:$0xff]  ;;  %v5515_v55 = vld [vmem:[%s11363_s2 + $0x4e0] sm:$0xff]  ;;  %v5517_v56 = vld [vmem:[%s11363_s2 + $0x4f0] sm:$0xff] }
  0x1e   : > { %5461 = vmatmul.mubr.msk.f32.vlgmr.msra.gmra.mxu1 %vm270_vm1, %v5453_v13  ;;  %5447 = vmatmul.mubr.msk.f32.vlgmr.msra.gmra.mxu0 %vm270_vm1, %v264_v14  ;;  %v5510_v57 = vld [vmem:[%s11363_s2 + $0x4b8] sm:$0xff]  ;;  %v5512_v58 = vld [vmem:[%s11363_s2 + $0x4c8] sm:$0xff]  ;;  %v5509_v59 = vld [vmem:[%s11363_s2 + $0x4b0] sm:$0xff] }
  0x1f   : > { %600 = vmatprep.mubr.f32.mxu1 %v11368_v0  ;;  %366 = vmatprep.mubr.f32.mxu0 %v11368_v0  ;;  %v5511_v60 = vld [vmem:[%s11363_s2 + $0x4c0] sm:$0xff]  ;;  %v5504_v61 = vld [vmem:[%s11363_s2 + $0x488] sm:$0xff]  ;;  %v5506_v62 = vld [vmem:[%s11363_s2 + $0x498] sm:$0xff] }
  0x20   : > { %778 = vmatprep.subr.mxu0 %v5558_v15  ;;  %879 = vmatprep.subr.mxu1 %v5560_v16  ;;  %v5503_v63 = vld [vmem:[%s11363_s2 + $0x480] sm:$0xff]  ;;  %v5505_v1 = vld [vmem:[%s11363_s2 + $0x490] sm:$0xff]  ;;  %v5498_v2 = vld [vmem:[%s11363_s2 + $0x458] sm:$0xff] }
  0x21   : > { %779 = vmatpush1.msra.mxu0 %v5557_v17  ;;  %880 = vmatpush1.msra.mxu1 %v5559_v18  ;;  %v5500_v3 = vld [vmem:[%s11363_s2 + $0x468] sm:$0xff]  ;;  %v5497_v4 = vld [vmem:[%s11363_s2 + $0x450] sm:$0xff]  ;;  %v5499_v5 = vld [vmem:[%s11363_s2 + $0x460] sm:$0xff] }
  0x22   : > { %5462 = vmatmul.mubr.msk.f32.gmra.mxu1 %vm270_vm1, %v5454_v19  ;;  %5448 = vmatmul.mubr.msk.f32.gmra.mxu0 %vm270_vm1, %v265_v20  ;;  %v5492_v6 = vld [vmem:[%s11363_s2 + $0x428] sm:$0xff]  ;;  %v5494_v7 = vld [vmem:[%s11363_s2 + $0x438] sm:$0xff]  ;;  %v5491_v8 = vld [vmem:[%s11363_s2 + $0x420] sm:$0xff] }
  0x23   : > { %606 = vmatprep.mubr.f32.mxu1 %v11368_v0  ;;  %372 = vmatprep.mubr.f32.mxu0 %v11368_v0  ;;  %v5493_v9 = vld [vmem:[%s11363_s2 + $0x430] sm:$0xff]  ;;  %v5486_v10 = vld [vmem:[%s11363_s2 + $0x3f8] sm:$0xff]  ;;  %v5488_v11 = vld [vmem:[%s11363_s2 + $0x408] sm:$0xff] }
  0x24   : > { %780 = vmatprep.subr.mxu0 %v5552_v21  ;;  %881 = vmatprep.subr.mxu1 %v5554_v22  ;;  %v5485_v12 = vld [vmem:[%s11363_s2 + $0x3f0] sm:$0xff]  ;;  %v5487_v13 = vld [vmem:[%s11363_s2 + $0x400] sm:$0xff]  ;;  %v5480_v14 = vld [vmem:[%s11363_s2 + $0x3c8] sm:$0xff] }
  0x25   : > { %781 = vmatpush1.msra.mxu0 %v5551_v23  ;;  %882 = vmatpush1.msra.mxu1 %v5553_v24  ;;  %v5482_v15 = vld [vmem:[%s11363_s2 + $0x3d8] sm:$0xff]  ;;  %v5479_v16 = vld [vmem:[%s11363_s2 + $0x3c0] sm:$0xff]  ;;  %v5481_v17 = vld [vmem:[%s11363_s2 + $0x3d0] sm:$0xff] }
  0x26   : > { %5463 = vmatmul.mubr.msk.f32.gmra.mxu1 %vm270_vm1, %v5455_v25  ;;  %5449 = vmatmul.mubr.msk.f32.gmra.mxu0 %vm270_vm1, %v266_v26  ;;  %v5474_v18 = vld [vmem:[%s11363_s2 + $0x398] sm:$0xff]  ;;  %v5476_v19 = vld [vmem:[%s11363_s2 + $0x3a8] sm:$0xff]  ;;  %v5473_v20 = vld [vmem:[%s11363_s2 + $0x390] sm:$0xff] }
  0x27   : > { %612 = vmatprep.mubr.f32.mxu1 %v11368_v0  ;;  %378 = vmatprep.mubr.f32.mxu0 %v11368_v0  ;;  %v5475_v21 = vld [vmem:[%s11363_s2 + $0x3a0] sm:$0xff]  ;;  %v5468_v22 = vld [vmem:[%s11363_s2 + $0x368] sm:$0xff]  ;;  %v5470_v23 = vld [vmem:[%s11363_s2 + $0x378] sm:$0xff] }
  0x28   : > { %782 = vmatprep.subr.mxu0 %v5546_v27  ;;  %883 = vmatprep.subr.mxu1 %v5548_v28  ;;  %v5467_v24 = vld [vmem:[%s11363_s2 + $0x360] sm:$0xff]  ;;  %v5469_v25 = vld [vmem:[%s11363_s2 + $0x370] sm:$0xff]  ;;  %v5570_v26 = vld [vmem:[%s11363_s2 + $0x698] sm:$0x3] }
  0x29   : > { %783 = vmatpush1.msra.mxu0 %v5545_v29  ;;  %884 = vmatpush1.msra.mxu1 %v5547_v30  ;;  %v5572_v27 = vld [vmem:[%s11363_s2 + $0x6a8] sm:$0x3]  ;;  %v5569_v28 = vld [vmem:[%s11363_s2 + $0x690] sm:$0x3]  ;;  %v5571_v29 = vld [vmem:[%s11363_s2 + $0x6a0] sm:$0x3] }
  0x2a   : > { %5464 = vmatmul.mubr.msk.f32.gmra.mxu1 %vm270_vm1, %v5456_v31  ;;  %5450 = vmatmul.mubr.msk.f32.gmra.mxu0 %vm270_vm1, %v267_v32  ;;  %v5564_v30 = vld [vmem:[%s11363_s2 + $0x668] sm:$0xff]  ;;  %v5566_v31 = vld [vmem:[%s11363_s2 + $0x678] sm:$0xff]  ;;  %v5563_v32 = vld [vmem:[%s11363_s2 + $0x660] sm:$0xff] }
  0x2b   : > { %618 = vmatprep.mubr.f32.mxu1 %v11368_v0  ;;  %384 = vmatprep.mubr.f32.mxu0 %v11368_v0 }
  0x2c   : > { %784 = vmatprep.subr.mxu0 %v5540_v33  ;;  %885 = vmatprep.subr.mxu1 %v5542_v34  ;;  %v5565_v33 = vld [vmem:[%s11363_s2 + $0x670] sm:$0xff]  ;;  %v5562_v34 = vld [vmem:[%s11363_s2 + $0x658] sm:$0xff] }
  0x2d   : > { %785 = vmatpush1.msra.mxu0 %v5539_v35  ;;  %886 = vmatpush1.msra.mxu1 %v5541_v36  ;;  %v488_v35 = vld [vmem:[%s11363_s2 + $0x2d8] sm:$0xff] }
  0x2e   : > { %5465 = vmatmul.mubr.msk.f32.gmra.mxu1 %vm270_vm1, %v5457_v37  ;;  %5451 = vmatmul.mubr.msk.f32.gmra.mxu0 %vm270_vm1, %v268_v38  ;;  %v5561_v38 = vld [vmem:[%s11363_s2 + $0x650] sm:$0xff] }
  0x2f   : > { %624 = vmatprep.mubr.f32.mxu1 %v11368_v0  ;;  %390 = vmatprep.mubr.f32.mxu0 %v11368_v0 }
  0x30   : > { %786 = vmatprep.subr.mxu0 %v5534_v39  ;;  %887 = vmatprep.subr.mxu1 %v5536_v40  ;;  %v487_v39 = vld [vmem:[%s11363_s2 + $0x2d0] sm:$0xff]  ;;  %v5556_v40 = vld [vmem:[%s11363_s2 + $0x628] sm:$0xff] }
  0x31   : > { %787 = vmatpush1.msra.mxu0 %v5533_v41  ;;  %888 = vmatpush1.msra.mxu1 %v5535_v42  ;;  %v482_v41 = vld [vmem:[%s11363_s2 + $0x2a8] sm:$0xff] }
  0x32   : > { %5466 = vmatmul.mubr.msk.f32.gmra.mxu1 %vm270_vm1, %v5458_v43  ;;  %5452 = vmatmul.mubr.msk.f32.gmra.mxu0 %vm270_vm1, %v269_v44  ;;  %v5555_v43 = vld [vmem:[%s11363_s2 + $0x620] sm:$0xff] }
  0x33   : > { %788 = vmatprep.subr.mxu0 %v5528_v45  ;;  %889 = vmatprep.subr.mxu1 %v5530_v46  ;;  %v481_v44 = vld [vmem:[%s11363_s2 + $0x2a0] sm:$0xff]  ;;  %v5550_v45 = vld [vmem:[%s11363_s2 + $0x5f8] sm:$0xff] }
  0x34   : > { %789 = vmatpush1.msra.mxu0 %v5527_v47  ;;  %890 = vmatpush1.msra.mxu1 %v5529_v48  ;;  %v476_v47 = vld [vmem:[%s11363_s2 + $0x278] sm:$0xff]  ;;  %v5549_v48 = vld [vmem:[%s11363_s2 + $0x5f0] sm:$0xff] }
  0x35   : > { %790 = vmatprep.subr.mxu0 %v5522_v49  ;;  %891 = vmatprep.subr.mxu1 %v5524_v50  ;;  %v475_v49 = vld [vmem:[%s11363_s2 + $0x270] sm:$0xff] }
  0x36   : > { %791 = vmatpush1.msra.mxu0 %v5521_v51  ;;  %892 = vmatpush1.msra.mxu1 %v5523_v52  ;;  %v5544_v51 = vld [vmem:[%s11363_s2 + $0x5c8] sm:$0xff] }
  0x37   : > { %792 = vmatprep.subr.mxu0 %v5516_v53  ;;  %893 = vmatprep.subr.mxu1 %v5518_v54  ;;  %v470_v52 = vld [vmem:[%s11363_s2 + $0x248] sm:$0xff]  ;;  %v5543_v53 = vld [vmem:[%s11363_s2 + $0x5c0] sm:$0xff] }
  0x38   : > { %793 = vmatpush1.msra.mxu0 %v5515_v55  ;;  %894 = vmatpush1.msra.mxu1 %v5517_v56  ;;  %v469_v54 = vld [vmem:[%s11363_s2 + $0x240] sm:$0xff]  ;;  %v5538_v56 = vld [vmem:[%s11363_s2 + $0x598] sm:$0xff] }
  0x39   : > { %794 = vmatprep.subr.mxu0 %v5510_v57  ;;  %895 = vmatprep.subr.mxu1 %v5512_v58  ;;  %v464_v57 = vld [vmem:[%s11363_s2 + $0x218] sm:$0xff] }
  0x3a   : > { %795 = vmatpush1.msra.mxu0 %v5509_v59  ;;  %896 = vmatpush1.msra.mxu1 %v5511_v60  ;;  %v5537_v59 = vld [vmem:[%s11363_s2 + $0x590] sm:$0xff] }
  0x3b   : > { %796 = vmatprep.subr.mxu0 %v5504_v61  ;;  %897 = vmatprep.subr.mxu1 %v5506_v62  ;;  %v463_v60 = vld [vmem:[%s11363_s2 + $0x210] sm:$0xff]  ;;  %v5532_v61 = vld [vmem:[%s11363_s2 + $0x568] sm:$0xff] }
  0x3c   : > { %797 = vmatpush1.msra.mxu0 %v5503_v63  ;;  %898 = vmatpush1.msra.mxu1 %v5505_v1  ;;  %v458_v62 = vld [vmem:[%s11363_s2 + $0x1e8] sm:$0xff]  ;;  %v5531_v1 = vld [vmem:[%s11363_s2 + $0x560] sm:$0xff] }
  0x3d   : > { %798 = vmatprep.subr.mxu0 %v5498_v2  ;;  %899 = vmatprep.subr.mxu1 %v5500_v3  ;;  %v457_v2 = vld [vmem:[%s11363_s2 + $0x1e0] sm:$0xff]  ;;  %v5526_v3 = vld [vmem:[%s11363_s2 + $0x538] sm:$0xff] }
  0x3e   : > { %799 = vmatpush1.msra.mxu0 %v5497_v4  ;;  %900 = vmatpush1.msra.mxu1 %v5499_v5  ;;  %v452_v5 = vld [vmem:[%s11363_s2 + $0x1b8] sm:$0xff] }
  0x3f   : > { %800 = vmatprep.subr.mxu0 %v5492_v6  ;;  %901 = vmatprep.subr.mxu1 %v5494_v7  ;;  %v5525_v6 = vld [vmem:[%s11363_s2 + $0x530] sm:$0xff] }
  0x40   : > { %801 = vmatpush1.msra.mxu0 %v5491_v8  ;;  %902 = vmatpush1.msra.mxu1 %v5493_v9  ;;  %v451_v7 = vld [vmem:[%s11363_s2 + $0x1b0] sm:$0xff]  ;;  %v5520_v8 = vld [vmem:[%s11363_s2 + $0x508] sm:$0xff] }
  0x41   : > { %802 = vmatprep.subr.mxu0 %v5486_v10  ;;  %903 = vmatprep.subr.mxu1 %v5488_v11  ;;  %v446_v9 = vld [vmem:[%s11363_s2 + $0x188] sm:$0xff]  ;;  %v5519_v11 = vld [vmem:[%s11363_s2 + $0x500] sm:$0xff] }
  0x42   : > { %803 = vmatpush1.msra.mxu0 %v5485_v12  ;;  %904 = vmatpush1.msra.mxu1 %v5487_v13  ;;  %v445_v12 = vld [vmem:[%s11363_s2 + $0x180] sm:$0xff]  ;;  %v5514_v13 = vld [vmem:[%s11363_s2 + $0x4d8] sm:$0xff] }
  0x43   : > { %804 = vmatprep.subr.mxu0 %v5480_v14  ;;  %905 = vmatprep.subr.mxu1 %v5482_v15  ;;  %v440_v14 = vld [vmem:[%s11363_s2 + $0x158] sm:$0xff] }
  0x44   : > { %805 = vmatpush1.msra.mxu0 %v5479_v16  ;;  %906 = vmatpush1.msra.mxu1 %v5481_v17  ;;  %v5513_v16 = vld [vmem:[%s11363_s2 + $0x4d0] sm:$0xff] }
  0x45   : > { %806 = vmatprep.subr.mxu0 %v5474_v18  ;;  %907 = vmatprep.subr.mxu1 %v5476_v19  ;;  %v439_v17 = vld [vmem:[%s11363_s2 + $0x150] sm:$0xff]  ;;  %v5508_v18 = vld [vmem:[%s11363_s2 + $0x4a8] sm:$0xff] }
  0x46   : > { %807 = vmatpush1.msra.mxu0 %v5473_v20  ;;  %908 = vmatpush1.msra.mxu1 %v5475_v21  ;;  %v434_v19 = vld [vmem:[%s11363_s2 + $0x128] sm:$0xff]  ;;  %v5507_v20 = vld [vmem:[%s11363_s2 + $0x4a0] sm:$0xff] }
  0x47   : > { %808 = vmatprep.subr.mxu0 %v5468_v22  ;;  %909 = vmatprep.subr.mxu1 %v5470_v23  ;;  %v433_v22 = vld [vmem:[%s11363_s2 + $0x120] sm:$0xff]  ;;  %v5502_v23 = vld [vmem:[%s11363_s2 + $0x478] sm:$0xff] }
  0x48   : > { %809 = vmatpush1.msra.mxu0 %v5467_v24  ;;  %910 = vmatpush1.msra.mxu1 %v5469_v25  ;;  %v428_v24 = vld [vmem:[%s11363_s2 + $0xf8] sm:$0xff]  ;;  %v5501_v25 = vld [vmem:[%s11363_s2 + $0x470] sm:$0xff] }
  0x49   : > { %5575 = vmatprep.subr.msk.mxu0 %vm759_vm2, %v5570_v26  ;;  %5583 = vmatprep.subr.msk.mxu1 %vm759_vm2, %v5572_v27  ;;  %v427_v26 = vld [vmem:[%s11363_s2 + $0xf0] sm:$0xff]  ;;  %v5496_v27 = vld [vmem:[%s11363_s2 + $0x448] sm:$0xff] }
  0x4a   : > { %5576 = vmatpush2.msk.msra.mxu0 %vm759_vm2, %v5569_v28  ;;  %5584 = vmatpush2.msk.msra.mxu1 %vm759_vm2, %v5571_v29  ;;  %v422_v28 = vld [vmem:[%s11363_s2 + $0xc8] sm:$0xff] }
  0x4b   : > { %840 = vmatprep.subr.mxu0 %v5564_v30  ;;  %941 = vmatprep.subr.mxu1 %v5566_v31  ;;  %v5495_v30 = vld [vmem:[%s11363_s2 + $0x440] sm:$0xff] }
  0x4c   : > { %841 = vmatpush2.msra.mxu0 %v5563_v32  ;;  %942 = vmatpush2.msra.mxu1 %v5565_v33  ;;  %v421_v31 = vld [vmem:[%s11363_s2 + $0xc0] sm:$0xff]  ;;  %v5490_v32 = vld [vmem:[%s11363_s2 + $0x418] sm:$0xff] }
  0x4d   : > { %980 = vmatprep.subr.mxu0 %v5562_v34  ;;  %1117 = vmatprep.subr.mxu1 %v488_v35  ;;  %v416_v33 = vld [vmem:[%s11363_s2 + $0x98] sm:$0xff]  ;;  %v5489_v34 = vld [vmem:[%s11363_s2 + $0x410] sm:$0xff] }
  0x4e   : > { %v415_v35 = vld [vmem:[%s11363_s2 + $0x90] sm:$0xff] }
  0xde   : > { %v6874_v36 = vpop.f32.mrf.mxu1  ;;  %v7060_v29 = vpop.f32.mrf.mxu0 }
  0xe0   : > { %v6876_v37 = vpop.f32.mrf.mxu1 }
  0xe1   : > { %5577 = vmatprep.mubr.msk.f32.mxu0 %vm740_vm3, %v6876_v37  ;;  %5585 = vmatprep.mubr.msk.f32.mxu1 %vm740_vm3, %v6876_v37 }
  0xe2   : > { %v6894_v42 = vpop.f32.mrf.mxu1  ;;  %843 = vmatmul.mubr.f32.vlgmr.msra.gmra.mxu0 %v6874_v36  ;;  %944 = vmatmul.mubr.f32.vlgmr.msra.gmra.mxu1 %v6874_v36 }
  0xe3   : > { %981 = vmatpush1.msra.mxu0 %v5561_v38  ;;  %1118 = vmatpush1.msra.mxu1 %v487_v39  ;;  %v7087_v38 = vpop.f32.mrf.mxu0  ;;  %v410_v39 = vld [vmem:[%s11363_s2 + $0x68] sm:$0xff] }
  0xe4   : > { %982 = vmatprep.subr.mxu0 %v5556_v40  ;;  %1119 = vmatprep.subr.mxu1 %v482_v41  ;;  %v6907_v46 = vpop.f32.mrf.mxu1  ;;  %v5483_v40 = vld [vmem:[%s11363_s2 + $0x3e0] sm:$0xff] }
  0xe5   : > { %983 = vmatpush1.msra.mxu0 %v5555_v43  ;;  %1120 = vmatpush1.msra.mxu1 %v481_v44  ;;  %v409_v41 = vld [vmem:[%s11363_s2 + $0x60] sm:$0xff]  ;;  %v5478_v43 = vld [vmem:[%s11363_s2 + $0x3b8] sm:$0xff] }
  0xe6   : > { %5578 = vmatprep.mubr.msk.f32.mxu0 %vm740_vm3, %v6907_v46  ;;  %984 = vmatprep.subr.mxu0 %v5550_v45  ;;  %v6920_v50 = vpop.f32.mrf.mxu1  ;;  %v404_v44 = vld [vmem:[%s11363_s2 + $0x38] sm:$0xff]  ;;  %v5477_v45 = vld [vmem:[%s11363_s2 + $0x3b0] sm:$0xff] }
  0xe7   : > { %1121 = vmatprep.subr.mxu1 %v476_v47  ;;  %849 = vmatmul.mubr.f32.gmra.mxu0 %v6894_v42  ;;  %v7110_v47 = vpop.f32.mrf.mxu0 }
  0xe8   : > { %985 = vmatpush1.msra.mxu0 %v5549_v48  ;;  %1122 = vmatpush1.msra.mxu1 %v475_v49  ;;  %v6935_v55 = vpop.f32.mrf.mxu1  ;;  %v403_v48 = vld [vmem:[%s11363_s2 + $0x30] sm:$0xff]  ;;  %v5472_v49 = vld [vmem:[%s11363_s2 + $0x388] sm:$0xff] }
  0xe9   : > { %986 = vmatprep.subr.mxu0 %v5544_v51  ;;  %1123 = vmatprep.subr.mxu1 %v470_v52  ;;  %v398_v51 = vld [vmem:[%s11363_s2 + $0x8] sm:$0xff]  ;;  %v5471_v52 = vld [vmem:[%s11363_s2 + $0x380] sm:$0xff] }
  0xea   : > { %987 = vmatpush1.msra.mxu0 %v5543_v53  ;;  %1124 = vmatpush1.msra.mxu1 %v469_v54  ;;  %v6943_v58 = vpop.f32.mrf.mxu1  ;;  %v397_v53 = vld [vmem:[%s11363_s2] sm:$0xff]  ;;  %v5574_v54 = vld [vmem:[%s11363_s2 + $0x6b8] sm:$0x3] }
  0xeb   : > { %5579 = vmatprep.mubr.msk.f32.mxu0 %vm740_vm3, %v6935_v55  ;;  %988 = vmatprep.subr.mxu0 %v5538_v56  ;;  %v500_v56 = vld [vmem:[%s11363_s2 + $0x338] sm:$0x3] }
  0xec   : > { %1125 = vmatprep.subr.mxu1 %v464_v57  ;;  %855 = vmatmul.mubr.f32.gmra.mxu0 %v6920_v50  ;;  %v6960_v63 = vpop.f32.mrf.mxu1  ;;  %v5573_v57 = vld [vmem:[%s11363_s2 + $0x6b0] sm:$0x3] }
  0xed   : > { %989 = vmatpush1.msra.mxu0 %v5537_v59  ;;  %1126 = vmatpush1.msra.mxu1 %v463_v60  ;;  %v7137_v59 = vpop.f32.mrf.mxu0  ;;  %v499_v60 = vld [vmem:[%s11363_s2 + $0x330] sm:$0x3] }
  0xee   : > { %990 = vmatprep.subr.mxu0 %v5532_v61  ;;  %1127 = vmatprep.subr.mxu1 %v458_v62  ;;  %v6971_v4 = vpop.f32.mrf.mxu1  ;;  %v5568_v61 = vld [vmem:[%s11363_s2 + $0x688] sm:$0xff] }
  0xef   : > { %5586 = vmatprep.mubr.msk.f32.mxu1 %vm740_vm3, %v6907_v46  ;;  %991 = vmatpush1.msra.mxu0 %v5531_v1  ;;  %v494_v62 = vld [vmem:[%s11363_s2 + $0x308] sm:$0xff]  ;;  %v5567_v1 = vld [vmem:[%s11363_s2 + $0x680] sm:$0xff] }
  0xf0   : > { %1128 = vmatpush1.msra.mxu1 %v457_v2  ;;  %5580 = vmatprep.mubr.msk.f32.mxu0 %vm740_vm3, %v6960_v63  ;;  %v6993_v10 = vpop.f32.mrf.mxu1  ;;  %v493_v2 = vld [vmem:[%s11363_s2 + $0x300] sm:$0xff] }
  0xf1   : > { %950 = vmatmul.mubr.f32.gmra.mxu1 %v6894_v42  ;;  %992 = vmatprep.subr.mxu0 %v5526_v3  ;;  %v7158_v3 = vpop.f32.mrf.mxu0 }
  0xf2   : > { %1129 = vmatprep.subr.mxu1 %v452_v5  ;;  %861 = vmatmul.mubr.f32.gmra.mxu0 %v6943_v58  ;;  %v7010_v15 = vpop.f32.mrf.mxu1  ;;  %v490_v5 = vld [vmem:[%s11363_s2 + $0x2e8] sm:$0xff] }
  0xf3   : > { %993 = vmatpush1.msra.mxu0 %v5525_v6  ;;  %1130 = vmatpush1.msra.mxu1 %v451_v7  ;;  %v492_v6 = vld [vmem:[%s11363_s2 + $0x2f8] sm:$0xff]  ;;  %v489_v7 = vld [vmem:[%s11363_s2 + $0x2e0] sm:$0xff] }
  0xf4   : > { %994 = vmatprep.subr.mxu0 %v5520_v8  ;;  %1131 = vmatprep.subr.mxu1 %v446_v9  ;;  %v7031_v21 = vpop.f32.mrf.mxu1  ;;  %v491_v8 = vld [vmem:[%s11363_s2 + $0x2f0] sm:$0xff]  ;;  %v484_v9 = vld [vmem:[%s11363_s2 + $0x2b8] sm:$0xff] }
  0xf5   : > { %5587 = vmatprep.mubr.msk.f32.mxu1 %vm740_vm3, %v6935_v55  ;;  %995 = vmatpush1.msra.mxu0 %v5519_v11  ;;  %v486_v11 = vld [vmem:[%s11363_s2 + $0x2c8] sm:$0xff] }
  0xf6   : > { %1132 = vmatpush1.msra.mxu1 %v445_v12  ;;  %5581 = vmatprep.mubr.msk.f32.mxu0 %vm740_vm3, %v6993_v10  ;;  %v7182_v12 = vpop.f32.mrf.mxu0 }
  0xf7   : > { %956 = vmatmul.mubr.f32.gmra.mxu1 %v6920_v50  ;;  %996 = vmatprep.subr.mxu0 %v5514_v13  ;;  %v485_v13 = vld [vmem:[%s11363_s2 + $0x2c0] sm:$0xff] }
  0xf8   : > { %1133 = vmatprep.subr.mxu1 %v440_v14  ;;  %867 = vmatmul.mubr.f32.gmra.mxu0 %v6971_v4  ;;  %v478_v14 = vld [vmem:[%s11363_s2 + $0x288] sm:$0xff] }
  0xf9   : > { %997 = vmatpush1.msra.mxu0 %v5513_v16  ;;  %1134 = vmatpush1.msra.mxu1 %v439_v17  ;;  %v477_v16 = vld [vmem:[%s11363_s2 + $0x280] sm:$0xff]  ;;  %v7203_v17 = vpop.f32.mrf.mxu0 }
  0xfa   : > { %998 = vmatprep.subr.mxu0 %v5508_v18  ;;  %1135 = vmatprep.subr.mxu1 %v434_v19  ;;  %v479_v18 = vld [vmem:[%s11363_s2 + $0x290] sm:$0xff]  ;;  %v472_v19 = vld [vmem:[%s11363_s2 + $0x258] sm:$0xff] }
  0xfb   : > { %5588 = vmatprep.mubr.msk.f32.mxu1 %vm740_vm3, %v6960_v63  ;;  %999 = vmatpush1.msra.mxu0 %v5507_v20  ;;  %v474_v20 = vld [vmem:[%s11363_s2 + $0x268] sm:$0xff] }
  0xfc   : > { %1136 = vmatpush1.msra.mxu1 %v433_v22  ;;  %5582 = vmatprep.mubr.msk.f32.mxu0 %vm740_vm3, %v7031_v21  ;;  %v473_v22 = vld [vmem:[%s11363_s2 + $0x260] sm:$0xff] }
  0xfd   : > { %962 = vmatmul.mubr.f32.gmra.mxu1 %v6943_v58  ;;  %1000 = vmatprep.subr.mxu0 %v5502_v23  ;;  %v7224_v23 = vpop.f32.mrf.mxu0 }
  0xfe   : > { %1137 = vmatprep.subr.mxu1 %v428_v24  ;;  %873 = vmatmul.mubr.f32.gmra.mxu0 %v7010_v15  ;;  %v468_v24 = vld [vmem:[%s11363_s2 + $0x238] sm:$0xff] }
  0xff   : > { %1001 = vmatpush1.msra.mxu0 %v5501_v25  ;;  %1138 = vmatpush1.msra.mxu1 %v427_v26  ;;  %v465_v25 = vld [vmem:[%s11363_s2 + $0x220] sm:$0xff]  ;;  %v467_v26 = vld [vmem:[%s11363_s2 + $0x230] sm:$0xff] }
 0x100   : > { %1002 = vmatprep.subr.mxu0 %v5496_v27  ;;  %5593 = vmatprep.mubr.msk.f32.mxu0 %vm740_vm3, %v6876_v37  ;;  %v5484_v37 = vld [vmem:[%s11363_s2 + $0x3e8] sm:$0xff]  ;;  %v460_v27 = vld [vmem:[%s11363_s2 + $0x1f8] sm:$0xff] }
 0x101   : > { %1139 = vmatprep.subr.mxu1 %v422_v28  ;;  %5589 = vmatprep.mubr.msk.f32.mxu1 %vm740_vm3, %v6993_v10  ;;  %v462_v28 = vld [vmem:[%s11363_s2 + $0x208] sm:$0xff] }
 0x102   : > { %1003 = vmatpush1.msra.mxu0 %v5495_v30  ;;  %1140 = vmatpush1.msra.mxu1 %v421_v31  ;;  %v7248_v30 = vpop.f32.mrf.mxu0  ;;  %v461_v31 = vld [vmem:[%s11363_s2 + $0x200] sm:$0xff] }
 0x103   : > { %968 = vmatmul.mubr.f32.gmra.mxu1 %v6971_v4  ;;  %1004 = vmatprep.subr.mxu0 %v5490_v32  ;;  %v454_v32 = vld [vmem:[%s11363_s2 + $0x1c8] sm:$0xff] }
 0x104   : > { %1141 = vmatprep.subr.mxu1 %v416_v33  ;;  %1005 = vmatpush1.msra.mxu0 %v5489_v34  ;;  %v453_v33 = vld [vmem:[%s11363_s2 + $0x1c0] sm:$0xff]  ;;  %v7269_v34 = vpop.f32.mrf.mxu0 }
 0x105   : > { %1142 = vmatpush1.msra.mxu1 %v415_v35  ;;  %1006 = vmatprep.subr.mxu0 %v5484_v37  ;;  %v455_v35 = vld [vmem:[%s11363_s2 + $0x1d0] sm:$0xff]  ;;  %v448_v37 = vld [vmem:[%s11363_s2 + $0x198] sm:$0xff] }
 0x106   : > { %1143 = vmatprep.subr.mxu1 %v410_v39  ;;  %5590 = vmatprep.mubr.msk.f32.mxu1 %vm740_vm3, %v7031_v21  ;;  %v450_v39 = vld [vmem:[%s11363_s2 + $0x1a8] sm:$0xff] }
 0x107   : > { %1007 = vmatpush1.msra.mxu0 %v5483_v40  ;;  %1144 = vmatpush1.msra.mxu1 %v409_v41  ;;  %v449_v40 = vld [vmem:[%s11363_s2 + $0x1a0] sm:$0xff]  ;;  %v7290_v41 = vpop.f32.mrf.mxu0 }
 0x108   : > { %974 = vmatmul.mubr.f32.gmra.mxu1 %v7010_v15  ;;  %1008 = vmatprep.subr.mxu0 %v5478_v43  ;;  %v444_v43 = vld [vmem:[%s11363_s2 + $0x178] sm:$0xff] }
 0x109   : > { %1145 = vmatprep.subr.mxu1 %v404_v44  ;;  %1009 = vmatpush1.msra.mxu0 %v5477_v45  ;;  %v441_v44 = vld [vmem:[%s11363_s2 + $0x160] sm:$0xff]  ;;  %v443_v45 = vld [vmem:[%s11363_s2 + $0x170] sm:$0xff] }
 0x10a   : > { %1146 = vmatpush1.msra.mxu1 %v403_v48  ;;  %1010 = vmatprep.subr.mxu0 %v5472_v49  ;;  %v436_v48 = vld [vmem:[%s11363_s2 + $0x138] sm:$0xff]  ;;  %v7311_v49 = vpop.f32.mrf.mxu0 }
 0x10b   : > { %1147 = vmatprep.subr.mxu1 %v398_v51  ;;  %1011 = vmatpush1.msra.mxu0 %v5471_v52  ;;  %v438_v51 = vld [vmem:[%s11363_s2 + $0x148] sm:$0xff]  ;;  %v437_v52 = vld [vmem:[%s11363_s2 + $0x140] sm:$0xff] }
 0x10c   : > { %1148 = vmatpush1.msra.mxu1 %v397_v53  ;;  %5591 = vmatprep.subr.msk.mxu0 %vm759_vm2, %v5574_v54  ;;  %v430_v53 = vld [vmem:[%s11363_s2 + $0x108] sm:$0xff]  ;;  %v429_v54 = vld [vmem:[%s11363_s2 + $0x100] sm:$0xff] }
 0x10d   : > { %5599 = vmatprep.subr.msk.mxu1 %vm759_vm2, %v500_v56  ;;  %5592 = vmatpush2.msk.msra.mxu0 %vm759_vm2, %v5573_v57  ;;  %v431_v56 = vld [vmem:[%s11363_s2 + $0x110] sm:$0xff]  ;;  %v424_v57 = vld [vmem:[%s11363_s2 + $0xd8] sm:$0xff] }
 0x10e   : > { %5600 = vmatpush2.msk.msra.mxu1 %vm759_vm2, %v499_v60  ;;  %1042 = vmatprep.subr.mxu0 %v5568_v61  ;;  %v426_v60 = vld [vmem:[%s11363_s2 + $0xe8] sm:$0xff]  ;;  %v425_v61 = vld [vmem:[%s11363_s2 + $0xe0] sm:$0xff] }
 0x10f   : > { %1179 = vmatprep.subr.mxu1 %v494_v62  ;;  %5601 = vmatprep.mubr.msk.f32.mxu1 %vm740_vm3, %v7087_v38  ;;  %v418_v62 = vld [vmem:[%s11363_s2 + $0xa8] sm:$0xff] }
 0x110   : > { %1043 = vmatpush2.msra.mxu0 %v5567_v1  ;;  %1180 = vmatpush2.msra.mxu1 %v493_v2  ;;  %v420_v1 = vld [vmem:[%s11363_s2 + $0xb8] sm:$0xff]  ;;  %v417_v2 = vld [vmem:[%s11363_s2 + $0xa0] sm:$0xff] }
 0x111   : > { %1045 = vmatmul.mubr.f32.vlgmr.msra.gmra.mxu0 %v6874_v36  ;;  %1182 = vmatmul.mubr.f32.vlgmr.msra.gmra.mxu1 %v7060_v29  ;;  %v483_v36 = vld [vmem:[%s11363_s2 + $0x2b0] sm:$0xff] }
 0x112   : > { %1218 = vmatprep.subr.mxu0 %v490_v5  ;;  %1319 = vmatprep.subr.mxu1 %v492_v6  ;;  %v419_v5 = vld [vmem:[%s11363_s2 + $0xb0] sm:$0xff]  ;;  %v414_v6 = vld [vmem:[%s11363_s2 + $0x88] sm:$0xff] }
 0x113   : > { %5594 = vmatprep.mubr.msk.f32.mxu0 %vm740_vm3, %v6907_v46  ;;  %1219 = vmatpush1.msra.mxu0 %v489_v7  ;;  %v480_v46 = vld [vmem:[%s11363_s2 + $0x298] sm:$0xff]  ;;  %v411_v7 = vld [vmem:[%s11363_s2 + $0x70] sm:$0xff] }
 0x114   : > { %1320 = vmatpush1.msra.mxu1 %v491_v8  ;;  %1220 = vmatprep.subr.mxu0 %v484_v9  ;;  %v413_v8 = vld [vmem:[%s11363_s2 + $0x80] sm:$0xff]  ;;  %v406_v9 = vld [vmem:[%s11363_s2 + $0x48] sm:$0xff] }
 0x115   : > { %1321 = vmatprep.subr.mxu1 %v486_v11  ;;  %5602 = vmatprep.mubr.msk.f32.mxu1 %vm740_vm3, %v7137_v59  ;;  %v408_v11 = vld [vmem:[%s11363_s2 + $0x58] sm:$0xff] }
 0x116   : > { %1221 = vmatpush1.msra.mxu0 %v483_v36  ;;  %1322 = vmatpush1.msra.mxu1 %v485_v13  ;;  %v405_v36 = vld [vmem:[%s11363_s2 + $0x40] sm:$0xff]  ;;  %v407_v13 = vld [vmem:[%s11363_s2 + $0x50] sm:$0xff] }
 0x117   : > { %1051 = vmatmul.mubr.f32.gmra.mxu0 %v6894_v42  ;;  %1188 = vmatmul.mubr.f32.gmra.mxu1 %v7110_v47  ;;  %v471_v42 = vld [vmem:[%s11363_s2 + $0x250] sm:$0xff] }
 0x118   : > { %1222 = vmatprep.subr.mxu0 %v478_v14  ;;  %1323 = vmatprep.subr.mxu1 %v480_v46  ;;  %v400_v14 = vld [vmem:[%s11363_s2 + $0x18] sm:$0xff]  ;;  %v402_v46 = vld [vmem:[%s11363_s2 + $0x28] sm:$0xff] }
 0x119   : > { %5595 = vmatprep.mubr.msk.f32.mxu0 %vm740_vm3, %v6935_v55  ;;  %1223 = vmatpush1.msra.mxu0 %v477_v16  ;;  %v466_v55 = vld [vmem:[%s11363_s2 + $0x228] sm:$0xff]  ;;  %v399_v16 = vld [vmem:[%s11363_s2 + $0x10] sm:$0xff] }
 0x11a   : > { %1324 = vmatpush1.msra.mxu1 %v479_v18  ;;  %1224 = vmatprep.subr.mxu0 %v472_v19  ;;  %v401_v18 = vld [vmem:[%s11363_s2 + $0x20] sm:$0xff]  ;;  %v502_v19 = vld [vmem:[%s11363_s2 + $0x348] sm:$0x3] }
 0x11b   : > { %1325 = vmatprep.subr.mxu1 %v474_v20  ;;  %5603 = vmatprep.mubr.msk.f32.mxu1 %vm740_vm3, %v7182_v12  ;;  %v504_v20 = vld [vmem:[%s11363_s2 + $0x358] sm:$0x3] }
 0x11c   : > { %1225 = vmatpush1.msra.mxu0 %v471_v42  ;;  %1326 = vmatpush1.msra.mxu1 %v473_v22  ;;  %v501_v42 = vld [vmem:[%s11363_s2 + $0x340] sm:$0x3]  ;;  %v503_v22 = vld [vmem:[%s11363_s2 + $0x350] sm:$0x3] }
 0x11d   : > { %1057 = vmatmul.mubr.f32.gmra.mxu0 %v6920_v50  ;;  %1194 = vmatmul.mubr.f32.gmra.mxu1 %v7158_v3  ;;  %v459_v50 = vld [vmem:[%s11363_s2 + $0x1f0] sm:$0xff] }
 0x11e   : > { %1226 = vmatprep.subr.mxu0 %v466_v55  ;;  %1327 = vmatprep.subr.mxu1 %v468_v24  ;;  %v496_v55 = vld [vmem:[%s11363_s2 + $0x318] sm:$0xff]  ;;  %v498_v24 = vld [vmem:[%s11363_s2 + $0x328] sm:$0xff] }
 0x11f   : > { %5596 = vmatprep.mubr.msk.f32.mxu0 %vm740_vm3, %v6960_v63  ;;  %1227 = vmatpush1.msra.mxu0 %v465_v25  ;;  %v456_v63 = vld [vmem:[%s11363_s2 + $0x1d8] sm:$0xff]  ;;  %v495_v25 = vld [vmem:[%s11363_s2 + $0x310] sm:$0xff] }
 0x120   : > { %1328 = vmatpush1.msra.mxu1 %v467_v26  ;;  %1228 = vmatprep.subr.mxu0 %v460_v27  ;;  %v497_v26 = vld [vmem:[%s11363_s2 + $0x320] sm:$0xff]  ;;  %v7435_v27 = vld [vmem:[%s6572_s26 + $0x58] sm:$0x3f] }
 0x121   : > { %1329 = vmatprep.subr.mxu1 %v462_v28  ;;  %5604 = vmatprep.mubr.msk.f32.mxu1 %vm740_vm3, %v7224_v23  ;;  %v7444_v28 = vld [vmem:[%s6572_s26 + $0x50] sm:$0x3f] }
 0x122   : > { %1229 = vmatpush1.msra.mxu0 %v459_v50  ;;  %1330 = vmatpush1.msra.mxu1 %v461_v31  ;;  %v7449_v50 = vld [vmem:[%s6572_s26 + $0x48] sm:$0xff] }
 0x123   : > { %1063 = vmatmul.mubr.f32.gmra.mxu0 %v6943_v58  ;;  %1200 = vmatmul.mubr.f32.gmra.mxu1 %v7203_v17  ;;  %v447_v58 = vld [vmem:[%s11363_s2 + $0x190] sm:$0xff]  ;;  %v7505_v31 = vld [vmem:[%s6572_s26 + $0x8] sm:$0xff] }
 0x124   : > { %1230 = vmatprep.subr.mxu0 %v454_v32  ;;  %1331 = vmatprep.subr.mxu1 %v456_v63  ;;  %v7511_v32 = vld [vmem:[%s6572_s26] sm:$0xff]  ;;  %v5624_v63 = vld [vmem:[%s11362_s1 + $0x68] sm:$0xff] }
 0x125   : > { %5597 = vmatprep.mubr.msk.f32.mxu0 %vm740_vm3, %v6993_v10  ;;  %1231 = vmatpush1.msra.mxu0 %v453_v33  ;;  %v442_v10 = vld [vmem:[%s11363_s2 + $0x168] sm:$0xff]  ;;  %v5625_v33 = vld [vmem:[%s11362_s1 + $0x70] sm:$0xff] }
 0x126   : > { %1332 = vmatpush1.msra.mxu1 %v455_v35  ;;  %1232 = vmatprep.subr.mxu0 %v448_v37  ;;  %v5627_v35 = vld [vmem:[%s11362_s1 + $0x80] sm:$0xff]  ;;  %v5628_v37 = vld [vmem:[%s11362_s1 + $0x88] sm:$0x3f] }
 0x127   : > { %1333 = vmatprep.subr.mxu1 %v450_v39  ;;  %5605 = vmatprep.mubr.msk.f32.mxu1 %vm740_vm3, %v7269_v34  ;;  %v5728_v39 = vld [vmem:[%s11363_s2 + $0x998] sm:$0xff] }
 0x128   : > { %1233 = vmatpush1.msra.mxu0 %v447_v58  ;;  %1334 = vmatpush1.msra.mxu1 %v449_v40  ;;  %v5727_v58 = vld [vmem:[%s11363_s2 + $0x990] sm:$0xff]  ;;  %v5730_v40 = vld [vmem:[%s11363_s2 + $0x9a8] sm:$0xff] }
 0x129   : > { %1069 = vmatmul.mubr.f32.gmra.mxu0 %v6971_v4  ;;  %1206 = vmatmul.mubr.f32.gmra.mxu1 %v7248_v30  ;;  %v435_v4 = vld [vmem:[%s11363_s2 + $0x130] sm:$0xff] }
 0x12a   : > { %1234 = vmatprep.subr.mxu0 %v442_v10  ;;  %1335 = vmatprep.subr.mxu1 %v444_v43  ;;  %v5729_v10 = vld [vmem:[%s11363_s2 + $0x9a0] sm:$0xff] }
 0x12b   : > { %5598 = vmatprep.mubr.msk.f32.mxu0 %vm740_vm3, %v7031_v21  ;;  %1235 = vmatpush1.msra.mxu0 %v441_v44  ;;  %v432_v21 = vld [vmem:[%s11363_s2 + $0x118] sm:$0xff]  ;;  %v5721_v43 = vld [vmem:[%s11363_s2 + $0x960] sm:$0xff] }
 0x12c   : > { %1336 = vmatpush1.msra.mxu1 %v443_v45  ;;  %1236 = vmatprep.subr.mxu0 %v436_v48  ;;  %v5724_v44 = vld [vmem:[%s11363_s2 + $0x978] sm:$0xff]  ;;  %v5723_v48 = vld [vmem:[%s11363_s2 + $0x970] sm:$0xff] }
 0x12d   : > { %1337 = vmatprep.subr.mxu1 %v438_v51  ;;  %5606 = vmatprep.mubr.msk.f32.mxu1 %vm740_vm3, %v7311_v49  ;;  %v5716_v45 = vld [vmem:[%s11363_s2 + $0x938] sm:$0xff]  ;;  %v5718_v51 = vld [vmem:[%s11363_s2 + $0x948] sm:$0xff] }
 0x12e   : > { %1237 = vmatpush1.msra.mxu0 %v435_v4  ;;  %1338 = vmatpush1.msra.mxu1 %v437_v52  ;;  %v5710_v4 = vld [vmem:[%s11363_s2 + $0x908] sm:$0xff]  ;;  %v5717_v52 = vld [vmem:[%s11363_s2 + $0x940] sm:$0xff] }
 0x12f   : > { %1075 = vmatmul.mubr.f32.gmra.mxu0 %v7010_v15  ;;  %1212 = vmatmul.mubr.f32.gmra.mxu1 %v7290_v41  ;;  %v423_v15 = vld [vmem:[%s11363_s2 + $0xd0] sm:$0xff] }
 0x130   : > { %1238 = vmatprep.subr.mxu0 %v430_v53  ;;  %1339 = vmatprep.subr.mxu1 %v432_v21  ;;  %v5712_v53 = vld [vmem:[%s11363_s2 + $0x918] sm:$0xff]  ;;  %v5709_v21 = vld [vmem:[%s11363_s2 + $0x900] sm:$0xff] }
 0x131   : > { %1239 = vmatpush1.msra.mxu0 %v429_v54  ;;  %5609 = vmatprep.mubr.msk.f32.mxu0 %vm740_vm3, %v7087_v38  ;;  %v5711_v54 = vld [vmem:[%s11363_s2 + $0x910] sm:$0xff] }
 0x132   : > { %1340 = vmatpush1.msra.mxu1 %v431_v56  ;;  %5617 = vmatprep.mubr.msk.f32.mxu1 %vm740_vm3, %v7087_v38  ;;  %v412_v38 = vld [vmem:[%s11363_s2 + $0x78] sm:$0xff] }
 0x133   : > { %1240 = vmatprep.subr.mxu0 %v424_v57  ;;  %1341 = vmatprep.subr.mxu1 %v426_v60  ;;  %v5704_v56 = vld [vmem:[%s11363_s2 + $0x8d8] sm:$0xff]  ;;  %v5703_v57 = vld [vmem:[%s11363_s2 + $0x8d0] sm:$0xff]  ;;  %v5706_v60 = vld [vmem:[%s11363_s2 + $0x8e8] sm:$0xff] }
 0x134   : > { %1241 = vmatpush1.msra.mxu0 %v423_v15  ;;  %1342 = vmatpush1.msra.mxu1 %v425_v61  ;;  %v5698_v15 = vld [vmem:[%s11363_s2 + $0x8a8] sm:$0xff]  ;;  %v5705_v61 = vld [vmem:[%s11363_s2 + $0x8e0] sm:$0xff] }
 0x135   : > { %1242 = vmatprep.subr.mxu0 %v418_v62  ;;  %1343 = vmatprep.subr.mxu1 %v420_v1  ;;  %v5697_v62 = vld [vmem:[%s11363_s2 + $0x8a0] sm:$0xff]  ;;  %v5700_v1 = vld [vmem:[%s11363_s2 + $0x8b8] sm:$0xff] }
 0x136   : > { %1243 = vmatpush1.msra.mxu0 %v417_v2  ;;  %1344 = vmatpush1.msra.mxu1 %v419_v5  ;;  %v5692_v2 = vld [vmem:[%s11363_s2 + $0x878] sm:$0xff]  ;;  %v5699_v5 = vld [vmem:[%s11363_s2 + $0x8b0] sm:$0xff] }
 0x137   : > { %1244 = vmatprep.subr.mxu0 %v412_v38  ;;  %1345 = vmatprep.subr.mxu1 %v414_v6  ;;  %v5691_v38 = vld [vmem:[%s11363_s2 + $0x870] sm:$0xff]  ;;  %v5694_v6 = vld [vmem:[%s11363_s2 + $0x888] sm:$0xff] }
 0x138   : > { %1245 = vmatpush1.msra.mxu0 %v411_v7  ;;  %1346 = vmatpush1.msra.mxu1 %v413_v8  ;;  %v5686_v7 = vld [vmem:[%s11363_s2 + $0x848] sm:$0xff]  ;;  %v5693_v8 = vld [vmem:[%s11363_s2 + $0x880] sm:$0xff] }
 0x139   : > { %1246 = vmatprep.subr.mxu0 %v406_v9  ;;  %1347 = vmatprep.subr.mxu1 %v408_v11  ;;  %v5685_v9 = vld [vmem:[%s11363_s2 + $0x840] sm:$0xff]  ;;  %v5688_v11 = vld [vmem:[%s11363_s2 + $0x858] sm:$0xff] }
 0x13a   : > { %1247 = vmatpush1.msra.mxu0 %v405_v36  ;;  %1348 = vmatpush1.msra.mxu1 %v407_v13  ;;  %v5680_v36 = vld [vmem:[%s11363_s2 + $0x818] sm:$0xff]  ;;  %v5687_v13 = vld [vmem:[%s11363_s2 + $0x850] sm:$0xff] }
 0x13b   : > { %1248 = vmatprep.subr.mxu0 %v400_v14  ;;  %1349 = vmatprep.subr.mxu1 %v402_v46  ;;  %v5679_v14 = vld [vmem:[%s11363_s2 + $0x810] sm:$0xff]  ;;  %v5682_v46 = vld [vmem:[%s11363_s2 + $0x828] sm:$0xff] }
 0x13c   : > { %1249 = vmatpush1.msra.mxu0 %v399_v16  ;;  %1350 = vmatpush1.msra.mxu1 %v401_v18  ;;  %v5674_v16 = vld [vmem:[%s11363_s2 + $0x7e8] sm:$0xff]  ;;  %v5681_v18 = vld [vmem:[%s11363_s2 + $0x820] sm:$0xff] }
 0x13d   : > { %5607 = vmatprep.subr.msk.mxu0 %vm759_vm2, %v502_v19  ;;  %5615 = vmatprep.subr.msk.mxu1 %vm759_vm2, %v504_v20  ;;  %v5673_v19 = vld [vmem:[%s11363_s2 + $0x7e0] sm:$0xff]  ;;  %v5676_v20 = vld [vmem:[%s11363_s2 + $0x7f8] sm:$0xff] }
 0x13e   : > { %5608 = vmatpush2.msk.msra.mxu0 %vm759_vm2, %v501_v42  ;;  %5616 = vmatpush2.msk.msra.mxu1 %vm759_vm2, %v503_v22  ;;  %v5668_v42 = vld [vmem:[%s11363_s2 + $0x7b8] sm:$0xff]  ;;  %v5675_v22 = vld [vmem:[%s11363_s2 + $0x7f0] sm:$0xff] }
 0x13f   : > { %1280 = vmatprep.subr.mxu0 %v496_v55  ;;  %1381 = vmatprep.subr.mxu1 %v498_v24  ;;  %v5667_v55 = vld [vmem:[%s11363_s2 + $0x7b0] sm:$0xff]  ;;  %v5670_v24 = vld [vmem:[%s11363_s2 + $0x7c8] sm:$0xff] }
 0x140   : > { %1281 = vmatpush2.msra.mxu0 %v495_v25  ;;  %1382 = vmatpush2.msra.mxu1 %v497_v26  ;;  %v5662_v25 = vld [vmem:[%s11363_s2 + $0x788] sm:$0xff]  ;;  %v5669_v26 = vld [vmem:[%s11363_s2 + $0x7c0] sm:$0xff] }
 0x141   : > { %1283 = vmatmul.mubr.f32.vlgmr.msra.gmra.mxu0 %v7060_v29  ;;  %1384 = vmatmul.mubr.f32.vlgmr.msra.gmra.mxu1 %v7060_v29  ;;  %v7459_v29 = vld [vmem:[%s6572_s26 + $0x40] sm:$0xff] }
 0x142   : > { %5629 = vmatprep.subr.msk.mxu1 %vm289_vm0, %v7435_v27  ;;  %5610 = vmatprep.mubr.msk.f32.mxu0 %vm740_vm3, %v7137_v59 }
 0x143   : > { %5618 = vmatprep.mubr.msk.f32.mxu1 %vm740_vm3, %v7137_v59  ;;  %5630 = vmatpush1.msk.msra.mxu1 %vm289_vm0, %v7444_v28  ;;  %v7463_v59 = vld [vmem:[%s6572_s26 + $0x38] sm:$0xff] }
 0x144   : > { %1467 = vmatprep.subr.mxu1 %v7449_v50  ;;  %1792 = vmatprep.subr.mxu0 %v5730_v40  ;;  %v5649_v40 = vld [vmem:[%s11363_s2 + $0x720] sm:$0xff] }
 0x145   : > { %1289 = vmatmul.mubr.f32.gmra.mxu0 %v7110_v47  ;;  %1390 = vmatmul.mubr.f32.gmra.mxu1 %v7110_v47  ;;  %v7473_v47 = vld [vmem:[%s6572_s26 + $0x30] sm:$0xff] }
 0x146   : > { %5611 = vmatprep.mubr.msk.f32.mxu0 %vm740_vm3, %v7182_v12  ;;  %5619 = vmatprep.mubr.msk.f32.mxu1 %vm740_vm3, %v7182_v12  ;;  %v7477_v12 = vld [vmem:[%s6572_s26 + $0x28] sm:$0xff] }
 0x147   : > { %1468 = vmatpush1.msra.mxu1 %v7459_v29  ;;  %1793 = vmatpush1.msra.mxu0 %v5729_v10  ;;  %v5644_v10 = vld [vmem:[%s11363_s2 + $0x6f8] sm:$0xff] }
 0x148   : > { %1469 = vmatprep.subr.mxu1 %v7463_v59  ;;  %1794 = vmatprep.subr.mxu0 %v5724_v44  ;;  %v5643_v44 = vld [vmem:[%s11363_s2 + $0x6f0] sm:$0xff] }
 0x149   : > { %1295 = vmatmul.mubr.f32.gmra.mxu0 %v7158_v3  ;;  %1396 = vmatmul.mubr.f32.gmra.mxu1 %v7158_v3  ;;  %v7487_v3 = vld [vmem:[%s6572_s26 + $0x20] sm:$0xff] }
 0x14a   : > { %5612 = vmatprep.mubr.msk.f32.mxu0 %vm740_vm3, %v7224_v23  ;;  %5620 = vmatprep.mubr.msk.f32.mxu1 %vm740_vm3, %v7224_v23  ;;  %v7491_v23 = vld [vmem:[%s6572_s26 + $0x18] sm:$0xff] }
 0x14b   : > { %1470 = vmatpush1.msra.mxu1 %v7473_v47  ;;  %1795 = vmatpush1.msra.mxu0 %v5723_v48  ;;  %v5638_v48 = vld [vmem:[%s11363_s2 + $0x6c8] sm:$0xff] }
 0x14c   : > { %1471 = vmatprep.subr.mxu1 %v7477_v12  ;;  %1796 = vmatprep.subr.mxu0 %v5718_v51  ;;  %v5637_v51 = vld [vmem:[%s11363_s2 + $0x6c0] sm:$0xff] }
 0x14d   : > { %1301 = vmatmul.mubr.f32.gmra.mxu0 %v7203_v17  ;;  %1402 = vmatmul.mubr.f32.gmra.mxu1 %v7203_v17  ;;  %v7501_v17 = vld [vmem:[%s6572_s26 + $0x10] sm:$0xff] }
 0x14e   : > { %5613 = vmatprep.mubr.msk.f32.mxu0 %vm740_vm3, %v7269_v34  ;;  %5621 = vmatprep.mubr.msk.f32.mxu1 %vm740_vm3, %v7269_v34  ;;  %v5626_v34 = vld [vmem:[%s11362_s1 + $0x78] sm:$0xff] }
 0x14f   : > { %1472 = vmatpush1.msra.mxu1 %v7487_v3  ;;  %1797 = vmatpush1.msra.mxu0 %v5717_v52  ;;  %v5740_v52 = vld [vmem:[%s11363_s2 + $0x9f8] sm:$0x3] }
 0x150   : > { %1473 = vmatprep.subr.mxu1 %v7491_v23  ;;  %1798 = vmatprep.subr.mxu0 %v5712_v53  ;;  %v5639_v53 = vld [vmem:[%s11363_s2 + $0x6d0] sm:$0xff] }
 0x151   : > { %1307 = vmatmul.mubr.f32.gmra.mxu0 %v7248_v30  ;;  %1408 = vmatmul.mubr.f32.gmra.mxu1 %v7248_v30  ;;  %v5623_v30 = vld [vmem:[%s11362_s1 + $0x60] sm:$0xff] }
 0x152   : > { %5614 = vmatprep.mubr.msk.f32.mxu0 %vm740_vm3, %v7311_v49  ;;  %5622 = vmatprep.mubr.msk.f32.mxu1 %vm740_vm3, %v7311_v49  ;;  %v5715_v49 = vld [vmem:[%s11363_s2 + $0x930] sm:$0xff] }
 0x153   : > { %1474 = vmatpush1.msra.mxu1 %v7501_v17  ;;  %1799 = vmatpush1.msra.mxu0 %v5711_v54  ;;  %v5742_v54 = vld [vmem:[%s11363_s2 + $0xa08] sm:$0x3] }
 0x154   : > { %1475 = vmatprep.subr.mxu1 %v7505_v31  ;;  %1800 = vmatprep.subr.mxu0 %v5706_v60  ;;  %v5733_v60 = vld [vmem:[%s11363_s2 + $0x9c0] sm:$0xff] }
 0x155   : > { %1313 = vmatmul.mubr.f32.gmra.mxu0 %v7290_v41  ;;  %1414 = vmatmul.mubr.f32.gmra.mxu1 %v7290_v41  ;;  %v5722_v41 = vld [vmem:[%s11363_s2 + $0x968] sm:$0xff] }
 0x156   : > { %1476 = vmatpush1.msra.mxu1 %v7511_v32  ;;  %1509 = vmatprep.mubr.f32.mxu1 %v11368_v0 }
 0x157   : > { %1691 = vmatprep.subr.mxu1 %v5728_v39  ;;  %1801 = vmatpush1.msra.mxu0 %v5705_v61  ;;  %v5650_v39 = vld [vmem:[%s11363_s2 + $0x728] sm:$0xff]  ;;  %v5735_v61 = vld [vmem:[%s11363_s2 + $0x9d0] sm:$0xff] }
 0x158   : > { %1802 = vmatprep.subr.mxu0 %v5700_v1 }
 0x159   : > { %5631 = vmatmul.mubr.msk.f32.vlgmr.msra.gmra.mxu1 %vm270_vm1, %v5623_v30  ;;  %1803 = vmatpush1.msra.mxu0 %v5699_v5  ;;  %v5661_v30 = vld [vmem:[%s11363_s2 + $0x780] sm:$0xff] }
 0x15a   : > { %1515 = vmatprep.mubr.f32.mxu1 %v11368_v0  ;;  %1692 = vmatpush1.msra.mxu1 %v5727_v58  ;;  %v5657_v58 = vld [vmem:[%s11363_s2 + $0x760] sm:$0xff] }
 0x15b   : > { %1693 = vmatprep.subr.mxu1 %v5722_v41  ;;  %1804 = vmatprep.subr.mxu0 %v5694_v6  ;;  %v5652_v41 = vld [vmem:[%s11363_s2 + $0x738] sm:$0xff] }
 0x15c   : > { %1694 = vmatpush1.msra.mxu1 %v5721_v43  ;;  %1805 = vmatpush1.msra.mxu0 %v5693_v8  ;;  %v5651_v43 = vld [vmem:[%s11363_s2 + $0x730] sm:$0xff] }
 0x15d   : > { %5632 = vmatmul.mubr.msk.f32.gmra.mxu1 %vm270_vm1, %v5624_v63  ;;  %1695 = vmatprep.subr.mxu1 %v5716_v45  ;;  %v5664_v63 = vld [vmem:[%s11363_s2 + $0x798] sm:$0xff]  ;;  %v5646_v45 = vld [vmem:[%s11363_s2 + $0x708] sm:$0xff] }
 0x15e   : > { %1521 = vmatprep.mubr.f32.mxu1 %v11368_v0  ;;  %1696 = vmatpush1.msra.mxu1 %v5715_v49  ;;  %v5645_v49 = vld [vmem:[%s11363_s2 + $0x700] sm:$0xff] }
 0x15f   : > { %1697 = vmatprep.subr.mxu1 %v5710_v4  ;;  %1806 = vmatprep.subr.mxu0 %v5688_v11  ;;  %v5640_v4 = vld [vmem:[%s11363_s2 + $0x6d8] sm:$0xff] }
 0x160   : > { %1698 = vmatpush1.msra.mxu1 %v5709_v21  ;;  %1807 = vmatpush1.msra.mxu0 %v5687_v13  ;;  %v5739_v21 = vld [vmem:[%s11363_s2 + $0x9f0] sm:$0x3] }
 0x161   : > { %5633 = vmatmul.mubr.msk.f32.gmra.mxu1 %vm270_vm1, %v5625_v33  ;;  %1699 = vmatprep.subr.mxu1 %v5704_v56  ;;  %v5656_v33 = vld [vmem:[%s11363_s2 + $0x758] sm:$0xff]  ;;  %v5734_v56 = vld [vmem:[%s11363_s2 + $0x9c8] sm:$0xff] }
 0x162   : > { %1527 = vmatprep.mubr.f32.mxu1 %v11368_v0  ;;  %1700 = vmatpush1.msra.mxu1 %v5703_v57  ;;  %v5741_v57 = vld [vmem:[%s11363_s2 + $0xa00] sm:$0x3] }
 0x163   : > { %1701 = vmatprep.subr.mxu1 %v5698_v15  ;;  %1808 = vmatprep.subr.mxu0 %v5682_v46  ;;  %v5736_v15 = vld [vmem:[%s11363_s2 + $0x9d8] sm:$0xff] }
 0x164   : > { %1702 = vmatpush1.msra.mxu1 %v5697_v62  ;;  %1809 = vmatpush1.msra.mxu0 %v5681_v18  ;;  %v5732_v62 = vld [vmem:[%s11363_s2 + $0x9b8] sm:$0xff] }
 0x165   : > { %5634 = vmatmul.mubr.msk.f32.gmra.mxu1 %vm270_vm1, %v5626_v34  ;;  %1703 = vmatprep.subr.mxu1 %v5692_v2  ;;  %v5663_v34 = vld [vmem:[%s11363_s2 + $0x790] sm:$0xff] }
 0x166   : > { %1533 = vmatprep.mubr.f32.mxu1 %v11368_v0  ;;  %1704 = vmatpush1.msra.mxu1 %v5691_v38 }
 0x167   : > { %1705 = vmatprep.subr.mxu1 %v5686_v7  ;;  %1810 = vmatprep.subr.mxu0 %v5676_v20 }
 0x168   : > { %1706 = vmatpush1.msra.mxu1 %v5685_v9  ;;  %1811 = vmatpush1.msra.mxu0 %v5675_v22 }
 0x169   : > { %5635 = vmatmul.mubr.msk.f32.gmra.mxu1 %vm270_vm1, %v5627_v35  ;;  %1707 = vmatprep.subr.mxu1 %v5680_v36  ;;  %v5655_v35 = vld [vmem:[%s11363_s2 + $0x750] sm:$0xff] }
 0x16a   : > { %1539 = vmatprep.mubr.f32.mxu1 %v11368_v0  ;;  %1708 = vmatpush1.msra.mxu1 %v5679_v14 }
 0x16b   : > { %1709 = vmatprep.subr.mxu1 %v5674_v16  ;;  %1812 = vmatprep.subr.mxu0 %v5670_v24 }
 0x16c   : > { %1710 = vmatpush1.msra.mxu1 %v5673_v19  ;;  %1813 = vmatpush1.msra.mxu0 %v5669_v26 }
 0x16d   : > { %5636 = vmatmul.mubr.msk.f32.gmra.mxu1 %vm270_vm1, %v5628_v37  ;;  %1711 = vmatprep.subr.mxu1 %v5668_v42  ;;  %v5658_v37 = vld [vmem:[%s11363_s2 + $0x768] sm:$0xff] }
 0x16e   : > { %1712 = vmatpush1.msra.mxu1 %v5667_v55  ;;  %1814 = vmatprep.subr.mxu0 %v5664_v63 }
 0x16f   : > { %1713 = vmatprep.subr.mxu1 %v5662_v25  ;;  %1815 = vmatpush1.msra.mxu0 %v5663_v34 }
 0x170   : > { %1714 = vmatpush1.msra.mxu1 %v5661_v30  ;;  %1816 = vmatprep.subr.mxu0 %v5658_v37 }
 0x171   : > { %1715 = vmatprep.subr.mxu1 %v5656_v33  ;;  %1817 = vmatpush1.msra.mxu0 %v5657_v58 }
 0x172   : > { %1716 = vmatpush1.msra.mxu1 %v5655_v35  ;;  %1818 = vmatprep.subr.mxu0 %v5652_v41 }
 0x173   : > { %1717 = vmatprep.subr.mxu1 %v5650_v39  ;;  %1819 = vmatpush1.msra.mxu0 %v5651_v43 }
 0x174   : > { %1718 = vmatpush1.msra.mxu1 %v5649_v40  ;;  %1820 = vmatprep.subr.mxu0 %v5646_v45 }
 0x175   : > { %1719 = vmatprep.subr.mxu1 %v5644_v10  ;;  %1821 = vmatpush1.msra.mxu0 %v5645_v49 }
 0x176   : > { %1720 = vmatpush1.msra.mxu1 %v5643_v44  ;;  %1822 = vmatprep.subr.mxu0 %v5640_v4 }
 0x177   : > { %1721 = vmatprep.subr.mxu1 %v5638_v48  ;;  %1823 = vmatpush1.msra.mxu0 %v5639_v53 }
 0x178   : > { %1722 = vmatpush1.msra.mxu1 %v5637_v51  ;;  %5753 = vmatprep.subr.msk.mxu0 %vm759_vm2, %v5742_v54 }
 0x179   : > { %5745 = vmatprep.subr.msk.mxu1 %vm759_vm2, %v5740_v52  ;;  %5754 = vmatpush2.msk.msra.mxu0 %vm759_vm2, %v5741_v57 }
 0x17a   : > { %5746 = vmatpush2.msk.msra.mxu1 %vm759_vm2, %v5739_v21  ;;  %1854 = vmatprep.subr.mxu0 %v5736_v15 }
 0x17b   : > { %1753 = vmatprep.subr.mxu1 %v5734_v56  ;;  %1855 = vmatpush2.msra.mxu0 %v5735_v61 }
 0x17c   : > { %1754 = vmatpush2.msra.mxu1 %v5733_v60  ;;  %5775 = vmatprep.subr.msk.mxu0 %vm289_vm0, %v7435_v27 }
 0x17d   : > { %1893 = vmatprep.subr.mxu1 %v5732_v62 }
 0x1a2   : > { %v7769_v1 = vpop.f32.mrf.mxu1  ;;  %v844_v11 = vpop.f32.mrf.mxu0 }
 0x1a4   : > { %v7771_v2 = vpop.f32.mrf.mxu1  ;;  %v7787_v27 = vpop.f32.mrf.mxu0 }
 0x1a7   : > { %v850_v13 = vpop.f32.mrf.mxu0 }
 0x1a9   : > { %v7791_v46 = vpop.f32.mrf.mxu0 }
 0x1aa   : > { %11371 = vst [vmem:[#allocation2_spill] sm:$0xff] %v7791_v46 }
 0x1ac   : > { %v856_v18 = vpop.f32.mrf.mxu0 }
 0x1ae   : > { %v7799_v22 = vpop.f32.mrf.mxu0 }
 0x1af   : > { %11372 = vst [vmem:[#allocation3_spill] sm:$0xff] %v7799_v22 }
 0x1b1   : > { %v7773_v5 = vpop.f32.mrf.mxu1 }
 0x1b2   : > { %v862_v24 = vpop.f32.mrf.mxu0 }
 0x1b3   : > { %v7775_v38 = vpop.f32.mrf.mxu1 }
 0x1b4   : > { %v7807_v63 = vpop.f32.mrf.mxu0 }
 0x1b7   : > { %v7777_v6 = vpop.f32.mrf.mxu1 }
 0x1b8   : > { %v868_v35 = vpop.f32.mrf.mxu0 }
 0x1b9   : > { %v7779_v7 = vpop.f32.mrf.mxu1 }
 0x1ba   : > { %v7813_v39 = vpop.f32.mrf.mxu0 }
 0x1bd   : > { %v7781_v8 = vpop.f32.mrf.mxu1 }
 0x1be   : > { %v874_v10 = vpop.f32.mrf.mxu0 }
 0x1bf   : > { %v7783_v9 = vpop.f32.mrf.mxu1 }
 0x1c0   : > { %v7821_v45 = vpop.f32.mrf.mxu0 }
 0x1c3   : > { %v7785_v36 = vpop.f32.mrf.mxu1 }
 0x1c5   : > { %v7789_v14 = vpop.f32.mrf.mxu1 }
 0x1c8   : > { %v7793_v16 = vpop.f32.mrf.mxu1 }
 0x1ca   : > { %v7795_v19 = vpop.f32.mrf.mxu1 }
 0x1d1   : > { %v1183_v20 = vpop.f32.mrf.mxu1  ;;  %v1046_v49 = vpop.f32.mrf.mxu0 }
 0x1d2   : > { %v7797_v42 = vadd.f32 %v1183_v20, %v844_v11 }
 0x1d3   : > { %v7801_v55 = vpop.f32.mrf.mxu1  ;;  %v7827_v52 = vpop.f32.mrf.mxu0 }
 0x1d7   : > { %v1189_v25 = vpop.f32.mrf.mxu1  ;;  %v1052_v53 = vpop.f32.mrf.mxu0 }
 0x1d8   : > { %v7803_v26 = vadd.f32 %v1189_v25, %v850_v13 }
 0x1d9   : > { %v7805_v30 = vpop.f32.mrf.mxu1  ;;  %v7829_v21 = vpop.f32.mrf.mxu0 }
 0x1da   : > { %11373 = vst [vmem:[#allocation4_spill] sm:$0xff] %v7805_v30 }
 0x1dd   : > { %v1195_v33 = vpop.f32.mrf.mxu1  ;;  %v1058_v54 = vpop.f32.mrf.mxu0 }
 0x1de   : > { %v7809_v34 = vadd.f32 %v1195_v33, %v856_v18 }
 0x1df   : > { %v7811_v37 = vpop.f32.mrf.mxu1  ;;  %v7833_v57 = vpop.f32.mrf.mxu0 }
 0x1e0   : > { %11374 = vst [vmem:[#allocation5_spill] sm:$0xff] %v7811_v37 }
 0x1e3   : > { %v1201_v58 = vpop.f32.mrf.mxu1  ;;  %v1064_v62 = vpop.f32.mrf.mxu0 }
 0x1e4   : > { %v7815_v40 = vadd.f32 %v1201_v58, %v862_v24 }
 0x1e5   : > { %v7817_v41 = vpop.f32.mrf.mxu1  ;;  %v7843_v20 = vpop.f32.mrf.mxu0 }
 0x1e6   : > { %11376 = vst [vmem:[#allocation7_spill] sm:$0xff] %v7843_v20 }
 0x1e9   : > { %v1207_v43 = vpop.f32.mrf.mxu1 }
 0x1ea   : > { %v7819_v44 = vadd.f32 %v1207_v43, %v868_v35  ;;  %v1070_v35 = vpop.f32.mrf.mxu0 }
 0x1eb   : > { %v7823_v48 = vpop.f32.mrf.mxu1 }
 0x1ef   : > { %v1213_v51 = vpop.f32.mrf.mxu1 }
 0x1f0   : > { %v7825_v4 = vadd.f32 %v1213_v51, %v874_v10 }
 0x1f1   : > { %v7831_v56 = vpop.f32.mrf.mxu1 }
 0x1f2   : > { %11375 = vst [vmem:[#allocation6_spill] sm:$0xff] %v7831_v56 }
 0x201   : > { %v1385_v60 = vpop.f32.mrf.mxu1 }
 0x202   : > { %v7835_v15 = vadd.f32 %v1385_v60, %v1046_v49  ;;  %v7853_v49 = vpop.f32.mrf.mxu0 }
 0x203   : > { %v7837_v61 = vpop.f32.mrf.mxu1  ;;  %11378 = vst [vmem:[#allocation9_spill] sm:$0xff] %v7853_v49 }
 0x205   : > { %v1391_v11 = vpop.f32.mrf.mxu1 }
 0x206   : > { %v7839_v13 = vadd.f32 %v1391_v11, %v1052_v53  ;;  %v1076_v11 = vpop.f32.mrf.mxu0 }
 0x207   : > { %v7841_v18 = vpop.f32.mrf.mxu1 }
 0x209   : > { %v1397_v24 = vpop.f32.mrf.mxu1 }
 0x20a   : > { %v7845_v25 = vadd.f32 %v1397_v24, %v1058_v54 }
 0x20b   : > { %v7847_v33 = vpop.f32.mrf.mxu1 }
 0x20d   : > { %v1403_v58 = vpop.f32.mrf.mxu1 }
 0x20e   : > { %v7849_v10 = vadd.f32 %v1403_v58, %v1064_v62  ;;  %v5731_v62 = vld [vmem:[%s11363_s2 + $0x9b0] sm:$0xff]  ;;  %v5725_v58 = vld [vmem:[%s11363_s2 + $0x980] sm:$0xff] }
 0x20f   : > { %v7851_v43 = vpop.f32.mrf.mxu1 }
 0x210   : > { %11377 = vst [vmem:[#allocation8_spill] sm:$0xff] %v7851_v43  ;;  %v5696_v43 = vld [vmem:[%s11363_s2 + $0x898] sm:$0xff] }
 0x211   : > { %v1409_v51 = vpop.f32.mrf.mxu1 }
 0x212   : > { %v7855_v53 = vadd.f32 %v1409_v51, %v1070_v35  ;;  %v5720_v51 = vld [vmem:[%s11363_s2 + $0x958] sm:$0xff] }
 0x213   : > { %v7857_v60 = vpop.f32.mrf.mxu1 }
 0x214   : > { %11379 = vst [vmem:[#allocation10_spill] sm:$0xff] %v7857_v60  ;;  %v5695_v60 = vld [vmem:[%s11363_s2 + $0x890] sm:$0xff] }
 0x215   : > { %v1415_v0 = vpop.f32.mrf.mxu1 }
 0x216   : > { %v7859_v20 = vadd.f32 %v1415_v0, %v1076_v11  ;;  %v5726_v0 = vld [vmem:[%s11363_s2 + $0x988] sm:$0xff] }
 0x217   : > { %v7861_v54 = vpop.f32.mrf.mxu1 }
 0x218   : > { %11380 = vst [vmem:[#allocation11_spill] sm:$0xff] %v7861_v54  ;;  %v5707_v54 = vld [vmem:[%s11363_s2 + $0x8f0] sm:$0xff] }
 0x219   : > { %v7863_v24 = vpop.f32.mrf.mxu1 }
 0x21b   : > { %v7865_v30 = vpop.f32.mrf.mxu1 }
 0x21c   : > { %5747 = vmatprep.mubr.msk.f32.mxu1 %vm740_vm3, %v7865_v30  ;;  %5755 = vmatprep.mubr.msk.f32.mxu0 %vm740_vm3, %v7865_v30 }
 0x21d   : > { %v7877_v35 = vpop.f32.mrf.mxu1  ;;  %1756 = vmatmul.mubr.f32.vlgmr.msra.gmra.mxu1 %v7863_v24  ;;  %1857 = vmatmul.mubr.f32.vlgmr.msra.gmra.mxu0 %v7863_v24 }
 0x21e   : > { %1894 = vmatpush1.msra.mxu1 %v5731_v62  ;;  %5776 = vmatpush1.msk.msra.mxu0 %vm289_vm0, %v7444_v28  ;;  %v5719_v62 = vld [vmem:[%s11363_s2 + $0x950] sm:$0xff] }
 0x21f   : > { %1895 = vmatprep.subr.mxu1 %v5726_v0  ;;  %v7889_v11 = vpop.f32.mrf.mxu1  ;;  %2077 = vmatprep.subr.mxu0 %v7449_v50  ;;  %v5714_v0 = vld [vmem:[%s11363_s2 + $0x928] sm:$0xff]  ;;  %v5713_v50 = vld [vmem:[%s11363_s2 + $0x920] sm:$0xff] }
 0x220   : > { %1896 = vmatpush1.msra.mxu1 %v5725_v58  ;;  %5748 = vmatprep.mubr.msk.f32.mxu1 %vm740_vm3, %v7889_v11 }
 0x221   : > { %5756 = vmatprep.mubr.msk.f32.mxu0 %vm740_vm3, %v7889_v11  ;;  %1897 = vmatprep.subr.mxu1 %v5720_v51  ;;  %v7899_v28 = vpop.f32.mrf.mxu1  ;;  %v5708_v51 = vld [vmem:[%s11363_s2 + $0x8f8] sm:$0xff] }
 0x222   : > { %1762 = vmatmul.mubr.f32.gmra.mxu1 %v7877_v35  ;;  %1863 = vmatmul.mubr.f32.gmra.mxu0 %v7877_v35 }
 0x223   : > { %1898 = vmatpush1.msra.mxu1 %v5719_v62  ;;  %2078 = vmatpush1.msra.mxu0 %v7459_v29  ;;  %v7910_v58 = vpop.f32.mrf.mxu1  ;;  %v5702_v29 = vld [vmem:[%s11363_s2 + $0x8c8] sm:$0xff] }
 0x224   : > { %1899 = vmatprep.subr.mxu1 %v5714_v0  ;;  %5749 = vmatprep.mubr.msk.f32.mxu1 %vm740_vm3, %v7910_v58  ;;  %v5701_v0 = vld [vmem:[%s11363_s2 + $0x8c0] sm:$0xff] }
 0x225   : > { %1900 = vmatpush1.msra.mxu1 %v5713_v50  ;;  %5757 = vmatprep.mubr.msk.f32.mxu0 %vm740_vm3, %v7910_v58  ;;  %v7922_v62 = vpop.f32.mrf.mxu1 }
 0x226   : > { %1901 = vmatprep.subr.mxu1 %v5708_v51  ;;  %1768 = vmatmul.mubr.f32.gmra.mxu1 %v7899_v28 }
 0x227   : > { %1869 = vmatmul.mubr.f32.gmra.mxu0 %v7899_v28  ;;  %1902 = vmatpush1.msra.mxu1 %v5707_v54  ;;  %v7932_v50 = vpop.f32.mrf.mxu1  ;;  %v5689_v54 = vld [vmem:[%s11363_s2 + $0x860] sm:$0xff] }
 0x228   : > { %2079 = vmatprep.subr.mxu0 %v7463_v59  ;;  %1903 = vmatprep.subr.mxu1 %v5702_v29  ;;  %v5690_v59 = vld [vmem:[%s11363_s2 + $0x868] sm:$0xff]  ;;  %v5684_v29 = vld [vmem:[%s11363_s2 + $0x838] sm:$0xff] }
 0x229   : > { %2080 = vmatpush1.msra.mxu0 %v7473_v47  ;;  %1904 = vmatpush1.msra.mxu1 %v5701_v0  ;;  %v7939_v51 = vpop.f32.mrf.mxu1 }
 0x22a   : > { %5750 = vmatprep.mubr.msk.f32.mxu1 %vm740_vm3, %v7932_v50  ;;  %5758 = vmatprep.mubr.msk.f32.mxu0 %vm740_vm3, %v7932_v50 }
 0x22b   : > { %1905 = vmatprep.subr.mxu1 %v5696_v43  ;;  %1774 = vmatmul.mubr.f32.gmra.mxu1 %v7922_v62  ;;  %v7952_v47 = vpop.f32.mrf.mxu1  ;;  %v5683_v43 = vld [vmem:[%s11363_s2 + $0x830] sm:$0xff] }
 0x22c   : > { %1875 = vmatmul.mubr.f32.gmra.mxu0 %v7922_v62  ;;  %1906 = vmatpush1.msra.mxu1 %v5695_v60 }
 0x22d   : > { %2081 = vmatprep.subr.mxu0 %v7477_v12  ;;  %1907 = vmatprep.subr.mxu1 %v5690_v59  ;;  %v7962_v0 = vpop.f32.mrf.mxu1  ;;  %v5678_v12 = vld [vmem:[%s11363_s2 + $0x808] sm:$0xff]  ;;  %v5672_v59 = vld [vmem:[%s11363_s2 + $0x7d8] sm:$0xff] }
 0x22e   : > { %2082 = vmatpush1.msra.mxu0 %v7487_v3  ;;  %1908 = vmatpush1.msra.mxu1 %v5689_v54  ;;  %v5677_v3 = vld [vmem:[%s11363_s2 + $0x800] sm:$0xff]  ;;  %v5671_v54 = vld [vmem:[%s11363_s2 + $0x7d0] sm:$0xff] }
 0x22f   : > { %5751 = vmatprep.mubr.msk.f32.mxu1 %vm740_vm3, %v7952_v47  ;;  %5759 = vmatprep.mubr.msk.f32.mxu0 %vm740_vm3, %v7952_v47  ;;  %v7980_v60 = vpop.f32.mrf.mxu1 }
 0x230   : > { %1909 = vmatprep.subr.mxu1 %v5684_v29  ;;  %1780 = vmatmul.mubr.f32.gmra.mxu1 %v7939_v51  ;;  %v5660_v29 = vld [vmem:[%s11363_s2 + $0x778] sm:$0xff] }
 0x231   : > { %1881 = vmatmul.mubr.f32.gmra.mxu0 %v7939_v51  ;;  %1910 = vmatpush1.msra.mxu1 %v5683_v43  ;;  %v5769_v43 = vld [vmem:[%s11362_s1 + $0x90] sm:$0xff] }
 0x232   : > { %2083 = vmatprep.subr.mxu0 %v7491_v23  ;;  %1911 = vmatprep.subr.mxu1 %v5678_v12  ;;  %v5666_v23 = vld [vmem:[%s11363_s2 + $0x7a8] sm:$0xff]  ;;  %v5659_v12 = vld [vmem:[%s11363_s2 + $0x770] sm:$0xff] }
 0x233   : > { %2084 = vmatpush1.msra.mxu0 %v7501_v17  ;;  %1912 = vmatpush1.msra.mxu1 %v5677_v3  ;;  %v5665_v17 = vld [vmem:[%s11363_s2 + $0x7a0] sm:$0xff]  ;;  %v5654_v3 = vld [vmem:[%s11363_s2 + $0x748] sm:$0xff] }
 0x234   : > { %5752 = vmatprep.mubr.msk.f32.mxu1 %vm740_vm3, %v7980_v60  ;;  %5760 = vmatprep.mubr.msk.f32.mxu0 %vm740_vm3, %v7980_v60 }
 0x235   : > { %1913 = vmatprep.subr.mxu1 %v5672_v59  ;;  %1786 = vmatmul.mubr.f32.gmra.mxu1 %v7962_v0  ;;  %v5876_v59 = vld [vmem:[%s11363_s2 + $0xd08] sm:$0xff] }
 0x236   : > { %1887 = vmatmul.mubr.f32.gmra.mxu0 %v7962_v0  ;;  %1914 = vmatpush1.msra.mxu1 %v5671_v54  ;;  %v5648_v54 = vld [vmem:[%s11363_s2 + $0x718] sm:$0xff] }
 0x237   : > { %2085 = vmatprep.subr.mxu0 %v7505_v31  ;;  %1915 = vmatprep.subr.mxu1 %v5666_v23  ;;  %v11381_v31 = vmov 0.0   ;;  %v5770_v23 = vld [vmem:[%s11362_s1 + $0x98] sm:$0xff] }
 0x238   : > { %5763 = vmatprep.mubr.msk.f32.mxu1 %vm740_vm3, %v7865_v30  ;;  %2086 = vmatpush1.msra.mxu0 %v7511_v32  ;;  %v5653_v32 = vld [vmem:[%s11363_s2 + $0x740] sm:$0xff] }
 0x239   : > { %1916 = vmatpush1.msra.mxu1 %v5665_v17  ;;  %2119 = vmatprep.mubr.f32.mxu0 %v11381_v31  ;;  %v5875_v30 = vld [vmem:[%s11363_s2 + $0xd00] sm:$0xff]  ;;  %v5647_v17 = vld [vmem:[%s11363_s2 + $0x710] sm:$0xff] }
 0x23a   : > { %1917 = vmatprep.subr.mxu1 %v5660_v29  ;;  %5777 = vmatmul.mubr.msk.f32.vlgmr.msra.gmra.mxu0 %vm270_vm1, %v5769_v43  ;;  %v5642_v29 = vld [vmem:[%s11363_s2 + $0x6e8] sm:$0xff]  ;;  %v5870_v43 = vld [vmem:[%s11363_s2 + $0xcd8] sm:$0xff] }
 0x23b   : > { %1918 = vmatpush1.msra.mxu1 %v5659_v12  ;;  %2125 = vmatprep.mubr.f32.mxu0 %v11381_v31  ;;  %v5641_v12 = vld [vmem:[%s11363_s2 + $0x6e0] sm:$0xff] }
 0x23c   : > { %1919 = vmatprep.subr.mxu1 %v5654_v3  ;;  %2402 = vmatprep.subr.mxu0 %v5876_v59  ;;  %v5869_v3 = vld [vmem:[%s11363_s2 + $0xcd0] sm:$0xff]  ;;  %v5744_v59 = vld [vmem:[%s11363_s2 + $0xa18] sm:$0x3] }
 0x23d   : > { %1920 = vmatpush1.msra.mxu1 %v5653_v32  ;;  %2403 = vmatpush1.msra.mxu0 %v5875_v30  ;;  %v5771_v32 = vld [vmem:[%s11362_s1 + $0xa0] sm:$0xff]  ;;  %v5743_v30 = vld [vmem:[%s11363_s2 + $0xa10] sm:$0x3] }
 0x23e   : > { %1921 = vmatprep.subr.mxu1 %v5648_v54  ;;  %5778 = vmatmul.mubr.msk.f32.gmra.mxu0 %vm270_vm1, %v5770_v23  ;;  %v5738_v54 = vld [vmem:[%s11363_s2 + $0x9e8] sm:$0xff] }
 0x23f   : > { %1922 = vmatpush1.msra.mxu1 %v5647_v17  ;;  %2131 = vmatprep.mubr.f32.mxu0 %v11381_v31  ;;  %v5864_v23 = vld [vmem:[%s11363_s2 + $0xca8] sm:$0xff]  ;;  %v5737_v17 = vld [vmem:[%s11363_s2 + $0x9e0] sm:$0xff] }
 0x240   : > { %1923 = vmatprep.subr.mxu1 %v5642_v29  ;;  %2404 = vmatprep.subr.mxu0 %v5870_v43  ;;  %v5863_v29 = vld [vmem:[%s11363_s2 + $0xca0] sm:$0xff]  ;;  %v5772_v43 = vld [vmem:[%s11362_s1 + $0xa8] sm:$0xff] }
 0x241   : > { %1924 = vmatpush1.msra.mxu1 %v5641_v12  ;;  %2405 = vmatpush1.msra.mxu0 %v5869_v3  ;;  %v5874_v12 = vld [vmem:[%s11363_s2 + $0xcf8] sm:$0xff] }
 0x242   : > { %5761 = vmatprep.subr.msk.mxu1 %vm759_vm2, %v5744_v59  ;;  %5779 = vmatmul.mubr.msk.f32.gmra.mxu0 %vm270_vm1, %v5771_v32  ;;  %v5858_v3 = vld [vmem:[%s11363_s2 + $0xc78] sm:$0xff]  ;;  %v5873_v59 = vld [vmem:[%s11363_s2 + $0xcf0] sm:$0xff] }
 0x243   : > { %5762 = vmatpush2.msk.msra.mxu1 %vm759_vm2, %v5743_v30  ;;  %2137 = vmatprep.mubr.f32.mxu0 %v11381_v31  ;;  %v5857_v32 = vld [vmem:[%s11363_s2 + $0xc70] sm:$0xff] }
 0x244   : > { %1955 = vmatprep.subr.mxu1 %v5738_v54  ;;  %2406 = vmatprep.subr.mxu0 %v5864_v23  ;;  %v5773_v30 = vld [vmem:[%s11362_s1 + $0xb0] sm:$0xff]  ;;  %v5774_v54 = vld [vmem:[%s11362_s1 + $0xb8] sm:$0x3f] }
 0x245   : > { %1956 = vmatpush2.msra.mxu1 %v5737_v17  ;;  %2407 = vmatpush1.msra.mxu0 %v5863_v29  ;;  %v5861_v23 = vld [vmem:[%s11363_s2 + $0xc90] sm:$0xff]  ;;  %v5855_v17 = vld [vmem:[%s11363_s2 + $0xc60] sm:$0xff]  ;;  %v5838_v29 = vld [vmem:[%s11363_s2 + $0xbd8] sm:$0xff] }
 0x246   : > { %1958 = vmatmul.mubr.f32.vlgmr.msra.gmra.mxu1 %v7863_v24  ;;  %5780 = vmatmul.mubr.msk.f32.gmra.mxu0 %vm270_vm1, %v5772_v43  ;;  %v5868_v24 = vld [vmem:[%s11363_s2 + $0xcc8] sm:$0xff]  ;;  %v5845_v43 = vld [vmem:[%s11363_s2 + $0xc10] sm:$0xff] }
 0x247   : > { %5764 = vmatprep.mubr.msk.f32.mxu1 %vm740_vm3, %v7889_v11  ;;  %2143 = vmatprep.mubr.f32.mxu0 %v11381_v31  ;;  %v5867_v11 = vld [vmem:[%s11363_s2 + $0xcc0] sm:$0xff] }
 0x248   : > { %2301 = vmatprep.subr.mxu1 %v5874_v12  ;;  %2408 = vmatprep.subr.mxu0 %v5858_v3  ;;  %v5837_v12 = vld [vmem:[%s11363_s2 + $0xbd0] sm:$0xff]  ;;  %v5840_v3 = vld [vmem:[%s11363_s2 + $0xbe8] sm:$0xff] }
 0x249   : > { %2302 = vmatpush1.msra.mxu1 %v5873_v59  ;;  %2409 = vmatpush1.msra.mxu0 %v5857_v32  ;;  %v5832_v59 = vld [vmem:[%s11363_s2 + $0xba8] sm:$0xff]  ;;  %v5839_v32 = vld [vmem:[%s11363_s2 + $0xbe0] sm:$0xff] }
 0x24a   : > { %1964 = vmatmul.mubr.f32.gmra.mxu1 %v7877_v35  ;;  %5781 = vmatmul.mubr.msk.f32.gmra.mxu0 %vm270_vm1, %v5773_v30  ;;  %v5862_v35 = vld [vmem:[%s11363_s2 + $0xc98] sm:$0xff]  ;;  %v5831_v30 = vld [vmem:[%s11363_s2 + $0xba0] sm:$0xff] }
 0x24b   : > { %5765 = vmatprep.mubr.msk.f32.mxu1 %vm740_vm3, %v7910_v58  ;;  %2149 = vmatprep.mubr.f32.mxu0 %v11381_v31  ;;  %v5856_v58 = vld [vmem:[%s11363_s2 + $0xc68] sm:$0xff] }
 0x24c   : > { %2303 = vmatprep.subr.mxu1 %v5868_v24  ;;  %v5834_v24 = vld [vmem:[%s11363_s2 + $0xbb8] sm:$0xff] }
 0x24d   : > { %2304 = vmatpush1.msra.mxu1 %v5867_v11  ;;  %v5826_v11 = vld [vmem:[%s11363_s2 + $0xb78] sm:$0xff] }
 0x24e   : > { %1970 = vmatmul.mubr.f32.gmra.mxu1 %v7899_v28  ;;  %5782 = vmatmul.mubr.msk.f32.gmra.mxu0 %vm270_vm1, %v5774_v54  ;;  %v5850_v28 = vld [vmem:[%s11363_s2 + $0xc38] sm:$0xff]  ;;  %v5833_v54 = vld [vmem:[%s11363_s2 + $0xbb0] sm:$0xff] }
 0x24f   : > { %5766 = vmatprep.mubr.msk.f32.mxu1 %vm740_vm3, %v7932_v50  ;;  %2305 = vmatprep.subr.mxu1 %v5862_v35  ;;  %v5849_v50 = vld [vmem:[%s11363_s2 + $0xc30] sm:$0xff] }
 0x250   : > { %2306 = vmatpush1.msra.mxu1 %v5861_v23  ;;  %v5825_v35 = vld [vmem:[%s11363_s2 + $0xb70] sm:$0xff]  ;;  %v5828_v23 = vld [vmem:[%s11363_s2 + $0xb88] sm:$0xff] }
 0x251   : > { %2307 = vmatprep.subr.mxu1 %v5856_v58  ;;  %v5820_v58 = vld [vmem:[%s11363_s2 + $0xb48] sm:$0xff] }
 0x252   : > { %1976 = vmatmul.mubr.f32.gmra.mxu1 %v7922_v62  ;;  %v5852_v62 = vld [vmem:[%s11363_s2 + $0xc48] sm:$0xff] }
 0x253   : > { %5767 = vmatprep.mubr.msk.f32.mxu1 %vm740_vm3, %v7952_v47  ;;  %2308 = vmatpush1.msra.mxu1 %v5855_v17  ;;  %v5844_v47 = vld [vmem:[%s11363_s2 + $0xc08] sm:$0xff]  ;;  %v5827_v17 = vld [vmem:[%s11363_s2 + $0xb80] sm:$0xff] }
 0x254   : > { %2309 = vmatprep.subr.mxu1 %v5850_v28  ;;  %2410 = vmatprep.subr.mxu0 %v5852_v62  ;;  %v5819_v28 = vld [vmem:[%s11363_s2 + $0xb40] sm:$0xff]  ;;  %v5814_v62 = vld [vmem:[%s11363_s2 + $0xb18] sm:$0xff] }
 0x255   : > { %2310 = vmatpush1.msra.mxu1 %v5849_v50  ;;  %v5822_v50 = vld [vmem:[%s11363_s2 + $0xb58] sm:$0xff] }
 0x256   : > { %1982 = vmatmul.mubr.f32.gmra.mxu1 %v7939_v51  ;;  %v5851_v51 = vld [vmem:[%s11363_s2 + $0xc40] sm:$0xff]  ;;  %2311 = vmatprep.subr.mxu1 %v5844_v47  ;;  %v5821_v47 = vld [vmem:[%s11363_s2 + $0xb50] sm:$0xff] }
 0x257   : > { %5768 = vmatprep.mubr.msk.f32.mxu1 %vm740_vm3, %v7980_v60  ;;  %2411 = vmatpush1.msra.mxu0 %v5851_v51  ;;  %v5846_v60 = vld [vmem:[%s11363_s2 + $0xc18] sm:$0xff]  ;;  %v5813_v51 = vld [vmem:[%s11363_s2 + $0xb10] sm:$0xff] }
 0x258   : > { %2412 = vmatprep.subr.mxu0 %v5846_v60  ;;  %v5808_v60 = vld [vmem:[%s11363_s2 + $0xae8] sm:$0xff] }
 0x259   : > { %2413 = vmatpush1.msra.mxu0 %v5845_v43  ;;  %v5807_v43 = vld [vmem:[%s11363_s2 + $0xae0] sm:$0xff] }
 0x25a   : > { %1988 = vmatmul.mubr.f32.gmra.mxu1 %v7962_v0  ;;  %v5843_v0 = vld [vmem:[%s11363_s2 + $0xc00] sm:$0xff]  ;;  %2414 = vmatprep.subr.mxu0 %v5840_v3  ;;  %v5802_v3 = vld [vmem:[%s11363_s2 + $0xab8] sm:$0xff] }
 0x25b   : > { %2312 = vmatpush1.msra.mxu1 %v5843_v0  ;;  %2415 = vmatpush1.msra.mxu0 %v5839_v32  ;;  %v5816_v0 = vld [vmem:[%s11363_s2 + $0xb28] sm:$0xff]  ;;  %v5801_v32 = vld [vmem:[%s11363_s2 + $0xab0] sm:$0xff] }
 0x25c   : > { %2313 = vmatprep.subr.mxu1 %v5838_v29  ;;  %2416 = vmatprep.subr.mxu0 %v5834_v24  ;;  %v5815_v29 = vld [vmem:[%s11363_s2 + $0xb20] sm:$0xff]  ;;  %v5796_v24 = vld [vmem:[%s11363_s2 + $0xa88] sm:$0xff] }
 0x25d   : > { %2314 = vmatpush1.msra.mxu1 %v5837_v12  ;;  %2417 = vmatpush1.msra.mxu0 %v5833_v54  ;;  %v5810_v12 = vld [vmem:[%s11363_s2 + $0xaf8] sm:$0xff]  ;;  %v5795_v54 = vld [vmem:[%s11363_s2 + $0xa80] sm:$0xff] }
 0x25e   : > { %2315 = vmatprep.subr.mxu1 %v5832_v59  ;;  %2418 = vmatprep.subr.mxu0 %v5828_v23  ;;  %v5809_v59 = vld [vmem:[%s11363_s2 + $0xaf0] sm:$0xff]  ;;  %v5790_v23 = vld [vmem:[%s11363_s2 + $0xa58] sm:$0xff] }
 0x25f   : > { %2316 = vmatpush1.msra.mxu1 %v5831_v30  ;;  %2419 = vmatpush1.msra.mxu0 %v5827_v17  ;;  %v5804_v30 = vld [vmem:[%s11363_s2 + $0xac8] sm:$0xff]  ;;  %v5789_v17 = vld [vmem:[%s11363_s2 + $0xa50] sm:$0xff] }
 0x260   : > { %2317 = vmatprep.subr.mxu1 %v5826_v11  ;;  %2420 = vmatprep.subr.mxu0 %v5822_v50  ;;  %v5803_v11 = vld [vmem:[%s11363_s2 + $0xac0] sm:$0xff]  ;;  %v5784_v50 = vld [vmem:[%s11363_s2 + $0xa28] sm:$0xff] }
 0x261   : > { %2318 = vmatpush1.msra.mxu1 %v5825_v35  ;;  %2421 = vmatpush1.msra.mxu0 %v5821_v47  ;;  %v5798_v35 = vld [vmem:[%s11363_s2 + $0xa98] sm:$0xff]  ;;  %v5783_v47 = vld [vmem:[%s11363_s2 + $0xa20] sm:$0xff] }
 0x262   : > { %2319 = vmatprep.subr.mxu1 %v5820_v58  ;;  %2422 = vmatprep.subr.mxu0 %v5816_v0  ;;  %v5797_v58 = vld [vmem:[%s11363_s2 + $0xa90] sm:$0xff]  ;;  %v5886_v0 = vld [vmem:[%s11363_s2 + $0xd58] sm:$0x3] }
 0x263   : > { %2320 = vmatpush1.msra.mxu1 %v5819_v28  ;;  %2423 = vmatpush1.msra.mxu0 %v5815_v29  ;;  %v5792_v28 = vld [vmem:[%s11363_s2 + $0xa68] sm:$0xff]  ;;  %v5885_v29 = vld [vmem:[%s11363_s2 + $0xd50] sm:$0x3] }
 0x264   : > { %2321 = vmatprep.subr.mxu1 %v5814_v62  ;;  %2424 = vmatprep.subr.mxu0 %v5810_v12  ;;  %v5791_v62 = vld [vmem:[%s11363_s2 + $0xa60] sm:$0xff]  ;;  %v5880_v12 = vld [vmem:[%s11363_s2 + $0xd28] sm:$0xff] }
 0x265   : > { %2322 = vmatpush1.msra.mxu1 %v5813_v51  ;;  %2425 = vmatpush1.msra.mxu0 %v5809_v59  ;;  %v5786_v51 = vld [vmem:[%s11363_s2 + $0xa38] sm:$0xff]  ;;  %v5879_v59 = vld [vmem:[%s11363_s2 + $0xd20] sm:$0xff] }
 0x266   : > { %2323 = vmatprep.subr.mxu1 %v5808_v60  ;;  %2426 = vmatprep.subr.mxu0 %v5804_v30  ;;  %v5785_v60 = vld [vmem:[%s11363_s2 + $0xa30] sm:$0xff] }
 0x267   : > { %2324 = vmatpush1.msra.mxu1 %v5807_v43  ;;  %2427 = vmatpush1.msra.mxu0 %v5803_v11  ;;  %v5888_v43 = vld [vmem:[%s11363_s2 + $0xd68] sm:$0x3]  ;;  %v5881_v30 = vld [vmem:[%s11363_s2 + $0xd30] sm:$0xff]  ;;  %v6500_v11 = vld [vmem:[%s6572_s26 + $0x58] sm:$0x3f] }
 0x268   : > { %2325 = vmatprep.subr.mxu1 %v5802_v3  ;;  %2428 = vmatprep.subr.mxu0 %v5798_v35  ;;  %v5887_v3 = vld [vmem:[%s11363_s2 + $0xd60] sm:$0x3] }
 0x269   : > { %2326 = vmatpush1.msra.mxu1 %v5801_v32  ;;  %2429 = vmatpush1.msra.mxu0 %v5797_v58  ;;  %v5882_v32 = vld [vmem:[%s11363_s2 + $0xd38] sm:$0xff] }
 0x26a   : > { %2327 = vmatprep.subr.mxu1 %v5796_v24  ;;  %2430 = vmatprep.subr.mxu0 %v5792_v28  ;;  %v5878_v24 = vld [vmem:[%s11363_s2 + $0xd18] sm:$0xff] }
 0x26b   : > { %2328 = vmatpush1.msra.mxu1 %v5795_v54  ;;  %2431 = vmatpush1.msra.mxu0 %v5791_v62  ;;  %v8315_v54 = vpop.f32.mrf.mxu0 }
 0x26c   : > { %2329 = vmatprep.subr.mxu1 %v5790_v23  ;;  %2432 = vmatprep.subr.mxu0 %v5786_v51  ;;  %11382 = vst [vmem:[#allocation12_spill] sm:$0xff] %v8315_v54 }
 0x26d   : > { %2330 = vmatpush1.msra.mxu1 %v5789_v17  ;;  %2433 = vmatpush1.msra.mxu0 %v5785_v60  ;;  %v1284_v35 = vpop.f32.mrf.mxu0 }
 0x26e   : > { %2331 = vmatprep.subr.mxu1 %v5784_v50  ;;  %5899 = vmatprep.subr.msk.mxu0 %vm759_vm2, %v5888_v43  ;;  %v1285_v43 = vadd.f32 %v1284_v35, %v7769_v1 }
 0x26f   : > { %2332 = vmatpush1.msra.mxu1 %v5783_v47  ;;  %5900 = vmatpush2.msk.msra.mxu0 %vm759_vm2, %v5887_v3  ;;  %v8317_v23 = vpop.f32.mrf.mxu0 }
 0x270   : > { %5891 = vmatprep.subr.msk.mxu1 %vm759_vm2, %v5886_v0  ;;  %2464 = vmatprep.subr.mxu0 %v5882_v32 }
 0x271   : > { %5892 = vmatpush2.msk.msra.mxu1 %vm759_vm2, %v5885_v29  ;;  %2465 = vmatpush2.msra.mxu0 %v5881_v30  ;;  %v1290_v58 = vpop.f32.mrf.mxu0 }
 0x272   : > { %2363 = vmatprep.subr.mxu1 %v5880_v12  ;;  %5921 = vmatprep.subr.msk.mxu0 %vm289_vm0, %v6500_v11  ;;  %v1291_v11 = vadd.f32 %v1290_v58, %v7773_v5 }
 0x273   : > { %2364 = vmatpush2.msra.mxu1 %v5879_v59  ;;  %v8319_v17 = vpop.f32.mrf.mxu0 }
 0x274   : > { %2503 = vmatprep.subr.mxu1 %v5878_v24 }
 0x275   : > { %v1296_v28 = vpop.f32.mrf.mxu0 }
 0x277   : > { %v1298_v50 = vpop.f32.mrf.mxu0 }
 0x278   : > { %v1299_v5 = vadd.f32 %v1298_v50, %v7779_v7 }
 0x279   : > { %v1302_v62 = vpop.f32.mrf.mxu0 }
 0x27b   : > { %v1304_v47 = vpop.f32.mrf.mxu0 }
 0x27d   : > { %v1308_v51 = vpop.f32.mrf.mxu0 }
 0x27f   : > { %v1310_v0 = vpop.f32.mrf.mxu0 }
 0x281   : > { %v1314_v60 = vpop.f32.mrf.mxu0 }
 0x283   : > { %v8321_v29 = vpop.f32.mrf.mxu0 }
 0x2dd   : > { %v1757_v12 = vpop.f32.mrf.mxu1  ;;  %v1858_v3 = vpop.f32.mrf.mxu0 }
 0x2de   : > { %v8325_v59 = vadd.f32 %v1757_v12, %v7797_v42  ;;  %v8327_v32 = vadd.f32 %v1858_v3, %v1285_v43  ;;  %v1297_v42 = vadd.f32 %v1296_v28, %v7777_v6 }
 0x2df   : > { %v8329_v30 = vpop.f32.mrf.mxu1  ;;  %v8331_v24 = vpop.f32.mrf.mxu0 }
 0x2e2   : > { %v1763_v54 = vpop.f32.mrf.mxu1  ;;  %v1864_v49 = vpop.f32.mrf.mxu0 }
 0x2e3   : > { %v8335_v46 = vadd.f32 %v1763_v54, %v7803_v26  ;;  %v8337_v37 = vadd.f32 %v1864_v49, %v1291_v11  ;;  %v1303_v54 = vadd.f32 %v1302_v62, %v7781_v8 }
 0x2e4   : > { %v8339_v1 = vpop.f32.mrf.mxu1  ;;  %v8341_v35 = vpop.f32.mrf.mxu0 }
 0x2e5   : > { %11383 = vst [vmem:[#allocation13_spill] sm:$0xff] %v8335_v46  ;;  %11384 = vst [vmem:[#allocation14_spill] sm:$0xff] %v8339_v1 }
 0x2e6   : > { %v1769_v43 = vpop.f32.mrf.mxu1 }
 0x2e7   : > { %v8345_v12 = vadd.f32 %v1769_v43, %v7809_v34  ;;  %v1870_v3 = vpop.f32.mrf.mxu0  ;;  %v1305_v34 = vadd.f32 %v1304_v47, %v7783_v9 }
 0x2e8   : > { %v8348_v58 = vadd.f32 %v1870_v3, %v1297_v42  ;;  %v8350_v22 = vpop.f32.mrf.mxu1  ;;  %v1309_v42 = vadd.f32 %v1308_v51, %v7785_v36 }
 0x2e9   : > { %11385 = vst [vmem:[#allocation15_spill] sm:$0xff] %v8345_v12  ;;  %11386 = vst [vmem:[#allocation16_spill] sm:$0xff] %v8350_v22  ;;  %v1872_v26 = vpop.f32.mrf.mxu0 }
 0x2ea   : > { %v8352_v49 = vadd.f32 %v1872_v26, %v1299_v5 }
 0x2eb   : > { %v1775_v11 = vpop.f32.mrf.mxu1 }
 0x2ec   : > { %v8356_v46 = vadd.f32 %v1775_v11, %v7815_v40  ;;  %v1876_v6 = vpop.f32.mrf.mxu0  ;;  %v1311_v40 = vadd.f32 %v1310_v0, %v7789_v14 }
 0x2ed   : > { %v8359_v28 = vadd.f32 %v1876_v6, %v1303_v54  ;;  %v8361_v43 = vpop.f32.mrf.mxu1  ;;  %v1315_v54 = vadd.f32 %v1314_v60, %v7793_v16  ;;  %v5872_v16 = vld [vmem:[%s11363_s2 + $0xce8] sm:$0xff]  ;;  %v5871_v60 = vld [vmem:[%s11363_s2 + $0xce0] sm:$0xff] }
 0x2ee   : > { %11387 = vst [vmem:[#allocation17_spill] sm:$0xff] %v8356_v46  ;;  %11388 = vst [vmem:[#allocation18_spill] sm:$0xff] %v8361_v43  ;;  %v1878_v7 = vpop.f32.mrf.mxu0  ;;  %v6504_v46 = vld [vmem:[%s6572_s26 + $0x38] sm:$0xff] }
 0x2ef   : > { %v8363_v50 = vadd.f32 %v1878_v7, %v1305_v34  ;;  %v5877_v34 = vld [vmem:[%s11363_s2 + $0xd10] sm:$0xff] }
 0x2f0   : > { %v1781_v3 = vpop.f32.mrf.mxu1  ;;  %v6501_v7 = vld [vmem:[%s6572_s26 + $0x50] sm:$0x3f] }
 0x2f1   : > { %v8367_v5 = vadd.f32 %v1781_v3, %v7819_v44  ;;  %v1882_v8 = vpop.f32.mrf.mxu0 }
 0x2f2   : > { %v8370_v62 = vadd.f32 %v1882_v8, %v1309_v42  ;;  %v8372_v26 = vpop.f32.mrf.mxu1  ;;  %v5866_v42 = vld [vmem:[%s11363_s2 + $0xcb8] sm:$0xff]  ;;  %v6502_v8 = vld [vmem:[%s6572_s26 + $0x48] sm:$0xff] }
 0x2f3   : > { %11389 = vst [vmem:[#allocation19_spill] sm:$0xff] %v8367_v5  ;;  %11390 = vst [vmem:[#allocation20_spill] sm:$0xff] %v8372_v26  ;;  %v1884_v9 = vpop.f32.mrf.mxu0  ;;  %v6509_v26 = vld [vmem:[%s6572_s26 + $0x10] sm:$0xff] }
 0x2f4   : > { %v8374_v47 = vadd.f32 %v1884_v9, %v1311_v40  ;;  %v5865_v40 = vld [vmem:[%s11363_s2 + $0xcb0] sm:$0xff] }
 0x2f5   : > { %v1787_v11 = vpop.f32.mrf.mxu1 }
 0x2f6   : > { %v8378_v36 = vadd.f32 %v1787_v11, %v7825_v4  ;;  %v1888_v51 = vpop.f32.mrf.mxu0  ;;  %v5859_v11 = vld [vmem:[%s11363_s2 + $0xc80] sm:$0xff] }
 0x2f7   : > { %v8380_v44 = vadd.f32 %v1888_v51, %v1315_v54  ;;  %v5860_v54 = vld [vmem:[%s11363_s2 + $0xc88] sm:$0xff]  ;;  %v8430_v51 = vpop.f32.mrf.mxu1 }
 0x2f8   : > { %11391 = vst [vmem:[#allocation21_spill] sm:$0xff] %v8378_v36  ;;  %v8382_v6 = vpop.f32.mrf.mxu0  ;;  %11392 = vst [vmem:[#allocation22_spill] sm:$0xff] %v8430_v51  ;;  %v6507_v36 = vld [vmem:[%s6572_s26 + $0x20] sm:$0xff] }
 0x2fa   : > { %v8384_v14 = vpop.f32.mrf.mxu0 }
 0x2fc   : > { %v8386_v0 = vpop.f32.mrf.mxu0 }
 0x2fd   : > { %5893 = vmatprep.mubr.msk.f32.mxu1 %vm740_vm3, %v8386_v0  ;;  %5901 = vmatprep.mubr.msk.f32.mxu0 %vm740_vm3, %v8386_v0 }
 0x2fe   : > { %v8398_v4 = vpop.f32.mrf.mxu0  ;;  %2366 = vmatmul.mubr.f32.vlgmr.msra.gmra.mxu1 %v8384_v14  ;;  %2467 = vmatmul.mubr.f32.vlgmr.msra.gmra.mxu0 %v8384_v14 }
 0x2ff   : > { %2504 = vmatpush1.msra.mxu1 %v5877_v34  ;;  %5922 = vmatpush1.msk.msra.mxu0 %vm289_vm0, %v6501_v7  ;;  %v6503_v34 = vld [vmem:[%s6572_s26 + $0x40] sm:$0xff]  ;;  %v5853_v7 = vld [vmem:[%s11363_s2 + $0xc50] sm:$0xff] }
 0x300   : > { %2505 = vmatprep.subr.mxu1 %v5872_v16  ;;  %v8410_v3 = vpop.f32.mrf.mxu0  ;;  %2687 = vmatprep.subr.mxu0 %v6502_v8 }
 0x301   : > { %2506 = vmatpush1.msra.mxu1 %v5871_v60  ;;  %5894 = vmatprep.mubr.msk.f32.mxu1 %vm740_vm3, %v8410_v3  ;;  %v5854_v60 = vld [vmem:[%s11363_s2 + $0xc58] sm:$0xff] }
 0x302   : > { %5902 = vmatprep.mubr.msk.f32.mxu0 %vm740_vm3, %v8410_v3  ;;  %2507 = vmatprep.subr.mxu1 %v5866_v42  ;;  %v8420_v9 = vpop.f32.mrf.mxu0 }
 0x303   : > { %2372 = vmatmul.mubr.f32.gmra.mxu1 %v8398_v4  ;;  %2473 = vmatmul.mubr.f32.gmra.mxu0 %v8398_v4 }
 0x304   : > { %2508 = vmatpush1.msra.mxu1 %v5865_v40  ;;  %2688 = vmatpush1.msra.mxu0 %v6503_v34  ;;  %v8433_v16 = vpop.f32.mrf.mxu0  ;;  %v5848_v40 = vld [vmem:[%s11363_s2 + $0xc28] sm:$0xff] }
 0x305   : > { %2509 = vmatprep.subr.mxu1 %v5860_v54  ;;  %5895 = vmatprep.mubr.msk.f32.mxu1 %vm740_vm3, %v8433_v16 }
 0x306   : > { %2510 = vmatpush1.msra.mxu1 %v5859_v11  ;;  %v1959_v42 = vpop.f32.mrf.mxu1  ;;  %5903 = vmatprep.mubr.msk.f32.mxu0 %vm740_vm3, %v8433_v16  ;;  %v8445_v8 = vpop.f32.mrf.mxu0  ;;  %v5847_v11 = vld [vmem:[%s11363_s2 + $0xc20] sm:$0xff] }
 0x307   : > { %v8451_v54 = vadd.f32 %v1959_v42, %v7835_v15  ;;  %2511 = vmatprep.subr.mxu1 %v5854_v60  ;;  %2378 = vmatmul.mubr.f32.gmra.mxu1 %v8420_v9  ;;  %v5842_v15 = vld [vmem:[%s11363_s2 + $0xbf8] sm:$0xff]  ;;  %v6505_v60 = vld [vmem:[%s6572_s26 + $0x30] sm:$0xff] }
 0x308   : > { %2479 = vmatmul.mubr.f32.gmra.mxu0 %v8420_v9  ;;  %2512 = vmatpush1.msra.mxu1 %v5853_v7  ;;  %v8458_v34 = vpop.f32.mrf.mxu1  ;;  %v8460_v12 = vpop.f32.mrf.mxu0  ;;  %v5841_v7 = vld [vmem:[%s11363_s2 + $0xbf0] sm:$0xff] }
 0x309   : > { %2689 = vmatprep.subr.mxu0 %v6504_v46  ;;  %2513 = vmatprep.subr.mxu1 %v5848_v40  ;;  %v5836_v46 = vld [vmem:[%s11363_s2 + $0xbc8] sm:$0xff] }
 0x30a   : > { %2690 = vmatpush1.msra.mxu0 %v6505_v60  ;;  %2514 = vmatpush1.msra.mxu1 %v5847_v11  ;;  %v1965_v42 = vpop.f32.mrf.mxu1  ;;  %v8467_v1 = vpop.f32.mrf.mxu0  ;;  %v6506_v60 = vld [vmem:[%s6572_s26 + $0x28] sm:$0xff] }
 0x30b   : > { %v8473_v5 = vadd.f32 %v1965_v42, %v7839_v13  ;;  %5896 = vmatprep.mubr.msk.f32.mxu1 %vm740_vm3, %v8460_v12  ;;  %5904 = vmatprep.mubr.msk.f32.mxu0 %vm740_vm3, %v8460_v12  ;;  %v5835_v13 = vld [vmem:[%s11363_s2 + $0xbc0] sm:$0xff] }
 0x30c   : > { %2515 = vmatprep.subr.mxu1 %v5842_v15  ;;  %2384 = vmatmul.mubr.f32.gmra.mxu1 %v8445_v8  ;;  %v8483_v40 = vpop.f32.mrf.mxu1  ;;  %v8485_v11 = vpop.f32.mrf.mxu0  ;;  %v5830_v15 = vld [vmem:[%s11363_s2 + $0xb98] sm:$0xff] }
 0x30d   : > { %2485 = vmatmul.mubr.f32.gmra.mxu0 %v8445_v8  ;;  %2516 = vmatpush1.msra.mxu1 %v5841_v7  ;;  %v5829_v7 = vld [vmem:[%s11363_s2 + $0xb90] sm:$0xff] }
 0x30e   : > { %2691 = vmatprep.subr.mxu0 %v6506_v60  ;;  %2517 = vmatprep.subr.mxu1 %v5836_v46  ;;  %v1971_v42 = vpop.f32.mrf.mxu1  ;;  %v8495_v22 = vpop.f32.mrf.mxu0 }
 0x30f   : > { %2692 = vmatpush1.msra.mxu0 %v6507_v36  ;;  %2518 = vmatpush1.msra.mxu1 %v5835_v13  ;;  %v8499_v51 = vadd.f32 %v1971_v42, %v7845_v25  ;;  %v5824_v36 = vld [vmem:[%s11363_s2 + $0xb68] sm:$0xff]  ;;  %v5823_v25 = vld [vmem:[%s11363_s2 + $0xb60] sm:$0xff]  ;;  %v6508_v42 = vld [vmem:[%s6572_s26 + $0x18] sm:$0xff] }
 0x310   : > { %5897 = vmatprep.mubr.msk.f32.mxu1 %vm740_vm3, %v8485_v11  ;;  %5905 = vmatprep.mubr.msk.f32.mxu0 %vm740_vm3, %v8485_v11  ;;  %v8508_v46 = vpop.f32.mrf.mxu1  ;;  %v8518_v13 = vpop.f32.mrf.mxu0 }
 0x311   : > { %2519 = vmatprep.subr.mxu1 %v5830_v15  ;;  %2390 = vmatmul.mubr.f32.gmra.mxu1 %v8467_v1  ;;  %v5818_v15 = vld [vmem:[%s11363_s2 + $0xb38] sm:$0xff] }
 0x312   : > { %2491 = vmatmul.mubr.f32.gmra.mxu0 %v8467_v1  ;;  %2520 = vmatpush1.msra.mxu1 %v5829_v7  ;;  %v1977_v60 = vpop.f32.mrf.mxu1  ;;  %v5817_v7 = vld [vmem:[%s11363_s2 + $0xb30] sm:$0xff] }
 0x313   : > { %2693 = vmatprep.subr.mxu0 %v6508_v42  ;;  %2521 = vmatprep.subr.mxu1 %v5824_v36  ;;  %v8522_v43 = vadd.f32 %v1977_v60, %v7849_v10  ;;  %v5812_v10 = vld [vmem:[%s11363_s2 + $0xb08] sm:$0xff]  ;;  %v5811_v36 = vld [vmem:[%s11363_s2 + $0xb00] sm:$0xff]  ;;  %v5806_v42 = vld [vmem:[%s11363_s2 + $0xad8] sm:$0xff] }
 0x314   : > { %2694 = vmatpush1.msra.mxu0 %v6509_v26  ;;  %2522 = vmatpush1.msra.mxu1 %v5823_v25  ;;  %v8531_v56 = vpop.f32.mrf.mxu1  ;;  %v6510_v60 = vld [vmem:[%s6572_s26 + $0x8] sm:$0xff] }
 0x315   : > { %11393 = vst [vmem:[#allocation23_spill] sm:$0xff] %v8522_v43  ;;  %11394 = vst [vmem:[#allocation24_spill] sm:$0xff] %v8531_v56  ;;  %5898 = vmatprep.mubr.msk.f32.mxu1 %vm740_vm3, %v8518_v13  ;;  %5906 = vmatprep.mubr.msk.f32.mxu0 %vm740_vm3, %v8518_v13 }
 0x316   : > { %2523 = vmatprep.subr.mxu1 %v5818_v15  ;;  %2396 = vmatmul.mubr.f32.gmra.mxu1 %v8495_v22  ;;  %v1983_v26 = vpop.f32.mrf.mxu1  ;;  %v5915_v15 = vld [vmem:[%s11362_s1 + $0xc0] sm:$0xff] }
 0x317   : > { %2497 = vmatmul.mubr.f32.gmra.mxu0 %v8495_v22  ;;  %2524 = vmatpush1.msra.mxu1 %v5817_v7  ;;  %v8546_v25 = vadd.f32 %v1983_v26, %v7855_v53  ;;  %v6511_v7 = vld [vmem:[%s6572_s26] sm:$0xff]  ;;  %v5805_v53 = vld [vmem:[%s11363_s2 + $0xad0] sm:$0xff] }
 0x318   : > { %2695 = vmatprep.subr.mxu0 %v6510_v60  ;;  %2525 = vmatprep.subr.mxu1 %v5812_v10  ;;  %v8555_v43 = vpop.f32.mrf.mxu1  ;;  %v5800_v10 = vld [vmem:[%s11363_s2 + $0xaa8] sm:$0xff]  ;;  %v6020_v60 = vld [vmem:[%s11363_s2 + $0x1058] sm:$0xff] }
 0x319   : > { %11395 = vst [vmem:[#allocation25_spill] sm:$0xff] %v8546_v25  ;;  %11396 = vst [vmem:[#allocation26_spill] sm:$0xff] %v8555_v43  ;;  %5909 = vmatprep.mubr.msk.f32.mxu1 %vm740_vm3, %v8386_v0  ;;  %2696 = vmatpush1.msra.mxu0 %v6511_v7  ;;  %v5799_v0 = vld [vmem:[%s11363_s2 + $0xaa0] sm:$0xff]  ;;  %v6019_v7 = vld [vmem:[%s11363_s2 + $0x1050] sm:$0xff] }
 0x31a   : > { %2526 = vmatpush1.msra.mxu1 %v5811_v36  ;;  %2729 = vmatprep.mubr.f32.mxu0 %v11381_v31  ;;  %v1989_v26 = vpop.f32.mrf.mxu1  ;;  %v5794_v25 = vld [vmem:[%s11363_s2 + $0xa78] sm:$0xff] }
 0x31b   : > { %2527 = vmatprep.subr.mxu1 %v5806_v42  ;;  %5923 = vmatmul.mubr.msk.f32.vlgmr.msra.gmra.mxu0 %vm270_vm1, %v5915_v15  ;;  %v8575_v36 = vadd.f32 %v1989_v26, %v7859_v20  ;;  %v5916_v42 = vld [vmem:[%s11362_s1 + $0xc8] sm:$0xff]  ;;  %v5793_v20 = vld [vmem:[%s11363_s2 + $0xa70] sm:$0xff]  ;;  %v6013_v26 = vld [vmem:[%s11363_s2 + $0x1020] sm:$0xff] }
 0x31c   : > { %2528 = vmatpush1.msra.mxu1 %v5805_v53  ;;  %2735 = vmatprep.mubr.f32.mxu0 %v11381_v31  ;;  %v5788_v15 = vld [vmem:[%s11363_s2 + $0xa48] sm:$0xff] }
 0x31d   : > { %11397 = vst [vmem:[#allocation27_spill] sm:$0xff] %v8575_v36  ;;  %2529 = vmatprep.subr.mxu1 %v5800_v10  ;;  %2911 = vmatprep.subr.mxu0 %v6020_v60  ;;  %v6014_v53 = vld [vmem:[%s11363_s2 + $0x1028] sm:$0xff]  ;;  %v5787_v10 = vld [vmem:[%s11363_s2 + $0xa40] sm:$0xff]  ;;  %v5890_v60 = vld [vmem:[%s11363_s2 + $0xd78] sm:$0x3] }
 0x31e   : > { %2530 = vmatpush1.msra.mxu1 %v5799_v0  ;;  %2912 = vmatpush1.msra.mxu0 %v6019_v7  ;;  %v5889_v0 = vld [vmem:[%s11363_s2 + $0xd70] sm:$0x3]  ;;  %v5884_v7 = vld [vmem:[%s11363_s2 + $0xd48] sm:$0xff] }
 0x31f   : > { %2531 = vmatprep.subr.mxu1 %v5794_v25  ;;  %5924 = vmatmul.mubr.msk.f32.gmra.mxu0 %vm270_vm1, %v5916_v42  ;;  %v5917_v25 = vld [vmem:[%s11362_s1 + $0xd0] sm:$0xff]  ;;  %v6008_v42 = vld [vmem:[%s11363_s2 + $0xff8] sm:$0xff] }
 0x320   : > { %2532 = vmatpush1.msra.mxu1 %v5793_v20  ;;  %2741 = vmatprep.mubr.f32.mxu0 %v11381_v31  ;;  %v5883_v20 = vld [vmem:[%s11363_s2 + $0xd40] sm:$0xff] }
 0x321   : > { %2533 = vmatprep.subr.mxu1 %v5788_v15  ;;  %2913 = vmatprep.subr.mxu0 %v6014_v53  ;;  %v6007_v15 = vld [vmem:[%s11363_s2 + $0xff0] sm:$0xff]  ;;  %v5918_v53 = vld [vmem:[%s11362_s1 + $0xd8] sm:$0xff] }
 0x322   : > { %2534 = vmatpush1.msra.mxu1 %v5787_v10  ;;  %2914 = vmatpush1.msra.mxu0 %v6013_v26  ;;  %v6022_v10 = vld [vmem:[%s11363_s2 + $0x1068] sm:$0xff] }
 0x323   : > { %5907 = vmatprep.subr.msk.mxu1 %vm759_vm2, %v5890_v60  ;;  %5925 = vmatmul.mubr.msk.f32.gmra.mxu0 %vm270_vm1, %v5917_v25  ;;  %v6002_v26 = vld [vmem:[%s11363_s2 + $0xfc8] sm:$0xff]  ;;  %v6021_v60 = vld [vmem:[%s11363_s2 + $0x1060] sm:$0xff] }
 0x324   : > { %5908 = vmatpush2.msk.msra.mxu1 %vm759_vm2, %v5889_v0  ;;  %2747 = vmatprep.mubr.f32.mxu0 %v11381_v31  ;;  %v6001_v25 = vld [vmem:[%s11363_s2 + $0xfc0] sm:$0xff] }
 0x325   : > { %2565 = vmatprep.subr.mxu1 %v5884_v7  ;;  %2915 = vmatprep.subr.mxu0 %v6008_v42  ;;  %v5919_v0 = vld [vmem:[%s11362_s1 + $0xe0] sm:$0xff]  ;;  %v5996_v7 = vld [vmem:[%s11363_s2 + $0xf98] sm:$0xff]  ;;  %v5920_v42 = vld [vmem:[%s11362_s1 + $0xe8] sm:$0x3f] }
 0x326   : > { %2566 = vmatpush2.msra.mxu1 %v5883_v20  ;;  %2916 = vmatpush1.msra.mxu0 %v6007_v15  ;;  %v6009_v20 = vld [vmem:[%s11363_s2 + $0x1000] sm:$0xff]  ;;  %v6003_v15 = vld [vmem:[%s11363_s2 + $0xfd0] sm:$0xff] }
 0x327   : > { %2568 = vmatmul.mubr.f32.vlgmr.msra.gmra.mxu1 %v8384_v14  ;;  %5926 = vmatmul.mubr.msk.f32.gmra.mxu0 %vm270_vm1, %v5918_v53  ;;  %v6016_v14 = vld [vmem:[%s11363_s2 + $0x1038] sm:$0xff]  ;;  %v5991_v53 = vld [vmem:[%s11363_s2 + $0xf70] sm:$0xff] }
 0x328   : > { %5910 = vmatprep.mubr.msk.f32.mxu1 %vm740_vm3, %v8410_v3  ;;  %2753 = vmatprep.mubr.f32.mxu0 %v11381_v31  ;;  %v6015_v3 = vld [vmem:[%s11363_s2 + $0x1030] sm:$0xff] }
 0x329   : > { %3012 = vmatprep.subr.mxu1 %v6022_v10  ;;  %2917 = vmatprep.subr.mxu0 %v6002_v26  ;;  %v5983_v10 = vld [vmem:[%s11363_s2 + $0xf30] sm:$0xff]  ;;  %v5986_v26 = vld [vmem:[%s11363_s2 + $0xf48] sm:$0xff] }
 0x32a   : > { %3013 = vmatpush1.msra.mxu1 %v6021_v60  ;;  %2918 = vmatpush1.msra.mxu0 %v6001_v25  ;;  %v5978_v60 = vld [vmem:[%s11363_s2 + $0xf08] sm:$0xff]  ;;  %v5985_v25 = vld [vmem:[%s11363_s2 + $0xf40] sm:$0xff] }
 0x32b   : > { %2574 = vmatmul.mubr.f32.gmra.mxu1 %v8398_v4  ;;  %5927 = vmatmul.mubr.msk.f32.gmra.mxu0 %vm270_vm1, %v5919_v0  ;;  %v6010_v4 = vld [vmem:[%s11363_s2 + $0x1008] sm:$0xff]  ;;  %v5977_v0 = vld [vmem:[%s11363_s2 + $0xf00] sm:$0xff] }
 0x32c   : > { %5911 = vmatprep.mubr.msk.f32.mxu1 %vm740_vm3, %v8433_v16  ;;  %2759 = vmatprep.mubr.f32.mxu0 %v11381_v31  ;;  %v6004_v16 = vld [vmem:[%s11363_s2 + $0xfd8] sm:$0xff] }
 0x32d   : > { %3014 = vmatprep.subr.mxu1 %v6016_v14  ;;  %2919 = vmatprep.subr.mxu0 %v5996_v7  ;;  %v5980_v14 = vld [vmem:[%s11363_s2 + $0xf18] sm:$0xff] }
 0x32e   : > { %3015 = vmatpush1.msra.mxu1 %v6015_v3  ;;  %v5972_v7 = vld [vmem:[%s11363_s2 + $0xed8] sm:$0xff]  ;;  %v5979_v3 = vld [vmem:[%s11363_s2 + $0xf10] sm:$0xff] }
 0x32f   : > { %2580 = vmatmul.mubr.f32.gmra.mxu1 %v8420_v9  ;;  %5928 = vmatmul.mubr.msk.f32.gmra.mxu0 %vm270_vm1, %v5920_v42  ;;  %v5998_v9 = vld [vmem:[%s11363_s2 + $0xfa8] sm:$0xff]  ;;  %v5971_v42 = vld [vmem:[%s11363_s2 + $0xed0] sm:$0xff] }
 0x330   : > { %5912 = vmatprep.mubr.msk.f32.mxu1 %vm740_vm3, %v8460_v12  ;;  %3016 = vmatprep.subr.mxu1 %v6010_v4  ;;  %v5995_v12 = vld [vmem:[%s11363_s2 + $0xf90] sm:$0xff]  ;;  %v5974_v4 = vld [vmem:[%s11363_s2 + $0xee8] sm:$0xff] }
 0x331   : > { %3017 = vmatpush1.msra.mxu1 %v6009_v20  ;;  %2920 = vmatpush1.msra.mxu0 %v5995_v12  ;;  %v5966_v20 = vld [vmem:[%s11363_s2 + $0xea8] sm:$0xff]  ;;  %v5968_v12 = vld [vmem:[%s11363_s2 + $0xeb8] sm:$0xff] }
 0x332   : > { %3018 = vmatprep.subr.mxu1 %v6004_v16  ;;  %v5973_v16 = vld [vmem:[%s11363_s2 + $0xee0] sm:$0xff] }
 0x333   : > { %2586 = vmatmul.mubr.f32.gmra.mxu1 %v8445_v8  ;;  %v5990_v8 = vld [vmem:[%s11363_s2 + $0xf68] sm:$0xff] }
 0x334   : > { %5913 = vmatprep.mubr.msk.f32.mxu1 %vm740_vm3, %v8485_v11  ;;  %3019 = vmatpush1.msra.mxu1 %v6003_v15  ;;  %v5992_v11 = vld [vmem:[%s11363_s2 + $0xf78] sm:$0xff]  ;;  %v5965_v15 = vld [vmem:[%s11363_s2 + $0xea0] sm:$0xff] }
 0x335   : > { %3020 = vmatprep.subr.mxu1 %v5998_v9  ;;  %2921 = vmatprep.subr.mxu0 %v5990_v8  ;;  %v5960_v9 = vld [vmem:[%s11363_s2 + $0xe78] sm:$0xff]  ;;  %v5967_v8 = vld [vmem:[%s11363_s2 + $0xeb0] sm:$0xff] }
 0x337   : > { %2592 = vmatmul.mubr.f32.gmra.mxu1 %v8467_v1  ;;  %v5997_v1 = vld [vmem:[%s11363_s2 + $0xfa0] sm:$0xff] }
 0x338   : > { %5914 = vmatprep.mubr.msk.f32.mxu1 %vm740_vm3, %v8518_v13  ;;  %3021 = vmatpush1.msra.mxu1 %v5997_v1  ;;  %v5984_v13 = vld [vmem:[%s11363_s2 + $0xf38] sm:$0xff]  ;;  %v5959_v1 = vld [vmem:[%s11363_s2 + $0xe70] sm:$0xff] }
 0x339   : > { %3022 = vmatprep.subr.mxu1 %v5992_v11  ;;  %v5954_v11 = vld [vmem:[%s11363_s2 + $0xe48] sm:$0xff] }
 0x33a   : > { %3023 = vmatpush1.msra.mxu1 %v5991_v53  ;;  %v5953_v53 = vld [vmem:[%s11363_s2 + $0xe40] sm:$0xff] }
 0x33b   : > { %2598 = vmatmul.mubr.f32.gmra.mxu1 %v8495_v22  ;;  %v5989_v22 = vld [vmem:[%s11363_s2 + $0xf60] sm:$0xff]  ;;  %3024 = vmatprep.subr.mxu1 %v5986_v26  ;;  %v5948_v26 = vld [vmem:[%s11363_s2 + $0xe18] sm:$0xff] }
 0x33c   : > { %2922 = vmatpush1.msra.mxu0 %v5989_v22  ;;  %3025 = vmatpush1.msra.mxu1 %v5985_v25  ;;  %v5962_v22 = vld [vmem:[%s11363_s2 + $0xe88] sm:$0xff]  ;;  %v5947_v25 = vld [vmem:[%s11363_s2 + $0xe10] sm:$0xff] }
 0x33d   : > { %2923 = vmatprep.subr.mxu0 %v5984_v13  ;;  %3026 = vmatprep.subr.mxu1 %v5980_v14  ;;  %v5961_v13 = vld [vmem:[%s11363_s2 + $0xe80] sm:$0xff]  ;;  %v5942_v14 = vld [vmem:[%s11363_s2 + $0xde8] sm:$0xff] }
 0x33e   : > { %2924 = vmatpush1.msra.mxu0 %v5983_v10  ;;  %3027 = vmatpush1.msra.mxu1 %v5979_v3  ;;  %v5956_v10 = vld [vmem:[%s11363_s2 + $0xe58] sm:$0xff]  ;;  %v5941_v3 = vld [vmem:[%s11363_s2 + $0xde0] sm:$0xff] }
 0x33f   : > { %2925 = vmatprep.subr.mxu0 %v5978_v60  ;;  %3028 = vmatprep.subr.mxu1 %v5974_v4  ;;  %v5955_v60 = vld [vmem:[%s11363_s2 + $0xe50] sm:$0xff]  ;;  %v5936_v4 = vld [vmem:[%s11363_s2 + $0xdb8] sm:$0xff] }
 0x340   : > { %2926 = vmatpush1.msra.mxu0 %v5977_v0  ;;  %3029 = vmatpush1.msra.mxu1 %v5973_v16  ;;  %v5950_v0 = vld [vmem:[%s11363_s2 + $0xe28] sm:$0xff]  ;;  %v5935_v16 = vld [vmem:[%s11363_s2 + $0xdb0] sm:$0xff] }
 0x341   : > { %2927 = vmatprep.subr.mxu0 %v5972_v7  ;;  %3030 = vmatprep.subr.mxu1 %v5968_v12  ;;  %v5949_v7 = vld [vmem:[%s11363_s2 + $0xe20] sm:$0xff]  ;;  %v5930_v12 = vld [vmem:[%s11363_s2 + $0xd88] sm:$0xff] }
 0x342   : > { %2928 = vmatpush1.msra.mxu0 %v5971_v42  ;;  %3031 = vmatpush1.msra.mxu1 %v5967_v8  ;;  %v5944_v42 = vld [vmem:[%s11363_s2 + $0xdf8] sm:$0xff]  ;;  %v5929_v8 = vld [vmem:[%s11363_s2 + $0xd80] sm:$0xff] }
 0x343   : > { %2929 = vmatprep.subr.mxu0 %v5966_v20  ;;  %3032 = vmatprep.subr.mxu1 %v5962_v22  ;;  %v5943_v20 = vld [vmem:[%s11363_s2 + $0xdf0] sm:$0xff]  ;;  %v6032_v22 = vld [vmem:[%s11363_s2 + $0x10b8] sm:$0x3] }
 0x344   : > { %2930 = vmatpush1.msra.mxu0 %v5965_v15  ;;  %3033 = vmatpush1.msra.mxu1 %v5961_v13  ;;  %v5938_v15 = vld [vmem:[%s11363_s2 + $0xdc8] sm:$0xff]  ;;  %v6031_v13 = vld [vmem:[%s11363_s2 + $0x10b0] sm:$0x3] }
 0x345   : > { %2931 = vmatprep.subr.mxu0 %v5960_v9  ;;  %3034 = vmatprep.subr.mxu1 %v5956_v10  ;;  %v5937_v9 = vld [vmem:[%s11363_s2 + $0xdc0] sm:$0xff]  ;;  %v6026_v10 = vld [vmem:[%s11363_s2 + $0x1088] sm:$0xff] }
 0x346   : > { %2932 = vmatpush1.msra.mxu0 %v5959_v1  ;;  %3035 = vmatpush1.msra.mxu1 %v5955_v60  ;;  %v5932_v1 = vld [vmem:[%s11363_s2 + $0xd98] sm:$0xff]  ;;  %v6025_v60 = vld [vmem:[%s11363_s2 + $0x1080] sm:$0xff] }
 0x347   : > { %2933 = vmatprep.subr.mxu0 %v5954_v11  ;;  %3036 = vmatprep.subr.mxu1 %v5950_v0  ;;  %v5931_v11 = vld [vmem:[%s11363_s2 + $0xd90] sm:$0xff] }
 0x348   : > { %2934 = vmatpush1.msra.mxu0 %v5953_v53  ;;  %3037 = vmatpush1.msra.mxu1 %v5949_v7  ;;  %v6034_v53 = vld [vmem:[%s11363_s2 + $0x10c8] sm:$0x3]  ;;  %v6027_v0 = vld [vmem:[%s11363_s2 + $0x1090] sm:$0xff]  ;;  %v8864_v7 = vpop.f32.mrf.mxu1 }
 0x349   : > { %2935 = vmatprep.subr.mxu0 %v5948_v26  ;;  %3038 = vmatprep.subr.mxu1 %v5944_v42  ;;  %v6033_v26 = vld [vmem:[%s11363_s2 + $0x10c0] sm:$0x3]  ;;  %11398 = vst [vmem:[#allocation28_spill] sm:$0xff] %v8864_v7  ;;  %v1287_v42 = vadd.f32 %v8317_v23, %v7771_v2  ;;  %v1293_v2 = vadd.f32 %v8319_v17, %v7775_v38 }
 0x34a   : > { %2936 = vmatpush1.msra.mxu0 %v5947_v25  ;;  %3039 = vmatpush1.msra.mxu1 %v5943_v20  ;;  %v6028_v25 = vld [vmem:[%s11363_s2 + $0x1098] sm:$0xff] }
 0x34b   : > { %2937 = vmatprep.subr.mxu0 %v5942_v14  ;;  %3040 = vmatprep.subr.mxu1 %v5938_v15  ;;  %v6024_v14 = vld [vmem:[%s11363_s2 + $0x1078] sm:$0xff]  ;;  %v1997_v15 = vadd.f32 %v8331_v24, %v1287_v42 }
 0x34c   : > { %2938 = vmatpush1.msra.mxu0 %v5941_v3  ;;  %3041 = vmatpush1.msra.mxu1 %v5937_v9  ;;  %v1186_v3 = vadd.f32 %v7801_v55, %v7787_v27 }
 0x34d   : > { %2939 = vmatprep.subr.mxu0 %v5936_v4  ;;  %3042 = vmatprep.subr.mxu1 %v5932_v1 }
 0x34e   : > { %2940 = vmatpush1.msra.mxu0 %v5935_v16  ;;  %3043 = vmatpush1.msra.mxu1 %v5931_v11  ;;  %v1995_v16 = vadd.f32 %v8329_v30, %v1186_v3  ;;  %v2003_v30 = vadd.f32 %v8341_v35, %v1293_v2  ;;  %v6012_v2 = vld [vmem:[%s11363_s2 + $0x1018] sm:$0xff] }
 0x34f   : > { %2941 = vmatprep.subr.mxu0 %v5930_v12  ;;  %6045 = vmatprep.subr.msk.mxu1 %vm759_vm2, %v6034_v53 }
 0x350   : > { %2942 = vmatpush1.msra.mxu0 %v5929_v8  ;;  %6046 = vmatpush2.msk.msra.mxu1 %vm759_vm2, %v6033_v26 }
 0x351   : > { %6037 = vmatprep.subr.msk.mxu0 %vm759_vm2, %v6032_v22  ;;  %3074 = vmatprep.subr.mxu1 %v6028_v25 }
 0x352   : > { %6038 = vmatpush2.msk.msra.mxu0 %vm759_vm2, %v6031_v13  ;;  %3075 = vmatpush2.msra.mxu1 %v6027_v0 }
 0x353   : > { %2973 = vmatprep.subr.mxu0 %v6026_v10 }
 0x354   : > { %2974 = vmatpush2.msra.mxu0 %v6025_v60 }
 0x355   : > { %3113 = vmatprep.subr.mxu0 %v6024_v14 }
 0x3be   : > { %v2367_v4 = vpop.f32.mrf.mxu1  ;;  %v2468_v20 = vpop.f32.mrf.mxu0 }
 0x3bf   : > { %v8873_v12 = vadd.f32 %v2367_v4, %v8325_v59  ;;  %v8876_v9 = vadd.f32 %v2468_v20, %v8327_v32 }
 0x3c0   : > { %v2369_v8 = vpop.f32.mrf.mxu1  ;;  %v2470_v1 = vpop.f32.mrf.mxu0 }
 0x3c1   : > { %11399 = vst [vmem:[#allocation29_spill] sm:$0xff] %v8876_v9  ;;  %v8878_v22 = vadd.f32 %v2369_v8, %v1995_v16  ;;  %v8880_v27 = vadd.f32 %v2470_v1, %v1997_v15  ;;  %v11427_v9 = vld [vmem:[#allocation17_spill] sm:$0xff] }
 0x3c3   : > { %11400 = vst [vmem:[#allocation30_spill] sm:$0xff] %v8880_v27  ;;  %v8884_v55 = vpop.f32.mrf.mxu1  ;;  %v2474_v23 = vpop.f32.mrf.mxu0 }
 0x3c4   : > { %v8888_v59 = vadd.f32 %v2474_v23, %v8337_v37 }
 0x3c5   : > { %v8890_v24 = vpop.f32.mrf.mxu1  ;;  %v2476_v32 = vpop.f32.mrf.mxu0 }
 0x3c6   : > { %v8892_v11 = vadd.f32 %v2476_v32, %v2003_v30  ;;  %v6011_v32 = vld [vmem:[%s11363_s2 + $0x1010] sm:$0xff] }
 0x3c7   : > { %v8894_v53 = vpop.f32.mrf.mxu1 }
 0x3c8   : > { %v2480_v13 = vpop.f32.mrf.mxu0 }
 0x3c9   : > { %v8897_v10 = vadd.f32 %v2480_v13, %v8348_v58  ;;  %v8902_v26 = vpop.f32.mrf.mxu1 }
 0x3ca   : > { %v2482_v38 = vpop.f32.mrf.mxu0 }
 0x3cb   : > { %v8900_v17 = vadd.f32 %v2482_v38, %v8352_v49  ;;  %v6006_v38 = vld [vmem:[%s11363_s2 + $0xfe8] sm:$0xff] }
 0x3cc   : > { %v8910_v0 = vpop.f32.mrf.mxu1 }
 0x3cd   : > { %v2486_v35 = vpop.f32.mrf.mxu0 }
 0x3ce   : > { %v8905_v37 = vadd.f32 %v2486_v35, %v8359_v28  ;;  %v8915_v42 = vpop.f32.mrf.mxu1  ;;  %v1317_v28 = vadd.f32 %v8321_v29, %v7795_v19  ;;  %v6023_v19 = vld [vmem:[%s11363_s2 + $0x1070] sm:$0xff]  ;;  %v6018_v29 = vld [vmem:[%s11363_s2 + $0x1048] sm:$0xff]  ;;  %v6005_v35 = vld [vmem:[%s11363_s2 + $0xfe0] sm:$0xff] }
 0x3cf   : > { %v2488_v60 = vpop.f32.mrf.mxu0 }
 0x3d0   : > { %v8908_v25 = vadd.f32 %v2488_v60, %v8363_v50  ;;  %v2027_v20 = vadd.f32 %v8382_v6, %v1317_v28  ;;  %v6017_v6 = vld [vmem:[%s11363_s2 + $0x1040] sm:$0xff]  ;;  %v1388_v28 = vadd.f32 %v7837_v61, %v7827_v52 }
 0x3d1   : > { %v8926_v16 = vpop.f32.mrf.mxu1 }
 0x3d2   : > { %v2492_v14 = vpop.f32.mrf.mxu0  ;;  %v1999_v52 = vadd.f32 %v8458_v34, %v1388_v28  ;;  %v5988_v34 = vld [vmem:[%s11363_s2 + $0xf58] sm:$0xff] }
 0x3d3   : > { %v8913_v58 = vadd.f32 %v2492_v14, %v8370_v62  ;;  %v8932_v1 = vpop.f32.mrf.mxu1 }
 0x3d4   : > { %v2494_v3 = vpop.f32.mrf.mxu0 }
 0x3d5   : > { %v8918_v49 = vadd.f32 %v2494_v3, %v8374_v47  ;;  %v6000_v3 = vld [vmem:[%s11363_s2 + $0xfb8] sm:$0xff] }
 0x3d6   : > { %v8956_v23 = vpop.f32.mrf.mxu1 }
 0x3d7   : > { %v2498_v4 = vpop.f32.mrf.mxu0 }
 0x3d8   : > { %v8924_v50 = vadd.f32 %v2498_v4, %v8380_v44  ;;  %v8977_v60 = vpop.f32.mrf.mxu1  ;;  %v5999_v4 = vld [vmem:[%s11363_s2 + $0xfb0] sm:$0xff] }
 0x3d9   : > { %v2500_v15 = vpop.f32.mrf.mxu0 }
 0x3da   : > { %v8928_v62 = vadd.f32 %v2500_v15, %v2027_v20 }
 0x3db   : > { %v8930_v8 = vpop.f32.mrf.mxu0 }
 0x3dd   : > { %v8934_v47 = vpop.f32.mrf.mxu0 }
 0x3de   : > { %6039 = vmatprep.mubr.msk.f32.mxu0 %vm740_vm3, %v8934_v47  ;;  %6047 = vmatprep.mubr.msk.f32.mxu1 %vm740_vm3, %v8934_v47 }
 0x3df   : > { %v8946_v44 = vpop.f32.mrf.mxu0  ;;  %2976 = vmatmul.mubr.f32.vlgmr.msra.gmra.mxu0 %v8930_v8  ;;  %3077 = vmatmul.mubr.f32.vlgmr.msra.gmra.mxu1 %v8930_v8 }
 0x3e0   : > { %3114 = vmatpush1.msra.mxu0 %v6023_v19  ;;  %v5994_v19 = vld [vmem:[%s11363_s2 + $0xf88] sm:$0xff] }
 0x3e1   : > { %3115 = vmatprep.subr.mxu0 %v6018_v29  ;;  %v8958_v30 = vpop.f32.mrf.mxu0  ;;  %v5993_v29 = vld [vmem:[%s11363_s2 + $0xf80] sm:$0xff] }
 0x3e2   : > { %3116 = vmatpush1.msra.mxu0 %v6017_v6  ;;  %6040 = vmatprep.mubr.msk.f32.mxu0 %vm740_vm3, %v8958_v30 }
 0x3e3   : > { %6048 = vmatprep.mubr.msk.f32.mxu1 %vm740_vm3, %v8958_v30  ;;  %3117 = vmatprep.subr.mxu0 %v6012_v2  ;;  %v8967_v13 = vpop.f32.mrf.mxu0 }
 0x3e4   : > { %2982 = vmatmul.mubr.f32.gmra.mxu0 %v8946_v44  ;;  %3083 = vmatmul.mubr.f32.gmra.mxu1 %v8946_v44 }
 0x3e5   : > { %3118 = vmatpush1.msra.mxu0 %v6011_v32  ;;  %v8979_v14 = vpop.f32.mrf.mxu0 }
 0x3e6   : > { %3119 = vmatprep.subr.mxu0 %v6006_v38  ;;  %6041 = vmatprep.mubr.msk.f32.mxu0 %vm740_vm3, %v8979_v14  ;;  %v5987_v38 = vld [vmem:[%s11363_s2 + $0xf50] sm:$0xff] }
 0x3e7   : > { %3120 = vmatpush1.msra.mxu0 %v6005_v35  ;;  %v2569_v20 = vpop.f32.mrf.mxu1  ;;  %6049 = vmatprep.mubr.msk.f32.mxu1 %vm740_vm3, %v8979_v14  ;;  %v8993_v15 = vpop.f32.mrf.mxu0 }
 0x3e8   : > { %v9000_v61 = vadd.f32 %v2569_v20, %v8451_v54  ;;  %3121 = vmatprep.subr.mxu0 %v6000_v3  ;;  %2988 = vmatmul.mubr.f32.gmra.mxu0 %v8967_v13  ;;  %v1394_v54 = vadd.f32 %v7841_v18, %v7829_v21  ;;  %v5982_v21 = vld [vmem:[%s11363_s2 + $0xf28] sm:$0xff] }
 0x3e9   : > { %3089 = vmatmul.mubr.f32.gmra.mxu1 %v8967_v13  ;;  %3122 = vmatpush1.msra.mxu0 %v5999_v4  ;;  %v2571_v6 = vpop.f32.mrf.mxu1  ;;  %v9007_v2 = vpop.f32.mrf.mxu0  ;;  %v5981_v4 = vld [vmem:[%s11363_s2 + $0xf20] sm:$0xff] }
 0x3ea   : > { %11401 = vst [vmem:[#allocation31_spill] sm:$0xff] %v9000_v61  ;;  %v9014_v32 = vadd.f32 %v2571_v6, %v1999_v52  ;;  %3123 = vmatprep.subr.mxu0 %v5994_v19  ;;  %6042 = vmatprep.mubr.msk.f32.mxu0 %vm740_vm3, %v9007_v2  ;;  %v2005_v18 = vadd.f32 %v8483_v40, %v1394_v54  ;;  %v5976_v40 = vld [vmem:[%s11363_s2 + $0xef8] sm:$0xff] }
 0x3eb   : > { %3124 = vmatpush1.msra.mxu0 %v5993_v29  ;;  %v2575_v35 = vpop.f32.mrf.mxu1  ;;  %6050 = vmatprep.mubr.msk.f32.mxu1 %vm740_vm3, %v9007_v2  ;;  %v9023_v3 = vpop.f32.mrf.mxu0  ;;  %v5975_v29 = vld [vmem:[%s11363_s2 + $0xef0] sm:$0xff] }
 0x3ec   : > { %11402 = vst [vmem:[#allocation32_spill] sm:$0xff] %v9014_v32  ;;  %v9030_v28 = vadd.f32 %v2575_v35, %v8473_v5  ;;  %3125 = vmatprep.subr.mxu0 %v5988_v34  ;;  %2994 = vmatmul.mubr.f32.gmra.mxu0 %v8993_v15  ;;  %v1400_v5 = vadd.f32 %v7847_v33, %v7833_v57  ;;  %v5970_v57 = vld [vmem:[%s11363_s2 + $0xec8] sm:$0xff] }
 0x3ed   : > { %3095 = vmatmul.mubr.f32.gmra.mxu1 %v8993_v15  ;;  %3126 = vmatpush1.msra.mxu0 %v5987_v38  ;;  %v2577_v20 = vpop.f32.mrf.mxu1  ;;  %v9037_v19 = vpop.f32.mrf.mxu0  ;;  %v5969_v38 = vld [vmem:[%s11363_s2 + $0xec0] sm:$0xff]  ;;  %v1204_v32 = vadd.f32 %v7817_v41, %v7807_v63  ;;  %v11421_v41 = vld [vmem:[#allocation21_spill] sm:$0xff] }
 0x3ee   : > { %11403 = vst [vmem:[#allocation33_spill] sm:$0xff] %v9030_v28  ;;  %v9044_v52 = vadd.f32 %v2577_v20, %v2005_v18  ;;  %3127 = vmatprep.subr.mxu0 %v5982_v21  ;;  %6043 = vmatprep.mubr.msk.f32.mxu0 %vm740_vm3, %v9037_v19  ;;  %v2011_v33 = vadd.f32 %v8508_v46, %v1400_v5  ;;  %v5964_v18 = vld [vmem:[%s11363_s2 + $0xe98] sm:$0xff]  ;;  %v5957_v20 = vld [vmem:[%s11363_s2 + $0xe60] sm:$0xff]  ;;  %v5951_v5 = vld [vmem:[%s11363_s2 + $0xe30] sm:$0xff] }
 0x3ef   : > { %3128 = vmatpush1.msra.mxu0 %v5981_v4  ;;  %v2581_v6 = vpop.f32.mrf.mxu1  ;;  %6051 = vmatprep.mubr.msk.f32.mxu1 %vm740_vm3, %v9037_v19  ;;  %v2761_v34 = vpop.f32.mrf.mxu0  ;;  %v5958_v4 = vld [vmem:[%s11363_s2 + $0xe68] sm:$0xff]  ;;  %v2634_v56 = vadd.f32 %v8956_v23, %v11421_v41 }
 0x3f0   : > { %11404 = vst [vmem:[#allocation34_spill] sm:$0xff] %v9044_v52  ;;  %v9058_v54 = vadd.f32 %v2581_v6, %v8499_v51  ;;  %3129 = vmatprep.subr.mxu0 %v5976_v40  ;;  %3000 = vmatmul.mubr.f32.gmra.mxu0 %v9023_v3  ;;  %v5963_v51 = vld [vmem:[%s11363_s2 + $0xe90] sm:$0xff]  ;;  %v5952_v40 = vld [vmem:[%s11363_s2 + $0xe38] sm:$0xff]  ;;  %v5945_v6 = vld [vmem:[%s11363_s2 + $0xe00] sm:$0xff] }
 0x3f1   : > { %3101 = vmatmul.mubr.f32.gmra.mxu1 %v9023_v3  ;;  %3130 = vmatpush1.msra.mxu0 %v5975_v29  ;;  %v2583_v35 = vpop.f32.mrf.mxu1  ;;  %v2763_v21 = vpop.f32.mrf.mxu0  ;;  %v5946_v29 = vld [vmem:[%s11363_s2 + $0xe08] sm:$0xff]  ;;  %v11415_v52 = vld [vmem:[#allocation6_spill] sm:$0xff] }
 0x3f2   : > { %11405 = vst [vmem:[#allocation35_spill] sm:$0xff] %v9058_v54  ;;  %v9068_v46 = vadd.f32 %v2583_v35, %v2011_v33  ;;  %3131 = vmatprep.subr.mxu0 %v5970_v57  ;;  %6044 = vmatprep.mubr.msk.f32.mxu0 %vm740_vm3, %v2763_v21  ;;  %v5939_v57 = vld [vmem:[%s11363_s2 + $0xdd0] sm:$0xff]  ;;  %v5934_v33 = vld [vmem:[%s11363_s2 + $0xda8] sm:$0xff]  ;;  %v6036_v35 = vld [vmem:[%s11363_s2 + $0x10d8] sm:$0x3]  ;;  %v1216_v54 = vadd.f32 %v11415_v52, %v7821_v45 }
 0x3f3   : > { %3132 = vmatpush1.msra.mxu0 %v5969_v38  ;;  %6052 = vmatprep.mubr.msk.f32.mxu1 %vm740_vm3, %v2763_v21  ;;  %v5933_v38 = vld [vmem:[%s11363_s2 + $0xda0] sm:$0xff] }
 0x3f4   : > { %11406 = vst [vmem:[#allocation36_spill] sm:$0xff] %v9068_v46  ;;  %3133 = vmatprep.subr.mxu0 %v5964_v18  ;;  %3006 = vmatmul.mubr.f32.gmra.mxu0 %v2761_v34  ;;  %v6035_v18 = vld [vmem:[%s11363_s2 + $0x10d0] sm:$0x3]  ;;  %v9191_v45 = vld [vmem:[%s11364_s3] sm:$0x3f] }
 0x3f5   : > { %3107 = vmatmul.mubr.f32.gmra.mxu1 %v2761_v34  ;;  %3134 = vmatpush1.msra.mxu0 %v5963_v51  ;;  %v6030_v51 = vld [vmem:[%s11363_s2 + $0x10a8] sm:$0xff]  ;;  %v11416_v46 = vld [vmem:[#allocation20_spill] sm:$0xff] }
 0x3f6   : > { %3135 = vmatprep.subr.mxu0 %v5958_v4  ;;  %6055 = vmatprep.mubr.msk.f32.mxu0 %vm740_vm3, %v8934_v47  ;;  %v5940_v47 = vld [vmem:[%s11363_s2 + $0xdd8] sm:$0xff]  ;;  %v6029_v4 = vld [vmem:[%s11363_s2 + $0x10a0] sm:$0xff] }
 0x3f7   : > { %3136 = vmatpush1.msra.mxu0 %v5957_v20  ;;  %3444 = vmatprep.mubr.f32.mxu1 %v11381_v31 }
 0x3f8   : > { %3137 = vmatprep.subr.mxu0 %v5952_v40 }
 0x3f9   : > { %3138 = vmatpush1.msra.mxu0 %v5951_v5 }
 0x3fa   : > { %3139 = vmatprep.subr.mxu0 %v5946_v29 }
 0x3fb   : > { %3140 = vmatpush1.msra.mxu0 %v5945_v6 }
 0x3fc   : > { %3141 = vmatprep.subr.mxu0 %v5940_v47  ;;  %v3252_v47 = vlaneseq }
 0x3fd   : > { %3142 = vmatpush1.msra.mxu0 %v5939_v57 }
 0x3fe   : > { %3143 = vmatprep.subr.mxu0 %v5934_v33 }
 0x3ff   : > { %3144 = vmatpush1.msra.mxu0 %v5933_v38 }
 0x400   : > { %6053 = vmatprep.subr.msk.mxu0 %vm759_vm2, %v6036_v35 }
 0x401   : > { %6054 = vmatpush2.msk.msra.mxu0 %vm759_vm2, %v6035_v18  ;;  %v9167_v18 = vshrl.u32 %v3252_v47, 7  ;;  %v11418_v47 = vld [vmem:[#allocation5_spill] sm:$0xff] }
 0x402   : > { %3175 = vmatprep.subr.mxu0 %v6030_v51 }
 0x403   : > { %3176 = vmatpush2.msra.mxu0 %v6029_v4  ;;  %v1210_v4 = vadd.f32 %v7823_v48, %v7813_v39  ;;  %v3254_v39 = vsub.s32 0, %v9167_v18  ;;  %v3258_v52 = vsub.s32 1, %v9167_v18 }
 0x404   : > { %3178 = vmatmul.mubr.f32.vlgmr.msra.gmra.mxu0 %v8930_v8  ;;  %v9137_v8 = vpop.f32.mrf.mxu1 }
 0x405   : > { %6056 = vmatprep.mubr.msk.f32.mxu0 %vm740_vm3, %v8958_v30  ;;  %11407 = vst [vmem:[#allocation37_spill] sm:$0xff] %v9137_v8  ;;  %v2019_v8 = vadd.f32 %v11416_v46, %v1210_v4  ;;  %v11422_v46 = vld [vmem:[#allocation2_spill] sm:$0xff] }
 0x407   : > { %v2629_v63 = vadd.f32 %v8932_v1, %v2019_v8 }
 0x408   : > { %3184 = vmatmul.mubr.f32.gmra.mxu0 %v8946_v44  ;;  %v9139_v44 = vpop.f32.mrf.mxu1 }
 0x409   : > { %6057 = vmatprep.mubr.msk.f32.mxu0 %vm740_vm3, %v8979_v14  ;;  %11408 = vst [vmem:[#allocation38_spill] sm:$0xff] %v9139_v44  ;;  %v11417_v44 = vld [vmem:[#allocation3_spill] sm:$0xff] }
 0x40a   : > { %v9141_v30 = vpop.f32.mrf.mxu1 }
 0x40b   : > { %11409 = vst [vmem:[#allocation39_spill] sm:$0xff] %v9141_v30  ;;  %v1198_v30 = vadd.f32 %v11418_v47, %v11417_v44  ;;  %v11423_v44 = vld [vmem:[#allocation4_spill] sm:$0xff]  ;;  %v11425_v47 = vld [vmem:[#allocation19_spill] sm:$0xff] }
 0x40c   : > { %3190 = vmatmul.mubr.f32.gmra.mxu0 %v8967_v13  ;;  %v9143_v13 = vpop.f32.mrf.mxu1 }
 0x40d   : > { %6058 = vmatprep.mubr.msk.f32.mxu0 %vm740_vm3, %v9007_v2  ;;  %11410 = vst [vmem:[#allocation40_spill] sm:$0xff] %v9143_v13  ;;  %v11420_v13 = vld [vmem:[#allocation22_spill] sm:$0xff] }
 0x40e   : > { %v9145_v14 = vpop.f32.mrf.mxu1  ;;  %v2025_v7 = vadd.f32 %v11420_v13, %v1216_v54  ;;  %v2628_v54 = vadd.f32 %v8926_v16, %v11425_v47  ;;  %v3259_v16 = vrot.slane %v9191_v45, %v3258_v52 }
 0x40f   : > { %11411 = vst [vmem:[#allocation41_spill] sm:$0xff] %v9145_v14  ;;  %v11419_v14 = vld [vmem:[#allocation18_spill] sm:$0xff] }
 0x410   : > { %3196 = vmatmul.mubr.f32.gmra.mxu0 %v8993_v15  ;;  %v9147_v15 = vpop.f32.mrf.mxu1  ;;  %v2013_v36 = vadd.f32 %v11419_v14, %v1204_v32  ;;  %v1192_v32 = vadd.f32 %v11423_v44, %v11422_v46  ;;  %v11424_v14 = vld [vmem:[#allocation16_spill] sm:$0xff]  ;;  %v2635_v23 = vadd.f32 %v8977_v60, %v2025_v7  ;;  %v3255_v46 = vrot.slane %v9191_v45, %v3254_v39  ;;  %v11429_v39 = vld [vmem:[#allocation13_spill] sm:$0xff] }
 0x411   : > { %6059 = vmatprep.mubr.msk.f32.mxu0 %vm740_vm3, %v9037_v19  ;;  %11412 = vst [vmem:[#allocation42_spill] sm:$0xff] %v9147_v15  ;;  %v2007_v4 = vadd.f32 %v11424_v14, %v1198_v30 }
 0x412   : > { %v2623_v8 = vadd.f32 %v8915_v42, %v2013_v36  ;;  %v11428_v36 = vld [vmem:[#allocation15_spill] sm:$0xff] }
 0x413   : > { %v2617_v14 = vadd.f32 %v8902_v26, %v2007_v4  ;;  %v2616_v7 = vadd.f32 %v8894_v53, %v11428_v36 }
 0x414   : > { %3202 = vmatmul.mubr.f32.gmra.mxu0 %v9023_v3 }
 0x415   : > { %6060 = vmatprep.mubr.msk.f32.mxu0 %vm740_vm3, %v2763_v21 }
 0x418   : > { %3208 = vmatmul.mubr.f32.gmra.mxu0 %v2761_v34 }
 0x419   : > { %3684 = vmatprep.mubr.f32.mxu0 %v11381_v31  ;;  %v11426_v31 = vld [vmem:[#allocation14_spill] sm:$0xff] }
 0x49f   : > { %v9149_v2 = vpop.f32.mrf.mxu0  ;;  %v9151_v3 = vpop.f32.mrf.mxu1 }
 0x4a0   : > { %11413 = vst [vmem:[#allocation43_spill] sm:$0xff] %v9151_v3  ;;  %v2001_v3 = vadd.f32 %v11426_v31, %v1192_v32 }
 0x4a1   : > { %v9153_v19 = vpop.f32.mrf.mxu0  ;;  %v9155_v34 = vpop.f32.mrf.mxu1 }
 0x4a2   : > { %11414 = vst [vmem:[#allocation44_spill] sm:$0xff] %v9155_v34  ;;  %v2622_v34 = vadd.f32 %v8910_v0, %v11427_v9  ;;  %v2611_v31 = vadd.f32 %v8890_v24, %v2001_v3  ;;  %v3215_v24 = vadd.f32 %v9153_v19, %v8878_v22  ;;  %v3266_v3 = vsub.s32 3, %v9167_v18 }
 0x4a4   : > { %v2983_v21 = vpop.f32.mrf.mxu0  ;;  %v9157_v20 = vpop.f32.mrf.mxu1 }
 0x4a6   : > { %v2985_v40 = vpop.f32.mrf.mxu0  ;;  %v9159_v5 = vpop.f32.mrf.mxu1 }
 0x4a7   : > { %v3221_v32 = vadd.f32 %v2985_v40, %v2611_v31 }
 0x4a8   : > { %v2989_v29 = vpop.f32.mrf.mxu0 }
 0x4a9   : > { %v9161_v6 = vpop.f32.mrf.mxu1  ;;  %v3289_v22 = vadd.f32 %v3259_v16, %v3221_v32 }
 0x4aa   : > { %v2991_v57 = vpop.f32.mrf.mxu0 }
 0x4ab   : > { %v9163_v33 = vpop.f32.mrf.mxu1 }
 0x4ac   : > { %v2995_v38 = vpop.f32.mrf.mxu0 }
 0x4ad   : > { %v9165_v35 = vpop.f32.mrf.mxu1  ;;  %v3232_v42 = vadd.f32 %v2995_v38, %v2622_v34 }
 0x4ae   : > { %v2997_v51 = vpop.f32.mrf.mxu0 }
 0x4af   : > { %v9171_v61 = vpop.f32.mrf.mxu1  ;;  %v3233_v47 = vadd.f32 %v2997_v51, %v2623_v8  ;;  %v9245_v8 = vrot.slane %v9191_v45, %v3266_v3 }
 0x4b0   : > { %v3001_v28 = vpop.f32.mrf.mxu0 }
 0x4b1   : > { %v9178_v15 = vpop.f32.mrf.mxu1  ;;  %v3238_v44 = vadd.f32 %v3001_v28, %v2628_v54  ;;  %v2610_v28 = vadd.f32 %v8884_v55, %v11429_v39  ;;  %v3301_v52 = vadd.f32 %v3259_v16, %v3233_v47  ;;  %v3300_v54 = vadd.f32 %v3255_v46, %v3232_v42 }
 0x4b2   : > { %v3003_v48 = vpop.f32.mrf.mxu0  ;;  %v3214_v55 = vadd.f32 %v9149_v2, %v8873_v12 }
 0x4b3   : > { %v3104_v13 = vpop.f32.mrf.mxu1  ;;  %v3239_v41 = vadd.f32 %v3003_v48, %v2629_v63  ;;  %v3227_v48 = vadd.f32 %v2991_v57, %v2617_v14  ;;  %v3226_v63 = vadd.f32 %v2989_v29, %v2616_v7  ;;  %v3306_v26 = vadd.f32 %v3255_v46, %v3238_v44 }
 0x4b4   : > { %v3007_v1 = vpop.f32.mrf.mxu0  ;;  %v3220_v4 = vadd.f32 %v2983_v21, %v2610_v28  ;;  %v3262_v21 = vsub.s32 2, %v9167_v18  ;;  %v9234_v19 = vmax.f32 %v3301_v52, 0.0  ;;  %v9239_v2 = vmax.f32 %v3300_v54, 0.0  ;;  %v9342_v52 = vld [vmem:[%s11365_s4 + $0x8] sm:$0x3f] }
 0x4b5   : > { %v3244_v43 = vadd.f32 %v3007_v1, %v2634_v56  ;;  %v3108_v60 = vpop.f32.mrf.mxu1  ;;  %v3307_v9 = vadd.f32 %v3259_v16, %v3239_v41  ;;  %v3294_v40 = vadd.f32 %v3255_v46, %v3226_v63  ;;  %v9228_v29 = vmax.f32 %v3306_v26, 0.0 }
 0x4b6   : > { %v3009_v30 = vpop.f32.mrf.mxu0  ;;  %v3288_v12 = vadd.f32 %v3255_v46, %v3220_v4  ;;  %v3246_v38 = vadd.f32 %v3108_v60, %v8924_v50  ;;  %v3283_v1 = vadd.f32 %v3259_v16, %v3215_v24  ;;  %v3282_v41 = vadd.f32 %v3255_v46, %v3214_v55  ;;  %v9352_v24 = vld [vmem:[%s11365_s4 + $0x18] sm:$0x3f] }
 0x4b7   : > { %v3245_v27 = vadd.f32 %v3009_v30, %v2635_v23  ;;  %v3312_v56 = vadd.f32 %v3255_v46, %v3244_v43  ;;  %v3110_v43 = vpop.f32.mrf.mxu1  ;;  %v9219_v34 = vmax.f32 %v3307_v9, 0.0  ;;  %v9253_v44 = vrot.slane %v9191_v45, %v3262_v21 }
 0x4b8   : > { %v3247_v57 = vadd.f32 %v3110_v43, %v8928_v62  ;;  %v3241_v62 = vadd.f32 %v3104_v13, %v8918_v49  ;;  %v9255_v50 = vmax.f32 %v3294_v40, 0.0  ;;  %v3240_v30 = vadd.f32 %v9178_v15, %v8913_v58 }
 0x4b9   : > { %v3313_v0 = vadd.f32 %v3259_v16, %v3245_v27  ;;  %v9214_v53 = vmax.f32 %v3312_v56, 0.0  ;;  %v3295_v27 = vadd.f32 %v3259_v16, %v3227_v48  ;;  %v9261_v14 = vmax.f32 %v3289_v22, 0.0  ;;  %v11431_v48 = vld [vmem:[#allocation44_spill] sm:$0xff] }
 0x4ba   : > { %v3235_v49 = vadd.f32 %v9171_v61, %v8908_v25  ;;  %v3315_v13 = vadd.f32 %v9245_v8, %v3247_v57  ;;  %v9268_v46 = vmax.f32 %v3288_v12, 0.0  ;;  %v3234_v58 = vadd.f32 %v9165_v35, %v8905_v37 }
 0x4bb   : > { %v9212_v51 = vmax.f32 %v3313_v0, 0.0  ;;  %v9247_v23 = vmax.f32 %v3295_v27, 0.0  ;;  %v3314_v15 = vadd.f32 %v9253_v44, %v3246_v38  ;;  %v9277_v25 = vmax.f32 %v3283_v1, 0.0 }
 0x4bc   : > { %v3229_v61 = vadd.f32 %v9163_v33, %v8900_v17  ;;  %v3309_v47 = vadd.f32 %v9245_v8, %v3241_v62  ;;  %v9284_v37 = vmax.f32 %v3282_v41, 0.0  ;;  %v3228_v35 = vadd.f32 %v9161_v6, %v8897_v10  ;;  %v9296_v17 = vld [vmem:[%s11365_s4] sm:$0xff]  ;;  %v9308_v10 = vld [vmem:[%s11365_s4 + $0x10] sm:$0xff] }
 0x4bd   : > { %6061 = vmatprep.subr.msk.mxu1 %vm289_vm0, %v9212_v51  ;;  %6075 = vmatprep.subr.msk.mxu0 %vm289_vm0, %v9212_v51  ;;  %v3308_v36 = vadd.f32 %v9253_v44, %v3240_v30  ;;  %v3223_v33 = vadd.f32 %v9159_v5, %v8892_v11  ;;  %v3303_v42 = vadd.f32 %v9245_v8, %v3235_v49  ;;  %v9301_v56 = vmax.f32 %v3315_v13, 0.0  ;;  %v11430_v5 = vld [vmem:[#allocation30_spill] sm:$0xff]  ;;  %v11435_v30 = vld [vmem:[#allocation9_spill] sm:$0xff] }
 0x4be   : > { %6062 = vmatpush1.msk.msra.mxu1 %vm289_vm0, %v9214_v53  ;;  %6076 = vmatpush1.msk.msra.mxu0 %vm289_vm0, %v9214_v53  ;;  %v3222_v6 = vadd.f32 %v9157_v20, %v8888_v59  ;;  %v3302_v60 = vadd.f32 %v9253_v44, %v3234_v58  ;;  %v9313_v31 = vmax.f32 %v3314_v15, 0.0  ;;  %v3217_v9 = vadd.f32 %v11431_v48, %v11430_v5  ;;  %v11432_v59 = vld [vmem:[#allocation29_spill] sm:$0xff]  ;;  %v11433_v20 = vld [vmem:[#allocation43_spill] sm:$0xff]  ;;  %v11436_v49 = vld [vmem:[#allocation10_spill] sm:$0xff] }
 0x4bf   : > { %3402 = vmatprep.subr.mxu1 %v9219_v34  ;;  %3642 = vmatprep.subr.mxu0 %v9219_v34  ;;  %v3297_v0 = vadd.f32 %v9245_v8, %v3229_v61  ;;  %v9322_v39 = vmax.f32 %v3309_v47, 0.0  ;;  %v3216_v28 = vadd.f32 %v11433_v20, %v11432_v59  ;;  %v3296_v63 = vadd.f32 %v9253_v44, %v3228_v35  ;;  %v11437_v58 = vld [vmem:[#allocation7_spill] sm:$0xff]  ;;  %v11438_v15 = vld [vmem:[#allocation8_spill] sm:$0xff] }
 0x4c0   : > { %3403 = vmatpush1.msra.mxu1 %v9228_v29  ;;  %3643 = vmatpush1.msra.mxu0 %v9228_v29  ;;  %v9331_v26 = vmax.f32 %v3308_v36, 0.0  ;;  %v3291_v4 = vadd.f32 %v9245_v8, %v3223_v33  ;;  %v9345_v54 = vmax.f32 %v3303_v42, 0.0  ;;  %v11434_v43 = vmov 0.0   ;;  %v11439_v35 = vld [vmem:[#allocation12_spill] sm:$0xff]  ;;  %v11440_v36 = vld [vmem:[#allocation11_spill] sm:$0xff]  ;;  %v11441_v42 = vld [vmem:[#allocation26_spill] sm:$0xff] }
 0x4c1   : > { %3404 = vmatprep.subr.mxu1 %v9234_v19  ;;  %3644 = vmatprep.subr.mxu0 %v9234_v19  ;;  %v3290_v3 = vadd.f32 %v9253_v44, %v3222_v6  ;;  %v9355_v27 = vmax.f32 %v3302_v60, 0.0  ;;  %v3285_v21 = vadd.f32 %v9245_v8, %v3217_v9  ;;  %v9360_v40 = vmax.f32 %v3297_v0, 0.0  ;;  %v11442_v60 = vld [vmem:[#allocation24_spill] sm:$0xff] }
 0x4c2   : > { %3405 = vmatpush1.msra.mxu1 %v9239_v2  ;;  %3645 = vmatpush1.msra.mxu0 %v9239_v2  ;;  %v3284_v22 = vadd.f32 %v9253_v44, %v3216_v28  ;;  %v9366_v57 = vmax.f32 %v3296_v63, 0.0  ;;  %v9371_v38 = vmax.f32 %v3291_v4, 0.0  ;;  %v1412_v13 = vadd.f32 %v11436_v49, %v11435_v30  ;;  %v11443_v0 = vld [vmem:[#allocation28_spill] sm:$0xff]  ;;  %v11445_v63 = vld [vmem:[#allocation27_spill] sm:$0xff]  ;;  %v11446_v4 = vld [vmem:[#allocation41_spill] sm:$0xff] }
 0x4c3   : > { %3406 = vmatprep.subr.mxu1 %v9247_v23  ;;  %3646 = vmatprep.subr.mxu0 %v9247_v23  ;;  %v9375_v1 = vmax.f32 %v3290_v3, 0.0  ;;  %v9379_v62 = vmax.f32 %v3285_v21, 0.0  ;;  %v1406_v61 = vadd.f32 %v11438_v15, %v11437_v58  ;;  %v1418_v33 = vadd.f32 %v11440_v36, %v11439_v35  ;;  %v11444_v20 = vld [vmem:[#allocation40_spill] sm:$0xff]  ;;  %v11448_v30 = vld [vmem:[#allocation39_spill] sm:$0xff]  ;;  %v11449_v58 = vld [vmem:[#allocation38_spill] sm:$0xff] }
 0x4c4   : > { %v9273_v16 = vpop.f32.mrf.mxu0  ;;  %3407 = vmatpush1.msra.mxu1 %v9255_v50  ;;  %3647 = vmatpush1.msra.mxu0 %v9255_v50  ;;  %v9382_v41 = vmax.f32 %v3284_v22, 0.0  ;;  %v2023_v6 = vadd.f32 %v11441_v42, %v1412_v13  ;;  %v3270_v48 = vsub.s32 4, %v9167_v18  ;;  %v2638_v3 = vadd.f32 %v11446_v4, %v11445_v63  ;;  %v11447_v22 = vld [vmem:[#allocation25_spill] sm:$0xff] }
 0x4c5   : > { %3408 = vmatprep.subr.mxu1 %v9261_v14  ;;  %3648 = vmatprep.subr.mxu0 %v9261_v14  ;;  %v2017_v5 = vadd.f32 %v11442_v60, %v1406_v61  ;;  %v2029_v59 = vadd.f32 %v11443_v0, %v1418_v33  ;;  %v3274_v21 = vsub.s32 5, %v9167_v18  ;;  %v2632_v49 = vadd.f32 %v11448_v30, %v11447_v22  ;;  %v11450_v61 = vld [vmem:[#allocation42_spill] sm:$0xff]  ;;  %v11451_v33 = vld [vmem:[#allocation23_spill] sm:$0xff] }
 0x4c6   : > { %v9289_v7 = vpop.f32.mrf.mxu0  ;;  %3409 = vmatpush1.msra.mxu1 %v9268_v46  ;;  %3649 = vmatpush1.msra.mxu0 %v9268_v46  ;;  %v2633_v28 = vadd.f32 %v11444_v20, %v2023_v6  ;;  %v11452_v6 = vld [vmem:[#allocation37_spill] sm:$0xff]  ;;  %v3271_v0 = vrot.slane %v9191_v45, %v3270_v48 }
 0x4c7   : > { %3410 = vmatprep.subr.mxu1 %v9277_v25  ;;  %3650 = vmatprep.subr.mxu0 %v9277_v25  ;;  %v2627_v15 = vadd.f32 %v11449_v58, %v2017_v5  ;;  %v2639_v35 = vadd.f32 %v11450_v61, %v2029_v59  ;;  %v2626_v60 = vadd.f32 %v11452_v6, %v11451_v33  ;;  %v11455_v33 = vld [vmem:[#allocation34_spill] sm:$0xff]  ;;  %v11456_v6 = vld [vmem:[#allocation33_spill] sm:$0xff] }
 0x4c8   : > { %v9315_v11 = vpop.f32.mrf.mxu0  ;;  %3411 = vmatpush1.msra.mxu1 %v9284_v37  ;;  %3651 = vmatpush1.msra.mxu0 %v9284_v37  ;;  %v3275_v63 = vrot.slane %v9191_v45, %v3274_v21 }
 0x4c9   : > { %6065 = vmatprep.subr.msk.mxu1 %vm289_vm0, %v9301_v56  ;;  %6063 = vmatmul.mubr.msk.f32.vlgmr.msra.gmra.mxu1 %vm270_vm1, %v9296_v17  ;;  %v3224_v45 = vadd.f32 %v9315_v11, %v11456_v6  ;;  %v4196_v6 = vld [vmem:[%s11366_s5 + $0x288] sm:$0xff] }
 0x4ca   : > { %v9333_v32 = vpop.f32.mrf.mxu0  ;;  %6066 = vmatpush1.msk.msra.mxu1 %vm289_vm0, %v9313_v31  ;;  %6077 = vmatmul.mubr.msk.f32.vlgmr.msra.gmra.mxu0 %vm270_vm1, %v9308_v10 }
 0x4cb   : > { %3479 = vmatprep.subr.mxu1 %v9322_v39  ;;  %3450 = vmatprep.mubr.f32.mxu1 %v11434_v43  ;;  %v3225_v48 = vadd.f32 %v9333_v32, %v11455_v33  ;;  %v11458_v32 = vld [vmem:[#allocation31_spill] sm:$0xff]  ;;  %v4198_v33 = vld [vmem:[%s11366_s5 + $0x298] sm:$0xff] }
 0x4cc   : > { %v3191_v55 = vpop.f32.mrf.mxu0  ;;  %3480 = vmatpush1.msra.mxu1 %v9331_v26  ;;  %3690 = vmatprep.mubr.f32.mxu0 %v11434_v43 }
 0x4cd   : > { %3481 = vmatprep.subr.mxu1 %v9345_v54  ;;  %6064 = vmatmul.mubr.msk.f32.gmra.mxu1 %vm270_vm1, %v9342_v52 }
 0x4ce   : > { %v3193_v12 = vpop.f32.mrf.mxu0  ;;  %3482 = vmatpush1.msra.mxu1 %v9355_v27  ;;  %6078 = vmatmul.mubr.msk.f32.gmra.mxu0 %vm270_vm1, %v9352_v24 }
 0x4cf   : > { %3483 = vmatprep.subr.mxu1 %v9360_v40  ;;  %3521 = vmatprep.mubr.f32.mxu1 %v11434_v43 }
 0x4d0   : > { %v3197_v8 = vpop.f32.mrf.mxu0  ;;  %3484 = vmatpush1.msra.mxu1 %v9366_v57  ;;  %3838 = vmatprep.mubr.f32.mxu0 %v11434_v43 }
 0x4d1   : > { %3485 = vmatprep.subr.mxu1 %v9371_v38  ;;  %v3236_v22 = vadd.f32 %v3197_v8, %v2626_v60  ;;  %v11457_v8 = vld [vmem:[#allocation32_spill] sm:$0xff]  ;;  %v3292_v60 = vadd.f32 %v3271_v0, %v3224_v45  ;;  %v4122_v45 = vld [vmem:[%s11366_s5 + $0x38] sm:$0xff] }
 0x4d2   : > { %v3199_v44 = vpop.f32.mrf.mxu0  ;;  %3486 = vmatpush1.msra.mxu1 %v9375_v1 }
 0x4d3   : > { %3487 = vmatprep.subr.mxu1 %v9379_v62  ;;  %v3237_v4 = vadd.f32 %v3199_v44, %v2627_v15  ;;  %v3304_v44 = vadd.f32 %v3271_v0, %v3236_v22 }
 0x4d4   : > { %v3203_v47 = vpop.f32.mrf.mxu0  ;;  %3488 = vmatpush1.msra.mxu1 %v9382_v41 }
 0x4d5   : > { %6067 = vmatmul.mubr.msk.f32.vlgmr.msra.gmra.mxu1 %vm270_vm1, %v9296_v17  ;;  %v3242_v20 = vadd.f32 %v3203_v47, %v2632_v49  ;;  %v3305_v47 = vadd.f32 %v3275_v63, %v3237_v4 }
 0x4d6   : > { %v3205_v9 = vpop.f32.mrf.mxu0  ;;  %3527 = vmatprep.mubr.f32.mxu1 %v11434_v43 }
 0x4d7   : > { %v3243_v36 = vadd.f32 %v3205_v9, %v2633_v28  ;;  %v11453_v9 = vld [vmem:[#allocation36_spill] sm:$0xff]  ;;  %v3310_v61 = vadd.f32 %v3271_v0, %v3242_v20  ;;  %v9445_v20 = vmax.f32 %v3304_v44, 0.0  ;;  %v4195_v44 = vld [vmem:[%s11366_s5 + $0x280] sm:$0xff] }
 0x4d8   : > { %v3209_v13 = vpop.f32.mrf.mxu0  ;;  %v3231_v28 = vadd.f32 %v3193_v12, %v11453_v9  ;;  %v3219_v12 = vadd.f32 %v9289_v7, %v11457_v8  ;;  %v3293_v7 = vadd.f32 %v3275_v63, %v3225_v48  ;;  %v4128_v9 = vld [vmem:[%s11366_s5 + $0x68] sm:$0xff]  ;;  %v4194_v8 = vld [vmem:[%s11366_s5 + $0x278] sm:$0xff] }
 0x4d9   : > { %v3248_v42 = vadd.f32 %v3209_v13, %v2638_v3  ;;  %6068 = vmatmul.mubr.msk.f32.gmra.mxu1 %vm270_vm1, %v9342_v52  ;;  %v3311_v3 = vadd.f32 %v3275_v63, %v3243_v36  ;;  %v11454_v13 = vld [vmem:[#allocation35_spill] sm:$0xff]  ;;  %v9435_v11 = vmax.f32 %v3310_v61, 0.0  ;;  %v4125_v61 = vld [vmem:[%s11366_s5 + $0x50] sm:$0xff] }
 0x4da   : > { %v3211_v18 = vpop.f32.mrf.mxu0  ;;  %3598 = vmatprep.mubr.f32.mxu1 %v11434_v43  ;;  %v3230_v58 = vadd.f32 %v3191_v55, %v11454_v13  ;;  %v3299_v15 = vadd.f32 %v3275_v63, %v3231_v28  ;;  %v3218_v55 = vadd.f32 %v9273_v16, %v11458_v32  ;;  %v3287_v16 = vadd.f32 %v3275_v63, %v3219_v12  ;;  %v4201_v28 = vld [vmem:[%s11366_s5 + $0x2b0] sm:$0xff]  ;;  %v4126_v13 = vld [vmem:[%s11366_s5 + $0x58] sm:$0xff]  ;;  %v4124_v48 = vld [vmem:[%s11366_s5 + $0x48] sm:$0xff] }
 0x4db   : > { %v3249_v5 = vadd.f32 %v3211_v18, %v2639_v35  ;;  %v3316_v59 = vadd.f32 %v3271_v0, %v3248_v42  ;;  %v9427_v35 = vmax.f32 %v3311_v3, 0.0  ;;  %v9441_v42 = vmax.f32 %v3305_v47, 0.0  ;;  %v4127_v3 = vld [vmem:[%s11366_s5 + $0x60] sm:$0xff]  ;;  %v4197_v47 = vld [vmem:[%s11366_s5 + $0x290] sm:$0xff]  ;;  %v4120_v12 = vld [vmem:[%s11366_s5 + $0x28] sm:$0xff] }
 0x4dc   : > { %v3298_v36 = vadd.f32 %v3271_v0, %v3230_v58  ;;  %v9449_v18 = vmax.f32 %v3299_v15, 0.0  ;;  %v3286_v4 = vadd.f32 %v3271_v0, %v3218_v55  ;;  %v9457_v22 = vmax.f32 %v3293_v7, 0.0  ;;  %v4199_v58 = vld [vmem:[%s11366_s5 + $0x2a0] sm:$0xff]  ;;  %v4193_v15 = vld [vmem:[%s11366_s5 + $0x270] sm:$0xff]  ;;  %v4192_v32 = vld [vmem:[%s11366_s5 + $0x268] sm:$0xff] }
 0x4dd   : > { %v3317_v30 = vadd.f32 %v3275_v63, %v3249_v5  ;;  %v9423_v21 = vmax.f32 %v3316_v59, 0.0  ;;  %v9461_v63 = vmax.f32 %v3292_v60, 0.0  ;;  %v9465_v59 = vmax.f32 %v3287_v16, 0.0  ;;  %v4118_v55 = vld [vmem:[%s11366_s5 + $0x18] sm:$0xff]  ;;  %v4189_v60 = vld [vmem:[%s11366_s5 + $0x250] sm:$0xff]  ;;  %v4188_v16 = vld [vmem:[%s11366_s5 + $0x248] sm:$0xff] }
 0x4de   : > { %v9453_v5 = vmax.f32 %v3298_v36, 0.0  ;;  %v9469_v0 = vmax.f32 %v3286_v4, 0.0  ;;  %v4191_v36 = vld [vmem:[%s11366_s5 + $0x260] sm:$0xff]  ;;  %v4190_v7 = vld [vmem:[%s11366_s5 + $0x258] sm:$0xff] }
 0x4df   : > { %v9419_v49 = vmax.f32 %v3317_v30, 0.0  ;;  %v4200_v30 = vld [vmem:[%s11366_s5 + $0x2a8] sm:$0xff]  ;;  %v4187_v4 = vld [vmem:[%s11366_s5 + $0x240] sm:$0xff] }
 0x4e1   : > { %6069 = vmatprep.subr.msk.mxu1 %vm289_vm0, %v9419_v49  ;;  %6083 = vmatprep.subr.msk.mxu0 %vm289_vm0, %v9419_v49 }
 0x4e2   : > { %6070 = vmatpush1.msk.msra.mxu1 %vm289_vm0, %v9423_v21  ;;  %6084 = vmatpush1.msk.msra.mxu0 %vm289_vm0, %v9423_v21 }
 0x4e3   : > { %3556 = vmatprep.subr.mxu1 %v9427_v35  ;;  %3796 = vmatprep.subr.mxu0 %v9427_v35 }
 0x4e4   : > { %3557 = vmatpush1.msra.mxu1 %v9435_v11  ;;  %3797 = vmatpush1.msra.mxu0 %v9435_v11 }
 0x4e5   : > { %3558 = vmatprep.subr.mxu1 %v9441_v42  ;;  %3798 = vmatprep.subr.mxu0 %v9441_v42 }
 0x4e6   : > { %3559 = vmatpush1.msra.mxu1 %v9445_v20  ;;  %3799 = vmatpush1.msra.mxu0 %v9445_v20 }
 0x4e7   : > { %3560 = vmatprep.subr.mxu1 %v9449_v18  ;;  %3800 = vmatprep.subr.mxu0 %v9449_v18 }
 0x4e8   : > { %3561 = vmatpush1.msra.mxu1 %v9453_v5  ;;  %3801 = vmatpush1.msra.mxu0 %v9453_v5 }
 0x4e9   : > { %3562 = vmatprep.subr.mxu1 %v9457_v22  ;;  %3802 = vmatprep.subr.mxu0 %v9457_v22 }
 0x4ea   : > { %3563 = vmatpush1.msra.mxu1 %v9461_v63  ;;  %3803 = vmatpush1.msra.mxu0 %v9461_v63 }
 0x4eb   : > { %3564 = vmatprep.subr.mxu1 %v9465_v59  ;;  %3804 = vmatprep.subr.mxu0 %v9465_v59 }
 0x4ec   : > { %3565 = vmatpush1.msra.mxu1 %v9469_v0  ;;  %3805 = vmatpush1.msra.mxu0 %v9469_v0 }
 0x4ed   : > { %6071 = vmatmul.mubr.msk.f32.vlgmr.msra.gmra.mxu1 %vm270_vm1, %v9296_v17  ;;  %6079 = vmatprep.subr.msk.mxu1 %vm289_vm0, %v9301_v56  ;;  %v9518_v17 = vld [vmem:[%s11365_s4 + $0x20] sm:$0xff] }
 0x4ee   : > { %6085 = vmatmul.mubr.msk.f32.vlgmr.msra.gmra.mxu0 %vm270_vm1, %v9308_v10  ;;  %6093 = vmatprep.subr.msk.mxu0 %vm289_vm0, %v9301_v56  ;;  %v9535_v56 = vld [vmem:[%s11365_s4 + $0x28] sm:$0x3f] }
 0x4ef   : > { %6080 = vmatpush1.msk.msra.mxu1 %vm289_vm0, %v9313_v31  ;;  %6094 = vmatpush1.msk.msra.mxu0 %vm289_vm0, %v9313_v31  ;;  %v4210_v31 = vld [vmem:[%s11366_s5 + $0x2f8] sm:$0xff] }
 0x4f0   : > { %3719 = vmatprep.subr.mxu1 %v9322_v39  ;;  %3971 = vmatprep.subr.mxu0 %v9322_v39  ;;  %v4209_v39 = vld [vmem:[%s11366_s5 + $0x2f0] sm:$0xff] }
 0x4f1   : > { %3720 = vmatpush1.msra.mxu1 %v9331_v26  ;;  %3972 = vmatpush1.msra.mxu0 %v9331_v26  ;;  %v4208_v26 = vld [vmem:[%s11366_s5 + $0x2e8] sm:$0xff] }
 0x4f2   : > { %3721 = vmatprep.subr.mxu1 %v9345_v54  ;;  %3973 = vmatprep.subr.mxu0 %v9345_v54  ;;  %v4207_v54 = vld [vmem:[%s11366_s5 + $0x2e0] sm:$0xff] }
 0x4f3   : > { %3722 = vmatpush1.msra.mxu1 %v9355_v27  ;;  %3974 = vmatpush1.msra.mxu0 %v9355_v27  ;;  %v4206_v27 = vld [vmem:[%s11366_s5 + $0x2d8] sm:$0xff] }
 0x4f4   : > { %3723 = vmatprep.subr.mxu1 %v9360_v40  ;;  %3975 = vmatprep.subr.mxu0 %v9360_v40  ;;  %v4205_v40 = vld [vmem:[%s11366_s5 + $0x2d0] sm:$0xff] }
 0x4f5   : > { %3604 = vmatprep.mubr.f32.mxu1 %v11434_v43  ;;  %3724 = vmatpush1.msra.mxu1 %v9366_v57 }
 0x4f6   : > { %3844 = vmatprep.mubr.f32.mxu0 %v11434_v43  ;;  %3976 = vmatpush1.msra.mxu0 %v9366_v57  ;;  %v4131_v57 = vld [vmem:[%s11366_s5 + $0x80] sm:$0xff] }
 0x4f7   : > { %6072 = vmatmul.mubr.msk.f32.gmra.mxu1 %vm270_vm1, %v9342_v52  ;;  %3725 = vmatprep.subr.mxu1 %v9371_v38  ;;  %v4133_v52 = vld [vmem:[%s11366_s5 + $0x90] sm:$0xff] }
 0x4f8   : > { %6086 = vmatmul.mubr.msk.f32.gmra.mxu0 %vm270_vm1, %v9352_v24  ;;  %3977 = vmatprep.subr.mxu0 %v9371_v38  ;;  %v4130_v38 = vld [vmem:[%s11366_s5 + $0x78] sm:$0xff] }
 0x4f9   : > { %3726 = vmatpush1.msra.mxu1 %v9375_v1  ;;  %3978 = vmatpush1.msra.mxu0 %v9375_v1  ;;  %v4203_v1 = vld [vmem:[%s11366_s5 + $0x2c0] sm:$0xff] }
 0x4fa   : > { %3727 = vmatprep.subr.mxu1 %v9379_v62  ;;  %3979 = vmatprep.subr.mxu0 %v9379_v62  ;;  %v4129_v62 = vld [vmem:[%s11366_s5 + $0x70] sm:$0xff] }
 0x4fb   : > { %3728 = vmatpush1.msra.mxu1 %v9382_v41  ;;  %3761 = vmatprep.mubr.f32.mxu1 %v11434_v43 }
 0x4fc   : > { %3980 = vmatpush1.msra.mxu0 %v9382_v41  ;;  %6081 = vmatmul.mubr.msk.f32.vlgmr.msra.gmra.mxu1 %vm270_vm1, %v9308_v10  ;;  %v4134_v10 = vld [vmem:[%s11366_s5 + $0x98] sm:$0xff] }
 0x4fd   : > { %6089 = vmatprep.subr.msk.mxu1 %vm289_vm0, %v9212_v51  ;;  %4013 = vmatprep.mubr.f32.mxu0 %v11434_v43  ;;  %v4146_v51 = vld [vmem:[%s11366_s5 + $0xf8] sm:$0xff] }
 0x4fe   : > { %6090 = vmatpush1.msk.msra.mxu1 %vm289_vm0, %v9214_v53  ;;  %6095 = vmatmul.mubr.msk.f32.vlgmr.msra.gmra.mxu0 %vm270_vm1, %v9518_v17  ;;  %v4145_v53 = vld [vmem:[%s11366_s5 + $0xf0] sm:$0xff]  ;;  %v4202_v41 = vld [vmem:[%s11366_s5 + $0x2b8] sm:$0xff] }
 0x4ff   : > { %3894 = vmatprep.subr.mxu1 %v9219_v34  ;;  %3767 = vmatprep.mubr.f32.mxu1 %v11434_v43  ;;  %v4144_v34 = vld [vmem:[%s11366_s5 + $0xe8] sm:$0xff] }
 0x500   : > { %3895 = vmatpush1.msra.mxu1 %v9228_v29  ;;  %4019 = vmatprep.mubr.f32.mxu0 %v11434_v43  ;;  %v4143_v29 = vld [vmem:[%s11366_s5 + $0xe0] sm:$0xff] }
 0x501   : > { %6082 = vmatmul.mubr.msk.f32.gmra.mxu1 %vm270_vm1, %v9352_v24  ;;  %3896 = vmatprep.subr.mxu1 %v9234_v19  ;;  %v4142_v19 = vld [vmem:[%s11366_s5 + $0xd8] sm:$0xff]  ;;  %v4132_v24 = vld [vmem:[%s11366_s5 + $0x88] sm:$0xff] }
 0x502   : > { %3897 = vmatpush1.msra.mxu1 %v9239_v2  ;;  %6096 = vmatmul.mubr.msk.f32.gmra.mxu0 %vm270_vm1, %v9535_v56  ;;  %v4141_v2 = vld [vmem:[%s11366_s5 + $0xd0] sm:$0xff] }
 0x503   : > { %3898 = vmatprep.subr.mxu1 %v9247_v23  ;;  %3936 = vmatprep.mubr.f32.mxu1 %v11434_v43  ;;  %v4140_v23 = vld [vmem:[%s11366_s5 + $0xc8] sm:$0xff] }
 0x504   : > { %3899 = vmatpush1.msra.mxu1 %v9255_v50  ;;  %4306 = vmatprep.subr.mxu0 %v4146_v51  ;;  %v4139_v50 = vld [vmem:[%s11366_s5 + $0xc0] sm:$0xff]  ;;  %v4181_v51 = vld [vmem:[%s11366_s5 + $0x210] sm:$0xff] }
 0x505   : > { %3900 = vmatprep.subr.mxu1 %v9261_v14  ;;  %4307 = vmatpush1.msra.mxu0 %v4145_v53  ;;  %v4138_v14 = vld [vmem:[%s11366_s5 + $0xb8] sm:$0xff]  ;;  %v4175_v53 = vld [vmem:[%s11366_s5 + $0x1e0] sm:$0xff] }
 0x506   : > { %3901 = vmatpush1.msra.mxu1 %v9268_v46  ;;  %4308 = vmatprep.subr.mxu0 %v4144_v34  ;;  %v4137_v46 = vld [vmem:[%s11366_s5 + $0xb0] sm:$0xff]  ;;  %v4174_v34 = vld [vmem:[%s11366_s5 + $0x1d8] sm:$0xff] }
 0x507   : > { %3902 = vmatprep.subr.mxu1 %v9277_v25  ;;  %4309 = vmatpush1.msra.mxu0 %v4143_v29  ;;  %v4136_v25 = vld [vmem:[%s11366_s5 + $0xa8] sm:$0xff] }
 0x508   : > { %3903 = vmatpush1.msra.mxu1 %v9284_v37  ;;  %4310 = vmatprep.subr.mxu0 %v4142_v19  ;;  %v4135_v37 = vld [vmem:[%s11366_s5 + $0xa0] sm:$0xff]  ;;  %v4180_v29 = vld [vmem:[%s11366_s5 + $0x208] sm:$0xff] }
 0x509   : > { %6091 = vmatmul.mubr.msk.f32.vlgmr.msra.gmra.mxu1 %vm270_vm1, %v9518_v17  ;;  %6097 = vmatprep.subr.msk.mxu1 %vm289_vm0, %v9419_v49  ;;  %v4123_v49 = vld [vmem:[%s11366_s5 + $0x40] sm:$0xff] }
 0x50a   : > { %6098 = vmatpush1.msk.msra.mxu1 %vm289_vm0, %v9423_v21  ;;  %3942 = vmatprep.mubr.f32.mxu1 %v11434_v43  ;;  %v4121_v21 = vld [vmem:[%s11366_s5 + $0x30] sm:$0xff]  ;;  %v4179_v19 = vld [vmem:[%s11366_s5 + $0x200] sm:$0xff] }
 0x50b   : > { %4048 = vmatprep.subr.mxu1 %v9427_v35  ;;  %4311 = vmatpush1.msra.mxu0 %v4141_v2  ;;  %v4119_v35 = vld [vmem:[%s11366_s5 + $0x20] sm:$0xff]  ;;  %v4173_v2 = vld [vmem:[%s11366_s5 + $0x1d0] sm:$0xff] }
 0x50c   : > { %4049 = vmatpush1.msra.mxu1 %v9435_v11  ;;  %4312 = vmatprep.subr.mxu0 %v4140_v23  ;;  %v4117_v11 = vld [vmem:[%s11366_s5 + $0x10] sm:$0xff]  ;;  %v4172_v23 = vld [vmem:[%s11366_s5 + $0x1c8] sm:$0xff] }
 0x50d   : > { %6092 = vmatmul.mubr.msk.f32.gmra.mxu1 %vm270_vm1, %v9535_v56  ;;  %4050 = vmatprep.subr.mxu1 %v9441_v42  ;;  %v4116_v42 = vld [vmem:[%s11366_s5 + $0x8] sm:$0xff] }
 0x50e   : > { %4051 = vmatpush1.msra.mxu1 %v9445_v20  ;;  %4090 = vmatprep.mubr.f32.mxu1 %v11434_v43  ;;  %v4115_v20 = vld [vmem:[%s11366_s5] sm:$0xff] }
 0x50f   : > { %4052 = vmatprep.subr.mxu1 %v9449_v18  ;;  %4313 = vmatpush1.msra.mxu0 %v4139_v50  ;;  %v4178_v18 = vld [vmem:[%s11366_s5 + $0x1f8] sm:$0xff] }
 0x510   : > { %4053 = vmatpush1.msra.mxu1 %v9453_v5  ;;  %4314 = vmatprep.subr.mxu0 %v4138_v14  ;;  %v4177_v5 = vld [vmem:[%s11366_s5 + $0x1f0] sm:$0xff]  ;;  %v4242_v50 = vld [vmem:[%s11366_s5 + $0x3f8] sm:$0xff]  ;;  %v4171_v14 = vld [vmem:[%s11366_s5 + $0x1c0] sm:$0xff] }
 0x511   : > { %4054 = vmatprep.subr.mxu1 %v9457_v22  ;;  %4315 = vmatpush1.msra.mxu0 %v4137_v46  ;;  %v4186_v22 = vld [vmem:[%s11366_s5 + $0x238] sm:$0xff]  ;;  %v4241_v46 = vld [vmem:[%s11366_s5 + $0x3f0] sm:$0xff] }
 0x512   : > { %4055 = vmatpush1.msra.mxu1 %v9461_v63  ;;  %4316 = vmatprep.subr.mxu0 %v4136_v25  ;;  %v4176_v63 = vld [vmem:[%s11366_s5 + $0x1e8] sm:$0xff]  ;;  %v4170_v25 = vld [vmem:[%s11366_s5 + $0x1b8] sm:$0xff] }
 0x513   : > { %4056 = vmatprep.subr.mxu1 %v9465_v59  ;;  %4317 = vmatpush1.msra.mxu0 %v4135_v37  ;;  %v4185_v59 = vld [vmem:[%s11366_s5 + $0x230] sm:$0xff] }
 0x514   : > { %4057 = vmatpush1.msra.mxu1 %v9469_v0  ;;  %4318 = vmatprep.subr.mxu0 %v4134_v10  ;;  %v4184_v0 = vld [vmem:[%s11366_s5 + $0x228] sm:$0xff]  ;;  %v4169_v37 = vld [vmem:[%s11366_s5 + $0x1b0] sm:$0xff] }
 0x515   : > { %6099 = vmatmul.mubr.msk.f32.vlgmr.msra.gmra.mxu1 %vm270_vm1, %v9518_v17  ;;  %4383 = vmatprep.subr.mxu1 %v4210_v31  ;;  %v4183_v17 = vld [vmem:[%s11366_s5 + $0x220] sm:$0xff]  ;;  %v4240_v10 = vld [vmem:[%s11366_s5 + $0x3e8] sm:$0xff] }
 0x516   : > { %4096 = vmatprep.mubr.f32.mxu1 %v11434_v43  ;;  %4384 = vmatpush1.msra.mxu1 %v4209_v39  ;;  %v4204_v43 = vld [vmem:[%s11366_s5 + $0x2c8] sm:$0xff]  ;;  %v4239_v39 = vld [vmem:[%s11366_s5 + $0x3e0] sm:$0xff] }
 0x517   : > { %4385 = vmatprep.subr.mxu1 %v4208_v26  ;;  %4319 = vmatpush1.msra.mxu0 %v4133_v52  ;;  %v4168_v31 = vld [vmem:[%s11366_s5 + $0x1a8] sm:$0xff]  ;;  %v4238_v26 = vld [vmem:[%s11366_s5 + $0x3d8] sm:$0xff]  ;;  %v4237_v52 = vld [vmem:[%s11366_s5 + $0x3d0] sm:$0xff] }
 0x518   : > { %4386 = vmatpush1.msra.mxu1 %v4207_v54  ;;  %4320 = vmatprep.subr.mxu0 %v4132_v24  ;;  %v4236_v54 = vld [vmem:[%s11366_s5 + $0x3c8] sm:$0xff]  ;;  %v4167_v24 = vld [vmem:[%s11366_s5 + $0x1a0] sm:$0xff] }
 0x519   : > { %6100 = vmatmul.mubr.msk.f32.gmra.mxu1 %vm270_vm1, %v9535_v56  ;;  %4387 = vmatprep.subr.mxu1 %v4206_v27  ;;  %v4182_v56 = vld [vmem:[%s11366_s5 + $0x218] sm:$0xff]  ;;  %v4235_v27 = vld [vmem:[%s11366_s5 + $0x3c0] sm:$0xff] }
 0x51a   : > { %4388 = vmatpush1.msra.mxu1 %v4205_v40  ;;  %4321 = vmatpush1.msra.mxu0 %v4131_v57  ;;  %v4166_v40 = vld [vmem:[%s11366_s5 + $0x198] sm:$0xff] }
 0x51b   : > { %4389 = vmatprep.subr.mxu1 %v4204_v43  ;;  %4322 = vmatprep.subr.mxu0 %v4130_v38  ;;  %v4234_v57 = vld [vmem:[%s11366_s5 + $0x3b8] sm:$0xff]  ;;  %v4165_v43 = vld [vmem:[%s11366_s5 + $0x190] sm:$0xff] }
 0x51c   : > { %4390 = vmatpush1.msra.mxu1 %v4203_v1  ;;  %4323 = vmatpush1.msra.mxu0 %v4129_v62  ;;  %v4233_v38 = vld [vmem:[%s11366_s5 + $0x3b0] sm:$0xff]  ;;  %v4164_v1 = vld [vmem:[%s11366_s5 + $0x188] sm:$0xff] }
 0x51d   : > { %4391 = vmatprep.subr.mxu1 %v4202_v41  ;;  %4324 = vmatprep.subr.mxu0 %v4128_v9  ;;  %v4232_v62 = vld [vmem:[%s11366_s5 + $0x3a8] sm:$0xff]  ;;  %v4163_v41 = vld [vmem:[%s11366_s5 + $0x180] sm:$0xff] }
 0x51e   : > { %4392 = vmatpush1.msra.mxu1 %v4201_v28  ;;  %4325 = vmatpush1.msra.mxu0 %v4127_v3  ;;  %v4231_v9 = vld [vmem:[%s11366_s5 + $0x3a0] sm:$0xff]  ;;  %v4162_v28 = vld [vmem:[%s11366_s5 + $0x178] sm:$0xff] }
 0x51f   : > { %4393 = vmatprep.subr.mxu1 %v4200_v30  ;;  %4326 = vmatprep.subr.mxu0 %v4126_v13  ;;  %v4230_v3 = vld [vmem:[%s11366_s5 + $0x398] sm:$0xff]  ;;  %v4161_v30 = vld [vmem:[%s11366_s5 + $0x170] sm:$0xff] }
 0x520   : > { %4394 = vmatpush1.msra.mxu1 %v4199_v58  ;;  %4327 = vmatpush1.msra.mxu0 %v4125_v61  ;;  %v4229_v13 = vld [vmem:[%s11366_s5 + $0x390] sm:$0xff]  ;;  %v4160_v58 = vld [vmem:[%s11366_s5 + $0x168] sm:$0xff] }
 0x521   : > { %4395 = vmatprep.subr.mxu1 %v4198_v33  ;;  %4328 = vmatprep.subr.mxu0 %v4124_v48  ;;  %v4228_v61 = vld [vmem:[%s11366_s5 + $0x388] sm:$0xff]  ;;  %v4159_v33 = vld [vmem:[%s11366_s5 + $0x160] sm:$0xff] }
 0x522   : > { %4396 = vmatpush1.msra.mxu1 %v4197_v47  ;;  %4329 = vmatpush1.msra.mxu0 %v4123_v49  ;;  %v4227_v48 = vld [vmem:[%s11366_s5 + $0x380] sm:$0xff]  ;;  %v4158_v47 = vld [vmem:[%s11366_s5 + $0x158] sm:$0xff] }
 0x523   : > { %4397 = vmatprep.subr.mxu1 %v4196_v6  ;;  %4330 = vmatprep.subr.mxu0 %v4122_v45  ;;  %v4226_v49 = vld [vmem:[%s11366_s5 + $0x378] sm:$0xff]  ;;  %v4157_v6 = vld [vmem:[%s11366_s5 + $0x150] sm:$0xff] }
 0x524   : > { %4398 = vmatpush1.msra.mxu1 %v4195_v44  ;;  %4331 = vmatpush1.msra.mxu0 %v4121_v21  ;;  %v4225_v45 = vld [vmem:[%s11366_s5 + $0x370] sm:$0xff]  ;;  %v4156_v44 = vld [vmem:[%s11366_s5 + $0x148] sm:$0xff] }
 0x525   : > { %4399 = vmatprep.subr.mxu1 %v4194_v8  ;;  %4332 = vmatprep.subr.mxu0 %v4120_v12  ;;  %v4224_v21 = vld [vmem:[%s11366_s5 + $0x368] sm:$0xff]  ;;  %v4155_v8 = vld [vmem:[%s11366_s5 + $0x140] sm:$0xff] }
 0x526   : > { %4400 = vmatpush1.msra.mxu1 %v4193_v15  ;;  %4333 = vmatpush1.msra.mxu0 %v4119_v35  ;;  %v4223_v12 = vld [vmem:[%s11366_s5 + $0x360] sm:$0xff]  ;;  %v4154_v15 = vld [vmem:[%s11366_s5 + $0x138] sm:$0xff] }
 0x527   : > { %4401 = vmatprep.subr.mxu1 %v4192_v32  ;;  %4334 = vmatprep.subr.mxu0 %v4118_v55  ;;  %v4222_v35 = vld [vmem:[%s11366_s5 + $0x358] sm:$0xff]  ;;  %v4153_v32 = vld [vmem:[%s11366_s5 + $0x130] sm:$0xff] }
 0x528   : > { %4402 = vmatpush1.msra.mxu1 %v4191_v36  ;;  %4335 = vmatpush1.msra.mxu0 %v4117_v11  ;;  %v4221_v55 = vld [vmem:[%s11366_s5 + $0x350] sm:$0xff]  ;;  %v4152_v36 = vld [vmem:[%s11366_s5 + $0x128] sm:$0xff] }
 0x529   : > { %4403 = vmatprep.subr.mxu1 %v4190_v7  ;;  %4336 = vmatprep.subr.mxu0 %v4116_v42  ;;  %v4220_v11 = vld [vmem:[%s11366_s5 + $0x348] sm:$0xff]  ;;  %v4151_v7 = vld [vmem:[%s11366_s5 + $0x120] sm:$0xff] }
 0x52a   : > { %4404 = vmatpush1.msra.mxu1 %v4189_v60  ;;  %4337 = vmatpush1.msra.mxu0 %v4115_v20  ;;  %v4219_v42 = vld [vmem:[%s11366_s5 + $0x340] sm:$0xff]  ;;  %v4218_v60 = vld [vmem:[%s11366_s5 + $0x338] sm:$0xff] }
 0x52b   : > { %4405 = vmatprep.subr.mxu1 %v4188_v16  ;;  %4338 = vmatprep.subr.mxu0 %v4178_v18  ;;  %v4150_v20 = vld [vmem:[%s11366_s5 + $0x118] sm:$0xff]  ;;  %v4217_v16 = vld [vmem:[%s11366_s5 + $0x330] sm:$0xff] }
 0x52c   : > { %4406 = vmatpush1.msra.mxu1 %v4187_v4  ;;  %4339 = vmatpush2.msra.mxu0 %v4177_v5  ;;  %v4149_v18 = vld [vmem:[%s11366_s5 + $0x110] sm:$0xff]  ;;  %v4216_v4 = vld [vmem:[%s11366_s5 + $0x328] sm:$0xff] }
 0x52d   : > { %4407 = vmatprep.subr.mxu1 %v4186_v22  ;;  %4340 = vmatprep.subr.mxu0 %v4176_v63  ;;  %v4148_v5 = vld [vmem:[%s11366_s5 + $0x108] sm:$0xff]  ;;  %v4215_v22 = vld [vmem:[%s11366_s5 + $0x320] sm:$0xff] }
 0x52e   : > { %4408 = vmatpush1.msra.mxu1 %v4185_v59  ;;  %4341 = vmatpush2.msra.mxu0 %v4175_v53  ;;  %v4147_v63 = vld [vmem:[%s11366_s5 + $0x100] sm:$0xff]  ;;  %v4214_v59 = vld [vmem:[%s11366_s5 + $0x318] sm:$0xff] }
 0x52f   : > { %4409 = vmatprep.subr.mxu1 %v4184_v0  ;;  %4342 = vmatprep.subr.mxu0 %v4174_v34  ;;  %v4274_v0 = vld [vmem:[%s11366_s5 + $0x4f8] sm:$0xff] }
 0x530   : > { %4410 = vmatpush1.msra.mxu1 %v4183_v17  ;;  %4343 = vmatpush2.msra.mxu0 %v4173_v2  ;;  %v4213_v17 = vld [vmem:[%s11366_s5 + $0x310] sm:$0xff]  ;;  %v6134_v53 = vld [vmem:[%s11366_s5 + $0x6b8] sm:$0xff] }
 0x531   : > { %4411 = vmatprep.subr.mxu1 %v4182_v56  ;;  %4344 = vmatprep.subr.mxu0 %v4172_v23  ;;  %v4212_v56 = vld [vmem:[%s11366_s5 + $0x308] sm:$0xff] }
 0x532   : > { %4412 = vmatpush1.msra.mxu1 %v4181_v51  ;;  %4345 = vmatpush2.msra.mxu0 %v4171_v14  ;;  %v4211_v51 = vld [vmem:[%s11366_s5 + $0x300] sm:$0xff] }
 0x533   : > { %4413 = vmatprep.subr.mxu1 %v4180_v29  ;;  %4346 = vmatprep.subr.mxu0 %v4170_v25 }
 0x534   : > { %4414 = vmatpush1.msra.mxu1 %v4179_v19  ;;  %4347 = vmatpush2.msra.mxu0 %v4169_v37 }
 0x535   : > { %4415 = vmatprep.subr.mxu1 %v4242_v50  ;;  %4348 = vmatprep.subr.mxu0 %v4168_v31 }
 0x536   : > { %4416 = vmatpush2.msra.mxu1 %v4241_v46  ;;  %4349 = vmatpush2.msra.mxu0 %v4167_v24 }
 0x537   : > { %4417 = vmatprep.subr.mxu1 %v4240_v10  ;;  %4350 = vmatprep.subr.mxu0 %v4166_v40 }
 0x538   : > { %4418 = vmatpush2.msra.mxu1 %v4239_v39  ;;  %4351 = vmatpush2.msra.mxu0 %v4165_v43 }
 0x539   : > { %4419 = vmatprep.subr.mxu1 %v4238_v26  ;;  %4352 = vmatprep.subr.mxu0 %v4164_v1 }
 0x53a   : > { %4420 = vmatpush2.msra.mxu1 %v4237_v52  ;;  %4353 = vmatpush2.msra.mxu0 %v4163_v41 }
 0x53b   : > { %4421 = vmatprep.subr.mxu1 %v4236_v54  ;;  %4354 = vmatprep.subr.mxu0 %v4162_v28 }
 0x53c   : > { %4422 = vmatpush2.msra.mxu1 %v4235_v27  ;;  %4355 = vmatpush2.msra.mxu0 %v4161_v30 }
 0x53d   : > { %4423 = vmatprep.subr.mxu1 %v4234_v57  ;;  %4356 = vmatprep.subr.mxu0 %v4160_v58 }
 0x53e   : > { %4424 = vmatpush2.msra.mxu1 %v4233_v38  ;;  %4357 = vmatpush2.msra.mxu0 %v4159_v33 }
 0x53f   : > { %4425 = vmatprep.subr.mxu1 %v4232_v62  ;;  %4358 = vmatprep.subr.mxu0 %v4158_v47 }
 0x540   : > { %4426 = vmatpush2.msra.mxu1 %v4231_v9  ;;  %4359 = vmatpush2.msra.mxu0 %v4157_v6  ;;  %v6132_v6 = vld [vmem:[%s11366_s5 + $0x6a8] sm:$0xff] }
 0x541   : > { %4427 = vmatprep.subr.mxu1 %v4230_v3  ;;  %4360 = vmatprep.subr.mxu0 %v4156_v44 }
 0x542   : > { %4428 = vmatpush2.msra.mxu1 %v4229_v13  ;;  %4361 = vmatpush2.msra.mxu0 %v4155_v8  ;;  %v6130_v8 = vld [vmem:[%s11366_s5 + $0x698] sm:$0xff] }
 0x543   : > { %4429 = vmatprep.subr.mxu1 %v4228_v61  ;;  %4362 = vmatprep.subr.mxu0 %v4154_v15 }
 0x544   : > { %4430 = vmatpush2.msra.mxu1 %v4227_v48  ;;  %4363 = vmatpush2.msra.mxu0 %v4153_v32  ;;  %v6133_v48 = vld [vmem:[%s11366_s5 + $0x6b0] sm:$0xff]  ;;  %v6128_v32 = vld [vmem:[%s11366_s5 + $0x688] sm:$0xff] }
 0x545   : > { %4431 = vmatprep.subr.mxu1 %v4226_v49  ;;  %4364 = vmatprep.subr.mxu0 %v4152_v36  ;;  %v6127_v36 = vld [vmem:[%s11366_s5 + $0x680] sm:$0xff] }
 0x546   : > { %4432 = vmatpush2.msra.mxu1 %v4225_v45  ;;  %4365 = vmatpush2.msra.mxu0 %v4151_v7  ;;  %v6126_v7 = vld [vmem:[%s11366_s5 + $0x678] sm:$0xff] }
 0x547   : > { %4433 = vmatprep.subr.mxu1 %v4224_v21  ;;  %4366 = vmatprep.subr.mxu0 %v4150_v20  ;;  %v6131_v21 = vld [vmem:[%s11366_s5 + $0x6a0] sm:$0xff] }
 0x548   : > { %4434 = vmatpush2.msra.mxu1 %v4223_v12  ;;  %4367 = vmatpush2.msra.mxu0 %v4149_v18  ;;  %v6124_v18 = vld [vmem:[%s11366_s5 + $0x668] sm:$0xff] }
 0x549   : > { %4435 = vmatprep.subr.mxu1 %v4222_v35  ;;  %4368 = vmatprep.subr.mxu0 %v4148_v5  ;;  %v6129_v35 = vld [vmem:[%s11366_s5 + $0x690] sm:$0xff]  ;;  %v6123_v5 = vld [vmem:[%s11366_s5 + $0x660] sm:$0xff] }
 0x54a   : > { %4436 = vmatpush2.msra.mxu1 %v4221_v55  ;;  %4369 = vmatpush2.msra.mxu0 %v4147_v63 }
 0x54b   : > { %4437 = vmatprep.subr.mxu1 %v4220_v11  ;;  %4460 = vmatprep.subr.mxu0 %v4274_v0  ;;  %v6122_v0 = vld [vmem:[%s11366_s5 + $0x658] sm:$0xff] }
 0x54c   : > { %4438 = vmatpush2.msra.mxu1 %v4219_v42 }
 0x54d   : > { %4439 = vmatprep.subr.mxu1 %v4218_v60  ;;  %v6125_v60 = vld [vmem:[%s11366_s5 + $0x670] sm:$0xff] }
 0x54e   : > { %4440 = vmatpush2.msra.mxu1 %v4217_v16 }
 0x54f   : > { %4441 = vmatprep.subr.mxu1 %v4216_v4 }
 0x550   : > { %4442 = vmatpush2.msra.mxu1 %v4215_v22 }
 0x551   : > { %4443 = vmatprep.subr.mxu1 %v4214_v59  ;;  %v4273_v59 = vld [vmem:[%s11366_s5 + $0x4f0] sm:$0xff] }
 0x552   : > { %4444 = vmatpush2.msra.mxu1 %v4213_v17 }
 0x553   : > { %4445 = vmatprep.subr.mxu1 %v4212_v56  ;;  %v4272_v56 = vld [vmem:[%s11366_s5 + $0x4e8] sm:$0xff] }
 0x554   : > { %4446 = vmatpush2.msra.mxu1 %v4211_v51  ;;  %v6121_v51 = vld [vmem:[%s11366_s5 + $0x650] sm:$0xff] }
 0x555   : > { %4722 = vmatprep.subr.mxu1 %v6134_v53 }
 0x589   : > { %v9967_v34 = vpop.f32.mrf.mxu1 }
 0x58a   : > { %v9973_v50 = vpop.f32.mrf.mxu0 }
 0x58b   : > { %v3448_v29 = vpop.f32.mrf.mxu1  ;;  %v3851_v20 = vmax.f32 %v9967_v34, %v9973_v50  ;;  %v4271_v34 = vld [vmem:[%s11366_s5 + $0x4e0] sm:$0xff] }
 0x58c   : > { %v3688_v25 = vpop.f32.mrf.mxu0  ;;  %v6119_v50 = vld [vmem:[%s11366_s5 + $0x640] sm:$0xff] }
 0x58d   : > { %v9969_v19 = vpop.f32.mrf.mxu1  ;;  %v3852_v11 = vmax.f32 %v3448_v29, %v3688_v25  ;;  %v4268_v25 = vld [vmem:[%s11366_s5 + $0x4c8] sm:$0xff] }
 0x58e   : > { %v9975_v37 = vpop.f32.mrf.mxu0 }
 0x58f   : > { %v9971_v2 = vpop.f32.mrf.mxu1  ;;  %v3857_v29 = vmax.f32 %v9969_v19, %v9975_v37  ;;  %v4269_v19 = vld [vmem:[%s11366_s5 + $0x4d0] sm:$0xff] }
 0x590   : > { %v9977_v31 = vpop.f32.mrf.mxu0  ;;  %v6117_v37 = vld [vmem:[%s11366_s5 + $0x630] sm:$0xff] }
 0x591   : > { %v3858_v22 = vmax.f32 %v9971_v2, %v9977_v31  ;;  %v4270_v2 = vld [vmem:[%s11366_s5 + $0x4d8] sm:$0xff]  ;;  %v4267_v31 = vld [vmem:[%s11366_s5 + $0x4c0] sm:$0xff] }
 0x595   : > { %v3523_v23 = vpop.f32.mrf.mxu1 }
 0x597   : > { %v3525_v14 = vpop.f32.mrf.mxu1 }
 0x599   : > { %v3529_v46 = vpop.f32.mrf.mxu1 }
 0x59b   : > { %v3531_v10 = vpop.f32.mrf.mxu1 }
 0x5ad   : > { %v9979_v39 = vpop.f32.mrf.mxu1 }
 0x5ae   : > { %v9981_v26 = vpop.f32.mrf.mxu0 }
 0x5af   : > { %v3855_v52 = vmax.f32 %v9979_v39, %v9981_v26  ;;  %v9985_v54 = vpop.f32.mrf.mxu1  ;;  %v6197_v39 = vld [vmem:[%s11366_s5 + $0x8b0] sm:$0xff]  ;;  %v6259_v26 = vld [vmem:[%s11366_s5 + $0xaa0] sm:$0xff] }
 0x5b0   : > { %v9987_v24 = vpop.f32.mrf.mxu0 }
 0x5b7   : > { %v9989_v27 = vpop.f32.mrf.mxu1 }
 0x5b8   : > { %v9991_v40 = vpop.f32.mrf.mxu0 }
 0x5b9   : > { %v3861_v57 = vmax.f32 %v9989_v27, %v9991_v40  ;;  %v9995_v43 = vpop.f32.mrf.mxu1  ;;  %v6255_v27 = vld [vmem:[%s11366_s5 + $0xa80] sm:$0xff]  ;;  %v6192_v40 = vld [vmem:[%s11366_s5 + $0x888] sm:$0xff] }
 0x5ba   : > { %v9997_v38 = vpop.f32.mrf.mxu0 }
 0x5bb   : > { %v3862_v1 = vmax.f32 %v9995_v43, %v9997_v38  ;;  %v6258_v43 = vld [vmem:[%s11366_s5 + $0xa98] sm:$0xff]  ;;  %v6195_v38 = vld [vmem:[%s11366_s5 + $0x8a0] sm:$0xff] }
 0x5bc   : > { %v3763_v62 = vpop.f32.mrf.mxu1 }
 0x5bd   : > { %v3853_v41 = vmax.f32 %v3523_v23, %v3763_v62  ;;  %v6120_v23 = vld [vmem:[%s11366_s5 + $0x648] sm:$0xff] }
 0x5be   : > { %v3765_v9 = vpop.f32.mrf.mxu1  ;;  %v4015_v28 = vpop.f32.mrf.mxu0  ;;  %v6116_v62 = vld [vmem:[%s11366_s5 + $0x628] sm:$0xff] }
 0x5bf   : > { %v3854_v3 = vmax.f32 %v3525_v14, %v3765_v9  ;;  %v10003_v61 = vmax.f32 %v3853_v41, %v4015_v28  ;;  %v3856_v41 = vmax.f32 %v9985_v54, %v9987_v24  ;;  %v4266_v9 = vld [vmem:[%s11366_s5 + $0x4b8] sm:$0xff]  ;;  %v6115_v28 = vld [vmem:[%s11366_s5 + $0x620] sm:$0xff] }
 0x5c0   : > { %v4017_v30 = vpop.f32.mrf.mxu0  ;;  %v6114_v54 = vld [vmem:[%s11366_s5 + $0x618] sm:$0xff] }
 0x5c1   : > { %v3769_v13 = vpop.f32.mrf.mxu1  ;;  %v10001_v58 = vmax.f32 %v3854_v3, %v4017_v30  ;;  %v4265_v30 = vld [vmem:[%s11366_s5 + $0x4b0] sm:$0xff] }
 0x5c2   : > { %v4021_v33 = vpop.f32.mrf.mxu0  ;;  %v3859_v47 = vmax.f32 %v3529_v46, %v3769_v13  ;;  %v6118_v46 = vld [vmem:[%s11366_s5 + $0x638] sm:$0xff]  ;;  %v4264_v13 = vld [vmem:[%s11366_s5 + $0x4a8] sm:$0xff] }
 0x5c3   : > { %v3771_v49 = vpop.f32.mrf.mxu1  ;;  %4447 = vmatprep.mubr.f32.mxu1 %v10001_v58 }
 0x5c4   : > { %v3860_v45 = vmax.f32 %v3531_v10, %v3771_v49  ;;  %v4023_v44 = vpop.f32.mrf.mxu0  ;;  %4448 = vmatmul.mubr.f32.vlgmr.msra.gmra.mxu1 %v10003_v61  ;;  %v10021_v15 = vmax.f32 %v3859_v47, %v4021_v33  ;;  %v6113_v33 = vld [vmem:[%s11366_s5 + $0x610] sm:$0xff]  ;;  %v4262_v47 = vld [vmem:[%s11366_s5 + $0x498] sm:$0xff]  ;;  %v6112_v49 = vld [vmem:[%s11366_s5 + $0x608] sm:$0xff] }
 0x5c5   : > { %4723 = vmatpush1.msra.mxu1 %v6133_v48  ;;  %v4263_v48 = vld [vmem:[%s11366_s5 + $0x4a0] sm:$0xff] }
 0x5c6   : > { %v10019_v12 = vmax.f32 %v3860_v45, %v4023_v44  ;;  %4724 = vmatprep.subr.mxu1 %v6132_v6  ;;  %v4261_v6 = vld [vmem:[%s11366_s5 + $0x490] sm:$0xff]  ;;  %v6111_v45 = vld [vmem:[%s11366_s5 + $0x600] sm:$0xff]  ;;  %v4260_v44 = vld [vmem:[%s11366_s5 + $0x488] sm:$0xff] }
 0x5c7   : > { %4725 = vmatpush1.msra.mxu1 %v6131_v21  ;;  %v6110_v21 = vld [vmem:[%s11366_s5 + $0x5f8] sm:$0xff] }
 0x5c8   : > { %4453 = vmatprep.mubr.f32.mxu1 %v10019_v12  ;;  %4726 = vmatprep.subr.mxu1 %v6130_v8  ;;  %v4259_v8 = vld [vmem:[%s11366_s5 + $0x480] sm:$0xff] }
 0x5c9   : > { %v3938_v55 = vpop.f32.mrf.mxu1  ;;  %4454 = vmatmul.mubr.f32.gmra.mxu1 %v10021_v15 }
 0x5ca   : > { %4727 = vmatpush1.msra.mxu1 %v6129_v35  ;;  %v10052_v63 = vmax.f32 %v3851_v20, %v3938_v55  ;;  %v6109_v35 = vld [vmem:[%s11366_s5 + $0x5f0] sm:$0xff]  ;;  %v6108_v55 = vld [vmem:[%s11366_s5 + $0x5e8] sm:$0xff] }
 0x5cb   : > { %4728 = vmatprep.subr.mxu1 %v6128_v32  ;;  %v3940_v42 = vpop.f32.mrf.mxu1  ;;  %v4258_v32 = vld [vmem:[%s11366_s5 + $0x478] sm:$0xff]  ;;  %v6105_v20 = vld [vmem:[%s11366_s5 + $0x5d0] sm:$0xff] }
 0x5cc   : > { %v10042_v16 = vmax.f32 %v3852_v11, %v3940_v42  ;;  %4729 = vmatpush1.msra.mxu1 %v6127_v36  ;;  %v4257_v36 = vld [vmem:[%s11366_s5 + $0x470] sm:$0xff]  ;;  %v6107_v11 = vld [vmem:[%s11366_s5 + $0x5e0] sm:$0xff]  ;;  %v6106_v42 = vld [vmem:[%s11366_s5 + $0x5d8] sm:$0xff] }
 0x5cd   : > { %4730 = vmatprep.subr.mxu1 %v6126_v7  ;;  %v3944_v4 = vpop.f32.mrf.mxu1  ;;  %v4256_v7 = vld [vmem:[%s11366_s5 + $0x468] sm:$0xff] }
 0x5ce   : > { %4731 = vmatpush1.msra.mxu1 %v6125_v60  ;;  %4370 = vmatprep.mubr.f32.mxu0 %v10042_v16  ;;  %v10085_v14 = vmax.f32 %v3857_v29, %v3944_v4  ;;  %v4255_v60 = vld [vmem:[%s11366_s5 + $0x460] sm:$0xff]  ;;  %v6104_v4 = vld [vmem:[%s11366_s5 + $0x5c8] sm:$0xff]  ;;  %v4249_v29 = vld [vmem:[%s11366_s5 + $0x430] sm:$0xff] }
 0x5cf   : > { %4732 = vmatprep.subr.mxu1 %v6124_v18  ;;  %4786 = vmatprep.mubr.f32.mxu1 %v10042_v16  ;;  %v3946_v17 = vpop.f32.mrf.mxu1  ;;  %v4254_v18 = vld [vmem:[%s11366_s5 + $0x458] sm:$0xff] }
 0x5d0   : > { %v10068_v53 = vmax.f32 %v3858_v22, %v3946_v17  ;;  %4371 = vmatmul.mubr.f32.vlgmr.msra.gmra.mxu0 %v10052_v63  ;;  %4733 = vmatpush1.msra.mxu1 %v6123_v5  ;;  %v4253_v5 = vld [vmem:[%s11366_s5 + $0x450] sm:$0xff]  ;;  %v6103_v22 = vld [vmem:[%s11366_s5 + $0x5c0] sm:$0xff] }
 0x5d1   : > { %4461 = vmatpush1.msra.mxu0 %v4273_v59  ;;  %4734 = vmatprep.subr.mxu1 %v6122_v0  ;;  %v4252_v59 = vld [vmem:[%s11366_s5 + $0x448] sm:$0xff]  ;;  %v6166_v0 = vld [vmem:[%s11366_s5 + $0x7b8] sm:$0xff]  ;;  %v4251_v17 = vld [vmem:[%s11366_s5 + $0x440] sm:$0xff] }
 0x5d2   : > { %4462 = vmatprep.subr.mxu0 %v4272_v56  ;;  %4735 = vmatpush1.msra.mxu1 %v6121_v51  ;;  %v6165_v56 = vld [vmem:[%s11366_s5 + $0x7b0] sm:$0xff]  ;;  %v4250_v51 = vld [vmem:[%s11366_s5 + $0x438] sm:$0xff] }
 0x5d3   : > { %4463 = vmatpush1.msra.mxu0 %v4271_v34  ;;  %4376 = vmatprep.mubr.f32.mxu0 %v10068_v53  ;;  %v6164_v34 = vld [vmem:[%s11366_s5 + $0x7a8] sm:$0xff] }
 0x5d4   : > { %4464 = vmatprep.subr.mxu0 %v4270_v2  ;;  %4736 = vmatprep.subr.mxu1 %v6120_v23  ;;  %v6163_v2 = vld [vmem:[%s11366_s5 + $0x7a0] sm:$0xff]  ;;  %v4248_v23 = vld [vmem:[%s11366_s5 + $0x428] sm:$0xff] }
 0x5d5   : > { %4377 = vmatmul.mubr.f32.gmra.mxu0 %v10085_v14  ;;  %4737 = vmatpush1.msra.mxu1 %v6119_v50  ;;  %v10101_v10 = vpop.f32.mrf.mxu1  ;;  %v6162_v50 = vld [vmem:[%s11366_s5 + $0x798] sm:$0xff] }
 0x5d6   : > { %4465 = vmatpush1.msra.mxu0 %v4269_v19  ;;  %4738 = vmatprep.subr.mxu1 %v6118_v46  ;;  %v4247_v19 = vld [vmem:[%s11366_s5 + $0x420] sm:$0xff]  ;;  %v6161_v46 = vld [vmem:[%s11366_s5 + $0x790] sm:$0xff] }
 0x5d7   : > { %4466 = vmatprep.subr.mxu0 %v4268_v25  ;;  %4739 = vmatpush1.msra.mxu1 %v6117_v37  ;;  %v4094_v3 = vpop.f32.mrf.mxu1  ;;  %v4246_v25 = vld [vmem:[%s11366_s5 + $0x418] sm:$0xff]  ;;  %v6160_v37 = vld [vmem:[%s11366_s5 + $0x788] sm:$0xff] }
 0x5d8   : > { %4467 = vmatpush1.msra.mxu0 %v4267_v31  ;;  %4740 = vmatprep.subr.mxu1 %v6116_v62  ;;  %v10123_v24 = vmax.f32 %v3856_v41, %v4094_v3  ;;  %v4245_v31 = vld [vmem:[%s11366_s5 + $0x410] sm:$0xff]  ;;  %v6159_v62 = vld [vmem:[%s11366_s5 + $0x780] sm:$0xff]  ;;  %v4244_v41 = vld [vmem:[%s11366_s5 + $0x408] sm:$0xff] }
 0x5d9   : > { %4468 = vmatprep.subr.mxu0 %v4266_v9  ;;  %4741 = vmatpush1.msra.mxu1 %v6115_v28  ;;  %v6158_v9 = vld [vmem:[%s11366_s5 + $0x778] sm:$0xff]  ;;  %v4243_v28 = vld [vmem:[%s11366_s5 + $0x400] sm:$0xff]  ;;  %v6157_v3 = vld [vmem:[%s11366_s5 + $0x770] sm:$0xff] }
 0x5da   : > { %4469 = vmatpush1.msra.mxu0 %v4265_v30  ;;  %4742 = vmatprep.subr.mxu1 %v6114_v54  ;;  %v4298_v30 = vld [vmem:[%s11366_s5 + $0x5b8] sm:$0xff]  ;;  %v6156_v54 = vld [vmem:[%s11366_s5 + $0x768] sm:$0xff] }
 0x5db   : > { %4470 = vmatprep.subr.mxu0 %v4264_v13  ;;  %4743 = vmatpush1.msra.mxu1 %v6113_v33  ;;  %v4297_v13 = vld [vmem:[%s11366_s5 + $0x5b0] sm:$0xff]  ;;  %v6155_v33 = vld [vmem:[%s11366_s5 + $0x760] sm:$0xff] }
 0x5dc   : > { %4471 = vmatpush1.msra.mxu0 %v4263_v48  ;;  %6101 = vmatprep.mubr.msk.f32.mxu0 %vm4299_vm4, %v10123_v24  ;;  %v4296_v48 = vld [vmem:[%s11366_s5 + $0x5a8] sm:$0xff] }
 0x5dd   : > { %4472 = vmatprep.subr.mxu0 %v4262_v47  ;;  %4744 = vmatprep.subr.mxu1 %v6112_v49  ;;  %v6154_v47 = vld [vmem:[%s11366_s5 + $0x758] sm:$0xff]  ;;  %v4295_v49 = vld [vmem:[%s11366_s5 + $0x5a0] sm:$0xff] }
 0x5de   : > { %4473 = vmatpush1.msra.mxu0 %v4261_v6  ;;  %4745 = vmatpush1.msra.mxu1 %v6111_v45  ;;  %v6153_v6 = vld [vmem:[%s11366_s5 + $0x750] sm:$0xff]  ;;  %v4294_v45 = vld [vmem:[%s11366_s5 + $0x598] sm:$0xff] }
 0x5df   : > { %4474 = vmatprep.subr.mxu0 %v4260_v44  ;;  %4746 = vmatprep.subr.mxu1 %v6110_v21  ;;  %v6152_v44 = vld [vmem:[%s11366_s5 + $0x748] sm:$0xff]  ;;  %v4293_v21 = vld [vmem:[%s11366_s5 + $0x590] sm:$0xff] }
 0x5e0   : > { %4475 = vmatpush1.msra.mxu0 %v4259_v8  ;;  %4747 = vmatpush1.msra.mxu1 %v6109_v35  ;;  %v6151_v8 = vld [vmem:[%s11366_s5 + $0x740] sm:$0xff]  ;;  %v4292_v35 = vld [vmem:[%s11366_s5 + $0x588] sm:$0xff] }
 0x5e1   : > { %4476 = vmatprep.subr.mxu0 %v4258_v32  ;;  %4748 = vmatprep.subr.mxu1 %v6108_v55  ;;  %v6150_v32 = vld [vmem:[%s11366_s5 + $0x738] sm:$0xff]  ;;  %v4291_v55 = vld [vmem:[%s11366_s5 + $0x580] sm:$0xff] }
 0x5e2   : > { %4477 = vmatpush1.msra.mxu0 %v4257_v36  ;;  %4749 = vmatpush1.msra.mxu1 %v6107_v11  ;;  %v6149_v36 = vld [vmem:[%s11366_s5 + $0x730] sm:$0xff]  ;;  %v4290_v11 = vld [vmem:[%s11366_s5 + $0x578] sm:$0xff] }
 0x5e3   : > { %4478 = vmatprep.subr.mxu0 %v4256_v7  ;;  %4750 = vmatprep.subr.mxu1 %v6106_v42  ;;  %v6148_v7 = vld [vmem:[%s11366_s5 + $0x728] sm:$0xff]  ;;  %v4289_v42 = vld [vmem:[%s11366_s5 + $0x570] sm:$0xff] }
 0x5e4   : > { %4479 = vmatpush1.msra.mxu0 %v4255_v60  ;;  %4751 = vmatpush1.msra.mxu1 %v6105_v20  ;;  %v6147_v60 = vld [vmem:[%s11366_s5 + $0x720] sm:$0xff]  ;;  %v4288_v20 = vld [vmem:[%s11366_s5 + $0x568] sm:$0xff] }
 0x5e5   : > { %4480 = vmatprep.subr.mxu0 %v4254_v18  ;;  %4752 = vmatprep.subr.mxu1 %v6104_v4  ;;  %v6146_v18 = vld [vmem:[%s11366_s5 + $0x718] sm:$0xff]  ;;  %v4287_v4 = vld [vmem:[%s11366_s5 + $0x560] sm:$0xff] }
 0x5e6   : > { %4481 = vmatpush1.msra.mxu0 %v4253_v5  ;;  %4753 = vmatpush1.msra.mxu1 %v6103_v22  ;;  %v6145_v5 = vld [vmem:[%s11366_s5 + $0x710] sm:$0xff]  ;;  %v4286_v22 = vld [vmem:[%s11366_s5 + $0x558] sm:$0xff] }
 0x5e7   : > { %4482 = vmatprep.subr.mxu0 %v4252_v59  ;;  %4754 = vmatprep.subr.mxu1 %v6166_v0  ;;  %v6144_v59 = vld [vmem:[%s11366_s5 + $0x708] sm:$0xff]  ;;  %v4285_v0 = vld [vmem:[%s11366_s5 + $0x550] sm:$0xff] }
 0x5e8   : > { %4483 = vmatpush1.msra.mxu0 %v4251_v17  ;;  %4755 = vmatpush2.msra.mxu1 %v6165_v56  ;;  %v6143_v17 = vld [vmem:[%s11366_s5 + $0x700] sm:$0xff]  ;;  %v4284_v56 = vld [vmem:[%s11366_s5 + $0x548] sm:$0xff] }
 0x5e9   : > { %4484 = vmatprep.subr.mxu0 %v4250_v51  ;;  %4756 = vmatprep.subr.mxu1 %v6164_v34  ;;  %v6142_v51 = vld [vmem:[%s11366_s5 + $0x6f8] sm:$0xff]  ;;  %v4283_v34 = vld [vmem:[%s11366_s5 + $0x540] sm:$0xff] }
 0x5ea   : > { %4485 = vmatpush1.msra.mxu0 %v4249_v29  ;;  %4757 = vmatpush2.msra.mxu1 %v6163_v2  ;;  %v6141_v29 = vld [vmem:[%s11366_s5 + $0x6f0] sm:$0xff]  ;;  %v4282_v2 = vld [vmem:[%s11366_s5 + $0x538] sm:$0xff] }
 0x5eb   : > { %4486 = vmatprep.subr.mxu0 %v4248_v23  ;;  %4758 = vmatprep.subr.mxu1 %v6162_v50  ;;  %v6140_v23 = vld [vmem:[%s11366_s5 + $0x6e8] sm:$0xff]  ;;  %v4281_v50 = vld [vmem:[%s11366_s5 + $0x530] sm:$0xff] }
 0x5ec   : > { %4487 = vmatpush1.msra.mxu0 %v4247_v19  ;;  %4759 = vmatpush2.msra.mxu1 %v6161_v46  ;;  %v6139_v19 = vld [vmem:[%s11366_s5 + $0x6e0] sm:$0xff]  ;;  %v4280_v46 = vld [vmem:[%s11366_s5 + $0x528] sm:$0xff] }
 0x5ed   : > { %4488 = vmatprep.subr.mxu0 %v4246_v25  ;;  %4760 = vmatprep.subr.mxu1 %v6160_v37  ;;  %v6138_v25 = vld [vmem:[%s11366_s5 + $0x6d8] sm:$0xff]  ;;  %v4279_v37 = vld [vmem:[%s11366_s5 + $0x520] sm:$0xff] }
 0x5ee   : > { %4489 = vmatpush1.msra.mxu0 %v4245_v31  ;;  %4761 = vmatpush2.msra.mxu1 %v6159_v62  ;;  %v6137_v31 = vld [vmem:[%s11366_s5 + $0x6d0] sm:$0xff]  ;;  %v4098_v62 = vpop.f32.mrf.mxu1 }
 0x5ef   : > { %4490 = vmatprep.subr.mxu0 %v4244_v41  ;;  %4762 = vmatprep.subr.mxu1 %v6158_v9  ;;  %v4278_v41 = vld [vmem:[%s11366_s5 + $0x518] sm:$0xff]  ;;  %v6136_v9 = vld [vmem:[%s11366_s5 + $0x6c8] sm:$0xff] }
 0x5f0   : > { %4491 = vmatpush1.msra.mxu0 %v4243_v28  ;;  %4763 = vmatpush2.msra.mxu1 %v6157_v3  ;;  %v4277_v28 = vld [vmem:[%s11366_s5 + $0x510] sm:$0xff]  ;;  %v6135_v3 = vld [vmem:[%s11366_s5 + $0x6c0] sm:$0xff] }
 0x5f1   : > { %4500 = vmatprep.subr.mxu0 %v4298_v30  ;;  %4764 = vmatprep.subr.mxu1 %v6156_v54  ;;  %v4276_v30 = vld [vmem:[%s11366_s5 + $0x508] sm:$0xff]  ;;  %v6262_v54 = vld [vmem:[%s11366_s5 + $0xab8] sm:$0xff] }
 0x5f2   : > { %4501 = vmatpush2.msra.mxu0 %v4297_v13  ;;  %4765 = vmatpush2.msra.mxu1 %v6155_v33  ;;  %v4275_v13 = vld [vmem:[%s11366_s5 + $0x500] sm:$0xff]  ;;  %v4100_v33 = vpop.f32.mrf.mxu1 }
 0x5f3   : > { %4502 = vmatprep.subr.mxu0 %v4296_v48  ;;  %4766 = vmatprep.subr.mxu1 %v6154_v47  ;;  %v6261_v48 = vld [vmem:[%s11366_s5 + $0xab0] sm:$0xff]  ;;  %v6198_v47 = vld [vmem:[%s11366_s5 + $0x8b8] sm:$0xff] }
 0x5f4   : > { %4503 = vmatpush2.msra.mxu0 %v4295_v49  ;;  %4767 = vmatpush2.msra.mxu1 %v6153_v6  ;;  %v10408_v49 = vmax.f32 %v3855_v52, %v10101_v10  ;;  %v6260_v6 = vld [vmem:[%s11366_s5 + $0xaa8] sm:$0xff]  ;;  %v6194_v10 = vld [vmem:[%s11366_s5 + $0x898] sm:$0xff] }
 0x5f5   : > { %4504 = vmatprep.subr.mxu0 %v4294_v45  ;;  %4768 = vmatprep.subr.mxu1 %v6152_v44  ;;  %v10416_v45 = vmax.f32 %v3862_v1, %v4100_v33  ;;  %v6196_v52 = vld [vmem:[%s11366_s5 + $0x8a8] sm:$0xff]  ;;  %v6257_v1 = vld [vmem:[%s11366_s5 + $0xa90] sm:$0xff]  ;;  %v10447_v44 = vmax.f32 %v3861_v57, %v4098_v62  ;;  %v6254_v57 = vld [vmem:[%s11366_s5 + $0xa78] sm:$0xff] }
 0x5f6   : > { %4505 = vmatpush2.msra.mxu0 %v4293_v21  ;;  %4769 = vmatpush2.msra.mxu1 %v6151_v8  ;;  %v6256_v21 = vld [vmem:[%s11366_s5 + $0xa88] sm:$0xff]  ;;  %v6193_v8 = vld [vmem:[%s11366_s5 + $0x890] sm:$0xff] }
 0x5f7   : > { %4506 = vmatprep.subr.mxu0 %v4292_v35  ;;  %4770 = vmatprep.subr.mxu1 %v6150_v32  ;;  %v6191_v35 = vld [vmem:[%s11366_s5 + $0x880] sm:$0xff]  ;;  %v6253_v32 = vld [vmem:[%s11366_s5 + $0xa70] sm:$0xff] }
 0x5f8   : > { %4507 = vmatpush2.msra.mxu0 %v4291_v55  ;;  %4771 = vmatpush2.msra.mxu1 %v6149_v36  ;;  %v6190_v55 = vld [vmem:[%s11366_s5 + $0x878] sm:$0xff]  ;;  %v6252_v36 = vld [vmem:[%s11366_s5 + $0xa68] sm:$0xff]  ;;  %v6177_v62 = vld [vmem:[%s11366_s5 + $0x810] sm:$0xff] }
 0x5f9   : > { %4508 = vmatprep.subr.mxu0 %v4290_v11  ;;  %4772 = vmatprep.subr.mxu1 %v6148_v7  ;;  %v6189_v11 = vld [vmem:[%s11366_s5 + $0x870] sm:$0xff]  ;;  %v6251_v7 = vld [vmem:[%s11366_s5 + $0xa60] sm:$0xff] }
 0x5fa   : > { %4509 = vmatpush2.msra.mxu0 %v4289_v42  ;;  %4773 = vmatpush2.msra.mxu1 %v6147_v60  ;;  %v6188_v42 = vld [vmem:[%s11366_s5 + $0x868] sm:$0xff]  ;;  %v6250_v60 = vld [vmem:[%s11366_s5 + $0xa58] sm:$0xff]  ;;  %v6173_v33 = vld [vmem:[%s11366_s5 + $0x7f0] sm:$0xff] }
 0x5fb   : > { %4510 = vmatprep.subr.mxu0 %v4288_v20  ;;  %4774 = vmatprep.subr.mxu1 %v6146_v18  ;;  %v6187_v20 = vld [vmem:[%s11366_s5 + $0x860] sm:$0xff]  ;;  %v6249_v18 = vld [vmem:[%s11366_s5 + $0xa50] sm:$0xff] }
 0x5fc   : > { %4511 = vmatpush2.msra.mxu0 %v4287_v4  ;;  %4775 = vmatpush2.msra.mxu1 %v6145_v5  ;;  %v6186_v4 = vld [vmem:[%s11366_s5 + $0x858] sm:$0xff]  ;;  %v6248_v5 = vld [vmem:[%s11366_s5 + $0xa48] sm:$0xff] }
 0x5fd   : > { %4512 = vmatprep.subr.mxu0 %v4286_v22  ;;  %4776 = vmatprep.subr.mxu1 %v6144_v59  ;;  %v6185_v22 = vld [vmem:[%s11366_s5 + $0x850] sm:$0xff]  ;;  %v6247_v59 = vld [vmem:[%s11366_s5 + $0xa40] sm:$0xff] }
 0x5fe   : > { %4513 = vmatpush2.msra.mxu0 %v4285_v0  ;;  %4777 = vmatpush2.msra.mxu1 %v6143_v17  ;;  %v6184_v0 = vld [vmem:[%s11366_s5 + $0x848] sm:$0xff]  ;;  %v6246_v17 = vld [vmem:[%s11366_s5 + $0xa38] sm:$0xff] }
 0x5ff   : > { %4514 = vmatprep.subr.mxu0 %v4284_v56  ;;  %4778 = vmatprep.subr.mxu1 %v6142_v51  ;;  %v6183_v56 = vld [vmem:[%s11366_s5 + $0x840] sm:$0xff]  ;;  %v6245_v51 = vld [vmem:[%s11366_s5 + $0xa30] sm:$0xff] }
 0x600   : > { %4515 = vmatpush2.msra.mxu0 %v4283_v34  ;;  %4779 = vmatpush2.msra.mxu1 %v6141_v29  ;;  %v6182_v34 = vld [vmem:[%s11366_s5 + $0x838] sm:$0xff]  ;;  %v6244_v29 = vld [vmem:[%s11366_s5 + $0xa28] sm:$0xff] }
 0x601   : > { %4516 = vmatprep.subr.mxu0 %v4282_v2  ;;  %4780 = vmatprep.subr.mxu1 %v6140_v23  ;;  %v6181_v2 = vld [vmem:[%s11366_s5 + $0x830] sm:$0xff]  ;;  %v6243_v23 = vld [vmem:[%s11366_s5 + $0xa20] sm:$0xff] }
 0x602   : > { %4517 = vmatpush2.msra.mxu0 %v4281_v50  ;;  %4781 = vmatpush2.msra.mxu1 %v6139_v19  ;;  %v6180_v50 = vld [vmem:[%s11366_s5 + $0x828] sm:$0xff]  ;;  %v6242_v19 = vld [vmem:[%s11366_s5 + $0xa18] sm:$0xff] }
 0x603   : > { %4518 = vmatprep.subr.mxu0 %v4280_v46  ;;  %4782 = vmatprep.subr.mxu1 %v6138_v25  ;;  %v6179_v46 = vld [vmem:[%s11366_s5 + $0x820] sm:$0xff]  ;;  %v6241_v25 = vld [vmem:[%s11366_s5 + $0xa10] sm:$0xff] }
 0x604   : > { %4519 = vmatpush2.msra.mxu0 %v4279_v37  ;;  %4783 = vmatpush2.msra.mxu1 %v6137_v31  ;;  %v6178_v37 = vld [vmem:[%s11366_s5 + $0x818] sm:$0xff]  ;;  %v6240_v31 = vld [vmem:[%s11366_s5 + $0xa08] sm:$0xff] }
 0x605   : > { %4520 = vmatprep.subr.mxu0 %v4278_v41  ;;  %4784 = vmatprep.subr.mxu1 %v6136_v9  ;;  %v6239_v41 = vld [vmem:[%s11366_s5 + $0xa00] sm:$0xff]  ;;  %v6176_v9 = vld [vmem:[%s11366_s5 + $0x808] sm:$0xff] }
 0x606   : > { %4521 = vmatpush2.msra.mxu0 %v4277_v28  ;;  %4785 = vmatpush2.msra.mxu1 %v6135_v3  ;;  %v6238_v28 = vld [vmem:[%s11366_s5 + $0x9f8] sm:$0xff]  ;;  %v6175_v3 = vld [vmem:[%s11366_s5 + $0x800] sm:$0xff] }
 0x607   : > { %4522 = vmatprep.subr.mxu0 %v4276_v30  ;;  %4787 = vmatmul.mubr.f32.vlgmr.msra.gmra.mxu1 %v10052_v63  ;;  %v6237_v30 = vld [vmem:[%s11366_s5 + $0x9f0] sm:$0xff] }
 0x608   : > { %4876 = vmatprep.subr.mxu1 %v6262_v54  ;;  %4523 = vmatpush2.msra.mxu0 %v4275_v13  ;;  %v6174_v54 = vld [vmem:[%s11366_s5 + $0x7f8] sm:$0xff]  ;;  %v6236_v13 = vld [vmem:[%s11366_s5 + $0x9e8] sm:$0xff] }
 0x609   : > { %4792 = vmatprep.mubr.f32.mxu1 %v10068_v53  ;;  %4877 = vmatpush1.msra.mxu1 %v6261_v48  ;;  %v6235_v48 = vld [vmem:[%s11366_s5 + $0x9e0] sm:$0xff] }
 0x60a   : > { %4525 = vmatmul.mubr.f32.vlgmr.msra.gmra.mxu0 %v10408_v49  ;;  %4799 = vmatprep.subr.mxu0 %v6198_v47  ;;  %v6172_v47 = vld [vmem:[%s11366_s5 + $0x7e8] sm:$0xff] }
 0x60b   : > { %4878 = vmatprep.subr.mxu1 %v6260_v6  ;;  %6102 = vmatprep.mubr.msk.f32.mxu0 %vm4299_vm4, %v10416_v45  ;;  %v6234_v6 = vld [vmem:[%s11366_s5 + $0x9d8] sm:$0xff] }
 0x60c   : > { %4800 = vmatpush1.msra.mxu0 %v6197_v39  ;;  %4879 = vmatpush1.msra.mxu1 %v6259_v26  ;;  %v6171_v39 = vld [vmem:[%s11366_s5 + $0x7e0] sm:$0xff]  ;;  %v6233_v26 = vld [vmem:[%s11366_s5 + $0x9d0] sm:$0xff] }
 0x60d   : > { %4793 = vmatmul.mubr.f32.gmra.mxu1 %v10085_v14  ;;  %4801 = vmatprep.subr.mxu0 %v6196_v52  ;;  %v6170_v52 = vld [vmem:[%s11366_s5 + $0x7d8] sm:$0xff] }
 0x60e   : > { %4880 = vmatprep.subr.mxu1 %v6258_v43  ;;  %4802 = vmatpush1.msra.mxu0 %v6195_v38  ;;  %v6232_v43 = vld [vmem:[%s11366_s5 + $0x9c8] sm:$0xff]  ;;  %v6169_v38 = vld [vmem:[%s11366_s5 + $0x7d0] sm:$0xff] }
 0x60f   : > { %4881 = vmatpush1.msra.mxu1 %v6257_v1  ;;  %6287 = vmatprep.mubr.msk.f32.mxu1 %vm4299_vm4, %v10123_v24  ;;  %v6231_v1 = vld [vmem:[%s11366_s5 + $0x9c0] sm:$0xff] }
 0x610   : > { %4531 = vmatmul.mubr.f32.gmra.mxu0 %v10447_v44  ;;  %4803 = vmatprep.subr.mxu0 %v6194_v10  ;;  %v6168_v10 = vld [vmem:[%s11366_s5 + $0x7c8] sm:$0xff] }
 0x611   : > { %4882 = vmatprep.subr.mxu1 %v6256_v21  ;;  %4804 = vmatpush1.msra.mxu0 %v6193_v8  ;;  %v6286_v21 = vld [vmem:[%s11366_s5 + $0xb78] sm:$0xff]  ;;  %v6167_v8 = vld [vmem:[%s11366_s5 + $0x7c0] sm:$0xff] }
 0x612   : > { %4863 = vmatprep.mubr.f32.mxu0 %v10001_v58  ;;  %4883 = vmatpush1.msra.mxu1 %v6255_v27  ;;  %v6285_v27 = vld [vmem:[%s11366_s5 + $0xb70] sm:$0xff] }
 0x613   : > { %4805 = vmatprep.subr.mxu0 %v6192_v40  ;;  %4884 = vmatprep.subr.mxu1 %v6254_v57  ;;  %v6230_v40 = vld [vmem:[%s11366_s5 + $0x9b8] sm:$0xff]  ;;  %v6284_v57 = vld [vmem:[%s11366_s5 + $0xb68] sm:$0xff] }
 0x614   : > { %4806 = vmatpush1.msra.mxu0 %v6191_v35  ;;  %4885 = vmatpush1.msra.mxu1 %v6253_v32  ;;  %v6229_v35 = vld [vmem:[%s11366_s5 + $0x9b0] sm:$0xff]  ;;  %v6283_v32 = vld [vmem:[%s11366_s5 + $0xb60] sm:$0xff] }
 0x615   : > { %4807 = vmatprep.subr.mxu0 %v6190_v55  ;;  %4886 = vmatprep.subr.mxu1 %v6252_v36  ;;  %v6228_v55 = vld [vmem:[%s11366_s5 + $0x9a8] sm:$0xff]  ;;  %v6282_v36 = vld [vmem:[%s11366_s5 + $0xb58] sm:$0xff] }
 0x616   : > { %4808 = vmatpush1.msra.mxu0 %v6189_v11  ;;  %4887 = vmatpush1.msra.mxu1 %v6251_v7  ;;  %v6227_v11 = vld [vmem:[%s11366_s5 + $0x9a0] sm:$0xff]  ;;  %v6281_v7 = vld [vmem:[%s11366_s5 + $0xb50] sm:$0xff] }
 0x617   : > { %4809 = vmatprep.subr.mxu0 %v6188_v42  ;;  %4888 = vmatprep.subr.mxu1 %v6250_v60  ;;  %v6226_v42 = vld [vmem:[%s11366_s5 + $0x998] sm:$0xff]  ;;  %v6280_v60 = vld [vmem:[%s11366_s5 + $0xb48] sm:$0xff] }
 0x618   : > { %4810 = vmatpush1.msra.mxu0 %v6187_v20  ;;  %4889 = vmatpush1.msra.mxu1 %v6249_v18  ;;  %v6225_v20 = vld [vmem:[%s11366_s5 + $0x990] sm:$0xff]  ;;  %v6279_v18 = vld [vmem:[%s11366_s5 + $0xb40] sm:$0xff] }
 0x619   : > { %4811 = vmatprep.subr.mxu0 %v6186_v4  ;;  %4890 = vmatprep.subr.mxu1 %v6248_v5  ;;  %v6224_v4 = vld [vmem:[%s11366_s5 + $0x988] sm:$0xff]  ;;  %v6278_v5 = vld [vmem:[%s11366_s5 + $0xb38] sm:$0xff] }
 0x61a   : > { %4812 = vmatpush1.msra.mxu0 %v6185_v22  ;;  %4891 = vmatpush1.msra.mxu1 %v6247_v59  ;;  %v6223_v22 = vld [vmem:[%s11366_s5 + $0x980] sm:$0xff]  ;;  %v6277_v59 = vld [vmem:[%s11366_s5 + $0xb30] sm:$0xff] }
 0x61b   : > { %4813 = vmatprep.subr.mxu0 %v6184_v0  ;;  %4892 = vmatprep.subr.mxu1 %v6246_v17  ;;  %v6222_v0 = vld [vmem:[%s11366_s5 + $0x978] sm:$0xff]  ;;  %v6276_v17 = vld [vmem:[%s11366_s5 + $0xb28] sm:$0xff] }
 0x61c   : > { %4814 = vmatpush1.msra.mxu0 %v6183_v56  ;;  %4893 = vmatpush1.msra.mxu1 %v6245_v51  ;;  %v6221_v56 = vld [vmem:[%s11366_s5 + $0x970] sm:$0xff]  ;;  %v6275_v51 = vld [vmem:[%s11366_s5 + $0xb20] sm:$0xff] }
 0x61d   : > { %4815 = vmatprep.subr.mxu0 %v6182_v34  ;;  %4894 = vmatprep.subr.mxu1 %v6244_v29  ;;  %v6220_v34 = vld [vmem:[%s11366_s5 + $0x968] sm:$0xff]  ;;  %v6274_v29 = vld [vmem:[%s11366_s5 + $0xb18] sm:$0xff] }
 0x61e   : > { %4816 = vmatpush1.msra.mxu0 %v6181_v2  ;;  %4895 = vmatpush1.msra.mxu1 %v6243_v23  ;;  %v6219_v2 = vld [vmem:[%s11366_s5 + $0x960] sm:$0xff]  ;;  %v6273_v23 = vld [vmem:[%s11366_s5 + $0xb10] sm:$0xff] }
 0x61f   : > { %4817 = vmatprep.subr.mxu0 %v6180_v50  ;;  %4896 = vmatprep.subr.mxu1 %v6242_v19  ;;  %v6218_v50 = vld [vmem:[%s11366_s5 + $0x958] sm:$0xff]  ;;  %v6272_v19 = vld [vmem:[%s11366_s5 + $0xb08] sm:$0xff] }
 0x620   : > { %4818 = vmatpush1.msra.mxu0 %v6179_v46  ;;  %4897 = vmatpush1.msra.mxu1 %v6241_v25  ;;  %v6217_v46 = vld [vmem:[%s11366_s5 + $0x950] sm:$0xff]  ;;  %v6271_v25 = vld [vmem:[%s11366_s5 + $0xb00] sm:$0xff] }
 0x621   : > { %4819 = vmatprep.subr.mxu0 %v6178_v37  ;;  %4898 = vmatprep.subr.mxu1 %v6240_v31  ;;  %v6216_v37 = vld [vmem:[%s11366_s5 + $0x948] sm:$0xff]  ;;  %v6270_v31 = vld [vmem:[%s11366_s5 + $0xaf8] sm:$0xff] }
 0x622   : > { %4820 = vmatpush1.msra.mxu0 %v6177_v62  ;;  %4899 = vmatpush1.msra.mxu1 %v6239_v41  ;;  %v6215_v62 = vld [vmem:[%s11366_s5 + $0x940] sm:$0xff]  ;;  %v6269_v41 = vld [vmem:[%s11366_s5 + $0xaf0] sm:$0xff] }
 0x623   : > { %4821 = vmatprep.subr.mxu0 %v6176_v9  ;;  %4900 = vmatprep.subr.mxu1 %v6238_v28  ;;  %v6214_v9 = vld [vmem:[%s11366_s5 + $0x938] sm:$0xff]  ;;  %v6268_v28 = vld [vmem:[%s11366_s5 + $0xae8] sm:$0xff] }
 0x624   : > { %4822 = vmatpush1.msra.mxu0 %v6175_v3  ;;  %4901 = vmatpush1.msra.mxu1 %v6237_v30  ;;  %v6213_v3 = vld [vmem:[%s11366_s5 + $0x930] sm:$0xff]  ;;  %v6267_v30 = vld [vmem:[%s11366_s5 + $0xae0] sm:$0xff] }
 0x625   : > { %4823 = vmatprep.subr.mxu0 %v6174_v54  ;;  %4902 = vmatprep.subr.mxu1 %v6236_v13  ;;  %v6212_v54 = vld [vmem:[%s11366_s5 + $0x928] sm:$0xff]  ;;  %v6266_v13 = vld [vmem:[%s11366_s5 + $0xad8] sm:$0xff] }
 0x626   : > { %4824 = vmatpush1.msra.mxu0 %v6173_v33  ;;  %4903 = vmatpush1.msra.mxu1 %v6235_v48  ;;  %v6211_v33 = vld [vmem:[%s11366_s5 + $0x920] sm:$0xff]  ;;  %v6265_v48 = vld [vmem:[%s11366_s5 + $0xad0] sm:$0xff] }
 0x627   : > { %4825 = vmatprep.subr.mxu0 %v6172_v47  ;;  %4904 = vmatprep.subr.mxu1 %v6234_v6  ;;  %v6210_v47 = vld [vmem:[%s11366_s5 + $0x918] sm:$0xff]  ;;  %v6264_v6 = vld [vmem:[%s11366_s5 + $0xac8] sm:$0xff] }
 0x628   : > { %4826 = vmatpush1.msra.mxu0 %v6171_v39  ;;  %4905 = vmatpush1.msra.mxu1 %v6233_v26  ;;  %v6209_v39 = vld [vmem:[%s11366_s5 + $0x910] sm:$0xff]  ;;  %v6263_v26 = vld [vmem:[%s11366_s5 + $0xac0] sm:$0xff] }
 0x629   : > { %4827 = vmatprep.subr.mxu0 %v6170_v52  ;;  %4906 = vmatprep.subr.mxu1 %v6232_v43  ;;  %v6208_v52 = vld [vmem:[%s11366_s5 + $0x908] sm:$0xff]  ;;  %v6384_v43 = vld [vmem:[%s11366_s5 + $0xe78] sm:$0xff] }
 0x62a   : > { %4828 = vmatpush1.msra.mxu0 %v6169_v38  ;;  %4907 = vmatpush1.msra.mxu1 %v6231_v1  ;;  %v6207_v38 = vld [vmem:[%s11366_s5 + $0x900] sm:$0xff]  ;;  %v6383_v1 = vld [vmem:[%s11366_s5 + $0xe70] sm:$0xff] }
 0x62b   : > { %4829 = vmatprep.subr.mxu0 %v6168_v10  ;;  %4916 = vmatprep.subr.mxu1 %v6286_v21  ;;  %v6206_v10 = vld [vmem:[%s11366_s5 + $0x8f8] sm:$0xff]  ;;  %v6382_v21 = vld [vmem:[%s11366_s5 + $0xe68] sm:$0xff] }
 0x62c   : > { %4830 = vmatpush1.msra.mxu0 %v6167_v8  ;;  %4917 = vmatpush2.msra.mxu1 %v6285_v27  ;;  %v6205_v8 = vld [vmem:[%s11366_s5 + $0x8f0] sm:$0xff]  ;;  %v6381_v27 = vld [vmem:[%s11366_s5 + $0xe60] sm:$0xff] }
 0x62d   : > { %4831 = vmatprep.subr.mxu0 %v6230_v40  ;;  %4918 = vmatprep.subr.mxu1 %v6284_v57  ;;  %v6204_v40 = vld [vmem:[%s11366_s5 + $0x8e8] sm:$0xff]  ;;  %v6380_v57 = vld [vmem:[%s11366_s5 + $0xe58] sm:$0xff] }
 0x62e   : > { %4832 = vmatpush2.msra.mxu0 %v6229_v35  ;;  %4919 = vmatpush2.msra.mxu1 %v6283_v32  ;;  %v6203_v35 = vld [vmem:[%s11366_s5 + $0x8e0] sm:$0xff]  ;;  %v6379_v32 = vld [vmem:[%s11366_s5 + $0xe50] sm:$0xff] }
 0x62f   : > { %4833 = vmatprep.subr.mxu0 %v6228_v55  ;;  %4920 = vmatprep.subr.mxu1 %v6282_v36  ;;  %v6202_v55 = vld [vmem:[%s11366_s5 + $0x8d8] sm:$0xff]  ;;  %v6378_v36 = vld [vmem:[%s11366_s5 + $0xe48] sm:$0xff] }
 0x630   : > { %4834 = vmatpush2.msra.mxu0 %v6227_v11  ;;  %4921 = vmatpush2.msra.mxu1 %v6281_v7  ;;  %v6201_v11 = vld [vmem:[%s11366_s5 + $0x8d0] sm:$0xff]  ;;  %v6377_v7 = vld [vmem:[%s11366_s5 + $0xe40] sm:$0xff] }
 0x631   : > { %4835 = vmatprep.subr.mxu0 %v6226_v42  ;;  %4922 = vmatprep.subr.mxu1 %v6280_v60  ;;  %v6200_v42 = vld [vmem:[%s11366_s5 + $0x8c8] sm:$0xff]  ;;  %v6376_v60 = vld [vmem:[%s11366_s5 + $0xe38] sm:$0xff] }
 0x632   : > { %4836 = vmatpush2.msra.mxu0 %v6225_v20  ;;  %4923 = vmatpush2.msra.mxu1 %v6279_v18  ;;  %v6199_v20 = vld [vmem:[%s11366_s5 + $0x8c0] sm:$0xff]  ;;  %v6375_v18 = vld [vmem:[%s11366_s5 + $0xe30] sm:$0xff] }
 0x633   : > { %4837 = vmatprep.subr.mxu0 %v6224_v4  ;;  %4924 = vmatprep.subr.mxu1 %v6278_v5  ;;  %v6374_v4 = vld [vmem:[%s11366_s5 + $0xe28] sm:$0xff]  ;;  %v6319_v5 = vld [vmem:[%s11366_s5 + $0xc70] sm:$0xff] }
 0x634   : > { %4838 = vmatpush2.msra.mxu0 %v6223_v22  ;;  %4925 = vmatpush2.msra.mxu1 %v6277_v59  ;;  %v6373_v22 = vld [vmem:[%s11366_s5 + $0xe20] sm:$0xff]  ;;  %v6318_v59 = vld [vmem:[%s11366_s5 + $0xc68] sm:$0xff] }
 0x635   : > { %4839 = vmatprep.subr.mxu0 %v6222_v0  ;;  %4926 = vmatprep.subr.mxu1 %v6276_v17  ;;  %v6372_v0 = vld [vmem:[%s11366_s5 + $0xe18] sm:$0xff]  ;;  %v6317_v17 = vld [vmem:[%s11366_s5 + $0xc60] sm:$0xff] }
 0x636   : > { %4840 = vmatpush2.msra.mxu0 %v6221_v56  ;;  %4927 = vmatpush2.msra.mxu1 %v6275_v51  ;;  %v6371_v56 = vld [vmem:[%s11366_s5 + $0xe10] sm:$0xff]  ;;  %v6316_v51 = vld [vmem:[%s11366_s5 + $0xc58] sm:$0xff] }
 0x637   : > { %4841 = vmatprep.subr.mxu0 %v6220_v34  ;;  %4928 = vmatprep.subr.mxu1 %v6274_v29  ;;  %v6370_v34 = vld [vmem:[%s11366_s5 + $0xe08] sm:$0xff]  ;;  %v6315_v29 = vld [vmem:[%s11366_s5 + $0xc50] sm:$0xff] }
 0x638   : > { %4842 = vmatpush2.msra.mxu0 %v6219_v2  ;;  %4929 = vmatpush2.msra.mxu1 %v6273_v23  ;;  %v6369_v2 = vld [vmem:[%s11366_s5 + $0xe00] sm:$0xff]  ;;  %v6314_v23 = vld [vmem:[%s11366_s5 + $0xc48] sm:$0xff] }
 0x639   : > { %4843 = vmatprep.subr.mxu0 %v6218_v50  ;;  %4930 = vmatprep.subr.mxu1 %v6272_v19  ;;  %v6368_v50 = vld [vmem:[%s11366_s5 + $0xdf8] sm:$0xff]  ;;  %v6313_v19 = vld [vmem:[%s11366_s5 + $0xc40] sm:$0xff] }
 0x63a   : > { %4844 = vmatpush2.msra.mxu0 %v6217_v46  ;;  %4931 = vmatpush2.msra.mxu1 %v6271_v25  ;;  %v6367_v46 = vld [vmem:[%s11366_s5 + $0xdf0] sm:$0xff]  ;;  %v6312_v25 = vld [vmem:[%s11366_s5 + $0xc38] sm:$0xff] }
 0x63b   : > { %4845 = vmatprep.subr.mxu0 %v6216_v37  ;;  %4932 = vmatprep.subr.mxu1 %v6270_v31  ;;  %v6366_v37 = vld [vmem:[%s11366_s5 + $0xde8] sm:$0xff]  ;;  %v6311_v31 = vld [vmem:[%s11366_s5 + $0xc30] sm:$0xff] }
 0x63c   : > { %4846 = vmatpush2.msra.mxu0 %v6215_v62  ;;  %4933 = vmatpush2.msra.mxu1 %v6269_v41  ;;  %v6365_v62 = vld [vmem:[%s11366_s5 + $0xde0] sm:$0xff]  ;;  %v6364_v41 = vld [vmem:[%s11366_s5 + $0xdd8] sm:$0xff] }
 0x63d   : > { %4847 = vmatprep.subr.mxu0 %v6214_v9  ;;  %4934 = vmatprep.subr.mxu1 %v6268_v28  ;;  %v6309_v9 = vld [vmem:[%s11366_s5 + $0xc20] sm:$0xff]  ;;  %v6363_v28 = vld [vmem:[%s11366_s5 + $0xdd0] sm:$0xff] }
 0x63e   : > { %4848 = vmatpush2.msra.mxu0 %v6213_v3  ;;  %4935 = vmatpush2.msra.mxu1 %v6267_v30  ;;  %v6308_v3 = vld [vmem:[%s11366_s5 + $0xc18] sm:$0xff]  ;;  %v6362_v30 = vld [vmem:[%s11366_s5 + $0xdc8] sm:$0xff] }
 0x63f   : > { %4849 = vmatprep.subr.mxu0 %v6212_v54  ;;  %4936 = vmatprep.subr.mxu1 %v6266_v13  ;;  %v6307_v54 = vld [vmem:[%s11366_s5 + $0xc10] sm:$0xff]  ;;  %v6361_v13 = vld [vmem:[%s11366_s5 + $0xdc0] sm:$0xff] }
 0x640   : > { %4850 = vmatpush2.msra.mxu0 %v6211_v33  ;;  %4937 = vmatpush2.msra.mxu1 %v6265_v48  ;;  %v6306_v33 = vld [vmem:[%s11366_s5 + $0xc08] sm:$0xff]  ;;  %v6360_v48 = vld [vmem:[%s11366_s5 + $0xdb8] sm:$0xff] }
 0x641   : > { %4851 = vmatprep.subr.mxu0 %v6210_v47  ;;  %4938 = vmatprep.subr.mxu1 %v6264_v6  ;;  %v6305_v47 = vld [vmem:[%s11366_s5 + $0xc00] sm:$0xff]  ;;  %v6359_v6 = vld [vmem:[%s11366_s5 + $0xdb0] sm:$0xff] }
 0x642   : > { %4852 = vmatpush2.msra.mxu0 %v6209_v39  ;;  %4939 = vmatpush2.msra.mxu1 %v6263_v26  ;;  %v6304_v39 = vld [vmem:[%s11366_s5 + $0xbf8] sm:$0xff]  ;;  %v6358_v26 = vld [vmem:[%s11366_s5 + $0xda8] sm:$0xff] }
 0x643   : > { %4853 = vmatprep.subr.mxu0 %v6208_v52  ;;  %4941 = vmatmul.mubr.f32.vlgmr.msra.gmra.mxu1 %v10408_v49  ;;  %v6303_v52 = vld [vmem:[%s11366_s5 + $0xbf0] sm:$0xff] }
 0x644   : > { %5219 = vmatprep.subr.mxu1 %v6384_v43  ;;  %4854 = vmatpush2.msra.mxu0 %v6207_v38  ;;  %v6357_v43 = vld [vmem:[%s11366_s5 + $0xda0] sm:$0xff]  ;;  %v6302_v38 = vld [vmem:[%s11366_s5 + $0xbe8] sm:$0xff] }
 0x645   : > { %6288 = vmatprep.mubr.msk.f32.mxu1 %vm4299_vm4, %v10416_v45  ;;  %5220 = vmatpush1.msra.mxu1 %v6383_v1  ;;  %v6356_v1 = vld [vmem:[%s11366_s5 + $0xd98] sm:$0xff] }
 0x646   : > { %4855 = vmatprep.subr.mxu0 %v6206_v10  ;;  %5221 = vmatprep.subr.mxu1 %v6382_v21  ;;  %v6301_v10 = vld [vmem:[%s11366_s5 + $0xbe0] sm:$0xff]  ;;  %v6355_v21 = vld [vmem:[%s11366_s5 + $0xd90] sm:$0xff] }
 0x647   : > { %4856 = vmatpush2.msra.mxu0 %v6205_v8  ;;  %5222 = vmatpush1.msra.mxu1 %v6381_v27  ;;  %v6300_v8 = vld [vmem:[%s11366_s5 + $0xbd8] sm:$0xff]  ;;  %v6354_v27 = vld [vmem:[%s11366_s5 + $0xd88] sm:$0xff] }
 0x648   : > { %4857 = vmatprep.subr.mxu0 %v6204_v40  ;;  %4947 = vmatmul.mubr.f32.gmra.mxu1 %v10447_v44  ;;  %v6299_v40 = vld [vmem:[%s11366_s5 + $0xbd0] sm:$0xff] }
 0x649   : > { %5223 = vmatprep.subr.mxu1 %v6380_v57  ;;  %4858 = vmatpush2.msra.mxu0 %v6203_v35  ;;  %v6353_v57 = vld [vmem:[%s11366_s5 + $0xd80] sm:$0xff]  ;;  %v6298_v35 = vld [vmem:[%s11366_s5 + $0xbc8] sm:$0xff] }
 0x64a   : > { %5224 = vmatpush1.msra.mxu1 %v6379_v32  ;;  %5283 = vmatprep.mubr.f32.mxu1 %v10001_v58  ;;  %v6320_v58 = vld [vmem:[%s11366_s5 + $0xc78] sm:$0xff] }
 0x64b   : > { %4859 = vmatprep.subr.mxu0 %v6202_v55  ;;  %5225 = vmatprep.subr.mxu1 %v6378_v36  ;;  %v6416_v32 = vld [vmem:[%s11366_s5 + $0xf78] sm:$0xff]  ;;  %v6297_v55 = vld [vmem:[%s11366_s5 + $0xbc0] sm:$0xff]  ;;  %v6415_v36 = vld [vmem:[%s11366_s5 + $0xf70] sm:$0xff] }
 0x64c   : > { %4860 = vmatpush2.msra.mxu0 %v6201_v11  ;;  %5226 = vmatpush1.msra.mxu1 %v6377_v7  ;;  %v6296_v11 = vld [vmem:[%s11366_s5 + $0xbb8] sm:$0xff]  ;;  %v6414_v7 = vld [vmem:[%s11366_s5 + $0xf68] sm:$0xff] }
 0x64d   : > { %4861 = vmatprep.subr.mxu0 %v6200_v42  ;;  %5227 = vmatprep.subr.mxu1 %v6376_v60  ;;  %v6295_v42 = vld [vmem:[%s11366_s5 + $0xbb0] sm:$0xff]  ;;  %v6413_v60 = vld [vmem:[%s11366_s5 + $0xf60] sm:$0xff] }
 0x64e   : > { %4862 = vmatpush2.msra.mxu0 %v6199_v20  ;;  %5228 = vmatpush1.msra.mxu1 %v6375_v18  ;;  %v6294_v20 = vld [vmem:[%s11366_s5 + $0xba8] sm:$0xff]  ;;  %v6412_v18 = vld [vmem:[%s11366_s5 + $0xf58] sm:$0xff] }
 0x64f   : > { %4864 = vmatmul.mubr.f32.vlgmr.msra.gmra.mxu0 %v10003_v61  ;;  %5142 = vmatprep.subr.mxu0 %v6320_v58  ;;  %v6293_v58 = vld [vmem:[%s11366_s5 + $0xba0] sm:$0xff] }
 0x650   : > { %5229 = vmatprep.subr.mxu1 %v6374_v4  ;;  %4869 = vmatprep.mubr.f32.mxu0 %v10019_v12  ;;  %v6411_v4 = vld [vmem:[%s11366_s5 + $0xf50] sm:$0xff] }
 0x651   : > { %5143 = vmatpush1.msra.mxu0 %v6319_v5  ;;  %5230 = vmatpush1.msra.mxu1 %v6373_v22  ;;  %v6292_v5 = vld [vmem:[%s11366_s5 + $0xb98] sm:$0xff]  ;;  %v6410_v22 = vld [vmem:[%s11366_s5 + $0xf48] sm:$0xff] }
 0x652   : > { %5144 = vmatprep.subr.mxu0 %v6318_v59  ;;  %5231 = vmatprep.subr.mxu1 %v6372_v0  ;;  %v6291_v59 = vld [vmem:[%s11366_s5 + $0xb90] sm:$0xff]  ;;  %v6409_v0 = vld [vmem:[%s11366_s5 + $0xf40] sm:$0xff] }
 0x653   : > { %5145 = vmatpush1.msra.mxu0 %v6317_v17  ;;  %5232 = vmatpush1.msra.mxu1 %v6371_v56  ;;  %v6290_v17 = vld [vmem:[%s11366_s5 + $0xb88] sm:$0xff]  ;;  %v6408_v56 = vld [vmem:[%s11366_s5 + $0xf38] sm:$0xff] }
 0x654   : > { %4870 = vmatmul.mubr.f32.gmra.mxu0 %v10021_v15  ;;  %5146 = vmatprep.subr.mxu0 %v6316_v51  ;;  %v6289_v51 = vld [vmem:[%s11366_s5 + $0xb80] sm:$0xff] }
 0x655   : > { %5233 = vmatprep.subr.mxu1 %v6370_v34  ;;  %5147 = vmatpush1.msra.mxu0 %v6315_v29  ;;  %v6407_v34 = vld [vmem:[%s11366_s5 + $0xf30] sm:$0xff]  ;;  %v6352_v29 = vld [vmem:[%s11366_s5 + $0xd78] sm:$0xff] }
 0x656   : > { %5206 = vmatprep.mubr.f32.mxu0 %v10042_v16  ;;  %5234 = vmatpush1.msra.mxu1 %v6369_v2  ;;  %v6310_v16 = vld [vmem:[%s11366_s5 + $0xc28] sm:$0xff] }
 0x657   : > { %5148 = vmatprep.subr.mxu0 %v6314_v23  ;;  %5235 = vmatprep.subr.mxu1 %v6368_v50  ;;  %v6406_v2 = vld [vmem:[%s11366_s5 + $0xf28] sm:$0xff]  ;;  %v6351_v23 = vld [vmem:[%s11366_s5 + $0xd70] sm:$0xff]  ;;  %v6405_v50 = vld [vmem:[%s11366_s5 + $0xf20] sm:$0xff] }
 0x658   : > { %5149 = vmatpush1.msra.mxu0 %v6313_v19  ;;  %5236 = vmatpush1.msra.mxu1 %v6367_v46  ;;  %v6350_v19 = vld [vmem:[%s11366_s5 + $0xd68] sm:$0xff]  ;;  %v6404_v46 = vld [vmem:[%s11366_s5 + $0xf18] sm:$0xff] }
 0x659   : > { %5150 = vmatprep.subr.mxu0 %v6312_v25  ;;  %5237 = vmatprep.subr.mxu1 %v6366_v37  ;;  %v6349_v25 = vld [vmem:[%s11366_s5 + $0xd60] sm:$0xff]  ;;  %v6403_v37 = vld [vmem:[%s11366_s5 + $0xf10] sm:$0xff] }
 0x65a   : > { %5151 = vmatpush1.msra.mxu0 %v6311_v31  ;;  %5238 = vmatpush1.msra.mxu1 %v6365_v62  ;;  %v6348_v31 = vld [vmem:[%s11366_s5 + $0xd58] sm:$0xff]  ;;  %v6402_v62 = vld [vmem:[%s11366_s5 + $0xf08] sm:$0xff] }
 0x65b   : > { %5152 = vmatprep.subr.mxu0 %v6310_v16  ;;  %5239 = vmatprep.subr.mxu1 %v6364_v41  ;;  %v6347_v16 = vld [vmem:[%s11366_s5 + $0xd50] sm:$0xff]  ;;  %v6401_v41 = vld [vmem:[%s11366_s5 + $0xf00] sm:$0xff] }
 0x65c   : > { %5153 = vmatpush1.msra.mxu0 %v6309_v9  ;;  %5240 = vmatpush1.msra.mxu1 %v6363_v28  ;;  %v6346_v9 = vld [vmem:[%s11366_s5 + $0xd48] sm:$0xff]  ;;  %v6400_v28 = vld [vmem:[%s11366_s5 + $0xef8] sm:$0xff] }
 0x65d   : > { %5154 = vmatprep.subr.mxu0 %v6308_v3  ;;  %5241 = vmatprep.subr.mxu1 %v6362_v30  ;;  %v6345_v3 = vld [vmem:[%s11366_s5 + $0xd40] sm:$0xff]  ;;  %v6399_v30 = vld [vmem:[%s11366_s5 + $0xef0] sm:$0xff] }
 0x65e   : > { %5155 = vmatpush1.msra.mxu0 %v6307_v54  ;;  %5242 = vmatpush1.msra.mxu1 %v6361_v13  ;;  %v6344_v54 = vld [vmem:[%s11366_s5 + $0xd38] sm:$0xff]  ;;  %v6398_v13 = vld [vmem:[%s11366_s5 + $0xee8] sm:$0xff] }
 0x65f   : > { %5156 = vmatprep.subr.mxu0 %v6306_v33  ;;  %5243 = vmatprep.subr.mxu1 %v6360_v48  ;;  %v6343_v33 = vld [vmem:[%s11366_s5 + $0xd30] sm:$0xff]  ;;  %v6397_v48 = vld [vmem:[%s11366_s5 + $0xee0] sm:$0xff] }
 0x660   : > { %5157 = vmatpush1.msra.mxu0 %v6305_v47  ;;  %5244 = vmatpush1.msra.mxu1 %v6359_v6  ;;  %v6342_v47 = vld [vmem:[%s11366_s5 + $0xd28] sm:$0xff]  ;;  %v6396_v6 = vld [vmem:[%s11366_s5 + $0xed8] sm:$0xff] }
 0x661   : > { %5158 = vmatprep.subr.mxu0 %v6304_v39  ;;  %5245 = vmatprep.subr.mxu1 %v6358_v26  ;;  %v6341_v39 = vld [vmem:[%s11366_s5 + $0xd20] sm:$0xff]  ;;  %v6395_v26 = vld [vmem:[%s11366_s5 + $0xed0] sm:$0xff] }
 0x662   : > { %5159 = vmatpush1.msra.mxu0 %v6303_v52  ;;  %5246 = vmatpush1.msra.mxu1 %v6357_v43  ;;  %v6340_v52 = vld [vmem:[%s11366_s5 + $0xd18] sm:$0xff]  ;;  %v6394_v43 = vld [vmem:[%s11366_s5 + $0xec8] sm:$0xff] }
 0x663   : > { %5160 = vmatprep.subr.mxu0 %v6302_v38  ;;  %5247 = vmatprep.subr.mxu1 %v6356_v1  ;;  %v6339_v38 = vld [vmem:[%s11366_s5 + $0xd10] sm:$0xff]  ;;  %v6393_v1 = vld [vmem:[%s11366_s5 + $0xec0] sm:$0xff] }
 0x664   : > { %5161 = vmatpush1.msra.mxu0 %v6301_v10  ;;  %5248 = vmatpush1.msra.mxu1 %v6355_v21  ;;  %v6338_v10 = vld [vmem:[%s11366_s5 + $0xd08] sm:$0xff]  ;;  %v6392_v21 = vld [vmem:[%s11366_s5 + $0xeb8] sm:$0xff] }
 0x665   : > { %5162 = vmatprep.subr.mxu0 %v6300_v8  ;;  %5249 = vmatprep.subr.mxu1 %v6354_v27  ;;  %v6337_v8 = vld [vmem:[%s11366_s5 + $0xd00] sm:$0xff]  ;;  %v6391_v27 = vld [vmem:[%s11366_s5 + $0xeb0] sm:$0xff] }
 0x666   : > { %5163 = vmatpush1.msra.mxu0 %v6299_v40  ;;  %5250 = vmatpush1.msra.mxu1 %v6353_v57  ;;  %v6336_v40 = vld [vmem:[%s11366_s5 + $0xcf8] sm:$0xff]  ;;  %v6390_v57 = vld [vmem:[%s11366_s5 + $0xea8] sm:$0xff] }
 0x667   : > { %5164 = vmatprep.subr.mxu0 %v6298_v35  ;;  %5251 = vmatprep.subr.mxu1 %v6416_v32  ;;  %v6335_v35 = vld [vmem:[%s11366_s5 + $0xcf0] sm:$0xff]  ;;  %v6389_v32 = vld [vmem:[%s11366_s5 + $0xea0] sm:$0xff] }
 0x668   : > { %5165 = vmatpush1.msra.mxu0 %v6297_v55  ;;  %5252 = vmatpush2.msra.mxu1 %v6415_v36  ;;  %v6334_v55 = vld [vmem:[%s11366_s5 + $0xce8] sm:$0xff]  ;;  %v6388_v36 = vld [vmem:[%s11366_s5 + $0xe98] sm:$0xff] }
 0x669   : > { %5166 = vmatprep.subr.mxu0 %v6296_v11  ;;  %5253 = vmatprep.subr.mxu1 %v6414_v7  ;;  %v6333_v11 = vld [vmem:[%s11366_s5 + $0xce0] sm:$0xff]  ;;  %v6387_v7 = vld [vmem:[%s11366_s5 + $0xe90] sm:$0xff] }
 0x66a   : > { %5167 = vmatpush1.msra.mxu0 %v6295_v42  ;;  %5254 = vmatpush2.msra.mxu1 %v6413_v60  ;;  %v6332_v42 = vld [vmem:[%s11366_s5 + $0xcd8] sm:$0xff]  ;;  %v6386_v60 = vld [vmem:[%s11366_s5 + $0xe88] sm:$0xff] }
 0x66b   : > { %5168 = vmatprep.subr.mxu0 %v6294_v20  ;;  %5255 = vmatprep.subr.mxu1 %v6412_v18  ;;  %v6331_v20 = vld [vmem:[%s11366_s5 + $0xcd0] sm:$0xff]  ;;  %v6385_v18 = vld [vmem:[%s11366_s5 + $0xe80] sm:$0xff] }
 0x66c   : > { %5169 = vmatpush1.msra.mxu0 %v6293_v58  ;;  %5256 = vmatpush2.msra.mxu1 %v6411_v4  ;;  %v6330_v58 = vld [vmem:[%s11366_s5 + $0xcc8] sm:$0xff]  ;;  %v6329_v4 = vld [vmem:[%s11366_s5 + $0xcc0] sm:$0xff] }
 0x66d   : > { %5170 = vmatprep.subr.mxu0 %v6292_v5  ;;  %5257 = vmatprep.subr.mxu1 %v6410_v22  ;;  %v6328_v5 = vld [vmem:[%s11366_s5 + $0xcb8] sm:$0xff]  ;;  %v6327_v22 = vld [vmem:[%s11366_s5 + $0xcb0] sm:$0xff] }
 0x66e   : > { %5171 = vmatpush1.msra.mxu0 %v6291_v59  ;;  %5258 = vmatpush2.msra.mxu1 %v6409_v0  ;;  %v6326_v59 = vld [vmem:[%s11366_s5 + $0xca8] sm:$0xff]  ;;  %v6325_v0 = vld [vmem:[%s11366_s5 + $0xca0] sm:$0xff] }
 0x66f   : > { %5172 = vmatprep.subr.mxu0 %v6290_v17  ;;  %5259 = vmatprep.subr.mxu1 %v6408_v56  ;;  %v6322_v17 = vld [vmem:[%s11366_s5 + $0xc88] sm:$0xff]  ;;  %v6321_v56 = vld [vmem:[%s11366_s5 + $0xc80] sm:$0xff] }
 0x670   : > { %5173 = vmatpush1.msra.mxu0 %v6289_v51  ;;  %5260 = vmatpush2.msra.mxu1 %v6407_v34  ;;  %v6448_v51 = vld [vmem:[%s11366_s5 + $0x1078] sm:$0xff]  ;;  %v6446_v34 = vld [vmem:[%s11366_s5 + $0x1068] sm:$0xff] }
 0x671   : > { %5174 = vmatprep.subr.mxu0 %v6352_v29  ;;  %5261 = vmatprep.subr.mxu1 %v6406_v2  ;;  %v6445_v29 = vld [vmem:[%s11366_s5 + $0x1060] sm:$0xff]  ;;  %v6444_v2 = vld [vmem:[%s11366_s5 + $0x1058] sm:$0xff] }
 0x672   : > { %5175 = vmatpush2.msra.mxu0 %v6351_v23  ;;  %5262 = vmatpush2.msra.mxu1 %v6405_v50  ;;  %v6443_v23 = vld [vmem:[%s11366_s5 + $0x1050] sm:$0xff]  ;;  %v6440_v50 = vld [vmem:[%s11366_s5 + $0x1038] sm:$0xff] }
 0x673   : > { %5176 = vmatprep.subr.mxu0 %v6350_v19  ;;  %5263 = vmatprep.subr.mxu1 %v6404_v46  ;;  %v6439_v19 = vld [vmem:[%s11366_s5 + $0x1030] sm:$0xff]  ;;  %v6437_v46 = vld [vmem:[%s11366_s5 + $0x1020] sm:$0xff] }
 0x674   : > { %5177 = vmatpush2.msra.mxu0 %v6349_v25  ;;  %5264 = vmatpush2.msra.mxu1 %v6403_v37  ;;  %v6435_v25 = vld [vmem:[%s11366_s5 + $0x1010] sm:$0xff]  ;;  %v6434_v37 = vld [vmem:[%s11366_s5 + $0x1008] sm:$0xff] }
 0x675   : > { %5178 = vmatprep.subr.mxu0 %v6348_v31  ;;  %5265 = vmatprep.subr.mxu1 %v6402_v62  ;;  %v6433_v31 = vld [vmem:[%s11366_s5 + $0x1000] sm:$0xff]  ;;  %v6432_v62 = vld [vmem:[%s11366_s5 + $0xff8] sm:$0xff] }
 0x676   : > { %5179 = vmatpush2.msra.mxu0 %v6347_v16  ;;  %5266 = vmatpush2.msra.mxu1 %v6401_v41  ;;  %v6431_v16 = vld [vmem:[%s11366_s5 + $0xff0] sm:$0xff]  ;;  %v6430_v41 = vld [vmem:[%s11366_s5 + $0xfe8] sm:$0xff] }
 0x677   : > { %5180 = vmatprep.subr.mxu0 %v6346_v9  ;;  %5267 = vmatprep.subr.mxu1 %v6400_v28  ;;  %v6429_v9 = vld [vmem:[%s11366_s5 + $0xfe0] sm:$0xff]  ;;  %v6428_v28 = vld [vmem:[%s11366_s5 + $0xfd8] sm:$0xff] }
 0x678   : > { %5181 = vmatpush2.msra.mxu0 %v6345_v3  ;;  %5268 = vmatpush2.msra.mxu1 %v6399_v30  ;;  %v6427_v3 = vld [vmem:[%s11366_s5 + $0xfd0] sm:$0xff]  ;;  %v6426_v30 = vld [vmem:[%s11366_s5 + $0xfc8] sm:$0xff] }
 0x679   : > { %5182 = vmatprep.subr.mxu0 %v6344_v54  ;;  %5269 = vmatprep.subr.mxu1 %v6398_v13  ;;  %v6425_v54 = vld [vmem:[%s11366_s5 + $0xfc0] sm:$0xff]  ;;  %v6424_v13 = vld [vmem:[%s11366_s5 + $0xfb8] sm:$0xff] }
 0x67a   : > { %5183 = vmatpush2.msra.mxu0 %v6343_v33  ;;  %5270 = vmatpush2.msra.mxu1 %v6397_v48  ;;  %v6423_v33 = vld [vmem:[%s11366_s5 + $0xfb0] sm:$0xff]  ;;  %v6422_v48 = vld [vmem:[%s11366_s5 + $0xfa8] sm:$0xff] }
 0x67b   : > { %5184 = vmatprep.subr.mxu0 %v6342_v47  ;;  %5271 = vmatprep.subr.mxu1 %v6396_v6  ;;  %v6421_v47 = vld [vmem:[%s11366_s5 + $0xfa0] sm:$0xff]  ;;  %v6420_v6 = vld [vmem:[%s11366_s5 + $0xf98] sm:$0xff] }
 0x67c   : > { %5185 = vmatpush2.msra.mxu0 %v6341_v39  ;;  %5272 = vmatpush2.msra.mxu1 %v6395_v26  ;;  %v6419_v39 = vld [vmem:[%s11366_s5 + $0xf90] sm:$0xff]  ;;  %v6418_v26 = vld [vmem:[%s11366_s5 + $0xf88] sm:$0xff] }
 0x67d   : > { %5186 = vmatprep.subr.mxu0 %v6340_v52  ;;  %5273 = vmatprep.subr.mxu1 %v6394_v43  ;;  %v6417_v52 = vld [vmem:[%s11366_s5 + $0xf80] sm:$0xff]  ;;  %v6472_v43 = vld [vmem:[%s11366_s5 + $0x1138] sm:$0xff] }
 0x67e   : > { %5187 = vmatpush2.msra.mxu0 %v6339_v38  ;;  %5274 = vmatpush2.msra.mxu1 %v6393_v1  ;;  %v6471_v38 = vld [vmem:[%s11366_s5 + $0x1130] sm:$0xff]  ;;  %v6470_v1 = vld [vmem:[%s11366_s5 + $0x1128] sm:$0xff] }
 0x67f   : > { %5188 = vmatprep.subr.mxu0 %v6338_v10  ;;  %5275 = vmatprep.subr.mxu1 %v6392_v21  ;;  %v6469_v10 = vld [vmem:[%s11366_s5 + $0x1120] sm:$0xff]  ;;  %v6468_v21 = vld [vmem:[%s11366_s5 + $0x1118] sm:$0xff] }
 0x680   : > { %5189 = vmatpush2.msra.mxu0 %v6337_v8  ;;  %5276 = vmatpush2.msra.mxu1 %v6391_v27  ;;  %v6467_v8 = vld [vmem:[%s11366_s5 + $0x1110] sm:$0xff]  ;;  %v6466_v27 = vld [vmem:[%s11366_s5 + $0x1108] sm:$0xff] }
 0x681   : > { %5190 = vmatprep.subr.mxu0 %v6336_v40  ;;  %5277 = vmatprep.subr.mxu1 %v6390_v57  ;;  %v6465_v40 = vld [vmem:[%s11366_s5 + $0x1100] sm:$0xff]  ;;  %v6464_v57 = vld [vmem:[%s11366_s5 + $0x10f8] sm:$0xff] }
 0x682   : > { %5191 = vmatpush2.msra.mxu0 %v6335_v35  ;;  %5278 = vmatpush2.msra.mxu1 %v6389_v32  ;;  %v6463_v35 = vld [vmem:[%s11366_s5 + $0x10f0] sm:$0xff]  ;;  %v6462_v32 = vld [vmem:[%s11366_s5 + $0x10e8] sm:$0xff] }
 0x683   : > { %5192 = vmatprep.subr.mxu0 %v6334_v55  ;;  %5279 = vmatprep.subr.mxu1 %v6388_v36  ;;  %v6461_v55 = vld [vmem:[%s11366_s5 + $0x10e0] sm:$0xff]  ;;  %v6460_v36 = vld [vmem:[%s11366_s5 + $0x10d8] sm:$0xff] }
 0x684   : > { %5193 = vmatpush2.msra.mxu0 %v6333_v11  ;;  %5280 = vmatpush2.msra.mxu1 %v6387_v7  ;;  %v6459_v11 = vld [vmem:[%s11366_s5 + $0x10d0] sm:$0xff]  ;;  %v6458_v7 = vld [vmem:[%s11366_s5 + $0x10c8] sm:$0xff] }
 0x685   : > { %5194 = vmatprep.subr.mxu0 %v6332_v42  ;;  %5281 = vmatprep.subr.mxu1 %v6386_v60  ;;  %v6457_v42 = vld [vmem:[%s11366_s5 + $0x10c0] sm:$0xff]  ;;  %v6456_v60 = vld [vmem:[%s11366_s5 + $0x10b8] sm:$0xff] }
 0x686   : > { %5195 = vmatpush2.msra.mxu0 %v6331_v20  ;;  %5282 = vmatpush2.msra.mxu1 %v6385_v18  ;;  %v6455_v20 = vld [vmem:[%s11366_s5 + $0x10b0] sm:$0xff]  ;;  %v6454_v18 = vld [vmem:[%s11366_s5 + $0x10a8] sm:$0xff] }
 0x687   : > { %5196 = vmatprep.subr.mxu0 %v6330_v58  ;;  %5284 = vmatmul.mubr.f32.vlgmr.msra.gmra.mxu1 %v10003_v61  ;;  %v6324_v61 = vld [vmem:[%s11366_s5 + $0xc98] sm:$0xff]  ;;  %v6453_v58 = vld [vmem:[%s11366_s5 + $0x10a0] sm:$0xff] }
 0x688   : > { %5197 = vmatpush2.msra.mxu0 %v6329_v4  ;;  %5289 = vmatprep.mubr.f32.mxu1 %v10019_v12  ;;  %v6323_v12 = vld [vmem:[%s11366_s5 + $0xc90] sm:$0xff]  ;;  %v6452_v4 = vld [vmem:[%s11366_s5 + $0x1098] sm:$0xff] }
 0x689   : > { %5198 = vmatprep.subr.mxu0 %v6328_v5  ;;  %v6451_v5 = vld [vmem:[%s11366_s5 + $0x1090] sm:$0xff] }
 0x68a   : > { %5199 = vmatpush2.msra.mxu0 %v6327_v22  ;;  %v6450_v22 = vld [vmem:[%s11366_s5 + $0x1088] sm:$0xff] }
 0x68b   : > { %5200 = vmatprep.subr.mxu0 %v6326_v59  ;;  %5290 = vmatmul.mubr.f32.gmra.mxu1 %v10021_v15  ;;  %v6447_v15 = vld [vmem:[%s11366_s5 + $0x1070] sm:$0xff]  ;;  %v6449_v59 = vld [vmem:[%s11366_s5 + $0x1080] sm:$0xff] }
 0x68c   : > { %5201 = vmatpush2.msra.mxu0 %v6325_v0 }
 0x68d   : > { %5202 = vmatprep.subr.mxu0 %v6324_v61 }
 0x68e   : > { %5203 = vmatpush2.msra.mxu0 %v6323_v12  ;;  %v4449_v12 = vpop.f32.mrf.mxu1 }
 0x68f   : > { %5204 = vmatprep.subr.mxu0 %v6322_v17 }
 0x690   : > { %5205 = vmatpush2.msra.mxu0 %v6321_v56  ;;  %v4372_v0 = vpop.f32.mrf.mxu0  ;;  %v4451_v56 = vpop.f32.mrf.mxu1 }
 0x691   : > { %5207 = vmatmul.mubr.f32.vlgmr.msra.gmra.mxu0 %v10052_v63  ;;  %5296 = vmatprep.subr.mxu0 %v6448_v51  ;;  %v6442_v63 = vld [vmem:[%s11366_s5 + $0x1048] sm:$0xff] }
 0x692   : > { %5212 = vmatprep.mubr.f32.mxu0 %v10068_v53  ;;  %5297 = vmatpush1.msra.mxu0 %v6447_v15  ;;  %v6441_v53 = vld [vmem:[%s11366_s5 + $0x1040] sm:$0xff]  ;;  %v4374_v61 = vpop.f32.mrf.mxu0  ;;  %v4455_v15 = vpop.f32.mrf.mxu1 }
 0x693   : > { %5298 = vmatprep.subr.mxu0 %v6446_v34 }
 0x694   : > { %5299 = vmatpush1.msra.mxu0 %v6445_v29  ;;  %v4457_v29 = vpop.f32.mrf.mxu1 }
 0x695   : > { %5213 = vmatmul.mubr.f32.gmra.mxu0 %v10085_v14  ;;  %5300 = vmatprep.subr.mxu0 %v6444_v2  ;;  %v6438_v14 = vld [vmem:[%s11366_s5 + $0x1028] sm:$0xff]  ;;  %v4378_v17 = vpop.f32.mrf.mxu0 }
 0x696   : > { %5301 = vmatpush1.msra.mxu0 %v6443_v23  ;;  %6473 = vmatprep.mubr.msk.f32.mxu0 %vm4299_vm4, %v10123_v24  ;;  %v6436_v24 = vld [vmem:[%s11366_s5 + $0x1018] sm:$0xff] }
 0x697   : > { %5302 = vmatprep.subr.mxu0 %v6442_v63  ;;  %v4380_v51 = vpop.f32.mrf.mxu0 }
 0x698   : > { %5303 = vmatpush1.msra.mxu0 %v6441_v53 }
 0x699   : > { %5304 = vmatprep.subr.mxu0 %v6440_v50 }
 0x69a   : > { %5305 = vmatpush1.msra.mxu0 %v6439_v19 }
 0x69b   : > { %5306 = vmatprep.subr.mxu0 %v6438_v14 }
 0x69c   : > { %5307 = vmatpush1.msra.mxu0 %v6437_v46 }
 0x69d   : > { %5308 = vmatprep.subr.mxu0 %v6436_v24 }
 0x69e   : > { %5309 = vmatpush1.msra.mxu0 %v6435_v25 }
 0x69f   : > { %5310 = vmatprep.subr.mxu0 %v6434_v37 }
 0x6a0   : > { %5311 = vmatpush1.msra.mxu0 %v6433_v31 }
 0x6a1   : > { %5312 = vmatprep.subr.mxu0 %v6432_v62 }
 0x6a2   : > { %5313 = vmatpush1.msra.mxu0 %v6431_v16 }
 0x6a3   : > { %5314 = vmatprep.subr.mxu0 %v6430_v41 }
 0x6a4   : > { %5315 = vmatpush1.msra.mxu0 %v6429_v9 }
 0x6a5   : > { %5316 = vmatprep.subr.mxu0 %v6428_v28 }
 0x6a6   : > { %5317 = vmatpush1.msra.mxu0 %v6427_v3 }
 0x6a7   : > { %5318 = vmatprep.subr.mxu0 %v6426_v30 }
 0x6a8   : > { %5319 = vmatpush1.msra.mxu0 %v6425_v54  ;;  %v4450_v54 = vadd.f32 %v4449_v12, %v4372_v0 }
 0x6a9   : > { %5320 = vmatprep.subr.mxu0 %v6424_v13 }
 0x6aa   : > { %5321 = vmatpush1.msra.mxu0 %v6423_v33 }
 0x6ab   : > { %5322 = vmatprep.subr.mxu0 %v6422_v48  ;;  %v4452_v48 = vadd.f32 %v4451_v56, %v4374_v61 }
 0x6ac   : > { %5323 = vmatpush1.msra.mxu0 %v6421_v47 }
 0x6ad   : > { %5324 = vmatprep.subr.mxu0 %v6420_v6 }
 0x6ae   : > { %5325 = vmatpush1.msra.mxu0 %v6419_v39 }
 0x6af   : > { %5326 = vmatprep.subr.mxu0 %v6418_v26 }
 0x6b0   : > { %5327 = vmatpush1.msra.mxu0 %v6417_v52 }
 0x6b1   : > { %5336 = vmatprep.subr.mxu0 %v6472_v43  ;;  %v4456_v43 = vadd.f32 %v4455_v15, %v4378_v17 }
 0x6b2   : > { %5337 = vmatpush2.msra.mxu0 %v6471_v38 }
 0x6b3   : > { %5338 = vmatprep.subr.mxu0 %v6470_v1 }
 0x6b4   : > { %5339 = vmatpush2.msra.mxu0 %v6469_v10 }
 0x6b5   : > { %5340 = vmatprep.subr.mxu0 %v6468_v21 }
 0x6b6   : > { %5341 = vmatpush2.msra.mxu0 %v6467_v8 }
 0x6b7   : > { %5342 = vmatprep.subr.mxu0 %v6466_v27 }
 0x6b8   : > { %5343 = vmatpush2.msra.mxu0 %v6465_v40 }
 0x6b9   : > { %5344 = vmatprep.subr.mxu0 %v6464_v57  ;;  %v4458_v57 = vadd.f32 %v4457_v29, %v4380_v51 }
 0x6ba   : > { %5345 = vmatpush2.msra.mxu0 %v6463_v35 }
 0x6bb   : > { %5346 = vmatprep.subr.mxu0 %v6462_v32 }
 0x6bc   : > { %5347 = vmatpush2.msra.mxu0 %v6461_v55 }
 0x6bd   : > { %5348 = vmatprep.subr.mxu0 %v6460_v36 }
 0x6be   : > { %5349 = vmatpush2.msra.mxu0 %v6459_v11 }
 0x6bf   : > { %5350 = vmatprep.subr.mxu0 %v6458_v7 }
 0x6c0   : > { %5351 = vmatpush2.msra.mxu0 %v6457_v42 }
 0x6c1   : > { %5352 = vmatprep.subr.mxu0 %v6456_v60 }
 0x6c2   : > { %5353 = vmatpush2.msra.mxu0 %v6455_v20 }
 0x6c3   : > { %5354 = vmatprep.subr.mxu0 %v6454_v18 }
 0x6c4   : > { %5355 = vmatpush2.msra.mxu0 %v6453_v58 }
 0x6c5   : > { %5356 = vmatprep.subr.mxu0 %v6452_v4 }
 0x6c6   : > { %5357 = vmatpush2.msra.mxu0 %v6451_v5 }
 0x6c7   : > { %5358 = vmatprep.subr.mxu0 %v6450_v22  ;;  %v4788_v23 = vpop.f32.mrf.mxu1 }
 0x6c8   : > { %5359 = vmatpush2.msra.mxu0 %v6449_v59 }
 0x6c9   : > { %5361 = vmatmul.mubr.f32.vlgmr.msra.gmra.mxu0 %v10408_v49  ;;  %v4790_v53 = vpop.f32.mrf.mxu1 }
 0x6ca   : > { %6474 = vmatprep.mubr.msk.f32.mxu0 %vm4299_vm4, %v10416_v45  ;;  %v4526_v34 = vpop.f32.mrf.mxu0 }
 0x6cb   : > { %v4527_v39 = vadd.f32 %v4526_v34, %v4450_v54 }
 0x6cc   : > { %v4528_v2 = vpop.f32.mrf.mxu0 }
 0x6cd   : > { %5367 = vmatmul.mubr.f32.gmra.mxu0 %v10447_v44  ;;  %v4794_v49 = vpop.f32.mrf.mxu1  ;;  %v4529_v38 = vadd.f32 %v4528_v2, %v4452_v48 }
 0x6cf   : > { %v4796_v14 = vpop.f32.mrf.mxu1 }
 0x6d0   : > { %v4532_v63 = vpop.f32.mrf.mxu0 }
 0x6d1   : > { %v4533_v35 = vadd.f32 %v4532_v63, %v4456_v43 }
 0x6d2   : > { %v4534_v50 = vpop.f32.mrf.mxu0 }
 0x6d3   : > { %v4535_v60 = vadd.f32 %v4534_v50, %v4458_v57 }
 0x703   : > { %v4942_v46 = vpop.f32.mrf.mxu1 }
 0x705   : > { %v4944_v24 = vpop.f32.mrf.mxu1 }
 0x708   : > { %v4948_v37 = vpop.f32.mrf.mxu1 }
 0x70a   : > { %v4950_v62 = vpop.f32.mrf.mxu1 }
 0x70f   : > { %v4865_v19 = vpop.f32.mrf.mxu0 }
 0x710   : > { %v4866_v9 = vadd.f32 %v4865_v19, %v4788_v23 }
 0x711   : > { %v4867_v45 = vpop.f32.mrf.mxu0 }
 0x712   : > { %v4868_v28 = vadd.f32 %v4867_v45, %v4790_v53  ;;  %v4943_v13 = vadd.f32 %v4942_v46, %v4866_v9 }
 0x714   : > { %v4871_v44 = vpop.f32.mrf.mxu0  ;;  %v4945_v47 = vadd.f32 %v4944_v24, %v4868_v28  ;;  %v4953_v27 = vmax.f32 %v4527_v39, %v4943_v13 }
 0x715   : > { %v4872_v33 = vadd.f32 %v4871_v44, %v4794_v49 }
 0x716   : > { %v4873_v25 = vpop.f32.mrf.mxu0  ;;  %v4954_v32 = vmax.f32 %v4529_v38, %v4945_v47 }
 0x717   : > { %v4874_v26 = vadd.f32 %v4873_v25, %v4796_v14  ;;  %v4949_v21 = vadd.f32 %v4948_v37, %v4872_v33 }
 0x719   : > { %v4951_v36 = vadd.f32 %v4950_v62, %v4874_v26  ;;  %v4955_v5 = vmax.f32 %v4533_v35, %v4949_v21 }
 0x71b   : > { %v4956_v61 = vmax.f32 %v4535_v60, %v4951_v36 }
 0x747   : > { %v5285_v41 = vpop.f32.mrf.mxu1 }
 0x749   : > { %v5287_v30 = vpop.f32.mrf.mxu1 }
 0x74b   : > { %v5291_v1 = vpop.f32.mrf.mxu1 }
 0x74d   : > { %v5293_v20 = vpop.f32.mrf.mxu1 }
 0x751   : > { %v5208_v31 = vpop.f32.mrf.mxu0 }
 0x752   : > { %v5286_v52 = vadd.f32 %v5285_v41, %v5208_v31 }
 0x753   : > { %v5210_v16 = vpop.f32.mrf.mxu0 }
 0x754   : > { %v5288_v8 = vadd.f32 %v5287_v30, %v5210_v16 }
 0x755   : > { %v5214_v3 = vpop.f32.mrf.mxu0 }
 0x756   : > { %v5292_v11 = vadd.f32 %v5291_v1, %v5214_v3 }
 0x757   : > { %v5216_v6 = vpop.f32.mrf.mxu0 }
 0x758   : > { %v5294_v58 = vadd.f32 %v5293_v20, %v5216_v6 }
 0x789   : > { %v5362_v10 = vpop.f32.mrf.mxu0 }
 0x78a   : > { %v5363_v40 = vadd.f32 %v5362_v10, %v5286_v52 }
 0x78b   : > { %v5364_v55 = vpop.f32.mrf.mxu0 }
 0x78c   : > { %v5373_v7 = vmax.f32 %v4953_v27, %v5363_v40  ;;  %v5365_v42 = vadd.f32 %v5364_v55, %v5288_v8 }
 0x78d   : > { %v5368_v18 = vpop.f32.mrf.mxu0 }
 0x78e   : > { %5377 = vst [vmem:[%s251_s18] sm:$0xff] %v5373_v7  ;;  %v5374_v4 = vmax.f32 %v4954_v32, %v5365_v42  ;;  %v5369_v22 = vadd.f32 %v5368_v18, %v5292_v11 }
 0x78f   : > { %v5370_v59 = vpop.f32.mrf.mxu0 }
 0x790   : > { %5378 = vst.msk [vmem:[%s251_s18 + $0x8] sm:$0xff] %vm4299_vm4, %v5374_v4  ;;  %v5375_v0 = vmax.f32 %v4955_v5, %v5369_v22  ;;  %v5371_v12 = vadd.f32 %v5370_v59, %v5294_v58 }
 0x792   : > { %5379 = vst [vmem:[%s251_s18 + $0x10] sm:$0x3f] %v5375_v0  ;;  %v5376_v17 = vmax.f32 %v4956_v61, %v5371_v12 }
 0x794   : > { %5381 = vst.msk [vmem:[%s251_s18 + $0x18] sm:$0x3f] %vm5380_vm5, %v5376_v17 }
 0x795 PF: > { %s16_s21 = sadd.s32 1, %s6518_s21  }
 0x796   : > { %p13_p4 = scmp.ge.s32.totalorder %s16_s21, 4  }
 0x798   :  { %15 = sbr.rel (!%p13_p4) target bundleno = 1 (0x1), region = 86 }

</bundles_post_ra>
